<compile_context>
chip_gen: v7x
topology: tpu7x:2x2x1
jax: 0.10.0
libtpu: 0.0.40
codegen_flags: <defaults>
</compile_context>

<pallas_src>
import math
import functools

import jax
import jax.numpy as jnp
from jax import lax
from jax.experimental import pallas as pl
from jax.experimental.pallas import tpu as pltpu


# ----------------------------- kernel helpers ------------------------------


def _layer_norm(x2d, gamma, beta, eps=1e-5):
    """LayerNorm over the feature axis; one-pass mean / E[x^2] statistics."""
    n = x2d.shape[-1]
    inv_n = 1.0 / n
    s = jnp.sum(x2d, axis=-1, keepdims=True)
    ss = jnp.sum(x2d * x2d, axis=-1, keepdims=True)
    mu = s * inv_n
    var = ss * inv_n - mu * mu
    return (x2d - mu) * lax.rsqrt(var + eps) * gamma + beta


def _attention(q, k, v, wo_ref, bo_ref, bb, sq, sk, *,
               num_heads, d_k, cd, approx):
    """Multi-head attention core on row-packed, already-projected q/k/v.

    q: (bb*sq, D) f32 (1/sqrt(d_k) already folded into W_q/b_q),
    k, v: (bb*sk, D) f32.  Returns (bb*sq, D) f32.
    Each head's context is accumulated straight into the output projection:
    no VMEM ctx scratch, no 32-lane masked scatter stores.
    """
    d = num_heads * d_k
    rows_q = bb * sq
    qc = q.astype(cd)
    kc = k.astype(cd)
    vc = v.astype(cd)

    out = jnp.zeros((rows_q, d), jnp.float32)
    # TODO(synk): a fully head-batched dot_general over (b, h) would remove the
    # per-head lane slices below; kept as a small static unroll (H=4) because
    # the 3-D single-batch einsums and leading-dim reshapes are the
    # known-safe Mosaic lowering path at these shapes.
    for h in range(num_heads):
        sl = slice(h * d_k, (h + 1) * d_k)
        qh = qc[:, sl].reshape(bb, sq, d_k)
        kh = kc[:, sl].reshape(bb, sk, d_k)
        vh = vc[:, sl].reshape(bb, sk, d_k)

        # NT scores (contract last dims) -- no explicit K transpose.
        sc = jnp.einsum("bqd,bkd->bqk", qh, kh,
                        preferred_element_type=jnp.float32)        # (bb, sq, sk)

        # numerically-stable softmax; one reciprocal per row (EUP when approx).
        m = jnp.max(sc, axis=-1, keepdims=True)
        p = jnp.exp(sc - m)
        p = p * pl.reciprocal(jnp.sum(p, axis=-1, keepdims=True), approx=approx)

        ch = jnp.einsum("bqk,bkd->bqd", p.astype(cd), vh,
                        preferred_element_type=jnp.float32)        # (bb, sq, d_k)

        # Fold this head's context into the output projection (accumulated
        # partial matmul over a sublane-aligned 32-row slice of W_o).
        out = out + jnp.dot(ch.reshape(rows_q, d_k).astype(cd), wo_ref[sl, :],
                            preferred_element_type=jnp.float32)

    return out + bo_ref[...]


# -------------------------------- kernel -----------------------------------


def _decoder_layer_kernel(
        x_ref, enc_ref,
        s_wqkv, s_bqkv, s_wo, s_bo,                  # self-attention (fused QKV)
        c_wq, c_bq, c_wkv, c_bkv, c_wo, c_bo,        # cross-attention (fused KV)
        fw1, fb1, fw2, fb2,                          # feed-forward
        g1, b1, g2, b2, g3, b3,                      # layer-norm gamma / beta
        o_ref,                                       # output block
        *, num_heads, d_k, compute_dtype, approx_recip):
    bb, sq, d = x_ref.shape
    se = enc_ref.shape[1]
    cd = compute_dtype

    # Row-pack (bb, S, D) -> (bb*S, D): every projection / FFN matmul feeds
    # bb*S rows into the MXU M dimension.
    x = x_ref[...].reshape(bb * sq, d)
    enc = enc_ref[...].reshape(bb * se, d)

    # --- 1. self-attention (Q = K = V = x) + residual + LayerNorm1 ----------
    # TODO(synk): optional tgt_mask not plumbed through (module default None);
    # a causal mask would be an additive -inf bias before the softmax max/exp.
    qkv = (jnp.dot(x.astype(cd), s_wqkv[...],
                   preferred_element_type=jnp.float32) + s_bqkv[...])
    sa = _attention(qkv[:, :d], qkv[:, d:2 * d], qkv[:, 2 * d:],
                    s_wo, s_bo, bb, sq, sq,
                    num_heads=num_heads, d_k=d_k, cd=cd, approx=approx_recip)
    # TODO(synk): dropout is eval-mode identity (train-mode RNG not implemented).
    x = _layer_norm(x + sa, g1[...], b1[...])

    # --- 2. cross-attention (Q = x, K = V = enc) + residual + LayerNorm2 ----
    # TODO(synk): optional src_mask not plumbed through (module default None).
    qc = (jnp.dot(x.astype(cd), c_wq[...],
                  preferred_element_type=jnp.float32) + c_bq[...])
    kv = (jnp.dot(enc.astype(cd), c_wkv[...],
                  preferred_element_type=jnp.float32) + c_bkv[...])
    ca = _attention(qc, kv[:, :d], kv[:, d:],
                    c_wo, c_bo, bb, sq, se,
                    num_heads=num_heads, d_k=d_k, cd=cd, approx=approx_recip)
    x = _layer_norm(x + ca, g2[...], b2[...])

    # --- 3. position-wise feed-forward + residual + LayerNorm3 --------------
    # TODO(synk): for large d_ff, K-tile this over Dff chunks with an f32
    # accumulator instead of materializing the full (bb*S, Dff) hidden.
    h = jnp.maximum(
        jnp.dot(x.astype(cd), fw1[...],
                preferred_element_type=jnp.float32) + fb1[...], 0.0)
    ff = jnp.dot(h.astype(cd), fw2[...],
                 preferred_element_type=jnp.float32) + fb2[...]
    x = _layer_norm(x + ff, g3[...], b3[...])

    o_ref[...] = x.reshape(bb, sq, d).astype(o_ref.dtype)


# ------------------------------- wrapper ------------------------------------


def _pick_block_batch(batch, seq, *, target_rows=512, min_grid_steps=2):
    """Largest divisor of `batch` with packed rows (bb*seq) <= target_rows while
    keeping >= min_grid_steps grid steps (v7x has 2 TensorCores to feed)."""
    best = 1
    for bb in range(1, batch + 1):
        if batch % bb:
            continue
        if bb * seq > max(target_rows, seq):
            continue
        if batch // bb < min_grid_steps and bb != 1:
            continue
        best = bb
    return best


def decoder_layer(x, enc_output, params, *, num_heads, block_batch=None,
                  compute_dtype=jnp.float32, approx_recip=None):
    """x: (B, S, D), enc_output: (B, S_enc, D).  Weights stored as (in, out).

    compute_dtype: MXU-operand dtype (jnp.bfloat16 for v6e/v7x peak throughput;
    accumulation, residuals and LayerNorm stay f32 either way).
    """
    B, S, D = x.shape
    Be, Se, De = enc_output.shape
    assert Be == B and De == D and D % num_heads == 0
    d_k = D // num_heads
    Dff = params["ffn_w1"].shape[1]
    if approx_recip is None:
        approx_recip = compute_dtype != jnp.float32

    if block_batch is None:
        block_batch = _pick_block_batch(B, S)
    assert B % block_batch == 0
    grid = (B // block_batch,)

    # --- one-time host-side parameter prep -------------------------------
    # QKV fusion, KV fusion for cross-attn, 1/sqrt(d_k) folded into W_q / b_q,
    # MXU-operand dtype cast.  Biases stay f32 (added to f32 accumulators).
    f32 = jnp.float32
    scale = 1.0 / math.sqrt(d_k)
    sa, ca = params["self_attn"], params["cross_attn"]
    s_wqkv = jnp.concatenate([sa["wq"] * scale, sa["wk"], sa["wv"]],
                             axis=1).astype(compute_dtype)
    s_bqkv = jnp.concatenate([sa["bq"] * scale, sa["bk"], sa["bv"]],
                             axis=1).astype(f32)
    s_wo = sa["wo"].astype(compute_dtype)
    s_bo = sa["bo"].astype(f32)
    c_wq = (ca["wq"] * scale).astype(compute_dtype)
    c_bq = (ca["bq"] * scale).astype(f32)
    c_wkv = jnp.concatenate([ca["wk"], ca["wv"]], axis=1).astype(compute_dtype)
    c_bkv = jnp.concatenate([ca["bk"], ca["bv"]], axis=1).astype(f32)
    c_wo = ca["wo"].astype(compute_dtype)
    c_bo = ca["bo"].astype(f32)
    fw1 = params["ffn_w1"].astype(compute_dtype)
    fb1 = params["ffn_b1"].astype(f32)
    fw2 = params["ffn_w2"].astype(compute_dtype)
    fb2 = params["ffn_b2"].astype(f32)

    kernel = functools.partial(_decoder_layer_kernel,
                               num_heads=num_heads, d_k=d_k,
                               compute_dtype=compute_dtype,
                               approx_recip=approx_recip)

    def const2d(shape):
        return pl.BlockSpec(shape, lambda b: (0, 0))

    x_spec = pl.BlockSpec((block_batch, S, D), lambda b: (b, 0, 0))
    enc_spec = pl.BlockSpec((block_batch, Se, D), lambda b: (b, 0, 0))
    o_spec = pl.BlockSpec((block_batch, S, D), lambda b: (b, 0, 0))
    # TODO(synk): at realistic D (>=1024) load the constant-index weights once
    # via memory_space=pl.ANY + a single async copy (or pipeline_mode single
    # buffering) to avoid double-buffering them in VMEM; noise at D=128.

    in_specs = [
        x_spec, enc_spec,
        const2d((D, 3 * D)), const2d((1, 3 * D)), const2d((D, D)), const2d((1, D)),
        const2d((D, D)), const2d((1, D)), const2d((D, 2 * D)), const2d((1, 2 * D)),
        const2d((D, D)), const2d((1, D)),
        const2d((D, Dff)), const2d((1, Dff)), const2d((Dff, D)), const2d((1, D)),
        const2d((1, D)), const2d((1, D)), const2d((1, D)), const2d((1, D)),
        const2d((1, D)), const2d((1, D)),
    ]

    args = [x, enc_output,
            s_wqkv, s_bqkv, s_wo, s_bo,
            c_wq, c_bq, c_wkv, c_bkv, c_wo, c_bo,
            fw1, fb1, fw2, fb2,
            params["ln1_g"], params["ln1_b"],
            params["ln2_g"], params["ln2_b"],
            params["ln3_g"], params["ln3_b"]]

    return pl.pallas_call(
        kernel,
        out_shape=jax.ShapeDtypeStruct((B, S, D), x.dtype),
        grid_spec=pltpu.PrefetchScalarGridSpec(
            num_scalar_prefetch=0,
            grid=grid,
            in_specs=in_specs,
            out_specs=o_spec,
        ),
        compiler_params=pltpu.CompilerParams(
            dimension_semantics=("parallel",),
            vmem_limit_bytes=32 * 1024 * 1024),
    )(*args)


# ------------------------------ reference -----------------------------------


def _reference(x, enc, params, *, num_heads):
    """Plain-JAX (f32) mirror of the PyTorch DecoderLayer forward (eval mode)."""
    D = x.shape[-1]
    d_k = D // num_heads

    def lin(t, w, b):
        return t @ w + b

    def mha(q_in, kv_in, p):
        q = lin(q_in, p["wq"], p["bq"])
        k = lin(kv_in, p["wk"], p["bk"])
        v = lin(kv_in, p["wv"], p["bv"])

        def split(t):
            b_, s_, _ = t.shape
            return t.reshape(b_, s_, num_heads, d_k).transpose(0, 2, 1, 3)

        qh, kh, vh = split(q), split(k), split(v)
        sc = jnp.einsum("bhqd,bhkd->bhqk", qh, kh) / math.sqrt(d_k)
        pr = jax.nn.softmax(sc, axis=-1)
        ctx = jnp.einsum("bhqk,bhkd->bhqd", pr, vh)
        ctx = ctx.transpose(0, 2, 1, 3).reshape(q_in.shape[0], q_in.shape[1], D)
        return lin(ctx, p["wo"], p["bo"])

    def ln(t, g, b, eps=1e-5):
        mu = t.mean(-1, keepdims=True)
        var = ((t - mu) ** 2).mean(-1, keepdims=True)
        return (t - mu) / jnp.sqrt(var + eps) * g + b

    h = ln(x + mha(x, x, params["self_attn"]), params["ln1_g"], params["ln1_b"])
    h = ln(h + mha(h, enc, params["cross_attn"]), params["ln2_g"], params["ln2_b"])
    mid = jax.nn.relu(lin(h, params["ffn_w1"], params["ffn_b1"]))
    ffo = lin(mid, params["ffn_w2"], params["ffn_b2"])
    return ln(h + ffo, params["ln3_g"], params["ln3_b"])


# --------------------------------- main --------------------------------------


if __name__ == "__main__":
    # batch=4 so the chosen block_batch=2 gives a 2-step parallel grid (feeds
    # both v7x TensorCores) while each step still packs 128 rows per matmul.
    batch, seq, enc_seq = 4, 64, 64
    d_model, num_heads, d_ff = 128, 4, 256   # lane-dense feature dims (x128)

    keys = iter(jax.random.split(jax.random.PRNGKey(0), 40))

    def u(shape, bound):
        return jax.random.uniform(next(keys), shape, jnp.float32,
                                  minval=-bound, maxval=bound)

    bd = 1.0 / math.sqrt(d_model)   # PyTorch nn.Linear init bound (fan_in = d_model)
    bf = 1.0 / math.sqrt(d_ff)      # fc2 (fan_in = d_ff)

    def attn_params():
        return {"wq": u((d_model, d_model), bd), "bq": u((1, d_model), bd),
                "wk": u((d_model, d_model), bd), "bk": u((1, d_model), bd),
                "wv": u((d_model, d_model), bd), "bv": u((1, d_model), bd),
                "wo": u((d_model, d_model), bd), "bo": u((1, d_model), bd)}

    params = {
        "self_attn": attn_params(),
        "cross_attn": attn_params(),
        "ffn_w1": u((d_model, d_ff), bd), "ffn_b1": u((1, d_ff), bd),
        "ffn_w2": u((d_ff, d_model), bf), "ffn_b2": u((1, d_model), bf),
        # PyTorch LayerNorm inits gamma=1, beta=0; perturb slightly so the
        # affine path is actually exercised (still deterministic).
        "ln1_g": 1.0 + 0.05 * u((1, d_model), 1.0), "ln1_b": 0.05 * u((1, d_model), 1.0),
        "ln2_g": 1.0 + 0.05 * u((1, d_model), 1.0), "ln2_b": 0.05 * u((1, d_model), 1.0),
        "ln3_g": 1.0 + 0.05 * u((1, d_model), 1.0), "ln3_b": 0.05 * u((1, d_model), 1.0),
    }

    x = jax.random.normal(next(keys), (batch, seq, d_model), jnp.float32)
    enc_out = jax.random.normal(next(keys), (batch, enc_seq, d_model), jnp.float32)

    ref = _reference(x, enc_out, params, num_heads=num_heads)

    # f32 MXU operands: exact check against the f32 reference.
    out_f32 = decoder_layer(x, enc_out, params, num_heads=num_heads,
                            compute_dtype=jnp.float32)
    out_f32 = jax.block_until_ready(out_f32)
    assert out_f32.shape == (batch, seq, d_model)
    assert jnp.allclose(out_f32, ref, atol=1e-4, rtol=1e-4), "f32 mismatch vs reference"

    # bf16 MXU operands (v6e/v7x fast path): f32 accumulation, looser tolerance.
    out_bf16 = decoder_layer(x, enc_out, params, num_heads=num_heads,
                             compute_dtype=jnp.bfloat16)
    out_bf16 = jax.block_until_ready(out_bf16)
    assert out_bf16.shape == (batch, seq, d_model)
    assert jnp.allclose(out_bf16, ref, atol=5e-2, rtol=5e-2), "bf16 mismatch vs reference"

    print("KERNEL_OK")
</pallas_src>

<mosaic_0001>
module attributes {stable_mosaic.version = 11 : i64} {
  func.func @_decoder_layer_kernel(%arg0: i32, %arg1: memref<2x64x128xf32, #tpu.memory_space<vmem>>, %arg2: memref<2x64x128xf32, #tpu.memory_space<vmem>>, %arg3: memref<128x384xf32, #tpu.memory_space<vmem>>, %arg4: memref<1x384xf32, #tpu.memory_space<vmem>>, %arg5: memref<128x128xf32, #tpu.memory_space<vmem>>, %arg6: memref<1x128xf32, #tpu.memory_space<vmem>>, %arg7: memref<128x128xf32, #tpu.memory_space<vmem>>, %arg8: memref<1x128xf32, #tpu.memory_space<vmem>>, %arg9: memref<128x256xf32, #tpu.memory_space<vmem>>, %arg10: memref<1x256xf32, #tpu.memory_space<vmem>>, %arg11: memref<128x128xf32, #tpu.memory_space<vmem>>, %arg12: memref<1x128xf32, #tpu.memory_space<vmem>>, %arg13: memref<128x256xf32, #tpu.memory_space<vmem>>, %arg14: memref<1x256xf32, #tpu.memory_space<vmem>>, %arg15: memref<256x128xf32, #tpu.memory_space<vmem>>, %arg16: memref<1x128xf32, #tpu.memory_space<vmem>>, %arg17: memref<1x128xf32, #tpu.memory_space<vmem>>, %arg18: memref<1x128xf32, #tpu.memory_space<vmem>>, %arg19: memref<1x128xf32, #tpu.memory_space<vmem>>, %arg20: memref<1x128xf32, #tpu.memory_space<vmem>>, %arg21: memref<1x128xf32, #tpu.memory_space<vmem>>, %arg22: memref<1x128xf32, #tpu.memory_space<vmem>>, %arg23: memref<2x64x128xf32, #tpu.memory_space<vmem>>) attributes {dimension_semantics = [#tpu.dimension_semantics<parallel>], iteration_bounds = array<i64: 2>, scalar_prefetch = 0 : i64, scratch_operands = 0 : i64, tpu.core_type = #tpu.core_type<tc>, window_params = [{transform_indices = @transform_0, window_bounds = array<i64: 2, 64, 128>}, {transform_indices = @transform_1, window_bounds = array<i64: 2, 64, 128>}, {pipeline_mode = #tpu.pipeline_mode<synchronous>, transform_indices = @transform_2, window_bounds = array<i64: 128, 384>}, {pipeline_mode = #tpu.pipeline_mode<synchronous>, transform_indices = @transform_3, window_bounds = array<i64: 1, 384>}, {pipeline_mode = #tpu.pipeline_mode<synchronous>, transform_indices = @transform_4, window_bounds = array<i64: 128, 128>}, {pipeline_mode = #tpu.pipeline_mode<synchronous>, transform_indices = @transform_5, window_bounds = array<i64: 1, 128>}, {pipeline_mode = #tpu.pipeline_mode<synchronous>, transform_indices = @transform_6, window_bounds = array<i64: 128, 128>}, {pipeline_mode = #tpu.pipeline_mode<synchronous>, transform_indices = @transform_7, window_bounds = array<i64: 1, 128>}, {pipeline_mode = #tpu.pipeline_mode<synchronous>, transform_indices = @transform_8, window_bounds = array<i64: 128, 256>}, {pipeline_mode = #tpu.pipeline_mode<synchronous>, transform_indices = @transform_9, window_bounds = array<i64: 1, 256>}, {pipeline_mode = #tpu.pipeline_mode<synchronous>, transform_indices = @transform_10, window_bounds = array<i64: 128, 128>}, {pipeline_mode = #tpu.pipeline_mode<synchronous>, transform_indices = @transform_11, window_bounds = array<i64: 1, 128>}, {pipeline_mode = #tpu.pipeline_mode<synchronous>, transform_indices = @transform_12, window_bounds = array<i64: 128, 256>}, {pipeline_mode = #tpu.pipeline_mode<synchronous>, transform_indices = @transform_13, window_bounds = array<i64: 1, 256>}, {pipeline_mode = #tpu.pipeline_mode<synchronous>, transform_indices = @transform_14, window_bounds = array<i64: 256, 128>}, {pipeline_mode = #tpu.pipeline_mode<synchronous>, transform_indices = @transform_15, window_bounds = array<i64: 1, 128>}, {pipeline_mode = #tpu.pipeline_mode<synchronous>, transform_indices = @transform_16, window_bounds = array<i64: 1, 128>}, {pipeline_mode = #tpu.pipeline_mode<synchronous>, transform_indices = @transform_17, window_bounds = array<i64: 1, 128>}, {pipeline_mode = #tpu.pipeline_mode<synchronous>, transform_indices = @transform_18, window_bounds = array<i64: 1, 128>}, {pipeline_mode = #tpu.pipeline_mode<synchronous>, transform_indices = @transform_19, window_bounds = array<i64: 1, 128>}, {pipeline_mode = #tpu.pipeline_mode<synchronous>, transform_indices = @transform_20, window_bounds = array<i64: 1, 128>}, {pipeline_mode = #tpu.pipeline_mode<synchronous>, transform_indices = @transform_21, window_bounds = array<i64: 1, 128>}, {transform_indices = @transform_22, window_bounds = array<i64: 2, 64, 128>}]} {
    %c0 = arith.constant 0 : index
    %c0_0 = arith.constant 0 : index
    %c0_1 = arith.constant 0 : index
    %0 = vector.load %arg1[%c0, %c0_0, %c0_1] : memref<2x64x128xf32, #tpu.memory_space<vmem>>, vector<2x64x128xf32>
    %1 = vector.shape_cast %0 : vector<2x64x128xf32> to vector<128x128xf32>
    %c0_2 = arith.constant 0 : index
    %c0_3 = arith.constant 0 : index
    %c0_4 = arith.constant 0 : index
    %2 = vector.load %arg2[%c0_2, %c0_3, %c0_4] : memref<2x64x128xf32, #tpu.memory_space<vmem>>, vector<2x64x128xf32>
    %3 = vector.shape_cast %2 : vector<2x64x128xf32> to vector<128x128xf32>
    %c0_5 = arith.constant 0 : index
    %c0_6 = arith.constant 0 : index
    %4 = vector.load %arg3[%c0_5, %c0_6] : memref<128x384xf32, #tpu.memory_space<vmem>>, vector<128x384xf32>
    %cst = arith.constant dense<0.000000e+00> : vector<128x384xf32>
    %5 = tpu.matmul %1, %4, %cst {dimension_numbers = #tpu.dot_dimension_numbers<[1], [0], [0], [1], [0, 0, 1, 1], [], []>} : vector<128x128xf32>, vector<128x384xf32>, vector<128x384xf32> -> vector<128x384xf32>
    %c0_7 = arith.constant 0 : index
    %c0_8 = arith.constant 0 : index
    %6 = vector.load %arg4[%c0_7, %c0_8] : memref<1x384xf32, #tpu.memory_space<vmem>>, vector<1x384xf32>
    %7 = vector.broadcast %6 : vector<1x384xf32> to vector<128x384xf32>
    %8 = arith.addf %5, %7 : vector<128x384xf32>
    %9 = vector.extract_strided_slice %8 {offsets = [0, 0], sizes = [128, 128], strides = [1, 1]} : vector<128x384xf32> to vector<128x128xf32>
    %10 = vector.extract_strided_slice %8 {offsets = [0, 128], sizes = [128, 128], strides = [1, 1]} : vector<128x384xf32> to vector<128x128xf32>
    %11 = vector.extract_strided_slice %8 {offsets = [0, 256], sizes = [128, 128], strides = [1, 1]} : vector<128x384xf32> to vector<128x128xf32>
    %cst_9 = arith.constant 0.000000e+00 : f32
    %12 = vector.broadcast %cst_9 : f32 to vector<128x128xf32>
    %13 = vector.extract_strided_slice %9 {offsets = [0, 0], sizes = [128, 32], strides = [1, 1]} : vector<128x128xf32> to vector<128x32xf32>
    %14 = vector.shape_cast %13 : vector<128x32xf32> to vector<2x64x32xf32>
    %15 = vector.extract_strided_slice %10 {offsets = [0, 0], sizes = [128, 32], strides = [1, 1]} : vector<128x128xf32> to vector<128x32xf32>
    %16 = vector.shape_cast %15 : vector<128x32xf32> to vector<2x64x32xf32>
    %17 = vector.extract_strided_slice %11 {offsets = [0, 0], sizes = [128, 32], strides = [1, 1]} : vector<128x128xf32> to vector<128x32xf32>
    %18 = vector.shape_cast %17 : vector<128x32xf32> to vector<2x64x32xf32>
    "tpu.trace_start"() <{level = 10 : i32, message = "bqd,bkd->bqk"}> : () -> ()
    %cst_10 = arith.constant dense<0.000000e+00> : vector<2x64x64xf32>
    %19 = tpu.matmul %14, %16, %cst_10 {dimension_numbers = #tpu.dot_dimension_numbers<[2], [2], [1], [1], [0, 0, 0, 1, 1, 1], [0], [0]>} : vector<2x64x32xf32>, vector<2x64x32xf32>, vector<2x64x64xf32> -> vector<2x64x64xf32>
    "tpu.trace_stop"() : () -> ()
    %cst_11 = arith.constant dense<0xFF800000> : vector<2x64xf32>
    %20 = vector.multi_reduction <maximumf>, %19, %cst_11 [2] : vector<2x64x64xf32> to vector<2x64xf32>
    %21 = vector.shape_cast %20 : vector<2x64xf32> to vector<2x64x1xf32>
    %22 = vector.broadcast %21 : vector<2x64x1xf32> to vector<2x64x64xf32>
    %23 = arith.subf %19, %22 : vector<2x64x64xf32>
    %24 = math.exp %23 : vector<2x64x64xf32>
    %cst_12 = arith.constant dense<0.000000e+00> : vector<2x64xf32>
    %25 = vector.multi_reduction <add>, %24, %cst_12 [2] : vector<2x64x64xf32> to vector<2x64xf32>
    %26 = vector.shape_cast %25 : vector<2x64xf32> to vector<2x64x1xf32>
    %27 = tpu.reciprocal %26 : vector<2x64x1xf32> -> vector<2x64x1xf32>
    %28 = vector.broadcast %27 : vector<2x64x1xf32> to vector<2x64x64xf32>
    %29 = arith.mulf %24, %28 : vector<2x64x64xf32>
    "tpu.trace_start"() <{level = 10 : i32, message = "bqk,bkd->bqd"}> : () -> ()
    %cst_13 = arith.constant dense<0.000000e+00> : vector<2x64x32xf32>
    %30 = tpu.matmul %29, %18, %cst_13 {dimension_numbers = #tpu.dot_dimension_numbers<[2], [1], [1], [2], [0, 0, 0, 1, 1, 2], [0], [0]>} : vector<2x64x64xf32>, vector<2x64x32xf32>, vector<2x64x32xf32> -> vector<2x64x32xf32>
    "tpu.trace_stop"() : () -> ()
    %31 = vector.shape_cast %30 : vector<2x64x32xf32> to vector<128x32xf32>
    %c0_14 = arith.constant 0 : index
    %c0_15 = arith.constant 0 : index
    %32 = vector.load %arg5[%c0_14, %c0_15] : memref<128x128xf32, #tpu.memory_space<vmem>>, vector<32x128xf32>
    %cst_16 = arith.constant dense<0.000000e+00> : vector<128x128xf32>
    %33 = tpu.matmul %31, %32, %cst_16 {dimension_numbers = #tpu.dot_dimension_numbers<[1], [0], [0], [1], [0, 0, 1, 1], [], []>} : vector<128x32xf32>, vector<32x128xf32>, vector<128x128xf32> -> vector<128x128xf32>
    %34 = arith.addf %12, %33 : vector<128x128xf32>
    %35 = vector.extract_strided_slice %9 {offsets = [0, 32], sizes = [128, 32], strides = [1, 1]} : vector<128x128xf32> to vector<128x32xf32>
    %36 = vector.shape_cast %35 : vector<128x32xf32> to vector<2x64x32xf32>
    %37 = vector.extract_strided_slice %10 {offsets = [0, 32], sizes = [128, 32], strides = [1, 1]} : vector<128x128xf32> to vector<128x32xf32>
    %38 = vector.shape_cast %37 : vector<128x32xf32> to vector<2x64x32xf32>
    %39 = vector.extract_strided_slice %11 {offsets = [0, 32], sizes = [128, 32], strides = [1, 1]} : vector<128x128xf32> to vector<128x32xf32>
    %40 = vector.shape_cast %39 : vector<128x32xf32> to vector<2x64x32xf32>
    "tpu.trace_start"() <{level = 10 : i32, message = "bqd,bkd->bqk"}> : () -> ()
    %cst_17 = arith.constant dense<0.000000e+00> : vector<2x64x64xf32>
    %41 = tpu.matmul %36, %38, %cst_17 {dimension_numbers = #tpu.dot_dimension_numbers<[2], [2], [1], [1], [0, 0, 0, 1, 1, 1], [0], [0]>} : vector<2x64x32xf32>, vector<2x64x32xf32>, vector<2x64x64xf32> -> vector<2x64x64xf32>
    "tpu.trace_stop"() : () -> ()
    %cst_18 = arith.constant dense<0xFF800000> : vector<2x64xf32>
    %42 = vector.multi_reduction <maximumf>, %41, %cst_18 [2] : vector<2x64x64xf32> to vector<2x64xf32>
    %43 = vector.shape_cast %42 : vector<2x64xf32> to vector<2x64x1xf32>
    %44 = vector.broadcast %43 : vector<2x64x1xf32> to vector<2x64x64xf32>
    %45 = arith.subf %41, %44 : vector<2x64x64xf32>
    %46 = math.exp %45 : vector<2x64x64xf32>
    %cst_19 = arith.constant dense<0.000000e+00> : vector<2x64xf32>
    %47 = vector.multi_reduction <add>, %46, %cst_19 [2] : vector<2x64x64xf32> to vector<2x64xf32>
    %48 = vector.shape_cast %47 : vector<2x64xf32> to vector<2x64x1xf32>
    %49 = tpu.reciprocal %48 : vector<2x64x1xf32> -> vector<2x64x1xf32>
    %50 = vector.broadcast %49 : vector<2x64x1xf32> to vector<2x64x64xf32>
    %51 = arith.mulf %46, %50 : vector<2x64x64xf32>
    "tpu.trace_start"() <{level = 10 : i32, message = "bqk,bkd->bqd"}> : () -> ()
    %cst_20 = arith.constant dense<0.000000e+00> : vector<2x64x32xf32>
    %52 = tpu.matmul %51, %40, %cst_20 {dimension_numbers = #tpu.dot_dimension_numbers<[2], [1], [1], [2], [0, 0, 0, 1, 1, 2], [0], [0]>} : vector<2x64x64xf32>, vector<2x64x32xf32>, vector<2x64x32xf32> -> vector<2x64x32xf32>
    "tpu.trace_stop"() : () -> ()
    %53 = vector.shape_cast %52 : vector<2x64x32xf32> to vector<128x32xf32>
    %c32 = arith.constant 32 : index
    %c0_21 = arith.constant 0 : index
    %54 = vector.load %arg5[%c32, %c0_21] : memref<128x128xf32, #tpu.memory_space<vmem>>, vector<32x128xf32>
    %cst_22 = arith.constant dense<0.000000e+00> : vector<128x128xf32>
    %55 = tpu.matmul %53, %54, %cst_22 {dimension_numbers = #tpu.dot_dimension_numbers<[1], [0], [0], [1], [0, 0, 1, 1], [], []>} : vector<128x32xf32>, vector<32x128xf32>, vector<128x128xf32> -> vector<128x128xf32>
    %56 = arith.addf %34, %55 : vector<128x128xf32>
    %57 = vector.extract_strided_slice %9 {offsets = [0, 64], sizes = [128, 32], strides = [1, 1]} : vector<128x128xf32> to vector<128x32xf32>
    %58 = vector.shape_cast %57 : vector<128x32xf32> to vector<2x64x32xf32>
    %59 = vector.extract_strided_slice %10 {offsets = [0, 64], sizes = [128, 32], strides = [1, 1]} : vector<128x128xf32> to vector<128x32xf32>
    %60 = vector.shape_cast %59 : vector<128x32xf32> to vector<2x64x32xf32>
    %61 = vector.extract_strided_slice %11 {offsets = [0, 64], sizes = [128, 32], strides = [1, 1]} : vector<128x128xf32> to vector<128x32xf32>
    %62 = vector.shape_cast %61 : vector<128x32xf32> to vector<2x64x32xf32>
    "tpu.trace_start"() <{level = 10 : i32, message = "bqd,bkd->bqk"}> : () -> ()
    %cst_23 = arith.constant dense<0.000000e+00> : vector<2x64x64xf32>
    %63 = tpu.matmul %58, %60, %cst_23 {dimension_numbers = #tpu.dot_dimension_numbers<[2], [2], [1], [1], [0, 0, 0, 1, 1, 1], [0], [0]>} : vector<2x64x32xf32>, vector<2x64x32xf32>, vector<2x64x64xf32> -> vector<2x64x64xf32>
    "tpu.trace_stop"() : () -> ()
    %cst_24 = arith.constant dense<0xFF800000> : vector<2x64xf32>
    %64 = vector.multi_reduction <maximumf>, %63, %cst_24 [2] : vector<2x64x64xf32> to vector<2x64xf32>
    %65 = vector.shape_cast %64 : vector<2x64xf32> to vector<2x64x1xf32>
    %66 = vector.broadcast %65 : vector<2x64x1xf32> to vector<2x64x64xf32>
    %67 = arith.subf %63, %66 : vector<2x64x64xf32>
    %68 = math.exp %67 : vector<2x64x64xf32>
    %cst_25 = arith.constant dense<0.000000e+00> : vector<2x64xf32>
    %69 = vector.multi_reduction <add>, %68, %cst_25 [2] : vector<2x64x64xf32> to vector<2x64xf32>
    %70 = vector.shape_cast %69 : vector<2x64xf32> to vector<2x64x1xf32>
    %71 = tpu.reciprocal %70 : vector<2x64x1xf32> -> vector<2x64x1xf32>
    %72 = vector.broadcast %71 : vector<2x64x1xf32> to vector<2x64x64xf32>
    %73 = arith.mulf %68, %72 : vector<2x64x64xf32>
    "tpu.trace_start"() <{level = 10 : i32, message = "bqk,bkd->bqd"}> : () -> ()
    %cst_26 = arith.constant dense<0.000000e+00> : vector<2x64x32xf32>
    %74 = tpu.matmul %73, %62, %cst_26 {dimension_numbers = #tpu.dot_dimension_numbers<[2], [1], [1], [2], [0, 0, 0, 1, 1, 2], [0], [0]>} : vector<2x64x64xf32>, vector<2x64x32xf32>, vector<2x64x32xf32> -> vector<2x64x32xf32>
    "tpu.trace_stop"() : () -> ()
    %75 = vector.shape_cast %74 : vector<2x64x32xf32> to vector<128x32xf32>
    %c64 = arith.constant 64 : index
    %c0_27 = arith.constant 0 : index
    %76 = vector.load %arg5[%c64, %c0_27] : memref<128x128xf32, #tpu.memory_space<vmem>>, vector<32x128xf32>
    %cst_28 = arith.constant dense<0.000000e+00> : vector<128x128xf32>
    %77 = tpu.matmul %75, %76, %cst_28 {dimension_numbers = #tpu.dot_dimension_numbers<[1], [0], [0], [1], [0, 0, 1, 1], [], []>} : vector<128x32xf32>, vector<32x128xf32>, vector<128x128xf32> -> vector<128x128xf32>
    %78 = arith.addf %56, %77 : vector<128x128xf32>
    %79 = vector.extract_strided_slice %9 {offsets = [0, 96], sizes = [128, 32], strides = [1, 1]} : vector<128x128xf32> to vector<128x32xf32>
    %80 = vector.shape_cast %79 : vector<128x32xf32> to vector<2x64x32xf32>
    %81 = vector.extract_strided_slice %10 {offsets = [0, 96], sizes = [128, 32], strides = [1, 1]} : vector<128x128xf32> to vector<128x32xf32>
    %82 = vector.shape_cast %81 : vector<128x32xf32> to vector<2x64x32xf32>
    %83 = vector.extract_strided_slice %11 {offsets = [0, 96], sizes = [128, 32], strides = [1, 1]} : vector<128x128xf32> to vector<128x32xf32>
    %84 = vector.shape_cast %83 : vector<128x32xf32> to vector<2x64x32xf32>
    "tpu.trace_start"() <{level = 10 : i32, message = "bqd,bkd->bqk"}> : () -> ()
    %cst_29 = arith.constant dense<0.000000e+00> : vector<2x64x64xf32>
    %85 = tpu.matmul %80, %82, %cst_29 {dimension_numbers = #tpu.dot_dimension_numbers<[2], [2], [1], [1], [0, 0, 0, 1, 1, 1], [0], [0]>} : vector<2x64x32xf32>, vector<2x64x32xf32>, vector<2x64x64xf32> -> vector<2x64x64xf32>
    "tpu.trace_stop"() : () -> ()
    %cst_30 = arith.constant dense<0xFF800000> : vector<2x64xf32>
    %86 = vector.multi_reduction <maximumf>, %85, %cst_30 [2] : vector<2x64x64xf32> to vector<2x64xf32>
    %87 = vector.shape_cast %86 : vector<2x64xf32> to vector<2x64x1xf32>
    %88 = vector.broadcast %87 : vector<2x64x1xf32> to vector<2x64x64xf32>
    %89 = arith.subf %85, %88 : vector<2x64x64xf32>
    %90 = math.exp %89 : vector<2x64x64xf32>
    %cst_31 = arith.constant dense<0.000000e+00> : vector<2x64xf32>
    %91 = vector.multi_reduction <add>, %90, %cst_31 [2] : vector<2x64x64xf32> to vector<2x64xf32>
    %92 = vector.shape_cast %91 : vector<2x64xf32> to vector<2x64x1xf32>
    %93 = tpu.reciprocal %92 : vector<2x64x1xf32> -> vector<2x64x1xf32>
    %94 = vector.broadcast %93 : vector<2x64x1xf32> to vector<2x64x64xf32>
    %95 = arith.mulf %90, %94 : vector<2x64x64xf32>
    "tpu.trace_start"() <{level = 10 : i32, message = "bqk,bkd->bqd"}> : () -> ()
    %cst_32 = arith.constant dense<0.000000e+00> : vector<2x64x32xf32>
    %96 = tpu.matmul %95, %84, %cst_32 {dimension_numbers = #tpu.dot_dimension_numbers<[2], [1], [1], [2], [0, 0, 0, 1, 1, 2], [0], [0]>} : vector<2x64x64xf32>, vector<2x64x32xf32>, vector<2x64x32xf32> -> vector<2x64x32xf32>
    "tpu.trace_stop"() : () -> ()
    %97 = vector.shape_cast %96 : vector<2x64x32xf32> to vector<128x32xf32>
    %c96 = arith.constant 96 : index
    %c0_33 = arith.constant 0 : index
    %98 = vector.load %arg5[%c96, %c0_33] : memref<128x128xf32, #tpu.memory_space<vmem>>, vector<32x128xf32>
    %cst_34 = arith.constant dense<0.000000e+00> : vector<128x128xf32>
    %99 = tpu.matmul %97, %98, %cst_34 {dimension_numbers = #tpu.dot_dimension_numbers<[1], [0], [0], [1], [0, 0, 1, 1], [], []>} : vector<128x32xf32>, vector<32x128xf32>, vector<128x128xf32> -> vector<128x128xf32>
    %100 = arith.addf %78, %99 : vector<128x128xf32>
    %c0_35 = arith.constant 0 : index
    %c0_36 = arith.constant 0 : index
    %101 = vector.load %arg6[%c0_35, %c0_36] : memref<1x128xf32, #tpu.memory_space<vmem>>, vector<1x128xf32>
    %102 = vector.broadcast %101 : vector<1x128xf32> to vector<128x128xf32>
    %103 = arith.addf %100, %102 : vector<128x128xf32>
    %104 = arith.addf %1, %103 : vector<128x128xf32>
    %c0_37 = arith.constant 0 : index
    %c0_38 = arith.constant 0 : index
    %105 = vector.load %arg17[%c0_37, %c0_38] : memref<1x128xf32, #tpu.memory_space<vmem>>, vector<1x128xf32>
    %c0_39 = arith.constant 0 : index
    %c0_40 = arith.constant 0 : index
    %106 = vector.load %arg18[%c0_39, %c0_40] : memref<1x128xf32, #tpu.memory_space<vmem>>, vector<1x128xf32>
    %cst_41 = arith.constant dense<0.000000e+00> : vector<128xf32>
    %107 = vector.multi_reduction <add>, %104, %cst_41 [1] : vector<128x128xf32> to vector<128xf32>
    %108 = vector.shape_cast %107 : vector<128xf32> to vector<128x1xf32>
    %109 = arith.mulf %104, %104 : vector<128x128xf32>
    %cst_42 = arith.constant dense<0.000000e+00> : vector<128xf32>
    %110 = vector.multi_reduction <add>, %109, %cst_42 [1] : vector<128x128xf32> to vector<128xf32>
    %111 = vector.shape_cast %110 : vector<128xf32> to vector<128x1xf32>
    %cst_43 = arith.constant 7.812500e-03 : f32
    %112 = vector.broadcast %cst_43 : f32 to vector<128x1xf32>
    %113 = arith.mulf %108, %112 : vector<128x1xf32>
    %cst_44 = arith.constant 7.812500e-03 : f32
    %114 = vector.broadcast %cst_44 : f32 to vector<128x1xf32>
    %115 = arith.mulf %111, %114 : vector<128x1xf32>
    %116 = arith.mulf %113, %113 : vector<128x1xf32>
    %117 = arith.subf %115, %116 : vector<128x1xf32>
    %118 = vector.broadcast %113 : vector<128x1xf32> to vector<128x128xf32>
    %119 = arith.subf %104, %118 : vector<128x128xf32>
    %cst_45 = arith.constant 9.99999974E-6 : f32
    %120 = vector.broadcast %cst_45 : f32 to vector<128x1xf32>
    %121 = arith.addf %117, %120 : vector<128x1xf32>
    %122 = math.rsqrt %121 : vector<128x1xf32>
    %123 = vector.broadcast %122 : vector<128x1xf32> to vector<128x128xf32>
    %124 = arith.mulf %119, %123 : vector<128x128xf32>
    %125 = vector.broadcast %105 : vector<1x128xf32> to vector<128x128xf32>
    %126 = arith.mulf %124, %125 : vector<128x128xf32>
    %127 = vector.broadcast %106 : vector<1x128xf32> to vector<128x128xf32>
    %128 = arith.addf %126, %127 : vector<128x128xf32>
    %c0_46 = arith.constant 0 : index
    %c0_47 = arith.constant 0 : index
    %129 = vector.load %arg7[%c0_46, %c0_47] : memref<128x128xf32, #tpu.memory_space<vmem>>, vector<128x128xf32>
    %cst_48 = arith.constant dense<0.000000e+00> : vector<128x128xf32>
    %130 = tpu.matmul %128, %129, %cst_48 {dimension_numbers = #tpu.dot_dimension_numbers<[1], [0], [0], [1], [0, 0, 1, 1], [], []>} : vector<128x128xf32>, vector<128x128xf32>, vector<128x128xf32> -> vector<128x128xf32>
    %c0_49 = arith.constant 0 : index
    %c0_50 = arith.constant 0 : index
    %131 = vector.load %arg8[%c0_49, %c0_50] : memref<1x128xf32, #tpu.memory_space<vmem>>, vector<1x128xf32>
    %132 = vector.broadcast %131 : vector<1x128xf32> to vector<128x128xf32>
    %133 = arith.addf %130, %132 : vector<128x128xf32>
    %c0_51 = arith.constant 0 : index
    %c0_52 = arith.constant 0 : index
    %134 = vector.load %arg9[%c0_51, %c0_52] : memref<128x256xf32, #tpu.memory_space<vmem>>, vector<128x256xf32>
    %cst_53 = arith.constant dense<0.000000e+00> : vector<128x256xf32>
    %135 = tpu.matmul %3, %134, %cst_53 {dimension_numbers = #tpu.dot_dimension_numbers<[1], [0], [0], [1], [0, 0, 1, 1], [], []>} : vector<128x128xf32>, vector<128x256xf32>, vector<128x256xf32> -> vector<128x256xf32>
    %c0_54 = arith.constant 0 : index
    %c0_55 = arith.constant 0 : index
    %136 = vector.load %arg10[%c0_54, %c0_55] : memref<1x256xf32, #tpu.memory_space<vmem>>, vector<1x256xf32>
    %137 = vector.broadcast %136 : vector<1x256xf32> to vector<128x256xf32>
    %138 = arith.addf %135, %137 : vector<128x256xf32>
    %139 = vector.extract_strided_slice %138 {offsets = [0, 0], sizes = [128, 128], strides = [1, 1]} : vector<128x256xf32> to vector<128x128xf32>
    %140 = vector.extract_strided_slice %138 {offsets = [0, 128], sizes = [128, 128], strides = [1, 1]} : vector<128x256xf32> to vector<128x128xf32>
    %cst_56 = arith.constant 0.000000e+00 : f32
    %141 = vector.broadcast %cst_56 : f32 to vector<128x128xf32>
    %142 = vector.extract_strided_slice %133 {offsets = [0, 0], sizes = [128, 32], strides = [1, 1]} : vector<128x128xf32> to vector<128x32xf32>
    %143 = vector.shape_cast %142 : vector<128x32xf32> to vector<2x64x32xf32>
    %144 = vector.extract_strided_slice %139 {offsets = [0, 0], sizes = [128, 32], strides = [1, 1]} : vector<128x128xf32> to vector<128x32xf32>
    %145 = vector.shape_cast %144 : vector<128x32xf32> to vector<2x64x32xf32>
    %146 = vector.extract_strided_slice %140 {offsets = [0, 0], sizes = [128, 32], strides = [1, 1]} : vector<128x128xf32> to vector<128x32xf32>
    %147 = vector.shape_cast %146 : vector<128x32xf32> to vector<2x64x32xf32>
    "tpu.trace_start"() <{level = 10 : i32, message = "bqd,bkd->bqk"}> : () -> ()
    %cst_57 = arith.constant dense<0.000000e+00> : vector<2x64x64xf32>
    %148 = tpu.matmul %143, %145, %cst_57 {dimension_numbers = #tpu.dot_dimension_numbers<[2], [2], [1], [1], [0, 0, 0, 1, 1, 1], [0], [0]>} : vector<2x64x32xf32>, vector<2x64x32xf32>, vector<2x64x64xf32> -> vector<2x64x64xf32>
    "tpu.trace_stop"() : () -> ()
    %cst_58 = arith.constant dense<0xFF800000> : vector<2x64xf32>
    %149 = vector.multi_reduction <maximumf>, %148, %cst_58 [2] : vector<2x64x64xf32> to vector<2x64xf32>
    %150 = vector.shape_cast %149 : vector<2x64xf32> to vector<2x64x1xf32>
    %151 = vector.broadcast %150 : vector<2x64x1xf32> to vector<2x64x64xf32>
    %152 = arith.subf %148, %151 : vector<2x64x64xf32>
    %153 = math.exp %152 : vector<2x64x64xf32>
    %cst_59 = arith.constant dense<0.000000e+00> : vector<2x64xf32>
    %154 = vector.multi_reduction <add>, %153, %cst_59 [2] : vector<2x64x64xf32> to vector<2x64xf32>
    %155 = vector.shape_cast %154 : vector<2x64xf32> to vector<2x64x1xf32>
    %156 = tpu.reciprocal %155 : vector<2x64x1xf32> -> vector<2x64x1xf32>
    %157 = vector.broadcast %156 : vector<2x64x1xf32> to vector<2x64x64xf32>
    %158 = arith.mulf %153, %157 : vector<2x64x64xf32>
    "tpu.trace_start"() <{level = 10 : i32, message = "bqk,bkd->bqd"}> : () -> ()
    %cst_60 = arith.constant dense<0.000000e+00> : vector<2x64x32xf32>
    %159 = tpu.matmul %158, %147, %cst_60 {dimension_numbers = #tpu.dot_dimension_numbers<[2], [1], [1], [2], [0, 0, 0, 1, 1, 2], [0], [0]>} : vector<2x64x64xf32>, vector<2x64x32xf32>, vector<2x64x32xf32> -> vector<2x64x32xf32>
    "tpu.trace_stop"() : () -> ()
    %160 = vector.shape_cast %159 : vector<2x64x32xf32> to vector<128x32xf32>
    %c0_61 = arith.constant 0 : index
    %c0_62 = arith.constant 0 : index
    %161 = vector.load %arg11[%c0_61, %c0_62] : memref<128x128xf32, #tpu.memory_space<vmem>>, vector<32x128xf32>
    %cst_63 = arith.constant dense<0.000000e+00> : vector<128x128xf32>
    %162 = tpu.matmul %160, %161, %cst_63 {dimension_numbers = #tpu.dot_dimension_numbers<[1], [0], [0], [1], [0, 0, 1, 1], [], []>} : vector<128x32xf32>, vector<32x128xf32>, vector<128x128xf32> -> vector<128x128xf32>
    %163 = arith.addf %141, %162 : vector<128x128xf32>
    %164 = vector.extract_strided_slice %133 {offsets = [0, 32], sizes = [128, 32], strides = [1, 1]} : vector<128x128xf32> to vector<128x32xf32>
    %165 = vector.shape_cast %164 : vector<128x32xf32> to vector<2x64x32xf32>
    %166 = vector.extract_strided_slice %139 {offsets = [0, 32], sizes = [128, 32], strides = [1, 1]} : vector<128x128xf32> to vector<128x32xf32>
    %167 = vector.shape_cast %166 : vector<128x32xf32> to vector<2x64x32xf32>
    %168 = vector.extract_strided_slice %140 {offsets = [0, 32], sizes = [128, 32], strides = [1, 1]} : vector<128x128xf32> to vector<128x32xf32>
    %169 = vector.shape_cast %168 : vector<128x32xf32> to vector<2x64x32xf32>
    "tpu.trace_start"() <{level = 10 : i32, message = "bqd,bkd->bqk"}> : () -> ()
    %cst_64 = arith.constant dense<0.000000e+00> : vector<2x64x64xf32>
    %170 = tpu.matmul %165, %167, %cst_64 {dimension_numbers = #tpu.dot_dimension_numbers<[2], [2], [1], [1], [0, 0, 0, 1, 1, 1], [0], [0]>} : vector<2x64x32xf32>, vector<2x64x32xf32>, vector<2x64x64xf32> -> vector<2x64x64xf32>
    "tpu.trace_stop"() : () -> ()
    %cst_65 = arith.constant dense<0xFF800000> : vector<2x64xf32>
    %171 = vector.multi_reduction <maximumf>, %170, %cst_65 [2] : vector<2x64x64xf32> to vector<2x64xf32>
    %172 = vector.shape_cast %171 : vector<2x64xf32> to vector<2x64x1xf32>
    %173 = vector.broadcast %172 : vector<2x64x1xf32> to vector<2x64x64xf32>
    %174 = arith.subf %170, %173 : vector<2x64x64xf32>
    %175 = math.exp %174 : vector<2x64x64xf32>
    %cst_66 = arith.constant dense<0.000000e+00> : vector<2x64xf32>
    %176 = vector.multi_reduction <add>, %175, %cst_66 [2] : vector<2x64x64xf32> to vector<2x64xf32>
    %177 = vector.shape_cast %176 : vector<2x64xf32> to vector<2x64x1xf32>
    %178 = tpu.reciprocal %177 : vector<2x64x1xf32> -> vector<2x64x1xf32>
    %179 = vector.broadcast %178 : vector<2x64x1xf32> to vector<2x64x64xf32>
    %180 = arith.mulf %175, %179 : vector<2x64x64xf32>
    "tpu.trace_start"() <{level = 10 : i32, message = "bqk,bkd->bqd"}> : () -> ()
    %cst_67 = arith.constant dense<0.000000e+00> : vector<2x64x32xf32>
    %181 = tpu.matmul %180, %169, %cst_67 {dimension_numbers = #tpu.dot_dimension_numbers<[2], [1], [1], [2], [0, 0, 0, 1, 1, 2], [0], [0]>} : vector<2x64x64xf32>, vector<2x64x32xf32>, vector<2x64x32xf32> -> vector<2x64x32xf32>
    "tpu.trace_stop"() : () -> ()
    %182 = vector.shape_cast %181 : vector<2x64x32xf32> to vector<128x32xf32>
    %c32_68 = arith.constant 32 : index
    %c0_69 = arith.constant 0 : index
    %183 = vector.load %arg11[%c32_68, %c0_69] : memref<128x128xf32, #tpu.memory_space<vmem>>, vector<32x128xf32>
    %cst_70 = arith.constant dense<0.000000e+00> : vector<128x128xf32>
    %184 = tpu.matmul %182, %183, %cst_70 {dimension_numbers = #tpu.dot_dimension_numbers<[1], [0], [0], [1], [0, 0, 1, 1], [], []>} : vector<128x32xf32>, vector<32x128xf32>, vector<128x128xf32> -> vector<128x128xf32>
    %185 = arith.addf %163, %184 : vector<128x128xf32>
    %186 = vector.extract_strided_slice %133 {offsets = [0, 64], sizes = [128, 32], strides = [1, 1]} : vector<128x128xf32> to vector<128x32xf32>
    %187 = vector.shape_cast %186 : vector<128x32xf32> to vector<2x64x32xf32>
    %188 = vector.extract_strided_slice %139 {offsets = [0, 64], sizes = [128, 32], strides = [1, 1]} : vector<128x128xf32> to vector<128x32xf32>
    %189 = vector.shape_cast %188 : vector<128x32xf32> to vector<2x64x32xf32>
    %190 = vector.extract_strided_slice %140 {offsets = [0, 64], sizes = [128, 32], strides = [1, 1]} : vector<128x128xf32> to vector<128x32xf32>
    %191 = vector.shape_cast %190 : vector<128x32xf32> to vector<2x64x32xf32>
    "tpu.trace_start"() <{level = 10 : i32, message = "bqd,bkd->bqk"}> : () -> ()
    %cst_71 = arith.constant dense<0.000000e+00> : vector<2x64x64xf32>
    %192 = tpu.matmul %187, %189, %cst_71 {dimension_numbers = #tpu.dot_dimension_numbers<[2], [2], [1], [1], [0, 0, 0, 1, 1, 1], [0], [0]>} : vector<2x64x32xf32>, vector<2x64x32xf32>, vector<2x64x64xf32> -> vector<2x64x64xf32>
    "tpu.trace_stop"() : () -> ()
    %cst_72 = arith.constant dense<0xFF800000> : vector<2x64xf32>
    %193 = vector.multi_reduction <maximumf>, %192, %cst_72 [2] : vector<2x64x64xf32> to vector<2x64xf32>
    %194 = vector.shape_cast %193 : vector<2x64xf32> to vector<2x64x1xf32>
    %195 = vector.broadcast %194 : vector<2x64x1xf32> to vector<2x64x64xf32>
    %196 = arith.subf %192, %195 : vector<2x64x64xf32>
    %197 = math.exp %196 : vector<2x64x64xf32>
    %cst_73 = arith.constant dense<0.000000e+00> : vector<2x64xf32>
    %198 = vector.multi_reduction <add>, %197, %cst_73 [2] : vector<2x64x64xf32> to vector<2x64xf32>
    %199 = vector.shape_cast %198 : vector<2x64xf32> to vector<2x64x1xf32>
    %200 = tpu.reciprocal %199 : vector<2x64x1xf32> -> vector<2x64x1xf32>
    %201 = vector.broadcast %200 : vector<2x64x1xf32> to vector<2x64x64xf32>
    %202 = arith.mulf %197, %201 : vector<2x64x64xf32>
    "tpu.trace_start"() <{level = 10 : i32, message = "bqk,bkd->bqd"}> : () -> ()
    %cst_74 = arith.constant dense<0.000000e+00> : vector<2x64x32xf32>
    %203 = tpu.matmul %202, %191, %cst_74 {dimension_numbers = #tpu.dot_dimension_numbers<[2], [1], [1], [2], [0, 0, 0, 1, 1, 2], [0], [0]>} : vector<2x64x64xf32>, vector<2x64x32xf32>, vector<2x64x32xf32> -> vector<2x64x32xf32>
    "tpu.trace_stop"() : () -> ()
    %204 = vector.shape_cast %203 : vector<2x64x32xf32> to vector<128x32xf32>
    %c64_75 = arith.constant 64 : index
    %c0_76 = arith.constant 0 : index
    %205 = vector.load %arg11[%c64_75, %c0_76] : memref<128x128xf32, #tpu.memory_space<vmem>>, vector<32x128xf32>
    %cst_77 = arith.constant dense<0.000000e+00> : vector<128x128xf32>
    %206 = tpu.matmul %204, %205, %cst_77 {dimension_numbers = #tpu.dot_dimension_numbers<[1], [0], [0], [1], [0, 0, 1, 1], [], []>} : vector<128x32xf32>, vector<32x128xf32>, vector<128x128xf32> -> vector<128x128xf32>
    %207 = arith.addf %185, %206 : vector<128x128xf32>
    %208 = vector.extract_strided_slice %133 {offsets = [0, 96], sizes = [128, 32], strides = [1, 1]} : vector<128x128xf32> to vector<128x32xf32>
    %209 = vector.shape_cast %208 : vector<128x32xf32> to vector<2x64x32xf32>
    %210 = vector.extract_strided_slice %139 {offsets = [0, 96], sizes = [128, 32], strides = [1, 1]} : vector<128x128xf32> to vector<128x32xf32>
    %211 = vector.shape_cast %210 : vector<128x32xf32> to vector<2x64x32xf32>
    %212 = vector.extract_strided_slice %140 {offsets = [0, 96], sizes = [128, 32], strides = [1, 1]} : vector<128x128xf32> to vector<128x32xf32>
    %213 = vector.shape_cast %212 : vector<128x32xf32> to vector<2x64x32xf32>
    "tpu.trace_start"() <{level = 10 : i32, message = "bqd,bkd->bqk"}> : () -> ()
    %cst_78 = arith.constant dense<0.000000e+00> : vector<2x64x64xf32>
    %214 = tpu.matmul %209, %211, %cst_78 {dimension_numbers = #tpu.dot_dimension_numbers<[2], [2], [1], [1], [0, 0, 0, 1, 1, 1], [0], [0]>} : vector<2x64x32xf32>, vector<2x64x32xf32>, vector<2x64x64xf32> -> vector<2x64x64xf32>
    "tpu.trace_stop"() : () -> ()
    %cst_79 = arith.constant dense<0xFF800000> : vector<2x64xf32>
    %215 = vector.multi_reduction <maximumf>, %214, %cst_79 [2] : vector<2x64x64xf32> to vector<2x64xf32>
    %216 = vector.shape_cast %215 : vector<2x64xf32> to vector<2x64x1xf32>
    %217 = vector.broadcast %216 : vector<2x64x1xf32> to vector<2x64x64xf32>
    %218 = arith.subf %214, %217 : vector<2x64x64xf32>
    %219 = math.exp %218 : vector<2x64x64xf32>
    %cst_80 = arith.constant dense<0.000000e+00> : vector<2x64xf32>
    %220 = vector.multi_reduction <add>, %219, %cst_80 [2] : vector<2x64x64xf32> to vector<2x64xf32>
    %221 = vector.shape_cast %220 : vector<2x64xf32> to vector<2x64x1xf32>
    %222 = tpu.reciprocal %221 : vector<2x64x1xf32> -> vector<2x64x1xf32>
    %223 = vector.broadcast %222 : vector<2x64x1xf32> to vector<2x64x64xf32>
    %224 = arith.mulf %219, %223 : vector<2x64x64xf32>
    "tpu.trace_start"() <{level = 10 : i32, message = "bqk,bkd->bqd"}> : () -> ()
    %cst_81 = arith.constant dense<0.000000e+00> : vector<2x64x32xf32>
    %225 = tpu.matmul %224, %213, %cst_81 {dimension_numbers = #tpu.dot_dimension_numbers<[2], [1], [1], [2], [0, 0, 0, 1, 1, 2], [0], [0]>} : vector<2x64x64xf32>, vector<2x64x32xf32>, vector<2x64x32xf32> -> vector<2x64x32xf32>
    "tpu.trace_stop"() : () -> ()
    %226 = vector.shape_cast %225 : vector<2x64x32xf32> to vector<128x32xf32>
    %c96_82 = arith.constant 96 : index
    %c0_83 = arith.constant 0 : index
    %227 = vector.load %arg11[%c96_82, %c0_83] : memref<128x128xf32, #tpu.memory_space<vmem>>, vector<32x128xf32>
    %cst_84 = arith.constant dense<0.000000e+00> : vector<128x128xf32>
    %228 = tpu.matmul %226, %227, %cst_84 {dimension_numbers = #tpu.dot_dimension_numbers<[1], [0], [0], [1], [0, 0, 1, 1], [], []>} : vector<128x32xf32>, vector<32x128xf32>, vector<128x128xf32> -> vector<128x128xf32>
    %229 = arith.addf %207, %228 : vector<128x128xf32>
    %c0_85 = arith.constant 0 : index
    %c0_86 = arith.constant 0 : index
    %230 = vector.load %arg12[%c0_85, %c0_86] : memref<1x128xf32, #tpu.memory_space<vmem>>, vector<1x128xf32>
    %231 = vector.broadcast %230 : vector<1x128xf32> to vector<128x128xf32>
    %232 = arith.addf %229, %231 : vector<128x128xf32>
    %233 = arith.addf %128, %232 : vector<128x128xf32>
    %c0_87 = arith.constant 0 : index
    %c0_88 = arith.constant 0 : index
    %234 = vector.load %arg19[%c0_87, %c0_88] : memref<1x128xf32, #tpu.memory_space<vmem>>, vector<1x128xf32>
    %c0_89 = arith.constant 0 : index
    %c0_90 = arith.constant 0 : index
    %235 = vector.load %arg20[%c0_89, %c0_90] : memref<1x128xf32, #tpu.memory_space<vmem>>, vector<1x128xf32>
    %cst_91 = arith.constant dense<0.000000e+00> : vector<128xf32>
    %236 = vector.multi_reduction <add>, %233, %cst_91 [1] : vector<128x128xf32> to vector<128xf32>
    %237 = vector.shape_cast %236 : vector<128xf32> to vector<128x1xf32>
    %238 = arith.mulf %233, %233 : vector<128x128xf32>
    %cst_92 = arith.constant dense<0.000000e+00> : vector<128xf32>
    %239 = vector.multi_reduction <add>, %238, %cst_92 [1] : vector<128x128xf32> to vector<128xf32>
    %240 = vector.shape_cast %239 : vector<128xf32> to vector<128x1xf32>
    %cst_93 = arith.constant 7.812500e-03 : f32
    %241 = vector.broadcast %cst_93 : f32 to vector<128x1xf32>
    %242 = arith.mulf %237, %241 : vector<128x1xf32>
    %cst_94 = arith.constant 7.812500e-03 : f32
    %243 = vector.broadcast %cst_94 : f32 to vector<128x1xf32>
    %244 = arith.mulf %240, %243 : vector<128x1xf32>
    %245 = arith.mulf %242, %242 : vector<128x1xf32>
    %246 = arith.subf %244, %245 : vector<128x1xf32>
    %247 = vector.broadcast %242 : vector<128x1xf32> to vector<128x128xf32>
    %248 = arith.subf %233, %247 : vector<128x128xf32>
    %cst_95 = arith.constant 9.99999974E-6 : f32
    %249 = vector.broadcast %cst_95 : f32 to vector<128x1xf32>
    %250 = arith.addf %246, %249 : vector<128x1xf32>
    %251 = math.rsqrt %250 : vector<128x1xf32>
    %252 = vector.broadcast %251 : vector<128x1xf32> to vector<128x128xf32>
    %253 = arith.mulf %248, %252 : vector<128x128xf32>
    %254 = vector.broadcast %234 : vector<1x128xf32> to vector<128x128xf32>
    %255 = arith.mulf %253, %254 : vector<128x128xf32>
    %256 = vector.broadcast %235 : vector<1x128xf32> to vector<128x128xf32>
    %257 = arith.addf %255, %256 : vector<128x128xf32>
    %c0_96 = arith.constant 0 : index
    %c0_97 = arith.constant 0 : index
    %258 = vector.load %arg13[%c0_96, %c0_97] : memref<128x256xf32, #tpu.memory_space<vmem>>, vector<128x256xf32>
    %cst_98 = arith.constant dense<0.000000e+00> : vector<128x256xf32>
    %259 = tpu.matmul %257, %258, %cst_98 {dimension_numbers = #tpu.dot_dimension_numbers<[1], [0], [0], [1], [0, 0, 1, 1], [], []>} : vector<128x128xf32>, vector<128x256xf32>, vector<128x256xf32> -> vector<128x256xf32>
    %c0_99 = arith.constant 0 : index
    %c0_100 = arith.constant 0 : index
    %260 = vector.load %arg14[%c0_99, %c0_100] : memref<1x256xf32, #tpu.memory_space<vmem>>, vector<1x256xf32>
    %261 = vector.broadcast %260 : vector<1x256xf32> to vector<128x256xf32>
    %262 = arith.addf %259, %261 : vector<128x256xf32>
    %cst_101 = arith.constant 0.000000e+00 : f32
    %263 = vector.broadcast %cst_101 : f32 to vector<128x256xf32>
    %264 = arith.maximumf %262, %263 : vector<128x256xf32>
    %c0_102 = arith.constant 0 : index
    %c0_103 = arith.constant 0 : index
    %265 = vector.load %arg15[%c0_102, %c0_103] : memref<256x128xf32, #tpu.memory_space<vmem>>, vector<256x128xf32>
    %cst_104 = arith.constant dense<0.000000e+00> : vector<128x128xf32>
    %266 = tpu.matmul %264, %265, %cst_104 {dimension_numbers = #tpu.dot_dimension_numbers<[1], [0], [0], [1], [0, 0, 1, 1], [], []>} : vector<128x256xf32>, vector<256x128xf32>, vector<128x128xf32> -> vector<128x128xf32>
    %c0_105 = arith.constant 0 : index
    %c0_106 = arith.constant 0 : index
    %267 = vector.load %arg16[%c0_105, %c0_106] : memref<1x128xf32, #tpu.memory_space<vmem>>, vector<1x128xf32>
    %268 = vector.broadcast %267 : vector<1x128xf32> to vector<128x128xf32>
    %269 = arith.addf %266, %268 : vector<128x128xf32>
    %270 = arith.addf %257, %269 : vector<128x128xf32>
    %c0_107 = arith.constant 0 : index
    %c0_108 = arith.constant 0 : index
    %271 = vector.load %arg21[%c0_107, %c0_108] : memref<1x128xf32, #tpu.memory_space<vmem>>, vector<1x128xf32>
    %c0_109 = arith.constant 0 : index
    %c0_110 = arith.constant 0 : index
    %272 = vector.load %arg22[%c0_109, %c0_110] : memref<1x128xf32, #tpu.memory_space<vmem>>, vector<1x128xf32>
    %cst_111 = arith.constant dense<0.000000e+00> : vector<128xf32>
    %273 = vector.multi_reduction <add>, %270, %cst_111 [1] : vector<128x128xf32> to vector<128xf32>
    %274 = vector.shape_cast %273 : vector<128xf32> to vector<128x1xf32>
    %275 = arith.mulf %270, %270 : vector<128x128xf32>
    %cst_112 = arith.constant dense<0.000000e+00> : vector<128xf32>
    %276 = vector.multi_reduction <add>, %275, %cst_112 [1] : vector<128x128xf32> to vector<128xf32>
    %277 = vector.shape_cast %276 : vector<128xf32> to vector<128x1xf32>
    %cst_113 = arith.constant 7.812500e-03 : f32
    %278 = vector.broadcast %cst_113 : f32 to vector<128x1xf32>
    %279 = arith.mulf %274, %278 : vector<128x1xf32>
    %cst_114 = arith.constant 7.812500e-03 : f32
    %280 = vector.broadcast %cst_114 : f32 to vector<128x1xf32>
    %281 = arith.mulf %277, %280 : vector<128x1xf32>
    %282 = arith.mulf %279, %279 : vector<128x1xf32>
    %283 = arith.subf %281, %282 : vector<128x1xf32>
    %284 = vector.broadcast %279 : vector<128x1xf32> to vector<128x128xf32>
    %285 = arith.subf %270, %284 : vector<128x128xf32>
    %cst_115 = arith.constant 9.99999974E-6 : f32
    %286 = vector.broadcast %cst_115 : f32 to vector<128x1xf32>
    %287 = arith.addf %283, %286 : vector<128x1xf32>
    %288 = math.rsqrt %287 : vector<128x1xf32>
    %289 = vector.broadcast %288 : vector<128x1xf32> to vector<128x128xf32>
    %290 = arith.mulf %285, %289 : vector<128x128xf32>
    %291 = vector.broadcast %271 : vector<1x128xf32> to vector<128x128xf32>
    %292 = arith.mulf %290, %291 : vector<128x128xf32>
    %293 = vector.broadcast %272 : vector<1x128xf32> to vector<128x128xf32>
    %294 = arith.addf %292, %293 : vector<128x128xf32>
    %295 = vector.shape_cast %294 : vector<128x128xf32> to vector<2x64x128xf32>
    %c0_116 = arith.constant 0 : index
    %c0_117 = arith.constant 0 : index
    %c0_118 = arith.constant 0 : index
    %296 = vector.load %arg23[%c0_116, %c0_117, %c0_118] : memref<2x64x128xf32, #tpu.memory_space<vmem>>, vector<2x64x128xf32>
    tpu.vector_store %arg23[%c0_116, %c0_117, %c0_118], %295 {strides = array<i32>} : memref<2x64x128xf32, #tpu.memory_space<vmem>>, vector<2x64x128xf32>,
    return
  }
  func.func @transform_0(%arg0: i32) -> (i32, i32, i32) {
    %c0_i32 = arith.constant 0 : i32
    %c0_i32_0 = arith.constant 0 : i32
    %c0_i32_1 = arith.constant 0 : i32
    return %arg0, %c0_i32, %c0_i32_0 : i32, i32, i32
  }
  func.func @transform_1(%arg0: i32) -> (i32, i32, i32) {
    %c0_i32 = arith.constant 0 : i32
    %c0_i32_0 = arith.constant 0 : i32
    %c0_i32_1 = arith.constant 0 : i32
    return %arg0, %c0_i32, %c0_i32_0 : i32, i32, i32
  }
  func.func @transform_2(%arg0: i32) -> (i32, i32) {
    %c0_i32 = arith.constant 0 : i32
    %c0_i32_0 = arith.constant 0 : i32
    %c0_i32_1 = arith.constant 0 : i32
    return %c0_i32, %c0_i32_0 : i32, i32
  }
  func.func @transform_3(%arg0: i32) -> (i32, i32) {
    %c0_i32 = arith.constant 0 : i32
    %c0_i32_0 = arith.constant 0 : i32
    %c0_i32_1 = arith.constant 0 : i32
    return %c0_i32, %c0_i32_0 : i32, i32
  }
  func.func @transform_4(%arg0: i32) -> (i32, i32) {
    %c0_i32 = arith.constant 0 : i32
    %c0_i32_0 = arith.constant 0 : i32
    %c0_i32_1 = arith.constant 0 : i32
    return %c0_i32, %c0_i32_0 : i32, i32
  }
  func.func @transform_5(%arg0: i32) -> (i32, i32) {
    %c0_i32 = arith.constant 0 : i32
    %c0_i32_0 = arith.constant 0 : i32
    %c0_i32_1 = arith.constant 0 : i32
    return %c0_i32, %c0_i32_0 : i32, i32
  }
  func.func @transform_6(%arg0: i32) -> (i32, i32) {
    %c0_i32 = arith.constant 0 : i32
    %c0_i32_0 = arith.constant 0 : i32
    %c0_i32_1 = arith.constant 0 : i32
    return %c0_i32, %c0_i32_0 : i32, i32
  }
  func.func @transform_7(%arg0: i32) -> (i32, i32) {
    %c0_i32 = arith.constant 0 : i32
    %c0_i32_0 = arith.constant 0 : i32
    %c0_i32_1 = arith.constant 0 : i32
    return %c0_i32, %c0_i32_0 : i32, i32
  }
  func.func @transform_8(%arg0: i32) -> (i32, i32) {
    %c0_i32 = arith.constant 0 : i32
    %c0_i32_0 = arith.constant 0 : i32
    %c0_i32_1 = arith.constant 0 : i32
    return %c0_i32, %c0_i32_0 : i32, i32
  }
  func.func @transform_9(%arg0: i32) -> (i32, i32) {
    %c0_i32 = arith.constant 0 : i32
    %c0_i32_0 = arith.constant 0 : i32
    %c0_i32_1 = arith.constant 0 : i32
    return %c0_i32, %c0_i32_0 : i32, i32
  }
  func.func @transform_10(%arg0: i32) -> (i32, i32) {
    %c0_i32 = arith.constant 0 : i32
    %c0_i32_0 = arith.constant 0 : i32
    %c0_i32_1 = arith.constant 0 : i32
    return %c0_i32, %c0_i32_0 : i32, i32
  }
  func.func @transform_11(%arg0: i32) -> (i32, i32) {
    %c0_i32 = arith.constant 0 : i32
    %c0_i32_0 = arith.constant 0 : i32
    %c0_i32_1 = arith.constant 0 : i32
    return %c0_i32, %c0_i32_0 : i32, i32
  }
  func.func @transform_12(%arg0: i32) -> (i32, i32) {
    %c0_i32 = arith.constant 0 : i32
    %c0_i32_0 = arith.constant 0 : i32
    %c0_i32_1 = arith.constant 0 : i32
    return %c0_i32, %c0_i32_0 : i32, i32
  }
  func.func @transform_13(%arg0: i32) -> (i32, i32) {
    %c0_i32 = arith.constant 0 : i32
    %c0_i32_0 = arith.constant 0 : i32
    %c0_i32_1 = arith.constant 0 : i32
    return %c0_i32, %c0_i32_0 : i32, i32
  }
  func.func @transform_14(%arg0: i32) -> (i32, i32) {
    %c0_i32 = arith.constant 0 : i32
    %c0_i32_0 = arith.constant 0 : i32
    %c0_i32_1 = arith.constant 0 : i32
    return %c0_i32, %c0_i32_0 : i32, i32
  }
  func.func @transform_15(%arg0: i32) -> (i32, i32) {
    %c0_i32 = arith.constant 0 : i32
    %c0_i32_0 = arith.constant 0 : i32
    %c0_i32_1 = arith.constant 0 : i32
    return %c0_i32, %c0_i32_0 : i32, i32
  }
  func.func @transform_16(%arg0: i32) -> (i32, i32) {
    %c0_i32 = arith.constant 0 : i32
    %c0_i32_0 = arith.constant 0 : i32
    %c0_i32_1 = arith.constant 0 : i32
    return %c0_i32, %c0_i32_0 : i32, i32
  }
  func.func @transform_17(%arg0: i32) -> (i32, i32) {
    %c0_i32 = arith.constant 0 : i32
    %c0_i32_0 = arith.constant 0 : i32
    %c0_i32_1 = arith.constant 0 : i32
    return %c0_i32, %c0_i32_0 : i32, i32
  }
  func.func @transform_18(%arg0: i32) -> (i32, i32) {
    %c0_i32 = arith.constant 0 : i32
    %c0_i32_0 = arith.constant 0 : i32
    %c0_i32_1 = arith.constant 0 : i32
    return %c0_i32, %c0_i32_0 : i32, i32
  }
  func.func @transform_19(%arg0: i32) -> (i32, i32) {
    %c0_i32 = arith.constant 0 : i32
    %c0_i32_0 = arith.constant 0 : i32
    %c0_i32_1 = arith.constant 0 : i32
    return %c0_i32, %c0_i32_0 : i32, i32
  }
  func.func @transform_20(%arg0: i32) -> (i32, i32) {
    %c0_i32 = arith.constant 0 : i32
    %c0_i32_0 = arith.constant 0 : i32
    %c0_i32_1 = arith.constant 0 : i32
    return %c0_i32, %c0_i32_0 : i32, i32
  }
  func.func @transform_21(%arg0: i32) -> (i32, i32) {
    %c0_i32 = arith.constant 0 : i32
    %c0_i32_0 = arith.constant 0 : i32
    %c0_i32_1 = arith.constant 0 : i32
    return %c0_i32, %c0_i32_0 : i32, i32
  }
  func.func @transform_22(%arg0: i32) -> (i32, i32, i32) {
    %c0_i32 = arith.constant 0 : i32
    %c0_i32_0 = arith.constant 0 : i32
    %c0_i32_1 = arith.constant 0 : i32
    return %arg0, %c0_i32, %c0_i32_0 : i32, i32, i32
  }
}

</mosaic_0001>

<bundles_post_ra>
// kernel: tpu_custom_call.1
= control target key start
LH: loop header
LB: loop body
LE: loop exit
PB: predicated region body
PF: predicated region fallthrough
CT: control target
= control target key end

     0   :  { %s20898_s0 = inlined_call_operand.hbm [shape: f32[4,64,128], index: 0, kind: input, shape index: {}]   ;;  %s20899_s1 = inlined_call_operand.hbm [shape: f32[4,64,128], index: 1, kind: input, shape index: {}]   ;;  %s20900_s2 = inlined_call_operand.hbm [shape: f32[128,384], index: 2, kind: input, shape index: {}]   ;;  %s20901_s3 = inlined_call_operand.vmem [shape: f32[1,384], index: 3, kind: input, shape index: {}]   ;;  %s20902_s4 = inlined_call_operand.hbm [shape: f32[128,128], index: 4, kind: input, shape index: {}]   ;;  %s20903_s5 = inlined_call_operand.vmem [shape: f32[1,128], index: 5, kind: input, shape index: {}]   ;;  %s20904_s6 = inlined_call_operand.hbm [shape: f32[128,128], index: 6, kind: input, shape index: {}]   ;;  %s20905_s7 = inlined_call_operand.vmem [shape: f32[1,128], index: 7, kind: input, shape index: {}]   ;;  %s20906_s8 = inlined_call_operand.hbm [shape: f32[128,256], index: 8, kind: input, shape index: {}]   ;;  %s20907_s9 = inlined_call_operand.vmem [shape: f32[1,256], index: 9, kind: input, shape index: {}]   ;;  %s20908_s10 = inlined_call_operand.hbm [shape: f32[128,128], index: 10, kind: input, shape index: {}]   ;;  %s20909_s11 = inlined_call_operand.vmem [shape: f32[1,128], index: 11, kind: input, shape index: {}]   ;;  %s20910_s12 = inlined_call_operand.hbm [shape: f32[128,256], index: 12, kind: input, shape index: {}]   ;;  %s20911_s13 = inlined_call_operand.vmem [shape: f32[1,256], index: 13, kind: input, shape index: {}]   ;;  %s20912_s14 = inlined_call_operand.hbm [shape: f32[256,128], index: 14, kind: input, shape index: {}]   ;;  %s20913_s15 = inlined_call_operand.vmem [shape: f32[1,128], index: 15, kind: input, shape index: {}]   ;;  %s20914_s16 = inlined_call_operand.vmem [shape: f32[1,128], index: 16, kind: input, shape index: {}]   ;;  %s20915_s17 = inlined_call_operand.vmem [shape: f32[1,128], index: 17, kind: input, shape index: {}]   ;;  %s20916_s18 = inlined_call_operand.vmem [shape: f32[1,128], index: 18, kind: input, shape index: {}]   ;;  %s20917_s19 = inlined_call_operand.vmem [shape: f32[1,128], index: 19, kind: input, shape index: {}]   ;;  %s20918_s20 = inlined_call_operand.vmem [shape: f32[1,128], index: 20, kind: input, shape index: {}]   ;;  %s20919_s21 = inlined_call_operand.vmem [shape: f32[1,128], index: 21, kind: input, shape index: {}]   ;;  %s20920_s22 = inlined_call_operand.hbm [shape: f32[4,64,128], index: 22, kind: output, shape index: {}]  }
   0x1   :  { %21006 = sst [smem:[#allocation74_spill]] %s20898_s0 }
   0x2   :  { %21007 = sst [smem:[#allocation75_spill]] %s20899_s1 }
   0x3   :  { %21008 = sst [smem:[#allocation76_spill]] %s20900_s2 }
   0x4   :  { %21009 = sst [smem:[#allocation77_spill]] %s20901_s3 }
   0x5   :  { %21010 = sst [smem:[#allocation78_spill]] %s20902_s4 }
   0x6   :  { %21011 = sst [smem:[#allocation79_spill]] %s20903_s5 }
   0x7   :  { %21012 = sst [smem:[#allocation80_spill]] %s20904_s6 }
   0x8   :  { %21013 = sst [smem:[#allocation81_spill]] %s20905_s7 }
   0x9   :  { %21014 = sst [smem:[#allocation82_spill]] %s20906_s8 }
   0xa   :  { %21015 = sst [smem:[#allocation83_spill]] %s20908_s10 }
   0xb   :  { %21016 = sst [smem:[#allocation84_spill]] %s20909_s11 }
   0xc   :  { %21017 = sst [smem:[#allocation85_spill]] %s20910_s12 }
   0xd   :  { %21018 = sst [smem:[#allocation86_spill]] %s20911_s13 }
   0xe   :  { %21019 = sst [smem:[#allocation87_spill]] %s20912_s14 }
   0xf   :  { %21020 = sst [smem:[#allocation88_spill]] %s20913_s15 }
  0x10   :  { %21021 = sst [smem:[#allocation89_spill]] %s20916_s18 }
  0x11   :  { %21022 = sst [smem:[#allocation90_spill]] %s20917_s19 }
  0x12   :  { %21023 = sst [smem:[#allocation91_spill]] %s20918_s20 }
  0x13   :  { %21024 = sst [smem:[#allocation92_spill]] %s20919_s21 }
  0x14   :  { %21025 = sst [smem:[#allocation93_spill]] %s20920_s22 }
  0x15   :  { %27 = vsyncpa [#allocation3], 0 }
  0x16   :  { %29 = vsyncpa [#allocation3 + $0x1], 0 }
  0x17   :  { %30 = vsyncpa [#allocation6], 0 }
  0x18   :  { %32 = vsyncpa [#allocation6 + $0x1], 0 }
  0x19   :  { %33 = vsyncpa [#allocation9], 0 }
  0x1a   :  { %34 = vsyncpa [#allocation12], 0 }
  0x1b   :  { %35 = vsyncpa [#allocation15], 0 }
  0x1c   :  { %36 = vsyncpa [#allocation4], 0 }
  0x1d   :  { %38 = vsyncpa [#allocation4 + $0x1], 0  ;;  %s16538_s3 = smov 0   ;;  %s16540_s28 = smov 0  }
  0x1e   :  { %s16542_s29 = smov 0   ;;  %s16544_s30 = smov 0  }
  0x1f LB: > { %21026 = sst [smem:[#allocation25_spill]] %s16395_s29  ;;  %s16401_s4 = smov [#allocation7]   ;;  %s16399_s30 = sphi %s16544_s30, %s21233_s30   ;;  %s16395_s29 = sphi %s16542_s29, %s21235_s29   ;;  %s16391_s28 = sphi %s16540_s28, %s21237_s28   ;;  %s16387_s3 = sphi %s16538_s3, %s21236_s3  }
  0x20   : > { %s559_s0 = sshll.u32 %s16401_s4, 4  ;;  %s16559_s23 = sadd.s32 4294967295, %s16399_s30   ;;  %s16564_s0 = int_to_ptr.vmem [resolvable:$true] %s559_s0 }
  0x21   : > { %p11169_p0 = scmp.ge.s32.totalorder %s16399_s30, 1  ;;  %p20927_p1 = scmp.eq.s32.totalorder %s16559_s23, 0 }
  0x22   : > { %p547_p2 = scmp.lt.s32.totalorder %s16399_s30, 3  ;;  %s16402_s5 = smov [#allocation8]  }
  0x23   : > { %s575_s24 = sshll.u32 %s16402_s5, 4  ;;  %s16403_s25 = smov [#allocation11]   ;;  %s16579_s24 = int_to_ptr.vmem [resolvable:$true] %s575_s24 }
  0x24   : > { %p16566_p3 = pnand %p11169_p0, %p547_p2  ;;  %s16581_s26 = sshll.u32 %s16403_s25, 4  ;;  %s608_s26 = int_to_ptr.vmem [resolvable:$true] %s16581_s26 }
  0x25   : > { %s21029_s4 = sld [smem:[#allocation76_spill]] }
  0x26   : > { %s21027_s1 = scalar_select %p16566_p3, 1, 0 }
  0x27   : > { %p14853_p5 = pneg %p16566_p3 }
  0x29   : > { %p16575_p6 = pnand %p14853_p5, %p20927_p1 }
  0x2b   : > { %s16057_s22 = scalar_lea.hbm %s21029_s4, 6144  ;;  %p16591_p8 = pneg %p16575_p6 }
  0x2c   : > { %p16058_p7 = scmp.ne.s32.totalorder %s21029_s4, %s16057_s22  ;;  %p16064_p11 = scmp.lt.u32.totalorder %s16057_s22, %s21029_s4 }
  0x2e   : > { %p16060_p9 = pnand %p16591_p8, %p16058_p7 }
  0x30   : > { %p16061_p10 = pneg %p16060_p9 }
  0x32   : > { %p16066_p12 = pnand %p16064_p11, %p16061_p10 }
  0x34   : > { %16069 = shalt.err (!%p16066_p12)
}
  0x35   : > { %s16070_s20 = scalar_lea.vmem %s16564_s0, 6144  ;;  %p16078_p5 = scmp.lt.s32.totalorder %s16564_s0, %s16564_s0 }
  0x36   : > { %p16071_p13 = scmp.ne.s32.totalorder %s16564_s0, %s16070_s20  ;;  %p16079_p4 = scmp.lt.s32.totalorder %s16070_s20, %s16070_s20 }
  0x38   : > { %p16073_p0 = pnand %p16071_p13, %p16591_p8  ;;  %p16080_p7 = por %p16079_p4, %p16078_p5 }
  0x3a   : > { %p16074_p2 = pneg %p16073_p0 }
  0x3c   : > { %p16081_p9 = pnand %p16080_p7, %p16074_p2 }
  0x3e   : > { %16084 = shalt.err (!%p16081_p9)
}
  0x3f   : > { %s16404_s21 = smov 384   ;;  %s16405_s15 = smov 24  }
  0x40   : > { %14856 = dma.hbm_to_vmem [thread:$0]  (!%p16575_p6), %s21029_s4, 6144, %s16564_s0, [#allocation6], %s16404_s21, %s16404_s21, %s16405_s15  }
  0x41   : > { %s21031_s13 = sld [smem:[#allocation78_spill]] }
  0x47   : > { %s16085_s19 = scalar_lea.hbm %s21031_s13, 2048 }
  0x48   : > { %p16086_p4 = scmp.ne.s32.totalorder %s21031_s13, %s16085_s19  ;;  %p16092_p12 = scmp.lt.u32.totalorder %s16085_s19, %s21031_s13 }
  0x4a   : > { %p16088_p10 = pnand %p16086_p4, %p16591_p8 }
  0x4c   : > { %p16089_p11 = pneg %p16088_p10 }
  0x4e   : > { %p16094_p13 = pnand %p16092_p12, %p16089_p11 }
  0x50   : > { %16097 = shalt.err (!%p16094_p13)
}
  0x51   : > { %s16098_s0 = scalar_lea.vmem %s16579_s24, 2048  ;;  %p16106_p7 = scmp.lt.s32.totalorder %s16579_s24, %s16579_s24 }
  0x52   : > { %p16099_p0 = scmp.ne.s32.totalorder %s16579_s24, %s16098_s0  ;;  %p16107_p9 = scmp.lt.s32.totalorder %s16098_s0, %s16098_s0 }
  0x54   : > { %p16101_p2 = pnand %p16099_p0, %p16591_p8  ;;  %p16108_p4 = por %p16107_p9, %p16106_p7 }
  0x56   : > { %p16102_p5 = pneg %p16101_p2 }
  0x58   : > { %p16109_p10 = pnand %p16108_p4, %p16102_p5 }
  0x5a   : > { %16112 = shalt.err (!%p16109_p10)
}
  0x5b   : > { %s20929_s11 = smov 128   ;;  %s20931_s7 = smov 8  }
  0x5c   : > { %14859 = dma.hbm_to_vmem [thread:$0]  (!%p16575_p6), %s21031_s13, 2048, %s16579_s24, [#allocation9], %s20929_s11, %s20929_s11, %s20931_s7  }
  0x5d   : > { %s21032_s8 = sld [smem:[#allocation82_spill]] }
  0x63   : > { %s16113_s22 = scalar_lea.hbm %s21032_s8, 4096 }
  0x64   : > { %p16114_p11 = scmp.ne.s32.totalorder %s21032_s8, %s16113_s22  ;;  %p16120_p0 = scmp.lt.u32.totalorder %s16113_s22, %s21032_s8 }
  0x66   : > { %p16116_p12 = pnand %p16114_p11, %p16591_p8 }
  0x68   : > { %p16117_p13 = pneg %p16116_p12 }
  0x6a   : > { %p16122_p2 = pnand %p16120_p0, %p16117_p13 }
  0x6c   : > { %16125 = shalt.err (!%p16122_p2)
}
  0x6d   : > { %s16126_s0 = scalar_lea.vmem %s608_s26, 4096  ;;  %p16134_p4 = scmp.lt.s32.totalorder %s608_s26, %s608_s26 }
  0x6e   : > { %p16127_p5 = scmp.ne.s32.totalorder %s608_s26, %s16126_s0  ;;  %p16135_p10 = scmp.lt.s32.totalorder %s16126_s0, %s16126_s0 }
  0x70   : > { %p16129_p7 = pnand %p16127_p5, %p16591_p8  ;;  %p16136_p1 = por %p16135_p10, %p16134_p4 }
  0x72   : > { %p16130_p9 = pneg %p16129_p7 }
  0x74   : > { %p16137_p3 = pnand %p16136_p1, %p16130_p9 }
  0x76   : > { %16140 = shalt.err (!%p16137_p3)
}
  0x77   : > { %s16408_s24 = smov 256   ;;  %s16409_s18 = smov 16  }
  0x78   : > { %14865 = dma.hbm_to_vmem [thread:$0]  (!%p16575_p6), %s21032_s8, 4096, %s608_s26, [#allocation12], %s16408_s24, %s16408_s24, %s16409_s18  }
  0x79   : > { %s16410_s15 = smov [#allocation14]   ;;  %s16411_s2 = smov [#allocation10]  }
  0x7a   : > { %s639_s22 = sshll.u32 %s16410_s15, 4  ;;  %s591_s27 = sshll.u32 %s16411_s2, 4  ;;  %s640_s22 = int_to_ptr.vmem [resolvable:$true] %s639_s22  ;;  %s592_s27 = int_to_ptr.vmem [resolvable:$true] %s591_s27 }
  0x7b   : > { %s21033_s12 = sld [smem:[#allocation85_spill]] }
  0x81   : > { %s16141_s0 = scalar_lea.hbm %s21033_s12, 4096 }
  0x82   : > { %p16142_p1 = scmp.ne.s32.totalorder %s21033_s12, %s16141_s0  ;;  %p16148_p12 = scmp.lt.u32.totalorder %s16141_s0, %s21033_s12 }
  0x84   : > { %p16144_p3 = pnand %p16142_p1, %p16591_p8 }
  0x86   : > { %p16145_p11 = pneg %p16144_p3 }
  0x88   : > { %p16150_p13 = pnand %p16148_p12, %p16145_p11 }
  0x8a   : > { %16153 = shalt.err (!%p16150_p13)
}
  0x8b   : > { %s16154_s26 = scalar_lea.vmem %s640_s22, 4096  ;;  %p16162_p7 = scmp.lt.s32.totalorder %s640_s22, %s640_s22 }
  0x8c   : > { %p16155_p0 = scmp.ne.s32.totalorder %s640_s22, %s16154_s26  ;;  %p16163_p9 = scmp.lt.s32.totalorder %s16154_s26, %s16154_s26 }
  0x8e   : > { %p16157_p2 = pnand %p16155_p0, %p16591_p8  ;;  %p16164_p4 = por %p16163_p9, %p16162_p7 }
  0x90   : > { %p16158_p5 = pneg %p16157_p2 }
  0x92   : > { %p16165_p10 = pnand %p16164_p4, %p16158_p5 }
  0x94   : > { %16168 = shalt.err (!%p16165_p10)
}
  0x95   : > { %14871 = dma.hbm_to_vmem [thread:$0]  (!%p16575_p6), %s21033_s12, 4096, %s640_s22, [#allocation15], %s16408_s24, %s16408_s24, %s16409_s18  }
  0x96   : > { %s21034_s19 = sld [smem:[#allocation80_spill]] }
  0x9c   : > { %s16169_s21 = scalar_lea.hbm %s21034_s19, 2048 }
  0x9d   : > { %p16170_p1 = scmp.ne.s32.totalorder %s21034_s19, %s16169_s21  ;;  %p16176_p12 = scmp.lt.u32.totalorder %s16169_s21, %s21034_s19 }
  0x9f   : > { %p16172_p3 = pnand %p16170_p1, %p16591_p8 }
  0xa1   : > { %p16173_p11 = pneg %p16172_p3 }
  0xa3   : > { %p16178_p13 = pnand %p16176_p12, %p16173_p11 }
  0xa5   : > { %16181 = shalt.err (!%p16178_p13)
}
  0xa6   : > { %s16182_s0 = scalar_lea.vmem %s592_s27, 2048  ;;  %p16190_p7 = scmp.lt.s32.totalorder %s592_s27, %s592_s27 }
  0xa7   : > { %p16183_p0 = scmp.ne.s32.totalorder %s592_s27, %s16182_s0  ;;  %p16191_p9 = scmp.lt.s32.totalorder %s16182_s0, %s16182_s0 }
  0xa9   : > { %p16185_p2 = pnand %p16183_p0, %p16591_p8  ;;  %p16192_p4 = por %p16191_p9, %p16190_p7 }
  0xab   : > { %p16186_p5 = pneg %p16185_p2 }
  0xad   : > { %p16193_p10 = pnand %p16192_p4, %p16186_p5 }
  0xaf   : > { %16196 = shalt.err (!%p16193_p10)
}
  0xb0   : > { %s21035_s24 = smov 8   ;;  %s21036_s18 = smov 128  }
  0xb1   : > { %14862 = dma.hbm_to_vmem [thread:$0]  (!%p16575_p6), %s21034_s19, 2048, %s592_s27, [#allocation9], %s21036_s18, %s21036_s18, %s21035_s24  }
  0xb2   : > { %s16412_s11 = smov [#allocation13]   ;;  %s16413_s13 = smov [#allocation16]  }
  0xb3   : > { %s623_s7 = sshll.u32 %s16412_s11, 4  ;;  %s655_s4 = sshll.u32 %s16413_s13, 4  ;;  %s624_s7 = int_to_ptr.vmem [resolvable:$true] %s623_s7  ;;  %s656_s4 = int_to_ptr.vmem [resolvable:$true] %s655_s4 }
  0xb4   : > { %s21037_s10 = sld [smem:[#allocation83_spill]] }
  0xba   : > { %s16197_s2 = scalar_lea.hbm %s21037_s10, 2048 }
  0xbb   : > { %p16198_p1 = scmp.ne.s32.totalorder %s21037_s10, %s16197_s2  ;;  %p16204_p12 = scmp.lt.u32.totalorder %s16197_s2, %s21037_s10 }
  0xbd   : > { %p16200_p3 = pnand %p16198_p1, %p16591_p8 }
  0xbf   : > { %p16201_p11 = pneg %p16200_p3 }
  0xc1   : > { %p16206_p13 = pnand %p16204_p12, %p16201_p11 }
  0xc3   : > { %16209 = shalt.err (!%p16206_p13)
}
  0xc4   : > { %s16210_s27 = scalar_lea.vmem %s624_s7, 2048  ;;  %p16218_p7 = scmp.lt.s32.totalorder %s624_s7, %s624_s7 }
  0xc5   : > { %p16211_p0 = scmp.ne.s32.totalorder %s624_s7, %s16210_s27  ;;  %p16219_p9 = scmp.lt.s32.totalorder %s16210_s27, %s16210_s27 }
  0xc7   : > { %p16213_p2 = pnand %p16211_p0, %p16591_p8  ;;  %p16220_p4 = por %p16219_p9, %p16218_p7 }
  0xc9   : > { %p16214_p5 = pneg %p16213_p2 }
  0xcb   : > { %p16221_p10 = pnand %p16220_p4, %p16214_p5 }
  0xcd   : > { %16224 = shalt.err (!%p16221_p10)
}
  0xce   : > { %14868 = dma.hbm_to_vmem [thread:$0]  (!%p16575_p6), %s21037_s10, 2048, %s624_s7, [#allocation12], %s21036_s18, %s21036_s18, %s21035_s24  }
  0xcf   : > { %s21038_s14 = sld [smem:[#allocation87_spill]] }
  0xd5   : > { %s16225_s15 = scalar_lea.hbm %s21038_s14, 4096 }
  0xd6   : > { %p16226_p1 = scmp.ne.s32.totalorder %s21038_s14, %s16225_s15  ;;  %p16232_p12 = scmp.lt.u32.totalorder %s16225_s15, %s21038_s14 }
  0xd8   : > { %p16228_p3 = pnand %p16226_p1, %p16591_p8 }
  0xda   : > { %p16229_p11 = pneg %p16228_p3 }
  0xdc   : > { %p16234_p13 = pnand %p16232_p12, %p16229_p11 }
  0xde   : > { %16237 = shalt.err (!%p16234_p13)
}
  0xdf   : > { %s16238_s22 = scalar_lea.vmem %s656_s4, 4096  ;;  %p16246_p7 = scmp.lt.s32.totalorder %s656_s4, %s656_s4 }
  0xe0   : > { %p16239_p0 = scmp.ne.s32.totalorder %s656_s4, %s16238_s22  ;;  %p16247_p9 = scmp.lt.s32.totalorder %s16238_s22, %s16238_s22 }
  0xe2   : > { %p16241_p2 = pnand %p16239_p0, %p16591_p8  ;;  %p16248_p4 = por %p16247_p9, %p16246_p7 }
  0xe4   : > { %p16242_p5 = pneg %p16241_p2 }
  0xe6   : > { %p16249_p10 = pnand %p16248_p4, %p16242_p5 }
  0xe8   : > { %16252 = shalt.err (!%p16249_p10)
}
  0xe9   : > { %14874 = dma.hbm_to_vmem [thread:$0]  (!%p16575_p6), %s21038_s14, 4096, %s656_s4, [#allocation15], %s21036_s18, %s21036_s18, %s21035_s24  }
  0xea   : > { %s11168_s6 = sadd.s32 4294967294, %s16399_s30   ;;  %s16740_s5 = sadd.s32 1, %s16399_s30  }
  0xeb   : > { %21039 = sst [smem:[#allocation26_spill]] %s16740_s5  ;;  %s51_s26 = sadd.s32 1, %s16395_s29 }
  0xec   : > { %s48_s11 = ssub.s32 %s16399_s30, %s16740_s5  ;;  %p58_p8 = scmp.ne.s32.totalorder %s16395_s29, %s16391_s28 }
  0xed   : > { %p49_p1 = scmp.eq.s32.totalorder %s48_s11, 0  ;;  %p59_p3 = scmp.eq.s32.totalorder %s16399_s30, 0 }
  0xee   : > { %p64_p11 = scmp.ne.s32.totalorder %s16391_s28, %s16387_s3  ;;  %p534_p12 = scmp.eq.s32.totalorder %s16559_s23, 1 }
  0xef   : > { %s16752_s13 = scalar_select %p49_p1, %s16395_s29, %s51_s26  }
  0xf0   : > { %p60_p13 = por %p59_p3, %p58_p8  ;;  %p21041_p0 = scmp.eq.s32.totalorder %s16559_s23, 0 }
  0xf1   : > { %21040 = sst [smem:[#allocation27_spill]] %s16752_s13  ;;  %p16760_p6 = por %p534_p12, %p58_p8 }
  0xf2   : > { %p16756_p2 = por %p21041_p0, %p64_p11  ;;  %p540_p5 = scmp.eq.s32.totalorder %s11168_s6, 1 }
  0xf3   : > { %s21043_s4 = scalar_select %p16760_p6, 1, 0 }
  0xf4   : > { %p14893_p7 = scmp.lt.s32.totalorder %s16399_s30, 2  ;;  %s690_s15 = sand.u32 1, %s16395_s29  }
  0xf5   : > { %p16766_p9 = por %p540_p5, %p64_p11  ;;  %s16770_s25 = sshll.u32 %s690_s15, 7 }
  0xf6   : > { %s11726_s20 = sshll.u32 %s16399_s30, 11  ;;  %s21045_s7 = sld [smem:[#allocation74_spill]] }
  0xf7   : > { %s21044_s2 = scalar_select %p16766_p9, 1, 0 }
  0xf8   : > { %s694_s6 = scalar_lea.vmem [#allocation2], %s16770_s25  ;;  %p16779_p4 = pnand %p14893_p7, %p60_p13 }
  0xf9   : > { %s702_s26 = sshll.u32 %s694_s6, 4  ;;  %s21047_s12 = sld [smem:[#allocation75_spill]]  ;;  %s16783_s26 = int_to_ptr.vmem [resolvable:$true] %s702_s26 }
  0xfa   : > { %s16790_s22 = scalar_lea.sflag [#allocation3], %s690_s15  ;;  %p16255_p8 = pneg %p16779_p4 }
  0xfc   : > { %s16776_s27 = scalar_lea.hbm %s21045_s7, %s11726_s20  ;;  %s16258_s13 = scalar_lea.hbm %s21045_s7, 4096 }
  0xfd   : > { %s16253_s14 = scalar_lea.hbm %s16776_s27, 2048  ;;  %p16259_p11 = scmp.lt.u32.totalorder %s16776_s27, %s21045_s7 }
  0xfe   : > { %p16254_p10 = scmp.ne.s32.totalorder %s16776_s27, %s16253_s14  ;;  %p16260_p12 = scmp.lt.u32.totalorder %s16258_s13, %s16253_s14 }
  0xff   : > { %s16788_s0 = scalar_lea.hbm %s21047_s12, %s11726_s20  ;;  %p16262_p0 = scmp.lt.u32.totalorder %s16253_s14, %s16776_s27 }
 0x100   : > { %p16256_p1 = pnand %p16255_p8, %p16254_p10  ;;  %p16261_p13 = por %p16260_p12, %p16259_p11 }
 0x102   : > { %p16257_p3 = pneg %p16256_p1  ;;  %p16263_p5 = por %p16262_p0, %p16261_p13 }
 0x104   : > { %p16264_p7 = pnand %p16263_p5, %p16257_p3 }
 0x106   : > { %16267 = shalt.err (!%p16264_p7)
}
 0x107   : > { %s16268_s8 = scalar_lea.vmem %s16783_s26, 2048  ;;  %s16414_s10 = smov [#allocation2]  }
 0x108   : > { %p16269_p10 = scmp.ne.s32.totalorder %s16783_s26, %s16268_s8  ;;  %s16273_s19 = sshll.u32 %s16414_s10, 4  ;;  %s16274_s19 = int_to_ptr.vmem [resolvable:$false] %s16273_s19 }
 0x109   : > { %s16275_s29 = scalar_lea.vmem %s16274_s19, 4096  ;;  %p16276_p6 = scmp.lt.s32.totalorder %s16783_s26, %s16274_s19 }
 0x10a   : > { %p16271_p1 = pnand %p16269_p10, %p16255_p8  ;;  %p16277_p11 = scmp.lt.s32.totalorder %s16275_s29, %s16268_s8 }
 0x10c   : > { %p16272_p9 = pneg %p16271_p1  ;;  %p16278_p12 = por %p16277_p11, %p16276_p6 }
 0x10e   : > { %p16279_p13 = pnand %p16278_p12, %p16272_p9 }
 0x110   : > { %16282 = shalt.err (!%p16279_p13)
}
 0x111   : > { %14878 = dma.hbm_to_vmem [thread:$0]  (!%p16779_p4), %s16776_s27, 2048, %s16783_s26, %s16790_s22, %s21036_s18, %s21036_s18, %s21035_s24  }
 0x112   : > { %s716_s14 = scalar_lea.vmem [#allocation5], %s16770_s25  ;;  %s712_s13 = sand.u32 1, %s16399_s30  }
 0x113   : > { %s724_s5 = sshll.u32 %s716_s14, 4  ;;  %s16825_s15 = scalar_lea.sflag [#allocation6], %s712_s13  ;;  %s16823_s5 = int_to_ptr.vmem [resolvable:$true] %s724_s5 }
 0x114   : > { %s16283_s20 = scalar_lea.hbm %s16788_s0, 2048  ;;  %s16288_s10 = scalar_lea.hbm %s21047_s12, 4096 }
 0x115   : > { %p16284_p6 = scmp.ne.s32.totalorder %s16788_s0, %s16283_s20  ;;  %p16289_p0 = scmp.lt.u32.totalorder %s16788_s0, %s21047_s12 }
 0x116   : > { %p16290_p5 = scmp.lt.u32.totalorder %s16288_s10, %s16283_s20  ;;  %p16292_p10 = scmp.lt.u32.totalorder %s16283_s20, %s16788_s0 }
 0x117   : > { %p16286_p9 = pnand %p16284_p6, %p16255_p8 }
 0x118   : > { %p16291_p7 = por %p16290_p5, %p16289_p0 }
 0x119   : > { %p16287_p3 = pneg %p16286_p9 }
 0x11a   : > { %p16293_p1 = por %p16292_p10, %p16291_p7 }
 0x11c   : > { %p16294_p11 = pnand %p16293_p1, %p16287_p3 }
 0x11e   : > { %16297 = shalt.err (!%p16294_p11)
}
 0x11f   : > { %s16298_s25 = scalar_lea.vmem %s16823_s5, 2048  ;;  %s16415_s27 = smov [#allocation5]  }
 0x120   : > { %p16299_p12 = scmp.ne.s32.totalorder %s16823_s5, %s16298_s25  ;;  %s16303_s26 = sshll.u32 %s16415_s27, 4  ;;  %s16304_s26 = int_to_ptr.vmem [resolvable:$false] %s16303_s26 }
 0x121   : > { %s16305_s22 = scalar_lea.vmem %s16304_s26, 4096  ;;  %p16306_p9 = scmp.lt.s32.totalorder %s16823_s5, %s16304_s26 }
 0x122   : > { %p16301_p13 = pnand %p16299_p12, %p16255_p8  ;;  %p16307_p0 = scmp.lt.s32.totalorder %s16305_s22, %s16298_s25 }
 0x124   : > { %p16302_p6 = pneg %p16301_p13  ;;  %p16308_p5 = por %p16307_p0, %p16306_p9 }
 0x126   : > { %p16309_p7 = pnand %p16308_p5, %p16302_p6 }
 0x128   : > { %16312 = shalt.err (!%p16309_p7)
}
 0x129   : > { %14881 = dma.hbm_to_vmem [thread:$0]  (!%p16779_p4), %s16788_s0, 2048, %s16823_s5, %s16825_s15, %s21036_s18, %s21036_s18, %s21035_s24  }
 0x12a   : > { %p21048_p8 = scmp.ne.s32.totalorder %s21027_s1, 0 }
 0x12c   : > { %736 = sbr.rel (%p21048_p8) target bundleno = 8243 (0x2033), region = 108 }
 0x133   : > { %s16857_s14 = sand.u32 1, %s16391_s28  }
 0x134   : > { %s16860_s13 = sshll.u32 %s16857_s14, 7  ;;  %s739_s11 = scalar_lea.sflag [#allocation3], %s16857_s14 }
 0x135   : > { %s16864_s20 = scalar_lea.vmem [#allocation2], %s16860_s13 }
 0x136   : > { %16358 = dma.done.wait (%p16756_p2), %s739_s11, 2048  }
 0x137   : > { %16360 = vsyncadd (%p16756_p2), %s739_s11, 4294965248  ;;  %s747_s1 = sand.u32 1, %s16559_s23   ;;  %s16872_s18 = scalar_lea.vmem [#allocation5], %s16860_s13 }
 0x138   : > { %s748_s24 = scalar_lea.sflag [#allocation6], %s747_s1 }
 0x139   : > { %16362 = dma.done.wait (%p16756_p2), %s748_s24, 2048  }
 0x13a   : > { %16364 = vsyncadd (%p16756_p2), %s748_s24, 4294965248  ;;  %p21049_p4 = scmp.eq.s32.totalorder %s16559_s23, 0 }
 0x13c   : > { %16366 = dma.done.wait (%p21049_p4), [#allocation6], 6144   ;;  %p21050_p3 = pmov %p21049_p4 }
 0x13e   : > { %16368 = vsyncadd (%p21050_p3), [#allocation6], 4294961152  ;;  %p21051_p10 = pmov %p21050_p3 }
 0x13f   : > { %p21052_p1 = pmov %p21050_p3 }
 0x140   : > { %16370 = dma.done.wait (%p21051_p10), [#allocation9], 4096  }
 0x141   : > { %16372 = vsyncadd (%p21052_p1), [#allocation9], 4294963200  ;;  %p21053_p11 = pmov %p21052_p1 }
 0x142   : > { %p21054_p12 = pmov %p21052_p1 }
 0x143   : > { %16374 = dma.done.wait (%p21053_p11), [#allocation12], 6144  }
 0x144   : > { %16376 = vsyncadd (%p21054_p12), [#allocation12], 4294961152  ;;  %p21055_p2 = pmov %p21052_p1 }
 0x145   : > { %p21056_p13 = pmov %p21052_p1 }
 0x146   : > { %16378 = dma.done.wait (%p21055_p2), [#allocation15], 8192  }
 0x147   : > { %16380 = vsyncadd (%p21056_p13), [#allocation15], 4294959104  ;;  %v20940_v0 = vmov 0.0   ;;  %v881_v1 = vld [vmem:[#allocation7 + $0x8] sm:$0xff]  ;;  %v884_v2 = vld [vmem:[#allocation7 + $0x20] sm:$0xff]  ;;  %s21058_s5 = sld [smem:[#allocation77_spill]] }
 0x148   : > { %1009 = vmatprep.mubr.f32.mxu0 %v20940_v0  ;;  %v880_v3 = vld [vmem:[#allocation7] sm:$0xff]  ;;  %v13811_v4 = vpack.c.bf16 %v884_v2, %v881_v1  ;;  %v883_v5 = vld [vmem:[#allocation7 + $0x18] sm:$0xff]  ;;  %v890_v7 = vld [vmem:[#allocation7 + $0x50] sm:$0xff]  ;;  %vm1251_vm0 = vcmask 261120   ;;  %vm1558_vm2 = vcmask 523264   ;;  %s16417_s15 = smov 96  }
 0x149   : > { %v887_v6 = vld [vmem:[#allocation7 + $0x38] sm:$0xff]  ;;  %v13813_v8 = vpack.c.bf16 %v883_v5, %v880_v3  ;;  %v886_v10 = vld [vmem:[#allocation7 + $0x30] sm:$0xff]  ;;  %v889_v11 = vld [vmem:[#allocation7 + $0x48] sm:$0xff]  ;;  %s16418_s6 = smov 64   ;;  %s16419_s8 = smov 32  }
 0x14a   : > { %v13815_v9 = vpack.c.bf16 %v890_v7, %v887_v6  ;;  %v893_v12 = vld [vmem:[#allocation7 + $0x68] sm:$0xff]  ;;  %13812 = vmatprep.subr.bf16.mxu0 %v13811_v4  ;;  %v896_v13 = vld [vmem:[#allocation7 + $0x80] sm:$0xff]  ;;  %v13817_v14 = vpack.c.bf16 %v889_v11, %v886_v10  ;;  %v895_v17 = vld [vmem:[#allocation7 + $0x78] sm:$0xff]  ;;  %s21125_s29 = sld [smem:[#allocation79_spill]]  ;;  %s21223_s26 = sld [smem:[#allocation86_spill]] }
 0x14b   : > { %13814 = vmatpush1.bf16.msra.mxu0 %v13813_v8  ;;  %v13819_v15 = vpack.c.bf16 %v896_v13, %v893_v12  ;;  %v892_v16 = vld [vmem:[#allocation7 + $0x60] sm:$0xff]  ;;  %v899_v18 = vld [vmem:[#allocation7 + $0x98] sm:$0xff]  ;;  %v902_v19 = vld [vmem:[#allocation7 + $0xb0] sm:$0xff]  ;;  %s21226_s1 = sld [smem:[#allocation88_spill]]  ;;  %s21229_s19 = sld [smem:[#allocation93_spill]] }
 0x14c   : > { %13816 = vmatprep.subr.bf16.mxu0 %v13815_v9  ;;  %v13821_v20 = vpack.c.bf16 %v895_v17, %v892_v16  ;;  %v13823_v21 = vpack.c.bf16 %v902_v19, %v899_v18  ;;  %v898_v22 = vld [vmem:[#allocation7 + $0x90] sm:$0xff]  ;;  %v901_v23 = vld [vmem:[#allocation7 + $0xa8] sm:$0xff]  ;;  %v908_v25 = vld [vmem:[#allocation7 + $0xe0] sm:$0xff]  ;;  %s10992_s25 = scalar_lea.sflag [#allocation4], %s16857_s14  ;;  %p21230_p9 = scmp.ne.s32.totalorder %s21043_s4, 0 }
 0x14d   : > { %v905_v24 = vld [vmem:[#allocation7 + $0xc8] sm:$0xff]  ;;  %v16896_v26 = vld [vmem:[%s16864_s20] sm:$0xff]  ;;  %v13825_v27 = vpack.c.bf16 %v901_v23, %v898_v22  ;;  %v907_v30 = vld [vmem:[#allocation7 + $0xd8] sm:$0xff] }
 0x14e   : > { %12579 = vmatprep.mubr.f32.mxu1 %v16896_v26  ;;  %v13827_v28 = vpack.c.bf16 %v908_v25, %v905_v24  ;;  %v904_v29 = vld [vmem:[#allocation7 + $0xc0] sm:$0xff]  ;;  %v911_v31 = vld [vmem:[#allocation7 + $0xf8] sm:$0xff]  ;;  %v914_v32 = vld [vmem:[#allocation7 + $0x110] sm:$0xff] }
 0x14f   : > { %13818 = vmatpush1.bf16.msra.mxu0 %v13817_v14  ;;  %v910_v33 = vld [vmem:[#allocation7 + $0xf0] sm:$0xff]  ;;  %v13829_v34 = vpack.c.bf16 %v907_v30, %v904_v29  ;;  %v885_v36 = vld [vmem:[#allocation7 + $0x28] sm:$0xff]  ;;  %v888_v37 = vld [vmem:[#allocation7 + $0x40] sm:$0xff]  ;;  %v13831_v38 = vpack.c.bf16 %v914_v32, %v911_v31 }
 0x150   : > { %13820 = vmatprep.subr.bf16.mxu0 %v13819_v15  ;;  %v882_v35 = vld [vmem:[#allocation7 + $0x10] sm:$0xff]  ;;  %v913_v39 = vld [vmem:[#allocation7 + $0x108] sm:$0xff]  ;;  %v891_v42 = vld [vmem:[#allocation7 + $0x58] sm:$0xff] }
 0x151   : > { %v917_v40 = vld [vmem:[#allocation7 + $0x128] sm:$0xff]  ;;  %v13843_v41 = vpack.c.bf16 %v885_v36, %v882_v35  ;;  %v920_v43 = vld [vmem:[#allocation7 + $0x140] sm:$0xff]  ;;  %v13847_v44 = vpack.c.bf16 %v891_v42, %v888_v37  ;;  %v894_v45 = vld [vmem:[#allocation7 + $0x70] sm:$0xff]  ;;  %v13833_v47 = vpack.c.bf16 %v913_v39, %v910_v33 }
 0x152   : > { %v897_v46 = vld [vmem:[#allocation7 + $0x88] sm:$0xff]  ;;  %v13835_v48 = vpack.c.bf16 %v920_v43, %v917_v40  ;;  %v916_v49 = vld [vmem:[#allocation7 + $0x120] sm:$0xff]  ;;  %v919_v50 = vld [vmem:[#allocation7 + $0x138] sm:$0xff]  ;;  %v21061_v40 = vmov 0 }
 0x153   : > { %13822 = vmatpush1.bf16.msra.mxu0 %v13821_v20  ;;  %13844 = vmatprep.subr.bf16.mxu1 %v13843_v41  ;;  %v923_v51 = vld [vmem:[#allocation7 + $0x158] sm:$0xff]  ;;  %v13851_v52 = vpack.c.bf16 %v897_v46, %v894_v45  ;;  %v926_v53 = vld [vmem:[#allocation7 + $0x170] sm:$0xff]  ;;  %v900_v54 = vld [vmem:[#allocation7 + $0xa0] sm:$0xff]  ;;  %v13837_v56 = vpack.c.bf16 %v919_v50, %v916_v49 }
 0x154   : > { %13824 = vmatprep.subr.bf16.mxu0 %v13823_v21  ;;  %13846 = vmatpush3.bf16.msra.mxu1 %v13843_v41  ;;  %v903_v55 = vld [vmem:[#allocation7 + $0xb8] sm:$0xff]  ;;  %v13839_v57 = vpack.c.bf16 %v926_v53, %v923_v51  ;;  %v922_v58 = vld [vmem:[#allocation7 + $0x150] sm:$0xff]  ;;  %v925_v59 = vld [vmem:[#allocation7 + $0x168] sm:$0xff] }
 0x155   : > { %13848 = vmatprep.subr.bf16.mxu1 %v13847_v44  ;;  %v13855_v60 = vpack.c.bf16 %v903_v55, %v900_v54  ;;  %v906_v61 = vld [vmem:[#allocation7 + $0xd0] sm:$0xff]  ;;  %v909_v62 = vld [vmem:[#allocation7 + $0xe8] sm:$0xff]  ;;  %v13841_v63 = vpack.c.bf16 %v925_v59, %v922_v58  ;;  %v912_v2 = vld [vmem:[#allocation7 + $0x100] sm:$0xff] }
 0x156   : > { %v13859_v1 = vpack.c.bf16 %v909_v62, %v906_v61  ;;  %v915_v3 = vld [vmem:[#allocation7 + $0x118] sm:$0xff]  ;;  %v918_v5 = vld [vmem:[#allocation7 + $0x130] sm:$0xff]  ;;  %v921_v6 = vld [vmem:[#allocation7 + $0x148] sm:$0xff] }
 0x157   : > { %13826 = vmatpush1.bf16.msra.mxu0 %v13825_v27  ;;  %v13863_v4 = vpack.c.bf16 %v915_v3, %v912_v2  ;;  %v849_v7 = vld [vmem:[%s16864_s20 + $0x8] sm:$0xff]  ;;  %v13867_v8 = vpack.c.bf16 %v921_v6, %v918_v5  ;;  %v924_v9 = vld [vmem:[#allocation7 + $0x160] sm:$0xff]  ;;  %v927_v10 = vld [vmem:[#allocation7 + $0x178] sm:$0xff] }
 0x158   : > { %13828 = vmatprep.subr.bf16.mxu0 %v13827_v28  ;;  %13850 = vmatpush3.bf16.msra.mxu1 %v13847_v44  ;;  %v850_v11 = vld [vmem:[%s16864_s20 + $0x10] sm:$0xff]  ;;  %v13871_v12 = vpack.c.bf16 %v927_v10, %v924_v9  ;;  %v851_v13 = vld [vmem:[%s16864_s20 + $0x18] sm:$0xff]  ;;  %v852_v14 = vld [vmem:[%s16864_s20 + $0x20] sm:$0xff] }
 0x159   : > { %13852 = vmatprep.subr.bf16.mxu1 %v13851_v52  ;;  %v853_v15 = vld [vmem:[%s16864_s20 + $0x28] sm:$0xff]  ;;  %v854_v16 = vld [vmem:[%s16864_s20 + $0x30] sm:$0xff]  ;;  %v855_v17 = vld [vmem:[%s16864_s20 + $0x38] sm:$0xff] }
 0x15a   : > { %v856_v18 = vld [vmem:[%s16864_s20 + $0x40] sm:$0xff]  ;;  %v857_v19 = vld [vmem:[%s16864_s20 + $0x48] sm:$0xff]  ;;  %v858_v20 = vld [vmem:[%s16864_s20 + $0x50] sm:$0xff] }
 0x15b   : > { %13830 = vmatpush1.bf16.msra.mxu0 %v13829_v34  ;;  %v859_v21 = vld [vmem:[%s16864_s20 + $0x58] sm:$0xff]  ;;  %v860_v22 = vld [vmem:[%s16864_s20 + $0x60] sm:$0xff]  ;;  %v861_v23 = vld [vmem:[%s16864_s20 + $0x68] sm:$0xff] }
 0x15c   : > { %13832 = vmatprep.subr.bf16.mxu0 %v13831_v38  ;;  %13854 = vmatpush3.bf16.msra.mxu1 %v13851_v52  ;;  %v862_v24 = vld [vmem:[%s16864_s20 + $0x70] sm:$0xff]  ;;  %v863_v25 = vld [vmem:[%s16864_s20 + $0x78] sm:$0xff]  ;;  %v16938_v29 = vld [vmem:[%s21058_s5] sm:$0x7]  ;;  %s21204_s5 = sld [smem:[#allocation84_spill]] }
 0x15d   : > { %13856 = vmatprep.subr.bf16.mxu1 %v13855_v60  ;;  %vm16962_vm1 = vmpackc.low %vm1251_vm0, %vm1251_vm0 }
 0x15e   : > { %v21062_v40 = vsel %vm16962_vm1, 4294967295, %v21061_v40 }
 0x15f   : > { %13834 = vmatpush1.bf16.msra.mxu0 %v13833_v47  ;;  %21063 = vst [vmem:[#allocation31_spill] sm:$0xff] %v21062_v40 }
 0x160   : > { %13836 = vmatprep.subr.bf16.mxu0 %v13835_v48  ;;  %13858 = vmatpush3.bf16.msra.mxu1 %v13855_v60 }
 0x161   : > { %13860 = vmatprep.subr.bf16.mxu1 %v13859_v1 }
 0x163   : > { %13838 = vmatpush1.bf16.msra.mxu0 %v13837_v56 }
 0x164   : > { %13840 = vmatprep.subr.bf16.mxu0 %v13839_v57  ;;  %13862 = vmatpush3.bf16.msra.mxu1 %v13859_v1 }
 0x165   : > { %13864 = vmatprep.subr.bf16.mxu1 %v13863_v4 }
 0x167   : > { %13842 = vmatpush1.bf16.msra.mxu0 %v13841_v63 }
 0x168   : > { %13866 = vmatpush3.bf16.msra.mxu1 %v13863_v4 }
 0x169   : > { %13868 = vmatprep.subr.bf16.mxu1 %v13867_v8 }
 0x16a   : > { %1010 = vmatmul.mubr.f32.vlgmr.msra.gmra.mrb[0].mxu0 %v16896_v26  ;;  %v930_v26 = vlaneseq }
 0x16b   : > { %1015 = vmatprep.mubr.f32.mxu0 %v20940_v0 }
 0x16c   : > { %13870 = vmatpush3.bf16.msra.mxu1 %v13867_v8  ;;  %v16930_v27 = vshrl.u32 %v930_v26, 7 }
 0x16d   : > { %13872 = vmatprep.subr.bf16.mxu1 %v13871_v12 }
 0x16e   : > { %1016 = vmatmul.mubr.f32.gmra.mrb[2].mxu0 %v849_v7  ;;  %v16933_v28 = vsub.s32 0, %v16930_v27  ;;  %v16945_v31 = vsub.s32 1, %v16930_v27  ;;  %v940_v10 = vsub.s32 2, %v16930_v27 }
 0x16f   : > { %1021 = vmatprep.mubr.f32.mxu0 %v20940_v0 }
 0x170   : > { %13874 = vmatpush3.bf16.msra.mxu1 %v13871_v12  ;;  %21057 = vst [vmem:[#allocation28_spill] sm:$0xff] %v16933_v28  ;;  %v16942_v30 = vrot.slane %v16938_v29, %v16933_v28  ;;  %21059 = vst [vmem:[#allocation29_spill] sm:$0xff] %v16945_v31  ;;  %v16952_v35 = vrot.slane %v16938_v29, %v16945_v31 }
 0x172   : > { %1022 = vmatmul.mubr.f32.gmra.mrb[4].mxu0 %v850_v11 }
 0x173   : > { %1027 = vmatprep.mubr.f32.mxu0 %v20940_v0  ;;  %12580 = vmatmul.mubr.f32.vlgmr.msra.gmra.mrb[0].mxu1 %v849_v7 }
 0x174   : > { %12582 = vmatprep.mubr.f32.mxu1 %v850_v11 }
 0x176   : > { %1028 = vmatmul.mubr.f32.gmra.mrb[6].mxu0 %v851_v13 }
 0x177   : > { %1033 = vmatprep.mubr.f32.mxu0 %v20940_v0  ;;  %12583 = vmatmul.mubr.f32.gmra.mrb[2].mxu1 %v851_v13 }
 0x178   : > { %12585 = vmatprep.mubr.f32.mxu1 %v852_v14 }
 0x17a   : > { %1034 = vmatmul.mubr.f32.gmra.mrb[8].mxu0 %v852_v14 }
 0x17b   : > { %1039 = vmatprep.mubr.f32.mxu0 %v20940_v0  ;;  %12586 = vmatmul.mubr.f32.gmra.mrb[4].mxu1 %v853_v15 }
 0x17c   : > { %12588 = vmatprep.mubr.f32.mxu1 %v854_v16 }
 0x17e   : > { %1040 = vmatmul.mubr.f32.gmra.mrb[10].mxu0 %v853_v15 }
 0x17f   : > { %1045 = vmatprep.mubr.f32.mxu0 %v20940_v0  ;;  %12589 = vmatmul.mubr.f32.gmra.mrb[6].mxu1 %v855_v17 }
 0x180   : > { %12591 = vmatprep.mubr.f32.mxu1 %v856_v18 }
 0x182   : > { %1046 = vmatmul.mubr.f32.gmra.mrb[12].mxu0 %v854_v16 }
 0x183   : > { %1051 = vmatprep.mubr.f32.mxu0 %v20940_v0  ;;  %12592 = vmatmul.mubr.f32.gmra.mrb[8].mxu1 %v857_v19 }
 0x184   : > { %12594 = vmatprep.mubr.f32.mxu1 %v858_v20 }
 0x186   : > { %1052 = vmatmul.mubr.f32.gmra.mrb[14].mxu0 %v855_v17 }
 0x187   : > { %1057 = vmatprep.mubr.f32.mxu0 %v20940_v0  ;;  %12595 = vmatmul.mubr.f32.gmra.mrb[10].mxu1 %v859_v21 }
 0x188   : > { %12597 = vmatprep.mubr.f32.mxu1 %v860_v22 }
 0x18a   : > { %1058 = vmatmul.mubr.f32.gmra.mrb[16].mxu0 %v856_v18  ;;  %v17035_v18 = vrot.slane %v16938_v29, %v940_v10 }
 0x18b   : > { %1063 = vmatprep.mubr.f32.mxu0 %v20940_v0  ;;  %12598 = vmatmul.mubr.f32.gmra.mrb[12].mxu1 %v861_v23 }
 0x18c   : > { %12600 = vmatprep.mubr.f32.mxu1 %v862_v24 }
 0x18e   : > { %1064 = vmatmul.mubr.f32.gmra.mrb[18].mxu0 %v857_v19 }
 0x18f   : > { %1069 = vmatprep.mubr.f32.mxu0 %v20940_v0  ;;  %12601 = vmatmul.mubr.f32.gmra.mrb[14].mxu1 %v863_v25 }
 0x192   : > { %1070 = vmatmul.mubr.f32.gmra.mrb[20].mxu0 %v858_v20 }
 0x193   : > { %1075 = vmatprep.mubr.f32.mxu0 %v20940_v0 }
 0x196   : > { %1076 = vmatmul.mubr.f32.gmra.mrb[22].mxu0 %v859_v21 }
 0x197   : > { %1081 = vmatprep.mubr.f32.mxu0 %v20940_v0 }
 0x19a   : > { %1082 = vmatmul.mubr.f32.gmra.mrb[24].mxu0 %v860_v22 }
 0x19b   : > { %1087 = vmatprep.mubr.f32.mxu0 %v20940_v0 }
 0x19e   : > { %1088 = vmatmul.mubr.f32.gmra.mrb[26].mxu0 %v861_v23 }
 0x19f   : > { %1093 = vmatprep.mubr.f32.mxu0 %v20940_v0 }
 0x1a2   : > { %1094 = vmatmul.mubr.f32.gmra.mrb[28].mxu0 %v862_v24 }
 0x1a3   : > { %1099 = vmatprep.mubr.f32.mxu0 %v20940_v0 }
 0x1a6   : > { %1100 = vmatmul.mubr.f32.gmra.mrb[30].mxu0 %v863_v25 }
 0x23d   : > { %v1011_v32 = vpop.f32.mrb[0].mxu0 }
 0x23e   : > { %v16948_v33 = vadd.f32 %v1011_v32, %v16942_v30  ;;  %v1013_v34 = vpop.f32.mrb[1].mxu0 }
 0x23f   : > { %v1014_v38 = vadd.f32 %v1013_v34, %v16952_v35 }
 0x240   : > { %21060 = vst [vmem:[#allocation30_spill] sm:$0xff] %v16948_v33  ;;  %12619 = vmatprep.mubr.msk.f32.mxu1 %vm1251_vm0, %v16948_v33 }
 0x241   : > { %v16956_v36 = vpop.f32.mrb[2].mxu0 }
 0x242   : > { %v1019_v37 = vpop.f32.mrb[3].mxu0  ;;  %v17050_v29 = vadd.f32 %v16956_v36, %v16942_v30 }
 0x243   : > { %v1020_v39 = vadd.f32 %v1019_v37, %v16952_v35 }
 0x244   : > { %21066 = vst [vmem:[#allocation34_spill] sm:$0xff] %v17050_v29 }
 0x245   : > { %v16966_v41 = vpop.f32.mrb[4].mxu0  ;;  %v13875_v42 = vpack.c.bf16 %v1020_v39, %v1014_v38  ;;  %v16968_v43 = vpack.i.bf16 %v1020_v39, %v1014_v38 }
 0x246   : > { %v1025_v44 = vpop.f32.mrb[5].mxu0  ;;  %v16980_v51 = vpop.f32.mrb[0].mxu1  ;;  %v17056_v39 = vadd.f32 %v16966_v41, %v16942_v30 }
 0x247   : > { %13877 = vmatprep.subr.msk.bf16.mxu1 %vm16962_vm1, %v13875_v42  ;;  %v1026_v47 = vadd.f32 %v1025_v44, %v16952_v35  ;;  %v16984_v54 = vpop.f32.mrb[1].mxu1 }
 0x248   : > { %13880 = vmatpush3.bf16.xpose.msk.msra.mxu1 %vm16962_vm1, %v13875_v42  ;;  %21068 = vst [vmem:[#allocation36_spill] sm:$0xff] %v17056_v39 }
 0x249   : > { %v16974_v45 = vpop.f32.mrb[6].mxu0 }
 0x24a   : > { %v1031_v46 = vpop.f32.mrb[7].mxu0  ;;  %v16992_v56 = vpop.f32.mrb[2].mxu1  ;;  %v17077_v41 = vadd.f32 %v16974_v45, %v16942_v30 }
 0x24b   : > { %v1032_v48 = vadd.f32 %v1031_v46, %v16952_v35  ;;  %v16994_v58 = vpop.f32.mrb[3].mxu1 }
 0x24d   : > { %v16978_v49 = vpop.f32.mrb[8].mxu0  ;;  %v13881_v50 = vpack.c.bf16 %v1032_v48, %v1026_v47  ;;  %v16982_v52 = vpack.i.bf16 %v1032_v48, %v1026_v47 }
 0x24e   : > { %v1037_v53 = vpop.f32.mrb[9].mxu0  ;;  %v17000_v63 = vpop.f32.mrb[4].mxu1 }
 0x24f   : > { %13883 = vmatprep.subr.msk.bf16.mxu1 %vm16962_vm1, %v13881_v50  ;;  %v1038_v59 = vadd.f32 %v1037_v53, %v16952_v35  ;;  %v17004_v3 = vpop.f32.mrb[5].mxu1  ;;  %v17081_v53 = vadd.f32 %v16978_v49, %v16942_v30 }
 0x250   : > { %13886 = vmatpush3.bf16.xpose.msk.msra.mxu1 %vm16962_vm1, %v13881_v50 }
 0x251   : > { %v16990_v55 = vpop.f32.mrb[10].mxu0 }
 0x252   : > { %v1043_v57 = vpop.f32.mrb[11].mxu0  ;;  %v17012_v5 = vpop.f32.mrb[6].mxu1  ;;  %v17098_v49 = vadd.f32 %v16990_v55, %v16942_v30 }
 0x253   : > { %v1044_v60 = vadd.f32 %v1043_v57, %v16952_v35  ;;  %v17014_v7 = vpop.f32.mrb[7].mxu1 }
 0x255   : > { %v16998_v61 = vpop.f32.mrb[12].mxu0  ;;  %v13887_v62 = vpack.c.bf16 %v1044_v60, %v1038_v59  ;;  %v17002_v1 = vpack.i.bf16 %v1044_v60, %v1038_v59 }
 0x256   : > { %v1049_v2 = vpop.f32.mrb[13].mxu0  ;;  %v17019_v13 = vpop.f32.mrb[8].mxu1 }
 0x257   : > { %21064 = vst [vmem:[#allocation32_spill] sm:$0xff] %v17002_v1  ;;  %13889 = vmatprep.subr.msk.bf16.mxu1 %vm16962_vm1, %v13887_v62  ;;  %v1050_v8 = vadd.f32 %v1049_v2, %v16952_v35  ;;  %v17026_v17 = vpop.f32.mrb[9].mxu1 }
 0x258   : > { %13892 = vmatpush3.bf16.xpose.msk.msra.mxu1 %vm16962_vm1, %v13887_v62 }
 0x259   : > { %v17010_v4 = vpop.f32.mrb[14].mxu0 }
 0x25a   : > { %v1055_v6 = vpop.f32.mrb[15].mxu0  ;;  %v12596_v20 = vpop.f32.mrb[10].mxu1  ;;  %v17121_v55 = vadd.f32 %v17010_v4, %v16942_v30 }
 0x25b   : > { %v1056_v9 = vadd.f32 %v1055_v6, %v16952_v35  ;;  %v17041_v23 = vadd.f32 %v12596_v20, %v17035_v18  ;;  %v1222_v24 = vpop.f32.mrb[11].mxu1 }
 0x25c   : > { %v17046_v27 = vadd.f32 %v1222_v24, %v17035_v18 }
 0x25d   : > { %v1059_v11 = vpop.f32.mrb[16].mxu0  ;;  %v13893_v12 = vpack.c.bf16 %v1056_v9, %v1050_v8  ;;  %v17021_v14 = vpack.i.bf16 %v1056_v9, %v1050_v8 }
 0x25e   : > { %v17024_v15 = vadd.f32 %v1059_v11, %v16942_v30  ;;  %v1061_v16 = vpop.f32.mrb[17].mxu0  ;;  %v12599_v37 = vpop.f32.mrb[12].mxu1  ;;  %v17106_v11 = vadd.f32 %v16998_v61, %v16942_v30 }
 0x25f   : > { %21065 = vst [vmem:[#allocation33_spill] sm:$0xff] %v17021_v14  ;;  %13895 = vmatprep.subr.msk.bf16.mxu1 %vm16962_vm1, %v13893_v12  ;;  %v1062_v25 = vadd.f32 %v1061_v16, %v16952_v35  ;;  %v17062_v46 = vadd.f32 %v12599_v37, %v17035_v18  ;;  %v1232_v47 = vpop.f32.mrb[13].mxu1 }
 0x260   : > { %13898 = vmatpush3.bf16.xpose.msk.msra.mxu1 %vm16962_vm1, %v13893_v12  ;;  %12647 = vmatprep.mubr.msk.f32.mxu0 %vm1251_vm0, %v17024_v15  ;;  %v17069_v36 = vadd.f32 %v1232_v47, %v17035_v18 }
 0x261   : > { %v1065_v19 = vpop.f32.mrb[18].mxu0 }
 0x262   : > { %v17038_v21 = vadd.f32 %v1065_v19, %v16942_v30  ;;  %v1067_v22 = vpop.f32.mrb[19].mxu0  ;;  %v12602_v50 = vpop.f32.mrb[14].mxu1 }
 0x263   : > { %v1068_v26 = vadd.f32 %v1067_v22, %v16952_v35  ;;  %v17087_v60 = vadd.f32 %v12602_v50, %v17035_v18  ;;  %v1242_v62 = vpop.f32.mrb[15].mxu1 }
 0x264   : > { %v17094_v45 = vadd.f32 %v1242_v62, %v17035_v18 }
 0x265   : > { %v1071_v32 = vpop.f32.mrb[20].mxu0  ;;  %v13899_v34 = vpack.c.bf16 %v1068_v26, %v1062_v25  ;;  %v17052_v38 = vpack.i.bf16 %v1068_v26, %v1062_v25 }
 0x266   : > { %v17059_v42 = vadd.f32 %v1071_v32, %v16942_v30  ;;  %v1073_v44 = vpop.f32.mrb[21].mxu0 }
 0x267   : > { %21067 = vst [vmem:[#allocation35_spill] sm:$0xff] %v17052_v38  ;;  %12620 = vmatmul.mubr.msk.f32.vlgmr.msra.gmra.mrb[16].mxu1 %vm1251_vm0, %v17050_v29  ;;  %13901 = vmatprep.subr.msk.bf16.mxu0 %vm16962_vm1, %v13899_v34  ;;  %v1074_v2 = vadd.f32 %v1073_v44, %v16952_v35 }
 0x268   : > { %12622 = vmatprep.mubr.msk.f32.mxu1 %vm1251_vm0, %v17056_v39  ;;  %13904 = vmatpush3.bf16.xpose.msk.msra.mxu0 %vm16962_vm1, %v13899_v34 }
 0x269   : > { %v1077_v48 = vpop.f32.mrb[22].mxu0 }
 0x26a   : > { %v17084_v57 = vadd.f32 %v1077_v48, %v16942_v30  ;;  %v1079_v59 = vpop.f32.mrb[23].mxu0 }
 0x26b   : > { %v1080_v6 = vadd.f32 %v1079_v59, %v16952_v35  ;;  %12623 = vmatmul.mubr.msk.f32.gmra.mrb[18].mxu1 %vm1251_vm0, %v17077_v41 }
 0x26c   : > { %12625 = vmatprep.mubr.msk.f32.mxu1 %vm1251_vm0, %v17081_v53 }
 0x26d   : > { %v1083_v8 = vpop.f32.mrb[24].mxu0  ;;  %v13905_v9 = vpack.c.bf16 %v1080_v6, %v1074_v2  ;;  %v17102_v10 = vpack.i.bf16 %v1080_v6, %v1074_v2  ;;  %v1188_v2 = vadd.f32 %v16992_v56, %v17035_v18  ;;  %v1183_v6 = vadd.f32 %v16994_v58, %v17035_v18 }
 0x26e   : > { %v17109_v12 = vadd.f32 %v1083_v8, %v16942_v30  ;;  %v1085_v16 = vpop.f32.mrb[25].mxu0  ;;  %v1208_v56 = vadd.f32 %v17012_v5, %v17035_v18  ;;  %v1203_v58 = vadd.f32 %v17014_v7, %v17035_v18  ;;  %v17199_v7 = vpack.c.bf16 %v17041_v23, %v17046_v27 }
 0x26f   : > { %21069 = vst [vmem:[#allocation37_spill] sm:$0xff] %v17102_v10  ;;  %12626 = vmatmul.mubr.msk.f32.gmra.mrb[20].mxu1 %vm1251_vm0, %v17098_v49  ;;  %13907 = vmatprep.subr.msk.bf16.mxu0 %vm16962_vm1, %v13905_v9  ;;  %v1086_v22 = vadd.f32 %v1085_v16, %v16952_v35  ;;  %v1198_v16 = vadd.f32 %v17000_v63, %v17035_v18 }
 0x270   : > { %12628 = vmatprep.mubr.msk.f32.mxu1 %vm1251_vm0, %v17106_v11  ;;  %13910 = vmatpush3.bf16.xpose.msk.msra.mxu0 %vm16962_vm1, %v13905_v9  ;;  %v13935_v63 = vpack.c.bf16 %v1208_v56, %v1203_v58 }
 0x271   : > { %v1089_v61 = vpop.f32.mrb[26].mxu0 }
 0x272   : > { %v17124_v19 = vadd.f32 %v1089_v61, %v16942_v30  ;;  %v1091_v20 = vpop.f32.mrb[27].mxu0  ;;  %v13927_v61 = vpack.c.bf16 %v1188_v2, %v1183_v6 }
 0x273   : > { %v1092_v24 = vadd.f32 %v1091_v20, %v16952_v35  ;;  %12629 = vmatmul.mubr.msk.f32.gmra.mrb[22].mxu1 %vm1251_vm0, %v17121_v55 }
 0x275   : > { %v1095_v25 = vpop.f32.mrb[28].mxu0  ;;  %v13911_v26 = vpack.c.bf16 %v1092_v24, %v1086_v22  ;;  %v17130_v32 = vpack.i.bf16 %v1092_v24, %v1086_v22  ;;  %v1213_v24 = vadd.f32 %v17026_v17, %v17035_v18  ;;  %v17207_v17 = vpack.c.bf16 %v17062_v46, %v17069_v36 }
 0x276   : > { %v17133_v34 = vadd.f32 %v1095_v25, %v16942_v30  ;;  %v1097_v4 = vpop.f32.mrb[29].mxu0  ;;  %v17190_v25 = vpack.i.bf16 %v1208_v56, %v1203_v58 }
 0x277   : > { %21070 = vst [vmem:[#allocation38_spill] sm:$0xff] %v17130_v32  ;;  %13913 = vmatprep.subr.msk.bf16.mxu0 %vm16962_vm1, %v13911_v26  ;;  %v1098_v48 = vadd.f32 %v1097_v4, %v16952_v35  ;;  %v17215_v4 = vpack.c.bf16 %v17087_v60, %v17094_v45 }
 0x278   : > { %13916 = vmatpush3.bf16.xpose.msk.msra.mxu0 %vm16962_vm1, %v13911_v26  ;;  %21074 = vst [vmem:[#allocation42_spill] sm:$0xff] %v17190_v25 }
 0x279   : > { %v1101_v37 = vpop.f32.mrb[30].mxu0 }
 0x27a   : > { %v17140_v44 = vadd.f32 %v1101_v37, %v16942_v30  ;;  %v1103_v47 = vpop.f32.mrb[31].mxu0  ;;  %v1178_v30 = vadd.f32 %v16980_v51, %v17035_v18  ;;  %v1193_v51 = vadd.f32 %v17004_v3, %v17035_v18  ;;  %v1218_v3 = vadd.f32 %v17019_v13, %v17035_v18 }
 0x27b   : > { %v1104_v50 = vadd.f32 %v1103_v47, %v16952_v35  ;;  %v1173_v35 = vadd.f32 %v16984_v54, %v17035_v18  ;;  %v17178_v54 = vpack.i.bf16 %v1188_v2, %v1183_v6  ;;  %v17203_v13 = vpack.i.bf16 %v17041_v23, %v17046_v27 }
 0x27c   : > { %v13931_v20 = vpack.c.bf16 %v1198_v16, %v1193_v51  ;;  %v17184_v22 = vpack.i.bf16 %v1198_v16, %v1193_v51  ;;  %v17192_v5 = vpack.c.bf16 %v1218_v3, %v1213_v24  ;;  %v17194_v26 = vpack.i.bf16 %v1218_v3, %v1213_v24 }
 0x27d   : > { %v13917_v59 = vpack.c.bf16 %v1104_v50, %v1098_v48  ;;  %v17144_v62 = vpack.i.bf16 %v1104_v50, %v1098_v48  ;;  %v13923_v8 = vpack.c.bf16 %v1178_v30, %v1173_v35  ;;  %v17172_v9 = vpack.i.bf16 %v1178_v30, %v1173_v35  ;;  %21072 = vst [vmem:[#allocation40_spill] sm:$0xff] %v17178_v54 }
 0x27e   : > { %21073 = vst [vmem:[#allocation41_spill] sm:$0xff] %v17184_v22  ;;  %21075 = vst [vmem:[#allocation43_spill] sm:$0xff] %v17194_v26  ;;  %v17211_v18 = vpack.i.bf16 %v17062_v46, %v17069_v36  ;;  %v17219_v37 = vpack.i.bf16 %v17087_v60, %v17094_v45 }
 0x27f   : > { %13919 = vmatprep.subr.msk.bf16.mxu0 %vm16962_vm1, %v13917_v59  ;;  %13924 = vmatprep.subr.bf16.mxu1 %v13923_v8  ;;  %21071 = vst [vmem:[#allocation39_spill] sm:$0xff] %v17172_v9  ;;  %21076 = vst [vmem:[#allocation44_spill] sm:$0xff] %v17203_v13 }
 0x280   : > { %13922 = vmatpush3.bf16.xpose.msk.msra.mxu0 %vm16962_vm1, %v13917_v59  ;;  %13926 = vmatpush3.bf16.msra.mxu1 %v13923_v8  ;;  %21077 = vst [vmem:[#allocation45_spill] sm:$0xff] %v17211_v18  ;;  %21078 = vst [vmem:[#allocation46_spill] sm:$0xff] %v17219_v37 }
 0x281   : > { %13928 = vmatprep.subr.bf16.mxu1 %v13927_v61 }
 0x284   : > { %13930 = vmatpush3.bf16.msra.mxu1 %v13927_v61 }
 0x285   : > { %13932 = vmatprep.subr.bf16.mxu1 %v13931_v20 }
 0x287   : > { %12648 = vmatmul.mubr.msk.f32.vlgmr.msra.gmra.mrb[32].mxu0 %vm1251_vm0, %v17038_v21 }
 0x288   : > { %12650 = vmatprep.mubr.msk.f32.mxu0 %vm1251_vm0, %v17059_v42  ;;  %13934 = vmatpush3.bf16.msra.mxu1 %v13931_v20 }
 0x289   : > { %13936 = vmatprep.subr.bf16.mxu1 %v13935_v63 }
 0x28b   : > { %12651 = vmatmul.mubr.msk.f32.gmra.mrb[34].mxu0 %vm1251_vm0, %v17084_v57 }
 0x28c   : > { %12653 = vmatprep.mubr.msk.f32.mxu0 %vm1251_vm0, %v17109_v12  ;;  %13938 = vmatpush3.bf16.msra.mxu1 %v13935_v63 }
 0x28d   : > { %13940 = vmatprep.subr.bf16.mxu1 %v17192_v5 }
 0x28f   : > { %12654 = vmatmul.mubr.msk.f32.gmra.mrb[36].mxu0 %vm1251_vm0, %v17124_v19 }
 0x290   : > { %12656 = vmatprep.mubr.msk.f32.mxu0 %vm1251_vm0, %v17133_v34 }
 0x293   : > { %12657 = vmatmul.mubr.msk.f32.gmra.mrb[38].mxu0 %vm1251_vm0, %v17140_v44 }
 0x33a   : > { %v12621_v47 = vpop.f32.mrb[16].mxu1 }
 0x33b   : > { %v1366_v23 = vpop.f32.mrb[17].mxu1  ;;  %v1562_v46 = vsel %vm1558_vm2, %v12621_v47, -inf }
 0x33c   : > { %v1559_v27 = vsel %vm1558_vm2, %v1366_v23, -inf }
 0x33d   : > { %1560 = vmax.xlane.f32.xlu0 %v1559_v27 }
 0x33e   : > { %v12624_v48 = vpop.f32.mrb[18].mxu1 }
 0x33f   : > { %v1376_v50 = vpop.f32.mrb[19].mxu1  ;;  %v1568_v59 = vsel %vm1558_vm2, %v12624_v48, -inf }
 0x340   : > { %1569 = vmax.xlane.f32.xlu1 %v1568_v59  ;;  %v1565_v35 = vsel %vm1558_vm2, %v1376_v50, -inf }
 0x341   : > { %1563 = vmax.xlane.f32.xlu0 %v1562_v46 }
 0x342   : > { %v12627_v36 = vpop.f32.mrb[20].mxu1 }
 0x343   : > { %v1386_v30 = vpop.f32.mrb[21].mxu1  ;;  %v1574_v6 = vsel %vm1558_vm2, %v12627_v36, -inf }
 0x344   : > { %1566 = vmax.xlane.f32.xlu1 %v1565_v35  ;;  %v1571_v60 = vsel %vm1558_vm2, %v1386_v30, -inf }
 0x345   : > { %1572 = vmax.xlane.f32.xlu0 %v1571_v60 }
 0x346   : > { %v17226_v45 = vpop.f32.mrb[22].mxu1 }
 0x347   : > { %v1396_v2 = vpop.f32.mrb[23].mxu1  ;;  %v1580_v16 = vsel %vm1558_vm2, %v17226_v45, -inf }
 0x348   : > { %1575 = vmax.xlane.f32.xlu1 %v1574_v6  ;;  %v1577_v8 = vsel %vm1558_vm2, %v1396_v2, -inf }
 0x349   : > { %1578 = vmax.xlane.f32.xlu0 %v1577_v8 }
 0x34c   : > { %1581 = vmax.xlane.f32.xlu1 %v1580_v16 }
 0x35a   : > { %v17232_v51 = vpop.f32.mrb[32].mxu0 }
 0x35b   : > { %v17234_v61 = vpop.f32.mrb[33].mxu0  ;;  %v1586_v56 = vsel %vm1558_vm2, %v17232_v51, -inf }
 0x35c   : > { %1587 = vmax.xlane.f32.xlu1 %v1586_v56  ;;  %v1583_v58 = vsel %vm1558_vm2, %v17234_v61, -inf }
 0x35d   : > { %1584 = vmax.xlane.f32.xlu0 %v1583_v58 }
 0x35e   : > { %v17240_v20 = vpop.f32.mrb[34].mxu0 }
 0x35f   : > { %v17242_v63 = vpop.f32.mrb[35].mxu0  ;;  %v1592_v3 = vsel %vm1558_vm2, %v17240_v20, -inf }
 0x360   : > { %1593 = vmax.xlane.f32.xlu1 %v1592_v3  ;;  %v1589_v24 = vsel %vm1558_vm2, %v17242_v63, -inf }
 0x361   : > { %1590 = vmax.xlane.f32.xlu0 %v1589_v24 }
 0x362   : > { %v17248_v27 = vpop.f32.mrb[36].mxu0 }
 0x363   : > { %v17250_v59 = vpop.f32.mrb[37].mxu0  ;;  %v1598_v46 = vsel %vm1558_vm2, %v17248_v27, -inf }
 0x364   : > { %1599 = vmax.xlane.f32.xlu1 %v1598_v46  ;;  %v1595_v35 = vsel %vm1558_vm2, %v17250_v59, -inf }
 0x365   : > { %1596 = vmax.xlane.f32.xlu0 %v1595_v35 }
 0x366   : > { %v17256_v60 = vpop.f32.mrb[38].mxu0 }
 0x367   : > { %v17258_v6 = vpop.f32.mrb[39].mxu0  ;;  %v1604_v8 = vsel %vm1558_vm2, %v17256_v60, -inf }
 0x368   : > { %1605 = vmax.xlane.f32.xlu1 %v1604_v8  ;;  %v1601_v16 = vsel %vm1558_vm2, %v17258_v6, -inf }
 0x369   : > { %1602 = vmax.xlane.f32.xlu0 %v1601_v16 }
 0x3ca   : > { %v1561_v56 = vpop.xlane.xlu0 %1560 }
 0x3cb   : > { %v1607_v58 = vsub.f32 %v1366_v23, %v1561_v56 }
 0x3cd   : > { %v1623_v3 = vmul.f32 1.442695, %v1607_v58  ;;  %v1570_v24 = vpop.xlane.xlu1 %1569 }
 0x3ce   : > { %v1610_v46 = vsub.f32 %v12624_v48, %v1570_v24  ;;  %v1564_v0 = vpop.xlane.xlu0 %1563 }
 0x3cf   : > { %15433 = vpow2.f32 %v1623_v3  ;;  %v1608_v35 = vsub.f32 %v12621_v47, %v1564_v0 }
 0x3d0   : > { %v1629_v31 = vmul.f32 1.442695, %v1610_v46 }
 0x3d1   : > { %v1625_v28 = vmul.f32 1.442695, %v1608_v35  ;;  %v1567_v25 = vpop.xlane.xlu1 %1566 }
 0x3d2   : > { %v1609_v54 = vsub.f32 %v1376_v50, %v1567_v25  ;;  %v1573_v22 = vpop.xlane.xlu0 %1572 }
 0x3d3   : > { %15435 = vpow2.f32 %v1625_v28  ;;  %v1611_v9 = vsub.f32 %v1386_v30, %v1573_v22 }
 0x3d4   : > { %v1627_v8 = vmul.f32 1.442695, %v1609_v54  ;;  %15437 = vpow2.f32 %v1629_v31 }
 0x3d5   : > { %v1631_v37 = vmul.f32 1.442695, %v1611_v9  ;;  %v1576_v18 = vpop.xlane.xlu1 %1575 }
 0x3d6   : > { %15439 = vpow2.f32 %v1627_v8  ;;  %v1612_v16 = vsub.f32 %v12627_v36, %v1576_v18  ;;  %v1579_v23 = vpop.xlane.xlu0 %1578 }
 0x3d7   : > { %v1613_v56 = vsub.f32 %v1396_v2, %v1579_v23  ;;  %15441 = vpow2.f32 %v1631_v37 }
 0x3d8   : > { %v1633_v48 = vmul.f32 1.442695, %v1612_v16 }
 0x3d9   : > { %v17264_v58 = vpop.eup %15433  ;;  %v1635_v0 = vmul.f32 1.442695, %v1613_v56  ;;  %v1582_v47 = vpop.xlane.xlu1 %1581 }
 0x3da   : > { %15443 = vpow2.f32 %v1633_v48  ;;  %v1614_v25 = vsub.f32 %v17226_v45, %v1582_v47  ;;  %v1655_v28 = vsel %vm1558_vm2, %v17264_v58, 0.0 }
 0x3db   : > { %1656 = vadd.xlane.f32.xlu0 %v1655_v28  ;;  %15445 = vpow2.f32 %v1635_v0 }
 0x3dc   : > { %v1637_v31 = vmul.f32 1.442695, %v1614_v25 }
 0x3dd   : > { %v17269_v9 = vpop.eup %15435 }
 0x3de   : > { %15447 = vpow2.f32 %v1637_v31  ;;  %v1658_v54 = vsel %vm1558_vm2, %v17269_v9, 0.0  ;;  %v17273_v22 = vpop.eup %15437 }
 0x3df   : > { %1659 = vadd.xlane.f32.xlu1 %v1658_v54  ;;  %v1664_v36 = vsel %vm1558_vm2, %v17273_v22, 0.0 }
 0x3e0   : > { %v17275_v18 = vpop.eup %15439 }
 0x3e1   : > { %v1661_v37 = vsel %vm1558_vm2, %v17275_v18, 0.0  ;;  %v17279_v50 = vpop.eup %15441 }
 0x3e2   : > { %1662 = vadd.xlane.f32.xlu0 %v1661_v37  ;;  %v1667_v45 = vsel %vm1558_vm2, %v17279_v50, 0.0 }
 0x3e3   : > { %1665 = vadd.xlane.f32.xlu1 %v1664_v36 }
 0x3e4   : > { %v17283_v30 = vpop.eup %15443 }
 0x3e5   : > { %v1670_v2 = vsel %vm1558_vm2, %v17283_v30, 0.0  ;;  %v17289_v3 = vpop.eup %15445 }
 0x3e6   : > { %1668 = vadd.xlane.f32.xlu0 %v1667_v45  ;;  %v1673_v35 = vsel %vm1558_vm2, %v17289_v3, 0.0 }
 0x3e7   : > { %1671 = vadd.xlane.f32.xlu1 %v1670_v2 }
 0x3e8   : > { %v17291_v24 = vpop.eup %15447 }
 0x3e9   : > { %v1588_v46 = vpop.xlane.xlu1 %1587  ;;  %v1676_v8 = vsel %vm1558_vm2, %v17291_v24, 0.0 }
 0x3ea   : > { %v1616_v16 = vsub.f32 %v17232_v51, %v1588_v46  ;;  %1674 = vadd.xlane.f32.xlu0 %v1673_v35  ;;  %v1585_v23 = vpop.xlane.xlu0 %1584 }
 0x3eb   : > { %v1615_v56 = vsub.f32 %v17234_v61, %v1585_v23  ;;  %1677 = vadd.xlane.f32.xlu1 %v1676_v8 }
 0x3ec   : > { %v1641_v48 = vmul.f32 1.442695, %v1616_v16 }
 0x3ed   : > { %v1639_v0 = vmul.f32 1.442695, %v1615_v56  ;;  %v1594_v61 = vpop.xlane.xlu1 %1593 }
 0x3ee   : > { %15449 = vpow2.f32 %v1641_v48  ;;  %v1591_v31 = vpop.xlane.xlu0 %1590  ;;  %v1618_v54 = vsub.f32 %v17240_v20, %v1594_v61 }
 0x3ef   : > { %15451 = vpow2.f32 %v1639_v0  ;;  %v1617_v37 = vsub.f32 %v17242_v63, %v1591_v31 }
 0x3f0   : > { %v1645_v2 = vmul.f32 1.442695, %v1618_v54 }
 0x3f1   : > { %v1600_v36 = vpop.xlane.xlu1 %1599  ;;  %v1643_v35 = vmul.f32 1.442695, %v1617_v37 }
 0x3f2   : > { %v1597_v45 = vpop.xlane.xlu0 %1596  ;;  %v1620_v46 = vsub.f32 %v17248_v27, %v1600_v36  ;;  %15453 = vpow2.f32 %v1645_v2 }
 0x3f3   : > { %v1619_v8 = vsub.f32 %v17250_v59, %v1597_v45  ;;  %15455 = vpow2.f32 %v1643_v35 }
 0x3f4   : > { %v1649_v16 = vmul.f32 1.442695, %v1620_v46 }
 0x3f5   : > { %v1647_v23 = vmul.f32 1.442695, %v1619_v8 }
 0x3f6   : > { %15457 = vpow2.f32 %v1649_v16  ;;  %v1603_v31 = vpop.xlane.xlu0 %1602 }
 0x3f7   : > { %15459 = vpow2.f32 %v1647_v23  ;;  %v1621_v37 = vsub.f32 %v17258_v6, %v1603_v31 }
 0x3f8   : > { %v17299_v47 = vpop.eup %15449 }
 0x3f9   : > { %v17301_v25 = vpop.eup %15451  ;;  %v1682_v28 = vsel %vm1558_vm2, %v17299_v47, 0.0  ;;  %v1651_v36 = vmul.f32 1.442695, %v1621_v37 }
 0x3fa   : > { %1683 = vadd.xlane.f32.xlu1 %v1682_v28  ;;  %v1679_v51 = vsel %vm1558_vm2, %v17301_v25, 0.0 }
 0x3fb   : > { %1680 = vadd.xlane.f32.xlu0 %v1679_v51  ;;  %v1606_v51 = vpop.xlane.xlu1 %1605 }
 0x3fc   : > { %v17315_v56 = vpop.eup %15453  ;;  %v1622_v61 = vsub.f32 %v17256_v60, %v1606_v51 }
 0x3fd   : > { %v17317_v48 = vpop.eup %15455  ;;  %v1688_v20 = vsel %vm1558_vm2, %v17315_v56, 0.0 }
 0x3fe   : > { %v1685_v27 = vsel %vm1558_vm2, %v17317_v48, 0.0  ;;  %v1653_v54 = vmul.f32 1.442695, %v1622_v61 }
 0x400   : > { %v17321_v63 = vpop.eup %15457  ;;  %15461 = vpow2.f32 %v1653_v54 }
 0x401   : > { %v17325_v59 = vpop.eup %15459  ;;  %v1694_v0 = vsel %vm1558_vm2, %v17321_v63, 0.0  ;;  %15463 = vpow2.f32 %v1651_v36 }
 0x402   : > { %v1691_v28 = vsel %vm1558_vm2, %v17325_v59, 0.0 }
 0x40a   : > { %v17349_v60 = vpop.eup %15461 }
 0x40b   : > { %14959 = vrot.lane.b32.xlu1 %v17102_v10, %s16417_s15  ;;  %v1700_v6 = vsel %vm1558_vm2, %v17349_v60, 0.0  ;;  %v17355_v45 = vpop.eup %15463 }
 0x40c   : > { %v1697_v46 = vsel %vm1558_vm2, %v17355_v45, 0.0 }
 0x411   : > { %14954 = vrot.lane.b32.xlu0 %v17052_v38, %s16417_s15 }
 0x42f   : > { %1689 = vadd.xlane.f32.xlu1 %v1688_v20 }
 0x430   : > { %1686 = vadd.xlane.f32.xlu0 %v1685_v27 }
 0x433   : > { %1695 = vadd.xlane.f32.xlu1 %v1694_v0 }
 0x434   : > { %1692 = vadd.xlane.f32.xlu0 %v1691_v28 }
 0x444   : > { %14969 = vrot.lane.b32.xlu1 %v17144_v62, %s16417_s15 }
 0x44a   : > { %14964 = vrot.lane.b32.xlu0 %v17130_v32, %s16417_s15 }
 0x44e   : > { %2166 = vrot.lane.b32.xlu0 %v17024_v15, %s16417_s15 }
 0x452   : > { %2170 = vrot.lane.b32.xlu0 %v17059_v42, %s16417_s15 }
 0x456   : > { %2174 = vrot.lane.b32.xlu0 %v17109_v12, %s16417_s15 }
 0x45a   : > { %2178 = vrot.lane.b32.xlu0 %v17133_v34, %s16417_s15 }
 0x45e   : > { %14974 = vrot.lane.b32.xlu0 %v16968_v43, %s16417_s15 }
 0x462   : > { %14984 = vrot.lane.b32.xlu0 %v17002_v1, %s16417_s15 }
 0x466   : > { %1997 = vrot.lane.b32.xlu0 %v16948_v33, %s16417_s15 }
 0x468   : > { %1701 = vadd.xlane.f32.xlu1 %v1700_v6  ;;  %v1657_v2 = vpop.xlane.xlu0 %1656 }
 0x469   : > { %15465 = vrcp.f32 %v1657_v2 }
 0x46a   : > { %2001 = vrot.lane.b32.xlu0 %v17056_v39, %s16417_s15 }
 0x46c   : > { %v1660_v35 = vpop.xlane.xlu1 %1659  ;;  %1698 = vadd.xlane.f32.xlu1 %v1697_v46 }
 0x46d   : > { %15467 = vrcp.f32 %v1660_v35 }
 0x46e   : > { %2005 = vrot.lane.b32.xlu0 %v17081_v53, %s16417_s15 }
 0x46f   : > { %v1663_v8 = vpop.xlane.xlu0 %1662 }
 0x470   : > { %15469 = vrcp.f32 %v1663_v8  ;;  %v1666_v16 = vpop.xlane.xlu1 %1665 }
 0x471   : > { %15471 = vrcp.f32 %v1666_v16 }
 0x472   : > { %2009 = vrot.lane.b32.xlu0 %v17106_v11, %s16417_s15 }
 0x473   : > { %v15466_v23 = vpop.eup %15465  ;;  %v1669_v20 = vpop.xlane.xlu0 %1668 }
 0x474   : > { %15473 = vrcp.f32 %v1669_v20  ;;  %v1672_v27 = vpop.xlane.xlu1 %1671  ;;  %v1719_v0 = vmul.f32 %v15466_v23, %v17264_v58 }
 0x475   : > { %15475 = vrcp.f32 %v1672_v27 }
 0x476   : > { %14994 = vrot.lane.b32.xlu0 %v17194_v26, %s16417_s15  ;;  %12675 = vmatprep.mubr.msk.f32.mxu1 %vm1558_vm2, %v1719_v0 }
 0x477   : > { %v15468_v28 = vpop.eup %15467  ;;  %v1675_v51 = vpop.xlane.xlu0 %1674 }
 0x478   : > { %v1720_v61 = vmul.f32 %v15468_v28, %v17269_v9  ;;  %15477 = vrcp.f32 %v1675_v51  ;;  %v1678_v31 = vpop.xlane.xlu1 %1677 }
 0x479   : > { %15479 = vrcp.f32 %v1678_v31 }
 0x47a   : > { %v15470_v54 = vpop.eup %15469  ;;  %15014 = vrot.lane.b32.xlu0 %v16968_v43, %s16418_s6  ;;  %12676 = vmatmul.mubr.msk.f32.vlgmr.msra.gmra.mrb[24].mxu1 %vm1558_vm2, %v1720_v61 }
 0x47b   : > { %v15472_v58 = vpop.eup %15471  ;;  %13942 = vmatpush3.bf16.msra.mxu1 %v17192_v5  ;;  %v1721_v37 = vmul.f32 %v15470_v54, %v17275_v18 }
 0x47c   : > { %13944 = vmatprep.subr.bf16.mxu1 %v17199_v7  ;;  %v1722_v36 = vmul.f32 %v15472_v58, %v17273_v22 }
 0x47d   : > { %2168 = vrot.lane.b32.xlu1 %v17038_v21, %s16417_s15  ;;  %12678 = vmatprep.mubr.msk.f32.mxu1 %vm1558_vm2, %v1721_v37 }
 0x47e   : > { %v15474_v9 = vpop.eup %15473  ;;  %15024 = vrot.lane.b32.xlu0 %v17002_v1, %s16418_s6  ;;  %12679 = vmatmul.mubr.msk.f32.gmra.mrb[26].mxu1 %vm1558_vm2, %v1722_v36 }
 0x47f   : > { %v15476_v6 = vpop.eup %15475  ;;  %13946 = vmatpush3.bf16.msra.mxu1 %v17199_v7  ;;  %v1723_v5 = vmul.f32 %v15474_v9, %v17279_v50 }
 0x480   : > { %13948 = vmatprep.subr.bf16.mxu1 %v17207_v17  ;;  %v1724_v22 = vmul.f32 %v15476_v6, %v17283_v30 }
 0x481   : > { %2172 = vrot.lane.b32.xlu1 %v17084_v57, %s16417_s15  ;;  %12681 = vmatprep.mubr.msk.f32.mxu1 %vm1558_vm2, %v1723_v5 }
 0x482   : > { %v15478_v18 = vpop.eup %15477  ;;  %15034 = vrot.lane.b32.xlu0 %v17052_v38, %s16418_s6  ;;  %12682 = vmatmul.mubr.msk.f32.gmra.mrb[28].mxu1 %vm1558_vm2, %v1724_v22 }
 0x483   : > { %v15480_v2 = vpop.eup %15479  ;;  %13950 = vmatpush3.bf16.msra.mxu1 %v17207_v17  ;;  %v1725_v7 = vmul.f32 %v15478_v18, %v17289_v3 }
 0x484   : > { %13952 = vmatprep.subr.bf16.mxu1 %v17215_v4  ;;  %v1726_v50 = vmul.f32 %v15480_v2, %v17291_v24 }
 0x485   : > { %2176 = vrot.lane.b32.xlu1 %v17124_v19, %s16417_s15  ;;  %12684 = vmatprep.mubr.msk.f32.mxu1 %vm1558_vm2, %v1725_v7 }
 0x486   : > { %3225 = vrot.lane.b32.xlu0 %v17050_v29, %s16418_s6  ;;  %12685 = vmatmul.mubr.msk.f32.gmra.mrb[30].mxu1 %vm1558_vm2, %v1726_v50 }
 0x487   : > { %13954 = vmatpush3.bf16.msra.mxu1 %v17215_v4  ;;  %v1684_v30 = vpop.xlane.xlu1 %1683 }
 0x488   : > { %15481 = vrcp.f32 %v1684_v30  ;;  %v1681_v17 = vpop.xlane.xlu0 %1680 }
 0x489   : > { %15483 = vrcp.f32 %v1681_v17  ;;  %2180 = vrot.lane.b32.xlu1 %v17140_v44, %s16417_s15 }
 0x48b   : > { %v14960_v8 = vpop.permute.xlu1 %14959 }
 0x48c   : > { %v14955_v3 = vpop.permute.xlu0 %14954  ;;  %v14962_v23 = vunpack.i.h.bf16 %v14960_v8  ;;  %v14961_v20 = vunpack.i.l.bf16 %v14960_v8 }
 0x48d   : > { %v14957_v24 = vunpack.i.h.bf16 %v14955_v3  ;;  %v14956_v46 = vunpack.i.l.bf16 %v14955_v3  ;;  %14979 = vrot.lane.b32.xlu1 %v16982_v52, %s16417_s15 }
 0x48e   : > { %v13985_v28 = vpack.c.bf16 %v14962_v23, %v14961_v20 }
 0x48f   : > { %v13979_v35 = vpack.c.bf16 %v14957_v24, %v14956_v46 }
 0x491   : > { %14989 = vrot.lane.b32.xlu1 %v17021_v14, %s16417_s15  ;;  %13981 = vmatprep.subr.msk.bf16.mxu1 %vm16962_vm1, %v13979_v35 }
 0x492   : > { %v15482_v4 = vpop.eup %15481 }
 0x493   : > { %v15484_v16 = vpop.eup %15483  ;;  %v1728_v0 = vmul.f32 %v15482_v4, %v17299_v47  ;;  %v21079_v47 = vld [vmem:[#allocation45_spill] sm:$0xff] }
 0x494   : > { %v1727_v27 = vmul.f32 %v15484_v16, %v17301_v25  ;;  %v21080_v25 = vld [vmem:[#allocation46_spill] sm:$0xff] }
 0x495   : > { %1999 = vrot.lane.b32.xlu1 %v17050_v29, %s16417_s15 }
 0x496   : > { %12703 = vmatprep.mubr.msk.f32.mxu1 %vm1558_vm2, %v1727_v27 }
 0x497   : > { %12704 = vmatmul.mubr.msk.f32.vlgmr.msra.gmra.mrb[32].mxu1 %vm1558_vm2, %v1728_v0 }
 0x498   : > { %13984 = vmatpush3.bf16.xpose.msk.msra.mxu1 %vm16962_vm1, %v13979_v35 }
 0x499   : > { %13987 = vmatprep.subr.msk.bf16.mxu1 %vm16962_vm1, %v13985_v28  ;;  %2003 = vrot.lane.b32.xlu1 %v17077_v41, %s16417_s15 }
 0x49d   : > { %2007 = vrot.lane.b32.xlu1 %v17098_v49, %s16417_s15 }
 0x4a0   : > { %13990 = vmatpush3.bf16.xpose.msk.msra.mxu1 %vm16962_vm1, %v13985_v28 }
 0x4a1   : > { %2011 = vrot.lane.b32.xlu1 %v17121_v55, %s16417_s15 }
 0x4a5   : > { %14999 = vrot.lane.b32.xlu1 %v17203_v13, %s16417_s15 }
 0x4a9   : > { %15004 = vrot.lane.b32.xlu1 %v21079_v47, %s16417_s15 }
 0x4ad   : > { %15009 = vrot.lane.b32.xlu1 %v21080_v25, %s16417_s15 }
 0x4b1   : > { %15019 = vrot.lane.b32.xlu1 %v16982_v52, %s16418_s6 }
 0x4b5   : > { %15029 = vrot.lane.b32.xlu1 %v17021_v14, %s16418_s6 }
 0x4b9   : > { %3223 = vrot.lane.b32.xlu1 %v16948_v33, %s16418_s6 }
 0x4bc   : > { %v1690_v51 = vpop.xlane.xlu1 %1689 }
 0x4bd   : > { %15485 = vrcp.f32 %v1690_v51  ;;  %15039 = vrot.lane.b32.xlu1 %v17102_v10, %s16418_s6  ;;  %v1687_v61 = vpop.xlane.xlu0 %1686 }
 0x4be   : > { %15487 = vrcp.f32 %v1687_v61 }
 0x4c0   : > { %v1696_v31 = vpop.xlane.xlu1 %1695 }
 0x4c1   : > { %15489 = vrcp.f32 %v1696_v31  ;;  %v1693_v54 = vpop.xlane.xlu0 %1692 }
 0x4c2   : > { %15491 = vrcp.f32 %v1693_v54 }
 0x4c4   : > { %v14970_v58 = vpop.permute.xlu1 %14969 }
 0x4c5   : > { %v14965_v37 = vpop.permute.xlu0 %14964  ;;  %v14972_v36 = vunpack.i.h.bf16 %v14970_v58  ;;  %v14971_v9 = vunpack.i.l.bf16 %v14970_v58 }
 0x4c6   : > { %v14967_v6 = vunpack.i.h.bf16 %v14965_v37  ;;  %v14966_v5 = vunpack.i.l.bf16 %v14965_v37 }
 0x4c7   : > { %v15486_v22 = vpop.eup %15485  ;;  %v13997_v30 = vpack.c.bf16 %v14972_v36, %v14971_v9 }
 0x4c8   : > { %v15488_v18 = vpop.eup %15487  ;;  %v13991_v2 = vpack.c.bf16 %v14967_v6, %v14966_v5  ;;  %v1730_v17 = vmul.f32 %v15486_v22, %v17315_v56 }
 0x4c9   : > { %v2167_v7 = vpop.permute.xlu0 %2166  ;;  %v1729_v50 = vmul.f32 %v15488_v18, %v17317_v48 }
 0x4ca   : > { %13993 = vmatprep.subr.msk.bf16.mxu1 %vm16962_vm1, %v13991_v2 }
 0x4cb   : > { %v15490_v3 = vpop.eup %15489  ;;  %12706 = vmatprep.mubr.msk.f32.mxu1 %vm1558_vm2, %v1729_v50  ;;  %13996 = vmatpush3.bf16.xpose.msk.msra.mxu1 %vm16962_vm1, %v13991_v2 }
 0x4cc   : > { %v15492_v24 = vpop.eup %15491  ;;  %12707 = vmatmul.mubr.msk.f32.gmra.mrb[34].mxu1 %vm1558_vm2, %v1730_v17  ;;  %13999 = vmatprep.subr.msk.bf16.mxu1 %vm16962_vm1, %v13997_v30  ;;  %v1732_v35 = vmul.f32 %v15490_v3, %v17321_v63 }
 0x4cd   : > { %v2171_v46 = vpop.permute.xlu0 %2170  ;;  %v1731_v48 = vmul.f32 %v15492_v24, %v17325_v59 }
 0x4cf   : > { %12709 = vmatprep.mubr.msk.f32.mxu1 %vm1558_vm2, %v1731_v48 }
 0x4d0   : > { %12710 = vmatmul.mubr.msk.f32.gmra.mrb[36].mxu1 %vm1558_vm2, %v1732_v35 }
 0x4d1   : > { %v2175_v56 = vpop.permute.xlu0 %2174 }
 0x4d3   : > { %14002 = vmatpush3.bf16.xpose.msk.msra.mxu1 %vm16962_vm1, %v13997_v30 }
 0x4d5   : > { %v2179_v8 = vpop.permute.xlu0 %2178 }
 0x4d9   : > { %v14975_v4 = vpop.permute.xlu0 %14974 }
 0x4da   : > { %v14977_v16 = vunpack.i.h.bf16 %v14975_v4  ;;  %v14976_v23 = vunpack.i.l.bf16 %v14975_v4 }
 0x4dc   : > { %v13955_v20 = vpack.c.bf16 %v14977_v16, %v14976_v23 }
 0x4dd   : > { %v14985_v27 = vpop.permute.xlu0 %14984 }
 0x4de   : > { %13957 = vmatprep.subr.msk.bf16.mxu0 %vm16962_vm1, %v13955_v20  ;;  %v14987_v17 = vunpack.i.h.bf16 %v14985_v27  ;;  %v14986_v3 = vunpack.i.l.bf16 %v14985_v27 }
 0x4df   : > { %13960 = vmatpush3.bf16.xpose.msk.msra.mxu0 %vm16962_vm1, %v13955_v20 }
 0x4e0   : > { %v13967_v35 = vpack.c.bf16 %v14987_v17, %v14986_v3 }
 0x4e1   : > { %v1998_v63 = vpop.permute.xlu0 %1997 }
 0x4e2   : > { %12731 = vmatprep.mubr.msk.f32.mxu0 %vm1251_vm0, %v1998_v63 }
 0x4e5   : > { %v2002_v59 = vpop.permute.xlu0 %2001 }
 0x4e9   : > { %v17465_v0 = vpop.permute.xlu0 %2005 }
 0x4ed   : > { %v17467_v28 = vpop.permute.xlu0 %2009 }
 0x4f1   : > { %v14995_v51 = vpop.permute.xlu0 %14994 }
 0x4f2   : > { %v14997_v61 = vunpack.i.h.bf16 %v14995_v51  ;;  %v14996_v31 = vunpack.i.l.bf16 %v14995_v51 }
 0x4f4   : > { %v14019_v54 = vpack.c.bf16 %v14997_v61, %v14996_v31 }
 0x4f5   : > { %v1702_v58 = vpop.xlane.xlu1 %1701 }
 0x4f6   : > { %14020 = vmatprep.subr.bf16.mxu1 %v14019_v54  ;;  %15493 = vrcp.f32 %v1702_v58  ;;  %v15015_v58 = vpop.permute.xlu0 %15014 }
 0x4f9   : > { %v1699_v37 = vpop.xlane.xlu1 %1698 }
 0x4fa   : > { %15495 = vrcp.f32 %v1699_v37 }
 0x4fd   : > { %v2169_v36 = vpop.permute.xlu1 %2168 }
 0x500   : > { %v15494_v6 = vpop.eup %15493 }
 0x501   : > { %v2173_v9 = vpop.permute.xlu1 %2172  ;;  %v1734_v2 = vmul.f32 %v15494_v6, %v17349_v60  ;;  %v15016_v6 = vunpack.i.l.bf16 %v15015_v58 }
 0x504   : > { %v15496_v5 = vpop.eup %15495 }
 0x505   : > { %v2177_v22 = vpop.permute.xlu1 %2176  ;;  %v1733_v18 = vmul.f32 %v15496_v5, %v17355_v45 }
 0x507   : > { %12712 = vmatprep.mubr.msk.f32.mxu1 %vm1558_vm2, %v1733_v18 }
 0x508   : > { %12713 = vmatmul.mubr.msk.f32.gmra.mrb[38].mxu1 %vm1558_vm2, %v1734_v2 }
 0x509   : > { %v2181_v50 = vpop.permute.xlu1 %2180  ;;  %12759 = vmatprep.mubr.msk.f32.mxu1 %vm1251_vm0, %v2167_v7 }
 0x50c   : > { %12760 = vmatmul.mubr.msk.f32.vlgmr.msra.gmra.mrb[40].mxu1 %vm1251_vm0, %v2169_v36 }
 0x50d   : > { %14022 = vmatpush3.bf16.msra.mxu1 %v14019_v54  ;;  %v14980_v30 = vpop.permute.xlu1 %14979  ;;  %12762 = vmatprep.mubr.msk.f32.mxu1 %vm1251_vm0, %v2171_v46 }
 0x50e   : > { %v14982_v24 = vunpack.i.h.bf16 %v14980_v30  ;;  %v14981_v48 = vunpack.i.l.bf16 %v14980_v30 }
 0x510   : > { %v13961_v45 = vpack.c.bf16 %v14982_v24, %v14981_v48  ;;  %12763 = vmatmul.mubr.msk.f32.gmra.mrb[42].mxu1 %vm1251_vm0, %v2173_v9  ;;  %v15017_v9 = vunpack.i.h.bf16 %v15015_v58 }
 0x511   : > { %v14990_v60 = vpop.permute.xlu1 %14989  ;;  %12765 = vmatprep.mubr.msk.f32.mxu1 %vm1251_vm0, %v2175_v56 }
 0x512   : > { %13963 = vmatprep.subr.msk.bf16.mxu0 %vm16962_vm1, %v13961_v45  ;;  %v14992_v46 = vunpack.i.h.bf16 %v14990_v60  ;;  %v14991_v4 = vunpack.i.l.bf16 %v14990_v60  ;;  %v17498_v2 = vpack.c.bf16 %v15017_v9, %v15016_v6 }
 0x513   : > { %13966 = vmatpush3.bf16.xpose.msk.msra.mxu0 %vm16962_vm1, %v13961_v45 }
 0x514   : > { %13969 = vmatprep.subr.msk.bf16.mxu0 %vm16962_vm1, %v13967_v35  ;;  %12766 = vmatmul.mubr.msk.f32.gmra.mrb[44].mxu1 %vm1251_vm0, %v2177_v22  ;;  %v13973_v16 = vpack.c.bf16 %v14992_v46, %v14991_v4 }
 0x515   : > { %v2000_v7 = vpop.permute.xlu1 %1999  ;;  %12768 = vmatprep.mubr.msk.f32.mxu1 %vm1251_vm0, %v2179_v8 }
 0x518   : > { %12769 = vmatmul.mubr.msk.f32.gmra.mrb[46].mxu1 %vm1251_vm0, %v2181_v50 }
 0x519   : > { %v2004_v56 = vpop.permute.xlu1 %2003 }
 0x51b   : > { %13972 = vmatpush3.bf16.xpose.msk.msra.mxu0 %vm16962_vm1, %v13967_v35 }
 0x51c   : > { %13975 = vmatprep.subr.msk.bf16.mxu0 %vm16962_vm1, %v13973_v16 }
 0x51d   : > { %v2008_v23 = vpop.permute.xlu1 %2007 }
 0x521   : > { %v2012_v20 = vpop.permute.xlu1 %2011 }
 0x523   : > { %13978 = vmatpush3.bf16.xpose.msk.msra.mxu0 %vm16962_vm1, %v13973_v16 }
 0x525   : > { %v15000_v27 = vpop.permute.xlu1 %14999 }
 0x526   : > { %v15002_v63 = vunpack.i.h.bf16 %v15000_v27  ;;  %v15001_v8 = vunpack.i.l.bf16 %v15000_v27 }
 0x528   : > { %v14023_v51 = vpack.c.bf16 %v15002_v63, %v15001_v8 }
 0x529   : > { %v15005_v61 = vpop.permute.xlu1 %15004 }
 0x52a   : > { %v15007_v31 = vunpack.i.h.bf16 %v15005_v61  ;;  %v15006_v54 = vunpack.i.l.bf16 %v15005_v61  ;;  %12732 = vmatmul.mubr.msk.f32.vlgmr.msra.gmra.mrb[40].mxu0 %vm1251_vm0, %v2000_v7  ;;  %14024 = vmatprep.subr.bf16.mxu1 %v14023_v51 }
 0x52b   : > { %12734 = vmatprep.mubr.msk.f32.mxu0 %vm1251_vm0, %v2002_v59  ;;  %14026 = vmatpush3.bf16.msra.mxu1 %v14023_v51 }
 0x52c   : > { %v14027_v37 = vpack.c.bf16 %v15007_v31, %v15006_v54 }
 0x52d   : > { %v15010_v36 = vpop.permute.xlu1 %15009 }
 0x52e   : > { %v15012_v5 = vunpack.i.h.bf16 %v15010_v36  ;;  %v15011_v22 = vunpack.i.l.bf16 %v15010_v36  ;;  %12735 = vmatmul.mubr.msk.f32.gmra.mrb[42].mxu0 %vm1251_vm0, %v2004_v56  ;;  %14028 = vmatprep.subr.bf16.mxu1 %v14027_v37 }
 0x52f   : > { %12737 = vmatprep.mubr.msk.f32.mxu0 %vm1251_vm0, %v17465_v0  ;;  %14030 = vmatpush3.bf16.msra.mxu1 %v14027_v37 }
 0x530   : > { %v14031_v18 = vpack.c.bf16 %v15012_v5, %v15011_v22 }
 0x532   : > { %12738 = vmatmul.mubr.msk.f32.gmra.mrb[44].mxu0 %vm1251_vm0, %v2008_v23  ;;  %14032 = vmatprep.subr.bf16.mxu1 %v14031_v18 }
 0x533   : > { %12740 = vmatprep.mubr.msk.f32.mxu0 %vm1251_vm0, %v17467_v28  ;;  %14034 = vmatpush3.bf16.msra.mxu1 %v14031_v18 }
 0x534   : > { %14053 = vmatprep.subr.msk.bf16.mxu1 %vm16962_vm1, %v17498_v2 }
 0x536   : > { %12741 = vmatmul.mubr.msk.f32.gmra.mrb[46].mxu0 %vm1251_vm0, %v2012_v20 }
 0x54d   : > { %v17507_v59 = vpop.f32.mrb[24].mxu1 }
 0x54e   : > { %v17509_v0 = vpop.f32.mrb[25].mxu1 }
 0x551   : > { %v17511_v50 = vpop.f32.mrb[26].mxu1 }
 0x552   : > { %21081 = vst [vmem:[#allocation46_spill] sm:$0xff] %v17511_v50  ;;  %v17513_v30 = vpop.f32.mrb[27].mxu1 }
 0x555   : > { %v17515_v17 = vpop.f32.mrb[28].mxu1 }
 0x556   : > { %21082 = vst [vmem:[#allocation47_spill] sm:$0xff] %v17515_v17  ;;  %v17517_v3 = vpop.f32.mrb[29].mxu1 }
 0x557   : > { %21083 = vst [vmem:[#allocation48_spill] sm:$0xff] %v17517_v3 }
 0x559   : > { %v17519_v28 = vpop.f32.mrb[30].mxu1 }
 0x55a   : > { %21084 = vst [vmem:[#allocation49_spill] sm:$0xff] %v17519_v28  ;;  %v17521_v24 = vpop.f32.mrb[31].mxu1 }
 0x55b   : > { %21085 = vst [vmem:[#allocation50_spill] sm:$0xff] %v17521_v24 }
 0x56a   : > { %v17523_v48 = vpop.f32.mrb[32].mxu1 }
 0x56b   : > { %21086 = vst [vmem:[#allocation51_spill] sm:$0xff] %v17523_v48  ;;  %v17525_v45 = vpop.f32.mrb[33].mxu1 }
 0x56c   : > { %21087 = vst [vmem:[#allocation52_spill] sm:$0xff] %v17525_v45 }
 0x59f   : > { %v17527_v60 = vpop.f32.mrb[34].mxu1 }
 0x5a0   : > { %21088 = vst [vmem:[#allocation53_spill] sm:$0xff] %v17527_v60  ;;  %v17529_v35 = vpop.f32.mrb[35].mxu1 }
 0x5a1   : > { %21089 = vst [vmem:[#allocation54_spill] sm:$0xff] %v17529_v35 }
 0x5a3   : > { %v17531_v7 = vpop.f32.mrb[36].mxu1 }
 0x5a4   : > { %21090 = vst [vmem:[#allocation55_spill] sm:$0xff] %v17531_v7  ;;  %v17533_v46 = vpop.f32.mrb[37].mxu1 }
 0x5a5   : > { %21091 = vst [vmem:[#allocation56_spill] sm:$0xff] %v17533_v46 }
 0x5db   : > { %v17535_v4 = vpop.f32.mrb[38].mxu1 }
 0x5dc   : > { %21092 = vst [vmem:[#allocation57_spill] sm:$0xff] %v17535_v4  ;;  %v17537_v56 = vpop.f32.mrb[39].mxu1 }
 0x5dd   : > { %21093 = vst [vmem:[#allocation58_spill] sm:$0xff] %v17537_v56 }
 0x5df   : > { %v12761_v16 = vpop.f32.mrb[40].mxu1 }
 0x5e0   : > { %v2296_v23 = vpop.f32.mrb[41].mxu1  ;;  %v2362_v6 = vsel %vm1558_vm2, %v12761_v16, -inf }
 0x5e1   : > { %v2359_v5 = vsel %vm1558_vm2, %v2296_v23, -inf }
 0x5e3   : > { %v17539_v20 = vpop.f32.mrb[42].mxu1 }
 0x5e4   : > { %v17541_v27 = vpop.f32.mrb[43].mxu1 }
 0x5e7   : > { %v17543_v63 = vpop.f32.mrb[44].mxu1 }
 0x5e8   : > { %v17545_v8 = vpop.f32.mrb[45].mxu1 }
 0x5e9   : > { %v2371_v47 = vsel %vm1558_vm2, %v17545_v8, -inf }
 0x5eb   : > { %v17547_v51 = vpop.f32.mrb[46].mxu1 }
 0x5ec   : > { %v17549_v61 = vpop.f32.mrb[47].mxu1 }
 0x5fd   : > { %v17551_v31 = vpop.f32.mrb[40].mxu0 }
 0x5fe   : > { %v17553_v54 = vpop.f32.mrb[41].mxu0  ;;  %v2338_v58 = vsel %vm1558_vm2, %v17551_v31, -inf }
 0x5ff   : > { %2339 = vmax.xlane.f32.xlu1 %v2338_v58  ;;  %v2335_v37 = vsel %vm1558_vm2, %v17553_v54, -inf  ;;  %v2374_v58 = vsel %vm1558_vm2, %v17543_v63, -inf }
 0x600   : > { %2336 = vmax.xlane.f32.xlu0 %v2335_v37 }
 0x601   : > { %v17559_v36 = vpop.f32.mrb[42].mxu0 }
 0x602   : > { %v17561_v9 = vpop.f32.mrb[43].mxu0  ;;  %v2344_v14 = vsel %vm1558_vm2, %v17559_v36, -inf }
 0x603   : > { %2363 = vmax.xlane.f32.xlu1 %v2362_v6  ;;  %v2341_v37 = vsel %vm1558_vm2, %v17561_v9, -inf  ;;  %v2380_v6 = vsel %vm1558_vm2, %v17547_v51, -inf }
 0x604   : > { %2360 = vmax.xlane.f32.xlu0 %v2359_v5  ;;  %v2368_v5 = vsel %vm1558_vm2, %v17539_v20, -inf }
 0x605   : > { %v17565_v22 = vpop.f32.mrb[44].mxu0 }
 0x606   : > { %v17567_v18 = vpop.f32.mrb[45].mxu0 }
 0x607   : > { %2375 = vmax.xlane.f32.xlu1 %v2374_v58  ;;  %v2365_v58 = vsel %vm1558_vm2, %v17541_v27, -inf }
 0x608   : > { %2342 = vmax.xlane.f32.xlu0 %v2341_v37  ;;  %v2347_v37 = vsel %vm1558_vm2, %v17567_v18, -inf }
 0x609   : > { %v17573_v10 = vpop.f32.mrb[46].mxu0 }
 0x60a   : > { %v17575_v33 = vpop.f32.mrb[47].mxu0 }
 0x60b   : > { %2381 = vmax.xlane.f32.xlu1 %v2380_v6  ;;  %v2350_v6 = vsel %vm1558_vm2, %v17565_v22, -inf }
 0x60c   : > { %2369 = vmax.xlane.f32.xlu0 %v2368_v5  ;;  %v2377_v5 = vsel %vm1558_vm2, %v17549_v61, -inf }
 0x60f   : > { %2345 = vmax.xlane.f32.xlu1 %v2344_v14  ;;  %v17597_v14 = vpop.permute.xlu1 %15019 }
 0x610   : > { %2366 = vmax.xlane.f32.xlu0 %v2365_v58 }
 0x613   : > { %2348 = vmax.xlane.f32.xlu1 %v2347_v37  ;;  %v17599_v58 = vpop.permute.xlu1 %15029  ;;  %v17601_v37 = vpop.permute.xlu0 %15024 }
 0x614   : > { %2372 = vmax.xlane.f32.xlu0 %v2371_v47 }
 0x617   : > { %2351 = vmax.xlane.f32.xlu1 %v2350_v6  ;;  %v17603_v47 = vpop.permute.xlu1 %3223  ;;  %v17605_v4 = vpop.permute.xlu0 %15034 }
 0x618   : > { %2378 = vmax.xlane.f32.xlu0 %v2377_v5 }
 0x61b   : > { %v17607_v6 = vpop.permute.xlu1 %15039  ;;  %v17609_v56 = vpop.permute.xlu0 %3225 }
 0x628   : > { %3227 = vrot.lane.b32.xlu1 %v17056_v39, %s16418_s6 }
 0x62e   : > { %15044 = vrot.lane.b32.xlu0 %v17130_v32, %s16418_s6 }
 0x68c   : > { %v17611_v5 = vpop.xlane.xlu1 %2339 }
 0x68d   : > { %v17613_v39 = vpop.xlane.xlu0 %2336 }
 0x690   : > { %v2364_v7 = vpop.xlane.xlu1 %2363 }
 0x691   : > { %v2392_v46 = vsub.f32 %v12761_v16, %v2364_v7  ;;  %v2361_v60 = vpop.xlane.xlu0 %2360 }
 0x692   : > { %v2391_v35 = vsub.f32 %v2296_v23, %v2361_v60 }
 0x693   : > { %v2417_v48 = vmul.f32 1.442695, %v2392_v46 }
 0x694   : > { %v2415_v32 = vmul.f32 1.442695, %v2391_v35  ;;  %v2376_v45 = vpop.xlane.xlu1 %2375 }
 0x695   : > { %15497 = vpow2.f32 %v2417_v48  ;;  %v17615_v28 = vpop.xlane.xlu0 %2342  ;;  %v2396_v3 = vsub.f32 %v17543_v63, %v2376_v45 }
 0x696   : > { %15499 = vpow2.f32 %v2415_v32 }
 0x697   : > { %v2425_v46 = vmul.f32 1.442695, %v2396_v3 }
 0x698   : > { %v2382_v29 = vpop.xlane.xlu1 %2381 }
 0x699   : > { %v2398_v24 = vsub.f32 %v17547_v51, %v2382_v29  ;;  %v2370_v17 = vpop.xlane.xlu0 %2369 }
 0x69a   : > { %v2394_v38 = vsub.f32 %v17539_v20, %v2370_v17 }
 0x69b   : > { %v2429_v50 = vmul.f32 1.442695, %v2398_v24 }
 0x69c   : > { %v2421_v1 = vmul.f32 1.442695, %v2394_v38 }
 0x69d   : > { %v2367_v7 = vpop.xlane.xlu0 %2366 }
 0x69e   : > { %15501 = vpow2.f32 %v2421_v1  ;;  %v2393_v60 = vsub.f32 %v17541_v27, %v2367_v7 }
 0x69f   : > { %v17621_v35 = vpop.eup %15497  ;;  %15503 = vpow2.f32 %v2429_v50 }
 0x6a0   : > { %v17623_v48 = vpop.eup %15499  ;;  %v2419_v32 = vmul.f32 1.442695, %v2393_v60  ;;  %v2458_v29 = vsel %vm1558_vm2, %v17621_v35, 0.0 }
 0x6a1   : > { %v2373_v16 = vpop.xlane.xlu0 %2372  ;;  %2459 = vadd.xlane.f32.xlu1 %v2458_v29  ;;  %v2455_v17 = vsel %vm1558_vm2, %v17623_v48, 0.0  ;;  %v2353_v29 = vsel %vm1558_vm2, %v17575_v33, -inf }
 0x6a2   : > { %15505 = vpow2.f32 %v2419_v32  ;;  %v2395_v1 = vsub.f32 %v17545_v8, %v2373_v16  ;;  %2456 = vadd.xlane.f32.xlu0 %v2455_v17  ;;  %v2356_v16 = vsel %vm1558_vm2, %v17573_v10, -inf  ;;  %v2346_v17 = vpop.xlane.xlu1 %2345 }
 0x6a3   : > { %15507 = vpow2.f32 %v2425_v46 }
 0x6a4   : > { %v2423_v38 = vmul.f32 1.442695, %v2395_v1 }
 0x6a5   : > { %v2379_v24 = vpop.xlane.xlu0 %2378 }
 0x6a6   : > { %v2397_v45 = vsub.f32 %v17549_v61, %v2379_v24  ;;  %15509 = vpow2.f32 %v2423_v38  ;;  %v2349_v1 = vpop.xlane.xlu1 %2348  ;;  %v2384_v38 = vsub.f32 %v17551_v31, %v17611_v5 }
 0x6a8   : > { %v17631_v3 = vpop.eup %15501  ;;  %v2427_v50 = vmul.f32 1.442695, %v2397_v45  ;;  %v2401_v45 = vmul.f32 1.442695, %v2384_v38 }
 0x6a9   : > { %v2464_v23 = vsel %vm1558_vm2, %v17631_v3, 0.0  ;;  %v17635_v20 = vpop.eup %15503  ;;  %v17697_v31 = vpop.permute.xlu0 %15044 }
 0x6aa   : > { %15511 = vpow2.f32 %v2427_v50  ;;  %2465 = vadd.xlane.f32.xlu1 %v2464_v23  ;;  %v2476_v63 = vsel %vm1558_vm2, %v17635_v20, 0.0  ;;  %v2352_v24 = vpop.xlane.xlu1 %2351  ;;  %v2383_v23 = vsub.f32 %v17553_v54, %v17613_v39  ;;  %v2387_v39 = vsub.f32 %v17567_v18, %v2349_v1 }
 0x6ab   : > { %v2388_v50 = vsub.f32 %v17565_v22, %v2352_v24  ;;  %15513 = vpow2.f32 %v2401_v45 }
 0x6ac   : > { %v17637_v27 = vpop.eup %15505 }
 0x6ad   : > { %v2461_v8 = vsel %vm1558_vm2, %v17637_v27, 0.0  ;;  %v17643_v51 = vpop.eup %15507 }
 0x6ae   : > { %2477 = vadd.xlane.f32.xlu1 %v2476_v63  ;;  %2462 = vadd.xlane.f32.xlu0 %v2461_v8  ;;  %v2470_v61 = vsel %vm1558_vm2, %v17643_v51, 0.0  ;;  %v2409_v63 = vmul.f32 1.442695, %v2388_v50  ;;  %v2399_v8 = vmul.f32 1.442695, %v2383_v23  ;;  %v15022_v23 = vunpack.i.h.bf16 %v17597_v14 }
 0x6b0   : > { %v17647_v7 = vpop.eup %15509  ;;  %15515 = vpow2.f32 %v2409_v63  ;;  %v15021_v63 = vunpack.i.l.bf16 %v17597_v14 }
 0x6b1   : > { %v2467_v46 = vsel %vm1558_vm2, %v17647_v7, 0.0  ;;  %15517 = vpow2.f32 %v2399_v8 }
 0x6b2   : > { %2471 = vadd.xlane.f32.xlu0 %v2470_v61  ;;  %v2385_v61 = vsub.f32 %v17561_v9, %v17615_v28 }
 0x6b4   : > { %v17649_v60 = vpop.eup %15511 }
 0x6b5   : > { %v2473_v32 = vsel %vm1558_vm2, %v17649_v60, 0.0  ;;  %v17699_v5 = vpop.eup %15513 }
 0x6b6   : > { %2468 = vadd.xlane.f32.xlu0 %v2467_v46  ;;  %2474 = vadd.xlane.f32.xlu1 %v2473_v32  ;;  %v2403_v46 = vmul.f32 1.442695, %v2385_v61  ;;  %v2386_v32 = vsub.f32 %v17559_v36, %v2346_v17  ;;  %v2434_v28 = vsel %vm1558_vm2, %v17699_v5, 0.0  ;;  %v2407_v36 = vmul.f32 1.442695, %v2387_v39 }
 0x6b7   : > { %v14057_v39 = vpack.c.bf16 %v15022_v23, %v15021_v63  ;;  %v15032_v23 = vunpack.i.h.bf16 %v17599_v58  ;;  %v15031_v63 = vunpack.i.l.bf16 %v17599_v58 }
 0x6b8   : > { %15519 = vpow2.f32 %v2403_v46  ;;  %v2405_v22 = vmul.f32 1.442695, %v2386_v32 }
 0x6ba   : > { %v17704_v9 = vpop.eup %15515 }
 0x6bb   : > { %v2446_v17 = vsel %vm1558_vm2, %v17704_v9, 0.0  ;;  %v17708_v38 = vpop.eup %15517 }
 0x6bc   : > { %v2431_v18 = vsel %vm1558_vm2, %v17708_v38, 0.0 }
 0x6c2   : > { %v17712_v1 = vpop.eup %15519 }
 0x6c3   : > { %v2437_v61 = vsel %vm1558_vm2, %v17712_v1, 0.0 }
 0x6c7   : > { %15049 = vrot.lane.b32.xlu1 %v17144_v62, %s16418_s6 }
 0x6cc   : > { %3229 = vrot.lane.b32.xlu0 %v17077_v41, %s16418_s6 }
 0x6eb   : > { %2354 = vmax.xlane.f32.xlu0 %v2353_v29  ;;  %2357 = vmax.xlane.f32.xlu1 %v2356_v16  ;;  %v17695_v29 = vpop.permute.xlu1 %3227 }
 0x6fc   : > { %3233 = vrot.lane.b32.xlu1 %v17098_v49, %s16418_s6 }
 0x700   : > { %3394 = vrot.lane.b32.xlu1 %v17038_v21, %s16418_s6 }
 0x701   : > { %3231 = vrot.lane.b32.xlu0 %v17081_v53, %s16418_s6 }
 0x704   : > { %3398 = vrot.lane.b32.xlu1 %v17084_v57, %s16418_s6 }
 0x705   : > { %3235 = vrot.lane.b32.xlu0 %v17106_v11, %s16418_s6 }
 0x708   : > { %3402 = vrot.lane.b32.xlu1 %v17124_v19, %s16418_s6 }
 0x709   : > { %3237 = vrot.lane.b32.xlu0 %v17121_v55, %s16418_s6 }
 0x70c   : > { %3406 = vrot.lane.b32.xlu1 %v17140_v44, %s16418_s6 }
 0x70d   : > { %3392 = vrot.lane.b32.xlu0 %v17024_v15, %s16418_s6 }
 0x711   : > { %3396 = vrot.lane.b32.xlu0 %v17059_v42, %s16418_s6 }
 0x715   : > { %3400 = vrot.lane.b32.xlu0 %v17109_v12, %s16418_s6 }
 0x719   : > { %3404 = vrot.lane.b32.xlu0 %v17133_v34, %s16418_s6 }
 0x72e   : > { %v2460_v54 = vpop.xlane.xlu1 %2459 }
 0x72f   : > { %15521 = vrcp.f32 %v2460_v54  ;;  %v2457_v16 = vpop.xlane.xlu0 %2456 }
 0x730   : > { %15523 = vrcp.f32 %v2457_v16  ;;  %2435 = vadd.xlane.f32.xlu1 %v2434_v28  ;;  %v15026_v28 = vunpack.i.l.bf16 %v17601_v37 }
 0x731   : > { %15525 = vpow2.f32 %v2405_v22 }
 0x732   : > { %15527 = vpow2.f32 %v2407_v36 }
 0x734   : > { %2447 = vadd.xlane.f32.xlu1 %v2446_v17 }
 0x737   : > { %v2466_v45 = vpop.xlane.xlu1 %2465 }
 0x738   : > { %2432 = vadd.xlane.f32.xlu0 %v2431_v18  ;;  %15529 = vrcp.f32 %v2466_v45 }
 0x739   : > { %v15522_v24 = vpop.eup %15521 }
 0x73a   : > { %v15524_v50 = vpop.eup %15523  ;;  %v2504_v22 = vmul.f32 %v15522_v24, %v17621_v35  ;;  %v15027_v35 = vunpack.i.h.bf16 %v17601_v37 }
 0x73b   : > { %v2463_v8 = vpop.xlane.xlu0 %2462  ;;  %v2503_v46 = vmul.f32 %v15524_v50, %v17623_v48  ;;  %v17719_v32 = vpop.eup %15525 }
 0x73c   : > { %2438 = vadd.xlane.f32.xlu0 %v2437_v61  ;;  %15531 = vrcp.f32 %v2463_v8  ;;  %v2478_v54 = vpop.xlane.xlu1 %2477  ;;  %v2440_v48 = vsel %vm1558_vm2, %v17719_v32, 0.0  ;;  %v17729_v16 = vpop.eup %15527  ;;  %v14063_v24 = vpack.c.bf16 %v15027_v35, %v15026_v28  ;;  %v15046_v28 = vunpack.i.l.bf16 %v17697_v31 }
 0x73d   : > { %12815 = vmatprep.mubr.msk.f32.mxu1 %vm1558_vm2, %v2503_v46  ;;  %v14069_v46 = vpack.c.bf16 %v15032_v23, %v15031_v63 }
 0x73e   : > { %12816 = vmatmul.mubr.msk.f32.vlgmr.msra.gmra.mrb[48].mxu1 %vm1558_vm2, %v2504_v22 }
 0x73f   : > { %14056 = vmatpush3.bf16.xpose.msk.msra.mxu1 %vm16962_vm1, %v17498_v2  ;;  %v2472_v14 = vpop.xlane.xlu0 %2471  ;;  %v2443_v2 = vsel %vm1558_vm2, %v17729_v16, 0.0 }
 0x740   : > { %14059 = vmatprep.subr.msk.bf16.mxu1 %vm16962_vm1, %v14057_v39  ;;  %2441 = vadd.xlane.f32.xlu0 %v2440_v48  ;;  %15533 = vrcp.f32 %v2472_v14  ;;  %v15036_v14 = vunpack.i.l.bf16 %v17605_v4 }
 0x742   : > { %v15530_v18 = vpop.eup %15529 }
 0x743   : > { %v2475_v36 = vpop.xlane.xlu1 %2474  ;;  %v2469_v17 = vpop.xlane.xlu0 %2468  ;;  %v2506_v50 = vmul.f32 %v15530_v18, %v17631_v3 }
 0x744   : > { %15535 = vrcp.f32 %v2475_v36  ;;  %2444 = vadd.xlane.f32.xlu0 %v2443_v2 }
 0x745   : > { %15537 = vrcp.f32 %v2469_v17 }
 0x746   : > { %v15532_v45 = vpop.eup %15531  ;;  %15539 = vrcp.f32 %v2478_v54  ;;  %v15037_v54 = vunpack.i.h.bf16 %v17605_v4  ;;  %v21094_v4 = vld [vmem:[#allocation39_spill] sm:$0xff] }
 0x747   : > { %14062 = vmatpush3.bf16.xpose.msk.msra.mxu1 %vm16962_vm1, %v14057_v39  ;;  %v2505_v37 = vmul.f32 %v15532_v45, %v17637_v27 }
 0x748   : > { %14065 = vmatprep.subr.msk.bf16.mxu1 %vm16962_vm1, %v14063_v24  ;;  %v14075_v35 = vpack.c.bf16 %v15037_v54, %v15036_v14 }
 0x749   : > { %12818 = vmatprep.mubr.msk.f32.mxu1 %vm1558_vm2, %v2505_v37 }
 0x74a   : > { %12819 = vmatmul.mubr.msk.f32.gmra.mrb[50].mxu1 %vm1558_vm2, %v2506_v50  ;;  %v15534_v8 = vpop.eup %15533 }
 0x74b   : > { %v2508_v27 = vmul.f32 %v15534_v8, %v17643_v51  ;;  %v15042_v51 = vunpack.i.h.bf16 %v17607_v6 }
 0x74e   : > { %v15536_v61 = vpop.eup %15535 }
 0x74f   : > { %v15538_v22 = vpop.eup %15537  ;;  %14068 = vmatpush3.bf16.xpose.msk.msra.mxu1 %vm16962_vm1, %v14063_v24  ;;  %v2509_v58 = vmul.f32 %v15536_v61, %v17649_v60 }
 0x750   : > { %14071 = vmatprep.subr.msk.bf16.mxu1 %vm16962_vm1, %v14069_v46  ;;  %v2507_v3 = vmul.f32 %v15538_v22, %v17647_v7  ;;  %v15540_v39 = vpop.eup %15539  ;;  %v15041_v7 = vunpack.i.l.bf16 %v17607_v6  ;;  %v15047_v6 = vunpack.i.h.bf16 %v17697_v31 }
 0x751   : > { %v2510_v48 = vmul.f32 %v15540_v39, %v17635_v20  ;;  %v21095_v20 = vld [vmem:[#allocation41_spill] sm:$0xff] }
 0x752   : > { %12821 = vmatprep.mubr.msk.f32.mxu1 %vm1558_vm2, %v2507_v3  ;;  %v14081_v60 = vpack.c.bf16 %v15042_v51, %v15041_v7  ;;  %v21096_v51 = vld [vmem:[#allocation40_spill] sm:$0xff]  ;;  %v21097_v7 = vld [vmem:[#allocation42_spill] sm:$0xff] }
 0x753   : > { %12822 = vmatmul.mubr.msk.f32.gmra.mrb[52].mxu1 %vm1558_vm2, %v2508_v27 }
 0x754   : > { %12824 = vmatprep.mubr.msk.f32.mxu1 %vm1558_vm2, %v2509_v58 }
 0x757   : > { %12825 = vmatmul.mubr.msk.f32.gmra.mrb[54].mxu1 %vm1558_vm2, %v2510_v48 }
 0x758   : > { %14074 = vmatpush3.bf16.xpose.msk.msra.mxu1 %vm16962_vm1, %v14069_v46  ;;  %12907 = vmatprep.mubr.msk.f32.mxu1 %vm1251_vm0, %v17603_v47  ;;  %v3230_v47 = vpop.permute.xlu0 %3229 }
 0x759   : > { %14077 = vmatprep.subr.msk.bf16.mxu1 %vm16962_vm1, %v14075_v35 }
 0x75a   : > { %15054 = vrot.lane.b32.xlu0 %v21094_v4, %s16417_s15 }
 0x75e   : > { %15064 = vrot.lane.b32.xlu0 %v21095_v20, %s16417_s15 }
 0x75f   : > { %12908 = vmatmul.mubr.msk.f32.vlgmr.msra.gmra.mrb[56].mxu1 %vm1251_vm0, %v17609_v56  ;;  %v14087_v56 = vpack.c.bf16 %v15047_v6, %v15046_v28 }
 0x760   : > { %12910 = vmatprep.mubr.msk.f32.mxu1 %vm1251_vm0, %v17695_v29  ;;  %14080 = vmatpush3.bf16.xpose.msk.msra.mxu1 %vm16962_vm1, %v14075_v35  ;;  %v15050_v29 = vpop.permute.xlu1 %15049 }
 0x761   : > { %14083 = vmatprep.subr.msk.bf16.mxu1 %vm16962_vm1, %v14081_v60  ;;  %v15052_v36 = vunpack.i.h.bf16 %v15050_v29  ;;  %v15051_v17 = vunpack.i.l.bf16 %v15050_v29 }
 0x762   : > { %15074 = vrot.lane.b32.xlu0 %v21094_v4, %s16418_s6 }
 0x763   : > { %12911 = vmatmul.mubr.msk.f32.gmra.mrb[58].mxu1 %vm1251_vm0, %v3230_v47  ;;  %v14093_v2 = vpack.c.bf16 %v15052_v36, %v15051_v17 }
 0x766   : > { %15084 = vrot.lane.b32.xlu0 %v21095_v20, %s16418_s6 }
 0x768   : > { %14086 = vmatpush3.bf16.xpose.msk.msra.mxu1 %vm16962_vm1, %v14081_v60 }
 0x769   : > { %14089 = vmatprep.subr.msk.bf16.mxu1 %vm16962_vm1, %v14087_v56 }
 0x770   : > { %14092 = vmatpush3.bf16.xpose.msk.msra.mxu1 %vm16962_vm1, %v14087_v56 }
 0x771   : > { %14095 = vmatprep.subr.msk.bf16.mxu1 %vm16962_vm1, %v14093_v2 }
 0x778   : > { %14098 = vmatpush3.bf16.xpose.msk.msra.mxu1 %vm16962_vm1, %v14093_v2  ;;  %v2358_v31 = vpop.xlane.xlu1 %2357  ;;  %v2355_v18 = vpop.xlane.xlu0 %2354 }
 0x779   : > { %v2390_v24 = vsub.f32 %v17573_v10, %v2358_v31  ;;  %v2389_v45 = vsub.f32 %v17575_v33, %v2355_v18 }
 0x77b   : > { %v2411_v37 = vmul.f32 1.442695, %v2389_v45  ;;  %v2413_v50 = vmul.f32 1.442695, %v2390_v24 }
 0x77c   : > { %v3234_v23 = vpop.permute.xlu1 %3233  ;;  %v3232_v63 = vpop.permute.xlu0 %3231 }
 0x77d   : > { %12913 = vmatprep.mubr.msk.f32.mxu1 %vm1251_vm0, %v3232_v63  ;;  %15541 = vpow2.f32 %v2411_v37 }
 0x77e   : > { %12914 = vmatmul.mubr.msk.f32.gmra.mrb[60].mxu1 %vm1251_vm0, %v3234_v23  ;;  %15543 = vpow2.f32 %v2413_v50 }
 0x780   : > { %v3236_v8 = vpop.permute.xlu0 %3235  ;;  %v3395_v61 = vpop.permute.xlu1 %3394 }
 0x781   : > { %12916 = vmatprep.mubr.msk.f32.mxu1 %vm1251_vm0, %v3236_v8 }
 0x784   : > { %v3238_v46 = vpop.permute.xlu0 %3237  ;;  %v3399_v22 = vpop.permute.xlu1 %3398 }
 0x785   : > { %12917 = vmatmul.mubr.msk.f32.gmra.mrb[62].mxu1 %vm1251_vm0, %v3238_v46 }
 0x787   : > { %v17804_v10 = vpop.eup %15541 }
 0x788   : > { %v3393_v33 = vpop.permute.xlu0 %3392  ;;  %v2449_v3 = vsel %vm1558_vm2, %v17804_v10, 0.0  ;;  %v17809_v27 = vpop.eup %15543 }
 0x789   : > { %12935 = vmatprep.mubr.msk.f32.mxu1 %vm1251_vm0, %v3393_v33  ;;  %2450 = vadd.xlane.f32.xlu1 %v2449_v3  ;;  %v2452_v58 = vsel %vm1558_vm2, %v17809_v27, 0.0  ;;  %v3403_v54 = vpop.permute.xlu1 %3402 }
 0x78a   : > { %12936 = vmatmul.mubr.msk.f32.vlgmr.msra.gmra.mrb[64].mxu1 %vm1251_vm0, %v3395_v61 }
 0x78c   : > { %v3397_v39 = vpop.permute.xlu0 %3396 }
 0x78d   : > { %12938 = vmatprep.mubr.msk.f32.mxu1 %vm1251_vm0, %v3397_v39  ;;  %2453 = vadd.xlane.f32.xlu1 %v2452_v58  ;;  %v3407_v35 = vpop.permute.xlu1 %3406 }
 0x78e   : > { %12939 = vmatmul.mubr.msk.f32.gmra.mrb[66].mxu1 %vm1251_vm0, %v3399_v22 }
 0x790   : > { %v3401_v14 = vpop.permute.xlu0 %3400 }
 0x791   : > { %12941 = vmatprep.mubr.msk.f32.mxu1 %vm1251_vm0, %v3401_v14 }
 0x792   : > { %12942 = vmatmul.mubr.msk.f32.gmra.mrb[68].mxu1 %vm1251_vm0, %v3403_v54 }
 0x794   : > { %v3405_v48 = vpop.permute.xlu0 %3404 }
 0x795   : > { %12944 = vmatprep.mubr.msk.f32.mxu1 %vm1251_vm0, %v3405_v48 }
 0x796   : > { %12945 = vmatmul.mubr.msk.f32.gmra.mrb[70].mxu1 %vm1251_vm0, %v3407_v35 }
 0x79e   : > { %15059 = vrot.lane.b32.xlu1 %v21096_v51, %s16417_s15 }
 0x7a2   : > { %15069 = vrot.lane.b32.xlu1 %v21097_v7, %s16417_s15 }
 0x7a6   : > { %15079 = vrot.lane.b32.xlu1 %v21096_v51, %s16418_s6 }
 0x7bd   : > { %v2436_v18 = vpop.xlane.xlu1 %2435 }
 0x7c1   : > { %v2448_v37 = vpop.xlane.xlu1 %2447 }
 0x7c5   : > { %v2433_v60 = vpop.xlane.xlu0 %2432 }
 0x7c6   : > { %15545 = vrcp.f32 %v2433_v60 }
 0x7c7   : > { %15547 = vrcp.f32 %v2436_v18 }
 0x7c9   : > { %v2439_v47 = vpop.xlane.xlu0 %2438 }
 0x7ca   : > { %15549 = vrcp.f32 %v2439_v47 }
 0x7cd   : > { %v2442_v6 = vpop.xlane.xlu0 %2441 }
 0x7ce   : > { %15551 = vrcp.f32 %v2442_v6 }
 0x7d0   : > { %v15546_v28 = vpop.eup %15545 }
 0x7d1   : > { %v2445_v56 = vpop.xlane.xlu0 %2444  ;;  %v2495_v29 = vmul.f32 %v15546_v28, %v17708_v38 }
 0x7d2   : > { %15553 = vrcp.f32 %v2445_v56 }
 0x7d3   : > { %12787 = vmatprep.mubr.msk.f32.mxu0 %vm1558_vm2, %v2495_v29  ;;  %15555 = vrcp.f32 %v2448_v37  ;;  %v15548_v29 = vpop.eup %15547 }
 0x7d4   : > { %v2496_v6 = vmul.f32 %v15548_v29, %v17699_v5 }
 0x7d5   : > { %v15055_v36 = vpop.permute.xlu0 %15054 }
 0x7d6   : > { %v15057_v17 = vunpack.i.h.bf16 %v15055_v36  ;;  %v15056_v2 = vunpack.i.l.bf16 %v15055_v36 }
 0x7d8   : > { %v14003_v31 = vpack.c.bf16 %v15057_v17, %v15056_v2  ;;  %v15550_v17 = vpop.eup %15549 }
 0x7d9   : > { %v15065_v63 = vpop.permute.xlu0 %15064  ;;  %v15552_v56 = vpop.eup %15551  ;;  %v2497_v2 = vmul.f32 %v15550_v17, %v17712_v1 }
 0x7da   : > { %14004 = vmatprep.subr.bf16.mxu0 %v14003_v31  ;;  %v15067_v46 = vunpack.i.h.bf16 %v15065_v63  ;;  %v15066_v33 = vunpack.i.l.bf16 %v15065_v63  ;;  %v2498_v37 = vmul.f32 %v15552_v56, %v17719_v32 }
 0x7db   : > { %14006 = vmatpush3.bf16.msra.mxu0 %v14003_v31 }
 0x7dc   : > { %v14011_v48 = vpack.c.bf16 %v15067_v46, %v15066_v33  ;;  %v15554_v31 = vpop.eup %15553 }
 0x7dd   : > { %v2499_v5 = vmul.f32 %v15554_v31, %v17729_v16 }
 0x811   : > { %v17828_v24 = vpop.f32.mrb[48].mxu1 }
 0x812   : > { %v17830_v45 = vpop.f32.mrb[49].mxu1 }
 0x816   : > { %v2451_v50 = vpop.xlane.xlu1 %2450 }
 0x817   : > { %15557 = vrcp.f32 %v2451_v50  ;;  %v15556_v50 = vpop.eup %15555 }
 0x818   : > { %v2500_v32 = vmul.f32 %v15556_v50, %v17704_v9 }
 0x81a   : > { %v2454_v23 = vpop.xlane.xlu1 %2453 }
 0x81b   : > { %15559 = vrcp.f32 %v2454_v23 }
 0x81d   : > { %v17832_v8 = vpop.f32.mrb[50].mxu1 }
 0x81e   : > { %v17834_v38 = vpop.f32.mrb[51].mxu1  ;;  %v15060_v61 = vpop.permute.xlu1 %15059 }
 0x81f   : > { %v15062_v22 = vunpack.i.h.bf16 %v15060_v61  ;;  %v15061_v3 = vunpack.i.l.bf16 %v15060_v61 }
 0x821   : > { %v14007_v39 = vpack.c.bf16 %v15062_v22, %v15061_v3  ;;  %v15558_v61 = vpop.eup %15557 }
 0x822   : > { %v15070_v58 = vpop.permute.xlu1 %15069  ;;  %v2501_v3 = vmul.f32 %v15558_v61, %v17804_v10 }
 0x823   : > { %v15072_v54 = vunpack.i.h.bf16 %v15070_v58  ;;  %v15071_v14 = vunpack.i.l.bf16 %v15070_v58  ;;  %14008 = vmatprep.subr.bf16.mxu0 %v14007_v39 }
 0x824   : > { %14010 = vmatpush3.bf16.msra.mxu0 %v14007_v39 }
 0x825   : > { %14012 = vmatprep.subr.bf16.mxu0 %v14011_v48  ;;  %v14015_v28 = vpack.c.bf16 %v15072_v54, %v15071_v14  ;;  %v15560_v33 = vpop.eup %15559 }
 0x826   : > { %v17836_v35 = vpop.f32.mrb[52].mxu1  ;;  %v2502_v39 = vmul.f32 %v15560_v33, %v17809_v27 }
 0x827   : > { %v17838_v60 = vpop.f32.mrb[53].mxu1 }
 0x828   : > { %14014 = vmatpush3.bf16.msra.mxu0 %v14011_v48 }
 0x829   : > { %14016 = vmatprep.subr.bf16.mxu0 %v14015_v28 }
 0x82a   : > { %v17840_v47 = vpop.f32.mrb[54].mxu1 }
 0x82b   : > { %v17842_v36 = vpop.f32.mrb[55].mxu1 }
 0x82c   : > { %14018 = vmatpush3.bf16.msra.mxu0 %v14015_v28 }
 0x82f   : > { %12788 = vmatmul.mubr.msk.f32.vlgmr.msra.gmra.mrb[48].mxu0 %vm1558_vm2, %v2496_v6 }
 0x830   : > { %12790 = vmatprep.mubr.msk.f32.mxu0 %vm1558_vm2, %v2497_v2 }
 0x832   : > { %v17848_v18 = vpop.f32.mrb[56].mxu1 }
 0x833   : > { %v17851_v63 = vpop.f32.mrb[57].mxu1  ;;  %v3564_v23 = vsel %vm1558_vm2, %v17848_v18, -inf  ;;  %12791 = vmatmul.mubr.msk.f32.gmra.mrb[50].mxu0 %vm1558_vm2, %v2498_v37 }
 0x834   : > { %3565 = vmax.xlane.f32.xlu1 %v3564_v23  ;;  %v3561_v1 = vsel %vm1558_vm2, %v17851_v63, -inf  ;;  %12793 = vmatprep.mubr.msk.f32.mxu0 %vm1558_vm2, %v2499_v5 }
 0x835   : > { %3562 = vmax.xlane.f32.xlu0 %v3561_v1 }
 0x836   : > { %v17860_v46 = vpop.f32.mrb[58].mxu1 }
 0x837   : > { %v17863_v22 = vpop.f32.mrb[59].mxu1  ;;  %v3570_v16 = vsel %vm1558_vm2, %v17860_v46, -inf  ;;  %12794 = vmatmul.mubr.msk.f32.gmra.mrb[52].mxu0 %vm1558_vm2, %v2500_v32 }
 0x838   : > { %12796 = vmatprep.mubr.msk.f32.mxu0 %vm1558_vm2, %v2501_v3  ;;  %v3567_v58 = vsel %vm1558_vm2, %v17863_v22, -inf }
 0x839   : > { %3571 = vmax.xlane.f32.xlu0 %v3570_v16 }
 0x83b   : > { %12797 = vmatmul.mubr.msk.f32.gmra.mrb[54].mxu0 %vm1558_vm2, %v2502_v39  ;;  %v2833_v39 = vld [vmem:[#allocation8 + $0x20] sm:$0xff] }
 0x83d   : > { %3568 = vmax.xlane.f32.xlu0 %v3567_v58  ;;  %v2834_v58 = vld [vmem:[#allocation8 + $0x28] sm:$0xff] }
 0x851   : > { %v17874_v9 = vpop.f32.mrb[60].mxu1 }
 0x852   : > { %v17876_v54 = vpop.f32.mrb[61].mxu1  ;;  %v3576_v10 = vsel %vm1558_vm2, %v17874_v9, -inf }
 0x853   : > { %3577 = vmax.xlane.f32.xlu1 %v3576_v10  ;;  %v3573_v14 = vsel %vm1558_vm2, %v17876_v54, -inf  ;;  %v14035_v10 = vpack.c.bf16 %v2834_v58, %v2833_v39 }
 0x854   : > { %3574 = vmax.xlane.f32.xlu0 %v3573_v14  ;;  %v2835_v14 = vld [vmem:[#allocation8 + $0x30] sm:$0xff] }
 0x855   : > { %14036 = vmatprep.subr.bf16.mxu0 %v14035_v10 }
 0x856   : > { %14038 = vmatpush3.bf16.msra.mxu0 %v14035_v10 }
 0x858   : > { %v17882_v48 = vpop.f32.mrb[62].mxu1 }
 0x859   : > { %v17884_v27 = vpop.f32.mrb[63].mxu1  ;;  %v3582_v28 = vsel %vm1558_vm2, %v17882_v48, -inf }
 0x85a   : > { %3583 = vmax.xlane.f32.xlu1 %v3582_v28  ;;  %v3579_v29 = vsel %vm1558_vm2, %v17884_v27, -inf  ;;  %v2836_v28 = vld [vmem:[#allocation8 + $0x38] sm:$0xff] }
 0x85b   : > { %3580 = vmax.xlane.f32.xlu0 %v3579_v29  ;;  %v14039_v29 = vpack.c.bf16 %v2836_v28, %v2835_v14 }
 0x85d   : > { %v17890_v17 = vpop.f32.mrb[64].mxu1  ;;  %14040 = vmatprep.subr.bf16.mxu0 %v14039_v29 }
 0x85e   : > { %v17892_v6 = vpop.f32.mrb[65].mxu1  ;;  %v3588_v56 = vsel %vm1558_vm2, %v17890_v17, -inf  ;;  %14042 = vmatpush3.bf16.msra.mxu0 %v14039_v29 }
 0x85f   : > { %3589 = vmax.xlane.f32.xlu1 %v3588_v56  ;;  %v3585_v2 = vsel %vm1558_vm2, %v17892_v6, -inf  ;;  %v1993_v56 = vld [vmem:[#allocation8] sm:$0xff] }
 0x860   : > { %3586 = vmax.xlane.f32.xlu0 %v3585_v2  ;;  %v1994_v2 = vld [vmem:[#allocation8 + $0x8] sm:$0xff] }
 0x861   : > { %v17898_v31 = vpop.f32.mrb[66].mxu1 }
 0x862   : > { %v17900_v37 = vpop.f32.mrb[67].mxu1  ;;  %v3594_v50 = vsel %vm1558_vm2, %v17898_v31, -inf }
 0x863   : > { %3595 = vmax.xlane.f32.xlu1 %v3594_v50  ;;  %v3591_v23 = vsel %vm1558_vm2, %v17900_v37, -inf  ;;  %v17924_v50 = vpack.c.bf16 %v1994_v2, %v1993_v56 }
 0x864   : > { %3592 = vmax.xlane.f32.xlu0 %v3591_v23 }
 0x865   : > { %v17906_v5 = vpop.f32.mrb[68].mxu1  ;;  %14044 = vmatprep.subr.bf16.mxu0 %v17924_v50 }
 0x866   : > { %v17908_v61 = vpop.f32.mrb[69].mxu1  ;;  %v3600_v1 = vsel %vm1558_vm2, %v17906_v5, -inf }
 0x867   : > { %3601 = vmax.xlane.f32.xlu1 %v3600_v1  ;;  %v3597_v32 = vsel %vm1558_vm2, %v17908_v61, -inf  ;;  %v17931_v1 = vpop.permute.xlu0 %15074 }
 0x868   : > { %3598 = vmax.xlane.f32.xlu0 %v3597_v32  ;;  %v17933_v32 = vpop.permute.xlu1 %15079 }
 0x869   : > { %v17914_v33 = vpop.f32.mrb[70].mxu1 }
 0x86a   : > { %v17916_v16 = vpop.f32.mrb[71].mxu1  ;;  %v3606_v3 = vsel %vm1558_vm2, %v17914_v33, -inf }
 0x86b   : > { %3607 = vmax.xlane.f32.xlu1 %v3606_v3  ;;  %v3603_v23 = vsel %vm1558_vm2, %v17916_v16, -inf  ;;  %v17935_v3 = vpop.permute.xlu0 %15084 }
 0x87c   : > { %15089 = vrot.lane.b32.xlu1 %v21097_v7, %s16418_s6 }
 0x87e   : > { %15094 = vrot.lane.b32.xlu0 %v17194_v26, %s16418_s6 }
 0x89d   : > { %3604 = vmax.xlane.f32.xlu0 %v3603_v23 }
 0x8b3   : > { %15099 = vrot.lane.b32.xlu0 %v17203_v13, %s16418_s6 }
 0x8c1   : > { %v3566_v39 = vpop.xlane.xlu1 %3565 }
 0x8c2   : > { %v3610_v58 = vsub.f32 %v17848_v18, %v3566_v39  ;;  %v3563_v10 = vpop.xlane.xlu0 %3562 }
 0x8c3   : > { %v3609_v14 = vsub.f32 %v17851_v63, %v3563_v10 }
 0x8c4   : > { %v3627_v28 = vmul.f32 1.442695, %v3610_v58 }
 0x8c5   : > { %v3625_v29 = vmul.f32 1.442695, %v3609_v14 }
 0x8c6   : > { %15561 = vpow2.f32 %v3627_v28  ;;  %v3572_v56 = vpop.xlane.xlu0 %3571 }
 0x8c7   : > { %15563 = vpow2.f32 %v3625_v29  ;;  %v3612_v2 = vsub.f32 %v17860_v46, %v3572_v56 }
 0x8c9   : > { %v3631_v23 = vmul.f32 1.442695, %v3612_v2 }
 0x8ca   : > { %v3569_v13 = vpop.xlane.xlu0 %3568 }
 0x8cb   : > { %15565 = vpow2.f32 %v3631_v23  ;;  %v3611_v26 = vsub.f32 %v17863_v22, %v3569_v13 }
 0x8cd   : > { %v3629_v7 = vmul.f32 1.442695, %v3611_v26 }
 0x8cf   : > { %15567 = vpow2.f32 %v3629_v7 }
 0x8d0   : > { %v17941_v40 = vpop.eup %15561 }
 0x8d1   : > { %v17943_v18 = vpop.eup %15563  ;;  %v3660_v63 = vsel %vm1558_vm2, %v17941_v40, 0.0 }
 0x8d2   : > { %3661 = vadd.xlane.f32.xlu1 %v3660_v63  ;;  %v3657_v39 = vsel %vm1558_vm2, %v17943_v18, 0.0 }
 0x8d3   : > { %3658 = vadd.xlane.f32.xlu0 %v3657_v39 }
 0x8d5   : > { %v17949_v46 = vpop.eup %15565 }
 0x8d6   : > { %v3666_v58 = vsel %vm1558_vm2, %v17949_v46, 0.0 }
 0x8d7   : > { %3667 = vadd.xlane.f32.xlu1 %v3666_v58 }
 0x8d9   : > { %v17953_v26 = vpop.eup %15567 }
 0x8da   : > { %v3663_v13 = vsel %vm1558_vm2, %v17953_v26, 0.0 }
 0x8db   : > { %3664 = vadd.xlane.f32.xlu0 %v3663_v13 }
 0x8e0   : > { %v3578_v7 = vpop.xlane.xlu1 %3577 }
 0x8e1   : > { %v3614_v22 = vsub.f32 %v17874_v9, %v3578_v7  ;;  %v3575_v10 = vpop.xlane.xlu0 %3574 }
 0x8e2   : > { %v3613_v14 = vsub.f32 %v17876_v54, %v3575_v10 }
 0x8e3   : > { %v3635_v28 = vmul.f32 1.442695, %v3614_v22 }
 0x8e4   : > { %v3633_v29 = vmul.f32 1.442695, %v3613_v14 }
 0x8e5   : > { %15569 = vpow2.f32 %v3635_v28 }
 0x8e6   : > { %15571 = vpow2.f32 %v3633_v29 }
 0x8e7   : > { %v3584_v56 = vpop.xlane.xlu1 %3583 }
 0x8e8   : > { %v3616_v2 = vsub.f32 %v17882_v48, %v3584_v56  ;;  %v3581_v23 = vpop.xlane.xlu0 %3580 }
 0x8e9   : > { %v3615_v63 = vsub.f32 %v17884_v27, %v3581_v23 }
 0x8ea   : > { %v3639_v39 = vmul.f32 1.442695, %v3616_v2 }
 0x8eb   : > { %v3637_v58 = vmul.f32 1.442695, %v3615_v63 }
 0x8ec   : > { %15573 = vpow2.f32 %v3639_v39  ;;  %v3590_v13 = vpop.xlane.xlu1 %3589 }
 0x8ed   : > { %v3618_v20 = vsub.f32 %v17890_v17, %v3590_v13  ;;  %v3587_v9 = vpop.xlane.xlu0 %3586  ;;  %15575 = vpow2.f32 %v3637_v58 }
 0x8ee   : > { %v3617_v54 = vsub.f32 %v17892_v6, %v3587_v9 }
 0x8ef   : > { %v17963_v7 = vpop.eup %15569  ;;  %v3643_v22 = vmul.f32 1.442695, %v3618_v20 }
 0x8f0   : > { %v17965_v10 = vpop.eup %15571  ;;  %v3641_v14 = vmul.f32 1.442695, %v3617_v54  ;;  %v3596_v48 = vpop.xlane.xlu1 %3595  ;;  %v3672_v27 = vsel %vm1558_vm2, %v17963_v7, 0.0 }
 0x8f1   : > { %15577 = vpow2.f32 %v3643_v22  ;;  %v3620_v28 = vsub.f32 %v17898_v31, %v3596_v48  ;;  %v3593_v29 = vpop.xlane.xlu0 %3592  ;;  %3673 = vadd.xlane.f32.xlu1 %v3672_v27  ;;  %v3669_v17 = vsel %vm1558_vm2, %v17965_v10, 0.0 }
 0x8f2   : > { %15579 = vpow2.f32 %v3641_v14  ;;  %v3619_v6 = vsub.f32 %v17900_v37, %v3593_v29  ;;  %3670 = vadd.xlane.f32.xlu0 %v3669_v17 }
 0x8f3   : > { %v3647_v20 = vmul.f32 1.442695, %v3620_v28 }
 0x8f4   : > { %v3602_v56 = vpop.xlane.xlu1 %3601  ;;  %v3645_v2 = vmul.f32 1.442695, %v3619_v6 }
 0x8f5   : > { %v3622_v23 = vsub.f32 %v17906_v5, %v3602_v56  ;;  %v3599_v63 = vpop.xlane.xlu0 %3598  ;;  %15581 = vpow2.f32 %v3647_v20  ;;  %v1995_v56 = vld [vmem:[#allocation8 + $0x10] sm:$0xff] }
 0x8f6   : > { %v17974_v39 = vpop.eup %15573  ;;  %v3621_v31 = vsub.f32 %v17908_v61, %v3599_v63  ;;  %15583 = vpow2.f32 %v3645_v2  ;;  %v1996_v2 = vld [vmem:[#allocation8 + $0x18] sm:$0xff] }
 0x8f7   : > { %v3678_v58 = vsel %vm1558_vm2, %v17974_v39, 0.0  ;;  %v17979_v13 = vpop.eup %15575  ;;  %v3651_v54 = vmul.f32 1.442695, %v3622_v23 }
 0x8f8   : > { %v3649_v9 = vmul.f32 1.442695, %v3621_v31  ;;  %3679 = vadd.xlane.f32.xlu1 %v3678_v58  ;;  %v3608_v37 = vpop.xlane.xlu1 %3607  ;;  %v3675_v61 = vsel %vm1558_vm2, %v17979_v13, 0.0 }
 0x8f9   : > { %v15095_v22 = vpop.permute.xlu0 %15094  ;;  %v3624_v5 = vsub.f32 %v17914_v33, %v3608_v37  ;;  %v14047_v37 = vpack.c.bf16 %v1996_v2, %v1995_v56 }
 0x8fa   : > { %15585 = vpow2.f32 %v3649_v9  ;;  %v15097_v14 = vunpack.i.h.bf16 %v15095_v22  ;;  %v15096_v48 = vunpack.i.l.bf16 %v15095_v22  ;;  %v15077_v22 = vunpack.i.h.bf16 %v17931_v1 }
 0x8fb   : > { %v17982_v27 = vpop.eup %15577  ;;  %15587 = vpow2.f32 %v3651_v54  ;;  %v3655_v6 = vmul.f32 1.442695, %v3624_v5  ;;  %v15076_v5 = vunpack.i.l.bf16 %v17931_v1 }
 0x8fc   : > { %v17986_v28 = vpop.eup %15579  ;;  %3676 = vadd.xlane.f32.xlu1 %v3675_v61  ;;  %v14115_v29 = vpack.c.bf16 %v15097_v14, %v15096_v48  ;;  %v3684_v33 = vsel %vm1558_vm2, %v17982_v27, 0.0 }
 0x8fd   : > { %v3681_v17 = vsel %vm1558_vm2, %v17986_v28, 0.0  ;;  %15589 = vpow2.f32 %v3655_v6 }
 0x8fe   : > { %14116 = vmatprep.subr.bf16.mxu1 %v14115_v29  ;;  %3682 = vadd.xlane.f32.xlu0 %v3681_v17  ;;  %v14099_v17 = vpack.c.bf16 %v15077_v22, %v15076_v5  ;;  %v4043_v22 = vld [vmem:[#allocation8 + $0x40] sm:$0xff]  ;;  %v4044_v5 = vld [vmem:[#allocation8 + $0x48] sm:$0xff] }
 0x8ff   : > { %14118 = vmatpush3.bf16.msra.mxu1 %v14115_v29  ;;  %v17992_v20 = vpop.eup %15581 }
 0x900   : > { %3685 = vadd.xlane.f32.xlu1 %v3684_v33  ;;  %v17994_v23 = vpop.eup %15583  ;;  %v3690_v31 = vsel %vm1558_vm2, %v17992_v20, 0.0 }
 0x901   : > { %v3687_v48 = vsel %vm1558_vm2, %v17994_v23, 0.0 }
 0x902   : > { %v12789_v63 = vpop.f32.mrb[48].mxu0 }
 0x903   : > { %v2633_v9 = vpop.f32.mrb[49].mxu0 }
 0x904   : > { %v17998_v58 = vpop.eup %15585  ;;  %3691 = vadd.xlane.f32.xlu1 %v3690_v31  ;;  %12835 = vmatprep.mubr.msk.f32.mxu0 %vm1251_vm0, %v2633_v9  ;;  %v21102_v9 = vld [vmem:[#allocation47_spill] sm:$0xff] }
 0x905   : > { %v3693_v54 = vsel %vm1558_vm2, %v17998_v58, 0.0  ;;  %12836 = vmatmul.mubr.msk.f32.vlgmr.msra.gmra.mrb[56].mxu0 %vm1251_vm0, %v12789_v63  ;;  %v18009_v61 = vpop.eup %15587 }
 0x906   : > { %3694 = vadd.xlane.f32.xlu0 %v3693_v54  ;;  %14046 = vmatpush3.bf16.msra.mxu0 %v17924_v50  ;;  %v12792_v14 = vpop.f32.mrb[50].mxu0  ;;  %v3696_v6 = vsel %vm1558_vm2, %v18009_v61, 0.0 }
 0x907   : > { %v2643_v29 = vpop.f32.mrb[51].mxu0  ;;  %14048 = vmatprep.subr.bf16.mxu0 %v14047_v37  ;;  %v18015_v50 = vpop.eup %15589 }
 0x908   : > { %3688 = vadd.xlane.f32.xlu1 %v3687_v48  ;;  %12838 = vmatprep.mubr.msk.f32.mxu0 %vm1251_vm0, %v2643_v29  ;;  %v3702_v2 = vsel %vm1558_vm2, %v18015_v50, 0.0 }
 0x909   : > { %12839 = vmatmul.mubr.msk.f32.gmra.mrb[58].mxu0 %vm1251_vm0, %v12792_v14  ;;  %v21103_v14 = vld [vmem:[#allocation50_spill] sm:$0xff] }
 0x90a   : > { %14050 = vmatpush3.bf16.msra.mxu0 %v14047_v37  ;;  %v12795_v1 = vpop.f32.mrb[52].mxu0 }
 0x90b   : > { %14100 = vmatprep.subr.bf16.mxu0 %v14099_v17  ;;  %v2653_v33 = vpop.f32.mrb[53].mxu0 }
 0x90c   : > { %3697 = vadd.xlane.f32.xlu1 %v3696_v6  ;;  %12841 = vmatprep.mubr.msk.f32.mxu0 %vm1251_vm0, %v2653_v33  ;;  %v21105_v6 = vld [vmem:[#allocation49_spill] sm:$0xff]  ;;  %v21106_v33 = vld [vmem:[#allocation52_spill] sm:$0xff] }
 0x90d   : > { %12842 = vmatmul.mubr.msk.f32.gmra.mrb[60].mxu0 %vm1251_vm0, %v12795_v1  ;;  %v14131_v1 = vpack.c.bf16 %v4044_v5, %v4043_v22 }
 0x90e   : > { %v12798_v56 = vpop.f32.mrb[54].mxu0 }
 0x90f   : > { %v2663_v63 = vpop.f32.mrb[55].mxu0 }
 0x910   : > { %3703 = vadd.xlane.f32.xlu1 %v3702_v2  ;;  %12844 = vmatprep.mubr.msk.f32.mxu0 %vm1251_vm0, %v2663_v63  ;;  %v21108_v2 = vld [vmem:[#allocation51_spill] sm:$0xff]  ;;  %v21109_v63 = vld [vmem:[#allocation54_spill] sm:$0xff] }
 0x911   : > { %12845 = vmatmul.mubr.msk.f32.gmra.mrb[62].mxu0 %vm1251_vm0, %v12798_v56  ;;  %v21107_v56 = vld [vmem:[#allocation38_spill] sm:$0xff] }
 0x912   : > { %12847 = vmatprep.mubr.msk.f32.mxu0 %vm1251_vm0, %v17830_v45  ;;  %v15081_v45 = vunpack.i.l.bf16 %v17933_v32 }
 0x915   : > { %12848 = vmatmul.mubr.msk.f32.gmra.mrb[64].mxu0 %vm1251_vm0, %v17828_v24  ;;  %v15082_v24 = vunpack.i.h.bf16 %v17933_v32 }
 0x916   : > { %12850 = vmatprep.mubr.msk.f32.mxu0 %vm1251_vm0, %v17834_v38  ;;  %v15086_v38 = vunpack.i.l.bf16 %v17935_v3 }
 0x919   : > { %12851 = vmatmul.mubr.msk.f32.gmra.mrb[66].mxu0 %vm1251_vm0, %v17832_v8  ;;  %v15087_v8 = vunpack.i.h.bf16 %v17935_v3  ;;  %v21100_v3 = vld [vmem:[#allocation48_spill] sm:$0xff] }
 0x91a   : > { %12853 = vmatprep.mubr.msk.f32.mxu0 %vm1251_vm0, %v17838_v60  ;;  %v21098_v60 = vld [vmem:[#allocation32_spill] sm:$0xff] }
 0x91c   : > { %15109 = vrot.lane.b32.xlu0 %v21080_v25, %s16418_s6 }
 0x91d   : > { %12854 = vmatmul.mubr.msk.f32.gmra.mrb[68].mxu0 %vm1251_vm0, %v17836_v35  ;;  %v15090_v35 = vpop.permute.xlu1 %15089 }
 0x91e   : > { %12856 = vmatprep.mubr.msk.f32.mxu0 %vm1251_vm0, %v17842_v36  ;;  %v14107_v36 = vpack.c.bf16 %v15087_v8, %v15086_v38  ;;  %v21111_v38 = vld [vmem:[#allocation56_spill] sm:$0xff] }
 0x920   : > { %15114 = vrot.lane.b32.xlu0 %v16968_v43, %s16419_s8  ;;  %v14103_v43 = vpack.c.bf16 %v15082_v24, %v15081_v45  ;;  %v21110_v45 = vld [vmem:[#allocation53_spill] sm:$0xff] }
 0x921   : > { %12857 = vmatmul.mubr.msk.f32.gmra.mrb[70].mxu0 %vm1251_vm0, %v17840_v47  ;;  %v15091_v47 = vunpack.i.l.bf16 %v15090_v35 }
 0x922   : > { %12867 = vmatprep.mubr.msk.f32.mxu0 %vm1251_vm0, %v17509_v0  ;;  %v15092_v0 = vunpack.i.h.bf16 %v15090_v35  ;;  %v21113_v35 = vld [vmem:[#allocation58_spill] sm:$0xff] }
 0x924   : > { %15119 = vrot.lane.b32.xlu0 %v16982_v52, %s16419_s8  ;;  %v21099_v52 = vld [vmem:[#allocation46_spill] sm:$0xff]  ;;  %v14111_v37 = vpack.c.bf16 %v15092_v0, %v15091_v47 }
 0x925   : > { %12868 = vmatmul.mubr.msk.f32.vlgmr.msra.gmra.mrb[56].mxu0 %vm1251_vm0, %v17507_v59 }
 0x926   : > { %14102 = vmatpush3.bf16.msra.mxu0 %v14099_v17  ;;  %12870 = vmatprep.mubr.msk.f32.mxu0 %vm1251_vm0, %v17513_v30  ;;  %v21101_v30 = vld [vmem:[#allocation35_spill] sm:$0xff] }
 0x927   : > { %14104 = vmatprep.subr.bf16.mxu0 %v14103_v43 }
 0x928   : > { %15124 = vrot.lane.b32.xlu0 %v21098_v60, %s16419_s8 }
 0x929   : > { %12871 = vmatmul.mubr.msk.f32.gmra.mrb[58].mxu0 %vm1251_vm0, %v21099_v52  ;;  %v4045_v52 = vld [vmem:[#allocation8 + $0x50] sm:$0xff] }
 0x92a   : > { %v3605_v32 = vpop.xlane.xlu0 %3604  ;;  %14106 = vmatpush3.bf16.msra.mxu0 %v14103_v43  ;;  %12873 = vmatprep.mubr.msk.f32.mxu0 %vm1251_vm0, %v21100_v3  ;;  %v21112_v43 = vld [vmem:[#allocation55_spill] sm:$0xff] }
 0x92b   : > { %v3623_v59 = vsub.f32 %v17916_v16, %v3605_v32  ;;  %14108 = vmatprep.subr.bf16.mxu0 %v14107_v36  ;;  %v21104_v16 = vld [vmem:[#allocation34_spill] sm:$0xff] }
 0x92c   : > { %15134 = vrot.lane.b32.xlu0 %v21101_v30, %s16419_s8 }
 0x92d   : > { %v3653_v31 = vmul.f32 1.442695, %v3623_v59  ;;  %12874 = vmatmul.mubr.msk.f32.gmra.mrb[60].mxu0 %vm1251_vm0, %v21102_v9 }
 0x92e   : > { %v15100_v54 = vpop.permute.xlu0 %15099  ;;  %14110 = vmatpush3.bf16.msra.mxu0 %v14107_v36  ;;  %12876 = vmatprep.mubr.msk.f32.mxu0 %vm1251_vm0, %v21103_v14  ;;  %v4046_v36 = vld [vmem:[#allocation8 + $0x58] sm:$0xff] }
 0x92f   : > { %15591 = vpow2.f32 %v3653_v31  ;;  %v15102_v48 = vunpack.i.h.bf16 %v15100_v54  ;;  %v15101_v29 = vunpack.i.l.bf16 %v15100_v54  ;;  %14112 = vmatprep.subr.bf16.mxu0 %v14111_v37  ;;  %v14135_v59 = vpack.c.bf16 %v4046_v36, %v4045_v52 }
 0x930   : > { %4258 = vrot.lane.b32.xlu0 %v21104_v16, %s16419_s8 }
 0x931   : > { %v14119_v17 = vpack.c.bf16 %v15102_v48, %v15101_v29  ;;  %12877 = vmatmul.mubr.msk.f32.gmra.mrb[62].mxu0 %vm1251_vm0, %v21105_v6 }
 0x932   : > { %14114 = vmatpush3.bf16.msra.mxu0 %v14111_v37  ;;  %12879 = vmatprep.mubr.msk.f32.mxu0 %vm1251_vm0, %v21106_v33 }
 0x933   : > { %14120 = vmatprep.subr.bf16.mxu1 %v14119_v17  ;;  %14132 = vmatprep.subr.bf16.mxu0 %v14131_v1 }
 0x934   : > { %15144 = vrot.lane.b32.xlu0 %v21107_v56, %s16419_s8  ;;  %14122 = vmatpush3.bf16.msra.mxu1 %v14119_v17 }
 0x935   : > { %12880 = vmatmul.mubr.msk.f32.gmra.mrb[64].mxu0 %vm1251_vm0, %v21108_v2 }
 0x936   : > { %12882 = vmatprep.mubr.msk.f32.mxu0 %vm1251_vm0, %v21109_v63 }
 0x938   : > { %4262 = vrot.lane.b32.xlu0 %v17077_v41, %s16419_s8  ;;  %v21114_v41 = vld [vmem:[#allocation57_spill] sm:$0xff] }
 0x939   : > { %v18082_v24 = vpop.eup %15591  ;;  %12883 = vmatmul.mubr.msk.f32.gmra.mrb[66].mxu0 %vm1251_vm0, %v21110_v45 }
 0x93a   : > { %v3699_v8 = vsel %vm1558_vm2, %v18082_v24, 0.0  ;;  %12885 = vmatprep.mubr.msk.f32.mxu0 %vm1251_vm0, %v21111_v38 }
 0x93b   : > { %3700 = vadd.xlane.f32.xlu1 %v3699_v8 }
 0x93c   : > { %4264 = vrot.lane.b32.xlu0 %v17081_v53, %s16419_s8  ;;  %v21115_v53 = vld [vmem:[#allocation45_spill] sm:$0xff] }
 0x93d   : > { %12886 = vmatmul.mubr.msk.f32.gmra.mrb[68].mxu0 %vm1251_vm0, %v21112_v43 }
 0x93e   : > { %12888 = vmatprep.mubr.msk.f32.mxu0 %vm1251_vm0, %v21113_v35 }
 0x940   : > { %4268 = vrot.lane.b32.xlu0 %v17106_v11, %s16419_s8  ;;  %v21116_v11 = vld [vmem:[#allocation33_spill] sm:$0xff] }
 0x941   : > { %12889 = vmatmul.mubr.msk.f32.gmra.mrb[70].mxu0 %vm1251_vm0, %v21114_v41 }
 0x944   : > { %4425 = vrot.lane.b32.xlu0 %v17024_v15, %s16419_s8  ;;  %v21117_v15 = vld [vmem:[#allocation30_spill] sm:$0xff] }
 0x948   : > { %4429 = vrot.lane.b32.xlu0 %v17059_v42, %s16419_s8  ;;  %v21118_v42 = vld [vmem:[#allocation37_spill] sm:$0xff] }
 0x94c   : > { %4433 = vrot.lane.b32.xlu0 %v17109_v12, %s16419_s8  ;;  %15104 = vrot.lane.b32.xlu1 %v21115_v53, %s16418_s6  ;;  %v21119_v12 = vld [vmem:[#allocation36_spill] sm:$0xff] }
 0x950   : > { %4437 = vrot.lane.b32.xlu0 %v17133_v34, %s16419_s8  ;;  %15129 = vrot.lane.b32.xlu1 %v21116_v11, %s16419_s8 }
 0x954   : > { %15154 = vrot.lane.b32.xlu0 %v21094_v4, %s16419_s8  ;;  %4256 = vrot.lane.b32.xlu1 %v21117_v15, %s16419_s8 }
 0x958   : > { %15139 = vrot.lane.b32.xlu1 %v21118_v42, %s16419_s8 }
 0x95c   : > { %4260 = vrot.lane.b32.xlu1 %v21119_v12, %s16419_s8 }
 0x95f   : > { %v3662_v60 = vpop.xlane.xlu1 %3661 }
 0x960   : > { %15593 = vrcp.f32 %v3662_v60  ;;  %v3659_v0 = vpop.xlane.xlu0 %3658  ;;  %15149 = vrot.lane.b32.xlu1 %v17144_v62, %s16419_s8 }
 0x961   : > { %15595 = vrcp.f32 %v3659_v0 }
 0x964   : > { %4266 = vrot.lane.b32.xlu1 %v17098_v49, %s16419_s8  ;;  %v3668_v34 = vpop.xlane.xlu1 %3667 }
 0x965   : > { %15597 = vrcp.f32 %v3668_v34 }
 0x968   : > { %v3665_v4 = vpop.xlane.xlu0 %3664  ;;  %4270 = vrot.lane.b32.xlu1 %v17121_v55, %s16419_s8 }
 0x969   : > { %15599 = vrcp.f32 %v3665_v4 }
 0x96a   : > { %v15594_v47 = vpop.eup %15593 }
 0x96b   : > { %v15596_v32 = vpop.eup %15595  ;;  %v3722_v3 = vmul.f32 %v15594_v47, %v17941_v40 }
 0x96c   : > { %4427 = vrot.lane.b32.xlu1 %v17038_v21, %s16419_s8  ;;  %v3721_v62 = vmul.f32 %v15596_v32, %v17943_v18 }
 0x96e   : > { %12963 = vmatprep.mubr.msk.f32.mxu0 %vm1558_vm2, %v3721_v62 }
 0x96f   : > { %12964 = vmatmul.mubr.msk.f32.vlgmr.msra.gmra.mrb[72].mxu0 %vm1558_vm2, %v3722_v3  ;;  %v15598_v49 = vpop.eup %15597 }
 0x970   : > { %4431 = vrot.lane.b32.xlu1 %v17084_v57, %s16419_s8  ;;  %14134 = vmatpush3.bf16.msra.mxu0 %v14131_v1  ;;  %v3724_v40 = vmul.f32 %v15598_v49, %v17949_v46 }
 0x971   : > { %14136 = vmatprep.subr.bf16.mxu0 %v14135_v59 }
 0x973   : > { %v15600_v55 = vpop.eup %15599 }
 0x974   : > { %4435 = vrot.lane.b32.xlu1 %v17124_v19, %s16419_s8  ;;  %v3723_v21 = vmul.f32 %v15600_v55, %v17953_v26  ;;  %14138 = vmatpush3.bf16.msra.mxu0 %v14135_v59  ;;  %v21120_v19 = vld [vmem:[#allocation41_spill] sm:$0xff] }
 0x976   : > { %12966 = vmatprep.mubr.msk.f32.mxu0 %vm1558_vm2, %v3723_v21 }
 0x977   : > { %12967 = vmatmul.mubr.msk.f32.gmra.mrb[74].mxu0 %vm1558_vm2, %v3724_v40 }
 0x978   : > { %4439 = vrot.lane.b32.xlu1 %v17140_v44, %s16419_s8 }
 0x97c   : > { %15159 = vrot.lane.b32.xlu1 %v21096_v51, %s16419_s8 }
 0x97e   : > { %v3674_v57 = vpop.xlane.xlu1 %3673 }
 0x97f   : > { %15601 = vrcp.f32 %v3674_v57  ;;  %v3671_v18 = vpop.xlane.xlu0 %3670 }
 0x980   : > { %15603 = vrcp.f32 %v3671_v18  ;;  %15164 = vrot.lane.b32.xlu1 %v21120_v19, %s16419_s8 }
 0x985   : > { %v3680_v26 = vpop.xlane.xlu1 %3679 }
 0x986   : > { %15605 = vrcp.f32 %v3680_v26 }
 0x989   : > { %v15602_v30 = vpop.eup %15601  ;;  %v3677_v46 = vpop.xlane.xlu1 %3676 }
 0x98a   : > { %v15604_v31 = vpop.eup %15603  ;;  %15607 = vrcp.f32 %v3677_v46  ;;  %v3726_v44 = vmul.f32 %v15602_v30, %v17963_v7 }
 0x98b   : > { %v3683_v9 = vpop.xlane.xlu0 %3682  ;;  %v3725_v37 = vmul.f32 %v15604_v31, %v17965_v10 }
 0x98c   : > { %15609 = vrcp.f32 %v3683_v9 }
 0x98d   : > { %12969 = vmatprep.mubr.msk.f32.mxu0 %vm1558_vm2, %v3725_v37  ;;  %v3686_v56 = vpop.xlane.xlu1 %3685 }
 0x98e   : > { %12970 = vmatmul.mubr.msk.f32.gmra.mrb[76].mxu0 %vm1558_vm2, %v3726_v44  ;;  %15611 = vrcp.f32 %v3686_v56 }
 0x990   : > { %v15606_v51 = vpop.eup %15605 }
 0x991   : > { %v3728_v48 = vmul.f32 %v15606_v51, %v17974_v39  ;;  %v3692_v2 = vpop.xlane.xlu1 %3691 }
 0x993   : > { %v3695_v54 = vpop.xlane.xlu0 %3694 }
 0x994   : > { %v15608_v22 = vpop.eup %15607 }
 0x995   : > { %v3727_v5 = vmul.f32 %v15608_v22, %v17979_v13 }
 0x996   : > { %v15610_v14 = vpop.eup %15609 }
 0x997   : > { %12972 = vmatprep.mubr.msk.f32.mxu0 %vm1558_vm2, %v3727_v5  ;;  %v15110_v29 = vpop.permute.xlu0 %15109  ;;  %v3729_v10 = vmul.f32 %v15610_v14, %v17986_v28  ;;  %v3689_v28 = vpop.xlane.xlu1 %3688 }
 0x998   : > { %12973 = vmatmul.mubr.msk.f32.gmra.mrb[78].mxu0 %vm1558_vm2, %v3728_v48  ;;  %15613 = vrcp.f32 %v3689_v28  ;;  %v15112_v15 = vunpack.i.h.bf16 %v15110_v29  ;;  %v15111_v42 = vunpack.i.l.bf16 %v15110_v29  ;;  %v15612_v32 = vpop.eup %15611 }
 0x999   : > { %12991 = vmatprep.mubr.msk.f32.mxu1 %vm1558_vm2, %v3729_v10  ;;  %15615 = vrcp.f32 %v3692_v2  ;;  %v3730_v49 = vmul.f32 %v15612_v32, %v17982_v27 }
 0x99a   : > { %15617 = vrcp.f32 %v3695_v54  ;;  %v14127_v36 = vpack.c.bf16 %v15112_v15, %v15111_v42 }
 0x99b   : > { %v15115_v7 = vpop.permute.xlu0 %15114  ;;  %v3698_v45 = vpop.xlane.xlu1 %3697 }
 0x99c   : > { %v15117_v4 = vunpack.i.h.bf16 %v15115_v7  ;;  %v15116_v47 = vunpack.i.l.bf16 %v15115_v7  ;;  %15619 = vrcp.f32 %v3698_v45 }
 0x99e   : > { %v14139_v59 = vpack.c.bf16 %v15117_v4, %v15116_v47 }
 0x99f   : > { %v15120_v16 = vpop.permute.xlu0 %15119  ;;  %v3704_v38 = vpop.xlane.xlu1 %3703 }
 0x9a0   : > { %v15122_v19 = vunpack.i.h.bf16 %v15120_v16  ;;  %v15121_v26 = vunpack.i.l.bf16 %v15120_v16 }
 0x9a2   : > { %v15614_v3 = vpop.eup %15613  ;;  %v14145_v44 = vpack.c.bf16 %v15122_v19, %v15121_v26 }
 0x9a3   : > { %v18156_v17 = vpop.permute.xlu0 %15124  ;;  %v15616_v21 = vpop.eup %15615  ;;  %v3731_v57 = vmul.f32 %v15614_v3, %v17994_v23 }
 0x9a4   : > { %v15618_v18 = vpop.eup %15617  ;;  %v3732_v30 = vmul.f32 %v15616_v21, %v17992_v20  ;;  %v15126_v22 = vunpack.i.l.bf16 %v18156_v17 }
 0x9a5   : > { %v3733_v31 = vmul.f32 %v15618_v18, %v17998_v58  ;;  %v15127_v58 = vunpack.i.h.bf16 %v18156_v17 }
 0x9a6   : > { %v15620_v27 = vpop.eup %15619 }
 0x9a7   : > { %v15135_v1 = vpop.permute.xlu0 %15134  ;;  %v3734_v23 = vmul.f32 %v15620_v27, %v18009_v61  ;;  %v14151_v48 = vpack.c.bf16 %v15127_v58, %v15126_v22 }
 0x9a8   : > { %v15137_v6 = vunpack.i.h.bf16 %v15135_v1  ;;  %v15136_v33 = vunpack.i.l.bf16 %v15135_v1 }
 0x9aa   : > { %v18158_v13 = vpack.c.bf16 %v15137_v6, %v15136_v33 }
 0x9ab   : > { %v18163_v63 = vpop.permute.xlu0 %4258 }
 0x9ac   : > { %14165 = vmatprep.subr.msk.bf16.mxu0 %vm16962_vm1, %v18158_v13 }
 0x9af   : > { %v18165_v8 = vpop.permute.xlu0 %15144 }
 0x9b0   : > { %v15147_v4 = vunpack.i.h.bf16 %v18165_v8  ;;  %v15146_v47 = vunpack.i.l.bf16 %v18165_v8 }
 0x9b2   : > { %v14175_v32 = vpack.c.bf16 %v15147_v4, %v15146_v47 }
 0x9b3   : > { %v18167_v43 = vpop.permute.xlu0 %4262 }
 0x9b7   : > { %v18169_v41 = vpop.permute.xlu0 %4264 }
 0x9bb   : > { %v18171_v52 = vpop.permute.xlu0 %4268 }
 0x9bf   : > { %v18174_v55 = vpop.permute.xlu0 %4425 }
 0x9c3   : > { %v18185_v37 = vpop.permute.xlu0 %4429 }
 0x9c7   : > { %v18201_v5 = vpop.permute.xlu0 %4433 }
 0x9c8   : > { %v3701_v35 = vpop.xlane.xlu1 %3700 }
 0x9c9   : > { %15621 = vrcp.f32 %v3701_v35 }
 0x9ca   : > { %15623 = vrcp.f32 %v3704_v38 }
 0x9cb   : > { %v18210_v29 = vpop.permute.xlu0 %4437 }
 0x9cc   : > { %v15105_v11 = vpop.permute.xlu1 %15104 }
 0x9cd   : > { %v15107_v12 = vunpack.i.h.bf16 %v15105_v11  ;;  %v15106_v60 = vunpack.i.l.bf16 %v15105_v11 }
 0x9cf   : > { %v14123_v0 = vpack.c.bf16 %v15107_v12, %v15106_v60  ;;  %v15155_v17 = vpop.permute.xlu0 %15154 }
 0x9d0   : > { %v15130_v34 = vpop.permute.xlu1 %15129  ;;  %v15157_v6 = vunpack.i.h.bf16 %v15155_v17  ;;  %v15156_v33 = vunpack.i.l.bf16 %v15155_v17 }
 0x9d1   : > { %14124 = vmatprep.subr.bf16.mxu1 %v14123_v0  ;;  %v15132_v10 = vunpack.i.h.bf16 %v15130_v34  ;;  %v15131_v7 = vunpack.i.l.bf16 %v15130_v34 }
 0x9d2   : > { %14126 = vmatpush3.bf16.msra.mxu1 %v14123_v0  ;;  %v14187_v2 = vpack.c.bf16 %v15157_v6, %v15156_v33 }
 0x9d3   : > { %14128 = vmatprep.subr.bf16.mxu1 %v14127_v36  ;;  %v15622_v9 = vpop.eup %15621 }
 0x9d4   : > { %v4257_v62 = vpop.permute.xlu1 %4256  ;;  %v15624_v51 = vpop.eup %15623  ;;  %v3735_v20 = vmul.f32 %v15622_v9, %v18082_v24 }
 0x9d5   : > { %v3736_v61 = vmul.f32 %v15624_v51, %v18015_v50  ;;  %v14157_v50 = vpack.c.bf16 %v15132_v10, %v15131_v7 }
 0x9d6   : > { %14130 = vmatpush3.bf16.msra.mxu1 %v14127_v36 }
 0x9d7   : > { %14141 = vmatprep.subr.msk.bf16.mxu1 %vm16962_vm1, %v14139_v59 }
 0x9d8   : > { %v18178_v40 = vpop.permute.xlu1 %15139 }
 0x9d9   : > { %12992 = vmatmul.mubr.msk.f32.vlgmr.msra.gmra.mrb[72].mxu1 %vm1558_vm2, %v3730_v49  ;;  %v15141_v0 = vunpack.i.l.bf16 %v18178_v40 }
 0x9da   : > { %12994 = vmatprep.mubr.msk.f32.mxu1 %vm1558_vm2, %v3731_v57 }
 0x9dc   : > { %v4261_v46 = vpop.permute.xlu1 %4260 }
 0x9dd   : > { %12995 = vmatmul.mubr.msk.f32.gmra.mrb[74].mxu1 %vm1558_vm2, %v3732_v30 }
 0x9de   : > { %12997 = vmatprep.mubr.msk.f32.mxu1 %vm1558_vm2, %v3733_v31 }
 0x9df   : > { %14144 = vmatpush3.bf16.xpose.msk.msra.mxu1 %vm16962_vm1, %v14139_v59 }
 0x9e0   : > { %v18192_v54 = vpop.permute.xlu1 %15149  ;;  %14147 = vmatprep.subr.msk.bf16.mxu1 %vm16962_vm1, %v14145_v44 }
 0x9e1   : > { %12998 = vmatmul.mubr.msk.f32.gmra.mrb[76].mxu1 %vm1558_vm2, %v3734_v23 }
 0x9e2   : > { %13000 = vmatprep.mubr.msk.f32.mxu1 %vm1558_vm2, %v3735_v20 }
 0x9e4   : > { %v4267_v14 = vpop.permute.xlu1 %4266 }
 0x9e5   : > { %13001 = vmatmul.mubr.msk.f32.gmra.mrb[78].mxu1 %vm1558_vm2, %v3736_v61 }
 0x9e6   : > { %13051 = vmatprep.mubr.msk.f32.mxu1 %vm1251_vm0, %v4257_v62  ;;  %v15151_v62 = vunpack.i.l.bf16 %v18192_v54 }
 0x9e7   : > { %14150 = vmatpush3.bf16.xpose.msk.msra.mxu1 %vm16962_vm1, %v14145_v44 }
 0x9e8   : > { %v4271_v24 = vpop.permute.xlu1 %4270  ;;  %14153 = vmatprep.subr.msk.bf16.mxu1 %vm16962_vm1, %v14151_v48 }
 0x9ec   : > { %v18212_v16 = vpop.permute.xlu1 %4427 }
 0x9ef   : > { %14156 = vmatpush3.bf16.xpose.msk.msra.mxu1 %vm16962_vm1, %v14151_v48 }
 0x9f0   : > { %v18216_v1 = vpop.permute.xlu1 %4431  ;;  %14159 = vmatprep.subr.msk.bf16.mxu1 %vm16962_vm1, %v14157_v50 }
 0x9f4   : > { %v18220_v56 = vpop.permute.xlu1 %4435 }
 0x9f7   : > { %14162 = vmatpush3.bf16.xpose.msk.msra.mxu1 %vm16962_vm1, %v14157_v50 }
 0x9f8   : > { %v18224_v28 = vpop.permute.xlu1 %4439  ;;  %14188 = vmatprep.subr.bf16.mxu1 %v14187_v2 }
 0x9fc   : > { %v15160_v45 = vpop.permute.xlu1 %15159 }
 0x9fd   : > { %v15162_v38 = vunpack.i.h.bf16 %v15160_v45  ;;  %v15161_v35 = vunpack.i.l.bf16 %v15160_v45 }
 0x9fe   : > { %13052 = vmatmul.mubr.msk.f32.vlgmr.msra.gmra.mrb[80].mxu1 %vm1251_vm0, %v18163_v63  ;;  %v15142_v63 = vunpack.i.h.bf16 %v18178_v40 }
 0x9ff   : > { %13054 = vmatprep.mubr.msk.f32.mxu1 %vm1251_vm0, %v4261_v46  ;;  %14190 = vmatpush3.bf16.msra.mxu1 %v14187_v2  ;;  %v14191_v11 = vpack.c.bf16 %v15162_v38, %v15161_v35 }
 0xa00   : > { %v15165_v15 = vpop.permute.xlu1 %15164 }
 0xa01   : > { %v15167_v42 = vunpack.i.h.bf16 %v15165_v15  ;;  %v15166_v12 = vunpack.i.l.bf16 %v15165_v15  ;;  %14192 = vmatprep.subr.bf16.mxu1 %v14191_v11 }
 0xa02   : > { %13055 = vmatmul.mubr.msk.f32.gmra.mrb[82].mxu1 %vm1251_vm0, %v18167_v43 }
 0xa03   : > { %13057 = vmatprep.mubr.msk.f32.mxu1 %vm1251_vm0, %v18169_v41  ;;  %14194 = vmatpush3.bf16.msra.mxu1 %v14191_v11  ;;  %v14195_v60 = vpack.c.bf16 %v15167_v42, %v15166_v12  ;;  %v14169_v41 = vpack.c.bf16 %v15142_v63, %v15141_v0 }
 0xa05   : > { %14196 = vmatprep.subr.bf16.mxu1 %v14195_v60 }
 0xa06   : > { %13058 = vmatmul.mubr.msk.f32.gmra.mrb[84].mxu1 %vm1251_vm0, %v4267_v14 }
 0xa07   : > { %13060 = vmatprep.mubr.msk.f32.mxu1 %vm1251_vm0, %v18171_v52  ;;  %14198 = vmatpush3.bf16.msra.mxu1 %v14195_v60 }
 0xa0a   : > { %13061 = vmatmul.mubr.msk.f32.gmra.mrb[86].mxu1 %vm1251_vm0, %v4271_v24 }
 0xa42   : > { %v12965_v34 = vpop.f32.mrb[72].mxu0 }
 0xa43   : > { %v3851_v43 = vpop.f32.mrb[73].mxu0 }
 0xa44   : > { %13011 = vmatprep.mubr.msk.f32.mxu0 %vm1251_vm0, %v3851_v43 }
 0xa45   : > { %13012 = vmatmul.mubr.msk.f32.vlgmr.msra.gmra.mrb[56].mxu0 %vm1251_vm0, %v12965_v34 }
 0xa46   : > { %14168 = vmatpush3.bf16.xpose.msk.msra.mxu0 %vm16962_vm1, %v18158_v13  ;;  %v15152_v13 = vunpack.i.h.bf16 %v18192_v54 }
 0xa47   : > { %14171 = vmatprep.subr.msk.bf16.mxu0 %vm16962_vm1, %v14169_v41 }
 0xa48   : > { %v14181_v3 = vpack.c.bf16 %v15152_v13, %v15151_v62 }
 0xa4a   : > { %v12968_v52 = vpop.f32.mrb[74].mxu0 }
 0xa4b   : > { %v3861_v36 = vpop.f32.mrb[75].mxu0 }
 0xa4c   : > { %13014 = vmatprep.mubr.msk.f32.mxu0 %vm1251_vm0, %v3861_v36 }
 0xa4d   : > { %13015 = vmatmul.mubr.msk.f32.gmra.mrb[58].mxu0 %vm1251_vm0, %v12968_v52 }
 0xa4e   : > { %14174 = vmatpush3.bf16.xpose.msk.msra.mxu0 %vm16962_vm1, %v14169_v41 }
 0xa4f   : > { %14177 = vmatprep.subr.msk.bf16.mxu0 %vm16962_vm1, %v14175_v32 }
 0xa56   : > { %14180 = vmatpush3.bf16.xpose.msk.msra.mxu0 %vm16962_vm1, %v14175_v32 }
 0xa57   : > { %14183 = vmatprep.subr.msk.bf16.mxu0 %vm16962_vm1, %v14181_v3 }
 0xa5e   : > { %14186 = vmatpush3.bf16.xpose.msk.msra.mxu0 %vm16962_vm1, %v14181_v3 }
 0xa61   : > { %v12971_v8 = vpop.f32.mrb[76].mxu0 }
 0xa62   : > { %v3871_v59 = vpop.f32.mrb[77].mxu0 }
 0xa63   : > { %13017 = vmatprep.mubr.msk.f32.mxu0 %vm1251_vm0, %v3871_v59 }
 0xa64   : > { %13018 = vmatmul.mubr.msk.f32.gmra.mrb[60].mxu0 %vm1251_vm0, %v12971_v8 }
 0xa6b   : > { %v12974_v49 = vpop.f32.mrb[78].mxu0 }
 0xa6c   : > { %v3881_v21 = vpop.f32.mrb[79].mxu0 }
 0xa6d   : > { %13020 = vmatprep.mubr.msk.f32.mxu0 %vm1251_vm0, %v3881_v21 }
 0xa6e   : > { %13021 = vmatmul.mubr.msk.f32.gmra.mrb[62].mxu0 %vm1251_vm0, %v12974_v49 }
 0xaac   : > { %v12993_v40 = vpop.f32.mrb[72].mxu1 }
 0xaad   : > { %v4004_v57 = vpop.f32.mrb[73].mxu1 }
 0xaae   : > { %13023 = vmatprep.mubr.msk.f32.mxu0 %vm1251_vm0, %v4004_v57 }
 0xaaf   : > { %13024 = vmatmul.mubr.msk.f32.gmra.mrb[64].mxu0 %vm1251_vm0, %v12993_v40 }
 0xab0   : > { %v12996_v18 = vpop.f32.mrb[74].mxu1 }
 0xab1   : > { %v4014_v19 = vpop.f32.mrb[75].mxu1 }
 0xab2   : > { %13026 = vmatprep.mubr.msk.f32.mxu0 %vm1251_vm0, %v4014_v19 }
 0xab3   : > { %13027 = vmatmul.mubr.msk.f32.gmra.mrb[66].mxu0 %vm1251_vm0, %v12996_v18 }
 0xab4   : > { %v12999_v26 = vpop.f32.mrb[76].mxu1 }
 0xab5   : > { %v4024_v30 = vpop.f32.mrb[77].mxu1 }
 0xab6   : > { %13029 = vmatprep.mubr.msk.f32.mxu0 %vm1251_vm0, %v4024_v30 }
 0xab7   : > { %13030 = vmatmul.mubr.msk.f32.gmra.mrb[68].mxu0 %vm1251_vm0, %v12999_v26 }
 0xab8   : > { %v13002_v27 = vpop.f32.mrb[78].mxu1 }
 0xab9   : > { %v4034_v46 = vpop.f32.mrb[79].mxu1 }
 0xaba   : > { %13032 = vmatprep.mubr.msk.f32.mxu0 %vm1251_vm0, %v4034_v46 }
 0xabb   : > { %13033 = vmatmul.mubr.msk.f32.gmra.mrb[70].mxu0 %vm1251_vm0, %v13002_v27 }
 0xabc   : > { %13079 = vmatprep.mubr.msk.f32.mxu0 %vm1251_vm0, %v18174_v55 }
 0xabf   : > { %13080 = vmatmul.mubr.msk.f32.vlgmr.msra.gmra.mrb[80].mxu0 %vm1251_vm0, %v18212_v16 }
 0xac0   : > { %13082 = vmatprep.mubr.msk.f32.mxu0 %vm1251_vm0, %v18185_v37 }
 0xac3   : > { %13083 = vmatmul.mubr.msk.f32.gmra.mrb[82].mxu0 %vm1251_vm0, %v18216_v1 }
 0xac4   : > { %13085 = vmatprep.mubr.msk.f32.mxu0 %vm1251_vm0, %v18201_v5 }
 0xac7   : > { %13086 = vmatmul.mubr.msk.f32.gmra.mrb[84].mxu0 %vm1251_vm0, %v18220_v56 }
 0xac8   : > { %13088 = vmatprep.mubr.msk.f32.mxu0 %vm1251_vm0, %v18210_v29 }
 0xacb   : > { %13089 = vmatmul.mubr.msk.f32.gmra.mrb[86].mxu0 %vm1251_vm0, %v18224_v28 }
 0xad1   : > { %v13053_v55 = vpop.f32.mrb[80].mxu1 }
 0xad2   : > { %v4386_v31 = vpop.f32.mrb[81].mxu1  ;;  %v4597_v9 = vsel %vm1558_vm2, %v13053_v55, -inf }
 0xad3   : > { %4598 = vmax.xlane.f32.xlu1 %v4597_v9  ;;  %v4594_v37 = vsel %vm1558_vm2, %v4386_v31, -inf }
 0xad4   : > { %4595 = vmax.xlane.f32.xlu0 %v4594_v37 }
 0xad5   : > { %v13056_v44 = vpop.f32.mrb[82].mxu1 }
 0xad6   : > { %v4396_v23 = vpop.f32.mrb[83].mxu1  ;;  %v4603_v51 = vsel %vm1558_vm2, %v13056_v44, -inf }
 0xad7   : > { %v4600_v22 = vsel %vm1558_vm2, %v4396_v23, -inf }
 0xad8   : > { %4604 = vmax.xlane.f32.xlu0 %v4603_v51 }
 0xad9   : > { %v13059_v54 = vpop.f32.mrb[84].mxu1 }
 0xada   : > { %v4406_v20 = vpop.f32.mrb[85].mxu1  ;;  %v4609_v58 = vsel %vm1558_vm2, %v13059_v54, -inf }
 0xadb   : > { %4610 = vmax.xlane.f32.xlu1 %v4609_v58  ;;  %v4606_v48 = vsel %vm1558_vm2, %v4406_v20, -inf }
 0xadc   : > { %4601 = vmax.xlane.f32.xlu0 %v4600_v22 }
 0xadd   : > { %v18295_v5 = vpop.f32.mrb[86].mxu1 }
 0xade   : > { %v4416_v61 = vpop.f32.mrb[87].mxu1  ;;  %v4615_v14 = vsel %vm1558_vm2, %v18295_v5, -inf }
 0xadf   : > { %4616 = vmax.xlane.f32.xlu1 %v4615_v14  ;;  %v4612_v24 = vsel %vm1558_vm2, %v4416_v61, -inf  ;;  %v21124_v14 = vld [vmem:[#allocation44_spill] sm:$0xff] }
 0xae0   : > { %4607 = vmax.xlane.f32.xlu0 %v4606_v48 }
 0xae4   : > { %4613 = vmax.xlane.f32.xlu0 %v4612_v24 }
 0xb60   : > { %v4599_v29 = vpop.xlane.xlu1 %4598 }
 0xb61   : > { %v4643_v10 = vsub.f32 %v13053_v55, %v4599_v29  ;;  %v4596_v7 = vpop.xlane.xlu0 %4595 }
 0xb62   : > { %v4642_v16 = vsub.f32 %v4386_v31, %v4596_v7 }
 0xb63   : > { %v4660_v50 = vmul.f32 1.442695, %v4643_v10 }
 0xb64   : > { %v4658_v17 = vmul.f32 1.442695, %v4642_v16 }
 0xb65   : > { %15625 = vpow2.f32 %v4660_v50  ;;  %v4605_v1 = vpop.xlane.xlu0 %4604 }
 0xb66   : > { %15627 = vpow2.f32 %v4658_v17  ;;  %v4645_v6 = vsub.f32 %v13056_v44, %v4605_v1 }
 0xb68   : > { %v4664_v33 = vmul.f32 1.442695, %v4645_v6  ;;  %v4611_v34 = vpop.xlane.xlu1 %4610 }
 0xb69   : > { %v4602_v56 = vpop.xlane.xlu0 %4601  ;;  %v4647_v43 = vsub.f32 %v13059_v54, %v4611_v34 }
 0xb6a   : > { %15629 = vpow2.f32 %v4664_v33  ;;  %v4644_v2 = vsub.f32 %v4396_v23, %v4602_v56 }
 0xb6b   : > { %v4668_v13 = vmul.f32 1.442695, %v4647_v43 }
 0xb6c   : > { %v4662_v28 = vmul.f32 1.442695, %v4644_v2  ;;  %v4617_v8 = vpop.xlane.xlu1 %4616 }
 0xb6d   : > { %v4608_v63 = vpop.xlane.xlu0 %4607  ;;  %v4649_v40 = vsub.f32 %v18295_v5, %v4617_v8  ;;  %v21122_v5 = vld [vmem:[#allocation42_spill] sm:$0xff] }
 0xb6e   : > { %15631 = vpow2.f32 %v4662_v28  ;;  %v4646_v0 = vsub.f32 %v4406_v20, %v4608_v63 }
 0xb6f   : > { %v18301_v45 = vpop.eup %15625  ;;  %v4672_v27 = vmul.f32 1.442695, %v4649_v40 }
 0xb70   : > { %v18303_v38 = vpop.eup %15627  ;;  %v4693_v35 = vsel %vm1558_vm2, %v18301_v45, 0.0  ;;  %v4666_v41 = vmul.f32 1.442695, %v4646_v0 }
 0xb71   : > { %4694 = vadd.xlane.f32.xlu1 %v4693_v35  ;;  %v4690_v11 = vsel %vm1558_vm2, %v18303_v38, 0.0  ;;  %v4614_v47 = vpop.xlane.xlu0 %4613 }
 0xb72   : > { %4691 = vadd.xlane.f32.xlu0 %v4690_v11  ;;  %15633 = vpow2.f32 %v4666_v41  ;;  %v4648_v62 = vsub.f32 %v4416_v61, %v4614_v47  ;;  %v21123_v61 = vld [vmem:[#allocation43_spill] sm:$0xff] }
 0xb73   : > { %15635 = vpow2.f32 %v4668_v13 }
 0xb74   : > { %v18309_v15 = vpop.eup %15629  ;;  %v4670_v57 = vmul.f32 1.442695, %v4648_v62 }
 0xb75   : > { %v4699_v42 = vsel %vm1558_vm2, %v18309_v15, 0.0 }
 0xb76   : > { %4700 = vadd.xlane.f32.xlu0 %v4699_v42  ;;  %15637 = vpow2.f32 %v4670_v57 }
 0xb77   : > { %15639 = vpow2.f32 %v4672_v27 }
 0xb78   : > { %v18313_v12 = vpop.eup %15631 }
 0xb79   : > { %v4696_v60 = vsel %vm1558_vm2, %v18313_v12, 0.0 }
 0xb7a   : > { %4697 = vadd.xlane.f32.xlu1 %v4696_v60 }
 0xb7c   : > { %v18342_v9 = vpop.eup %15633 }
 0xb7d   : > { %v4702_v44 = vsel %vm1558_vm2, %v18342_v9, 0.0  ;;  %v18348_v23 = vpop.eup %15635 }
 0xb7e   : > { %v4705_v51 = vsel %vm1558_vm2, %v18348_v23, 0.0 }
 0xb80   : > { %v18352_v54 = vpop.eup %15637 }
 0xb81   : > { %v4708_v20 = vsel %vm1558_vm2, %v18352_v54, 0.0  ;;  %v18356_v58 = vpop.eup %15639 }
 0xb82   : > { %v4711_v22 = vsel %vm1558_vm2, %v18356_v58, 0.0 }
 0xb92   : > { %v13081_v4 = vpop.f32.mrb[80].mxu0 }
 0xb93   : > { %v4555_v52 = vpop.f32.mrb[81].mxu0  ;;  %v4621_v36 = vsel %vm1558_vm2, %v13081_v4, -inf }
 0xb94   : > { %4622 = vmax.xlane.f32.xlu1 %v4621_v36  ;;  %v4618_v32 = vsel %vm1558_vm2, %v4555_v52, -inf }
 0xb95   : > { %4619 = vmax.xlane.f32.xlu0 %v4618_v32 }
 0xb96   : > { %v18319_v3 = vpop.f32.mrb[82].mxu0 }
 0xb97   : > { %v18321_v59 = vpop.f32.mrb[83].mxu0  ;;  %v4627_v49 = vsel %vm1558_vm2, %v18319_v3, -inf }
 0xb98   : > { %4628 = vmax.xlane.f32.xlu1 %v4627_v49  ;;  %v4624_v21 = vsel %vm1558_vm2, %v18321_v59, -inf }
 0xb99   : > { %4625 = vmax.xlane.f32.xlu0 %v4624_v21 }
 0xb9a   : > { %v18328_v18 = vpop.f32.mrb[84].mxu0 }
 0xb9b   : > { %v18330_v19 = vpop.f32.mrb[85].mxu0  ;;  %v4633_v26 = vsel %vm1558_vm2, %v18328_v18, -inf }
 0xb9c   : > { %4634 = vmax.xlane.f32.xlu1 %v4633_v26  ;;  %v4630_v30 = vsel %vm1558_vm2, %v18330_v19, -inf }
 0xb9d   : > { %4631 = vmax.xlane.f32.xlu0 %v4630_v30 }
 0xb9e   : > { %v18336_v46 = vpop.f32.mrb[86].mxu0 }
 0xb9f   : > { %v18338_v55 = vpop.f32.mrb[87].mxu0  ;;  %v4639_v31 = vsel %vm1558_vm2, %v18336_v46, -inf }
 0xba0   : > { %4640 = vmax.xlane.f32.xlu1 %v4639_v31  ;;  %v4636_v37 = vsel %vm1558_vm2, %v18338_v55, -inf }
 0xba1   : > { %4637 = vmax.xlane.f32.xlu0 %v4636_v37 }
 0xba4   : > { %4703 = vadd.xlane.f32.xlu1 %v4702_v44 }
 0xba8   : > { %4706 = vadd.xlane.f32.xlu1 %v4705_v51 }
 0xbac   : > { %4709 = vadd.xlane.f32.xlu1 %v4708_v20 }
 0xbb0   : > { %4712 = vadd.xlane.f32.xlu1 %v4711_v22 }
 0xbb7   : > { %15169 = vrot.lane.b32.xlu0 %v21122_v5, %s16419_s8 }
 0xbc1   : > { %15174 = vrot.lane.b32.xlu1 %v21123_v61, %s16419_s8 }
 0xbc5   : > { %15179 = vrot.lane.b32.xlu1 %v21124_v14, %s16419_s8 }
 0xbfe   : > { %v4695_v10 = vpop.xlane.xlu1 %4694 }
 0xbff   : > { %v4692_v48 = vpop.xlane.xlu0 %4691 }
 0xc00   : > { %15641 = vrcp.f32 %v4692_v48 }
 0xc03   : > { %v4701_v16 = vpop.xlane.xlu0 %4700 }
 0xc07   : > { %v4698_v7 = vpop.xlane.xlu1 %4697 }
 0xc0a   : > { %v15642_v24 = vpop.eup %15641 }
 0xc0b   : > { %v4754_v29 = vmul.f32 %v15642_v24, %v18303_v38 }
 0xc0d   : > { %13107 = vmatprep.mubr.msk.f32.mxu1 %vm1558_vm2, %v4754_v29 }
 0xc21   : > { %v4623_v50 = vpop.xlane.xlu1 %4622 }
 0xc22   : > { %v4651_v17 = vsub.f32 %v13081_v4, %v4623_v50  ;;  %v4620_v1 = vpop.xlane.xlu0 %4619 }
 0xc23   : > { %v4650_v6 = vsub.f32 %v4555_v52, %v4620_v1 }
 0xc24   : > { %v4676_v33 = vmul.f32 1.442695, %v4651_v17 }
 0xc25   : > { %v4674_v56 = vmul.f32 1.442695, %v4650_v6  ;;  %v18368_v2 = vpop.xlane.xlu1 %4628 }
 0xc26   : > { %15643 = vpow2.f32 %v4676_v33  ;;  %v18370_v28 = vpop.xlane.xlu0 %4625 }
 0xc27   : > { %15645 = vpow2.f32 %v4674_v56 }
 0xc28   : > { %15647 = vrcp.f32 %v4695_v10 }
 0xc29   : > { %v18372_v35 = vpop.xlane.xlu1 %4634  ;;  %15649 = vrcp.f32 %v4698_v7 }
 0xc2a   : > { %v18374_v38 = vpop.xlane.xlu0 %4631  ;;  %15651 = vrcp.f32 %v4701_v16 }
 0xc2b   : > { %v4654_v48 = vsub.f32 %v18330_v19, %v18374_v38 }
 0xc2d   : > { %v18376_v11 = vpop.xlane.xlu1 %4640 }
 0xc2e   : > { %v18378_v42 = vpop.xlane.xlu0 %4637 }
 0xc2f   : > { %v4656_v10 = vsub.f32 %v18338_v55, %v18378_v42 }
 0xc30   : > { %v18380_v60 = vpop.eup %15643 }
 0xc31   : > { %v18382_v63 = vpop.eup %15645  ;;  %v4704_v0 = vpop.xlane.xlu1 %4703  ;;  %v4717_v34 = vsel %vm1558_vm2, %v18380_v60, 0.0 }
 0xc32   : > { %4718 = vadd.xlane.f32.xlu0 %v4717_v34  ;;  %v15170_v43 = vpop.permute.xlu0 %15169  ;;  %v4714_v41 = vsel %vm1558_vm2, %v18382_v63, 0.0  ;;  %15653 = vrcp.f32 %v4704_v0  ;;  %v15648_v32 = vpop.eup %15647 }
 0xc33   : > { %v15172_v4 = vunpack.i.h.bf16 %v15170_v43  ;;  %v15171_v47 = vunpack.i.l.bf16 %v15170_v43  ;;  %4715 = vadd.xlane.f32.xlu1 %v4714_v41  ;;  %v15650_v13 = vpop.eup %15649  ;;  %v4755_v62 = vmul.f32 %v15648_v32, %v18301_v45 }
 0xc34   : > { %v15652_v49 = vpop.eup %15651  ;;  %v4756_v21 = vmul.f32 %v15650_v13, %v18313_v12 }
 0xc35   : > { %v4707_v52 = vpop.xlane.xlu1 %4706  ;;  %v14199_v36 = vpack.c.bf16 %v15172_v4, %v15171_v47  ;;  %v4757_v57 = vmul.f32 %v15652_v49, %v18309_v15  ;;  %v5076_v4 = vld [vmem:[#allocation8 + $0x60] sm:$0xff]  ;;  %v5077_v47 = vld [vmem:[#allocation8 + $0x68] sm:$0xff]  ;;  %v5079_v49 = vld [vmem:[#allocation8 + $0x78] sm:$0xff] }
 0xc36   : > { %15655 = vrcp.f32 %v4707_v52  ;;  %v14219_v32 = vpack.c.bf16 %v5077_v47, %v5076_v4  ;;  %v5766_v47 = vld [vmem:[#allocation11 + $0x80] sm:$0xff] }
 0xc37   : > { %14200 = vmatprep.subr.bf16.mxu1 %v14199_v36 }
 0xc38   : > { %14202 = vmatpush3.bf16.msra.mxu1 %v14199_v36 }
 0xc39   : > { %v4710_v8 = vpop.xlane.xlu1 %4709 }
 0xc3a   : > { %15657 = vrcp.f32 %v4710_v8  ;;  %v5078_v8 = vld [vmem:[#allocation8 + $0x70] sm:$0xff] }
 0xc3b   : > { %13108 = vmatmul.mubr.msk.f32.vlgmr.msra.gmra.mrb[88].mxu1 %vm1558_vm2, %v4755_v62 }
 0xc3c   : > { %13110 = vmatprep.mubr.msk.f32.mxu1 %vm1558_vm2, %v4756_v21  ;;  %v15654_v26 = vpop.eup %15653 }
 0xc3d   : > { %v4713_v40 = vpop.xlane.xlu1 %4712  ;;  %v4758_v30 = vmul.f32 %v15654_v26, %v18342_v9 }
 0xc3e   : > { %15659 = vrcp.f32 %v4713_v40  ;;  %v14223_v40 = vpack.c.bf16 %v5079_v49, %v5078_v8  ;;  %v5770_v8 = vld [vmem:[#allocation11 + $0xa0] sm:$0xff]  ;;  %v5772_v49 = vld [vmem:[#allocation11 + $0xb0] sm:$0xff] }
 0xc3f   : > { %13111 = vmatmul.mubr.msk.f32.gmra.mrb[90].mxu1 %vm1558_vm2, %v4757_v57 }
 0xc40   : > { %v15656_v27 = vpop.eup %15655  ;;  %13113 = vmatprep.mubr.msk.f32.mxu1 %vm1558_vm2, %v4758_v30 }
 0xc41   : > { %v15175_v45 = vpop.permute.xlu1 %15174  ;;  %v4759_v31 = vmul.f32 %v15656_v27, %v18348_v23 }
 0xc42   : > { %v15177_v12 = vunpack.i.h.bf16 %v15175_v45  ;;  %v15176_v37 = vunpack.i.l.bf16 %v15175_v45 }
 0xc43   : > { %13114 = vmatmul.mubr.msk.f32.gmra.mrb[92].mxu1 %vm1558_vm2, %v4759_v31 }
 0xc44   : > { %v15658_v44 = vpop.eup %15657  ;;  %15184 = vrot.lane.b32.xlu1 %v21115_v53, %s16419_s8  ;;  %v14203_v15 = vpack.c.bf16 %v15177_v12, %v15176_v37  ;;  %v4653_v53 = vsub.f32 %v18319_v3, %v18368_v2  ;;  %v4657_v3 = vsub.f32 %v18336_v46, %v18376_v11 }
 0xc45   : > { %v15180_v51 = vpop.permute.xlu1 %15179  ;;  %v4760_v20 = vmul.f32 %v15658_v44, %v18352_v54  ;;  %v4652_v54 = vsub.f32 %v18321_v59, %v18370_v28  ;;  %v4686_v59 = vmul.f32 1.442695, %v4656_v10  ;;  %v5753_v10 = vld [vmem:[#allocation11 + $0x18] sm:$0xff] }
 0xc46   : > { %v15182_v22 = vunpack.i.h.bf16 %v15180_v51  ;;  %v15181_v9 = vunpack.i.l.bf16 %v15180_v51  ;;  %14204 = vmatprep.subr.bf16.mxu0 %v14203_v15  ;;  %v4680_v14 = vmul.f32 1.442695, %v4653_v53  ;;  %v4688_v7 = vmul.f32 1.442695, %v4657_v3  ;;  %v5750_v3 = vld [vmem:[#allocation11] sm:$0xff] }
 0xc47   : > { %13116 = vmatprep.mubr.msk.f32.mxu1 %vm1558_vm2, %v4760_v20  ;;  %14206 = vmatpush3.bf16.msra.mxu0 %v14203_v15  ;;  %v4678_v24 = vmul.f32 1.442695, %v4652_v54 }
 0xc48   : > { %v15660_v5 = vpop.eup %15659  ;;  %15189 = vrot.lane.b32.xlu0 %v21080_v25, %s16419_s8  ;;  %v14207_v23 = vpack.c.bf16 %v15182_v22, %v15181_v9  ;;  %v4655_v25 = vsub.f32 %v18328_v18, %v18372_v35  ;;  %15661 = vpow2.f32 %v4680_v14 }
 0xc49   : > { %v4761_v61 = vmul.f32 %v15660_v5, %v18356_v58  ;;  %v4682_v58 = vmul.f32 1.442695, %v4654_v48  ;;  %15663 = vpow2.f32 %v4678_v24 }
 0xc4a   : > { %14208 = vmatprep.subr.bf16.mxu0 %v14207_v23  ;;  %v4684_v29 = vmul.f32 1.442695, %v4655_v25 }
 0xc4b   : > { %13117 = vmatmul.mubr.msk.f32.gmra.mrb[94].mxu1 %vm1558_vm2, %v4761_v61  ;;  %14210 = vmatpush3.bf16.msra.mxu0 %v14207_v23  ;;  %15665 = vpow2.f32 %v4682_v58 }
 0xc4c   : > { %15667 = vpow2.f32 %v4684_v29  ;;  %v5751_v29 = vld [vmem:[#allocation11 + $0x8] sm:$0xff] }
 0xc4d   : > { %15669 = vpow2.f32 %v4686_v59  ;;  %v14259_v59 = vpack.c.bf16 %v5753_v10, %v5751_v29 }
 0xc4e   : > { %15671 = vpow2.f32 %v4688_v7  ;;  %v5752_v7 = vld [vmem:[#allocation11 + $0x10] sm:$0xff] }
 0xc52   : > { %v18418_v19 = vpop.eup %15661 }
 0xc53   : > { %v18420_v16 = vpop.eup %15663  ;;  %v4723_v18 = vsel %vm1558_vm2, %v18418_v19, 0.0 }
 0xc54   : > { %v4720_v55 = vsel %vm1558_vm2, %v18420_v16, 0.0 }
 0xc55   : > { %v18424_v50 = vpop.eup %15665 }
 0xc56   : > { %v18428_v17 = vpop.eup %15667  ;;  %v4726_v46 = vsel %vm1558_vm2, %v18424_v50, 0.0 }
 0xc57   : > { %v4729_v1 = vsel %vm1558_vm2, %v18428_v17, 0.0  ;;  %v18434_v6 = vpop.eup %15669 }
 0xc58   : > { %v4732_v33 = vsel %vm1558_vm2, %v18434_v6, 0.0  ;;  %v18438_v56 = vpop.eup %15671 }
 0xc59   : > { %v4735_v2 = vsel %vm1558_vm2, %v18438_v56, 0.0 }
 0xc67   : > { %4724 = vadd.xlane.f32.xlu0 %v4723_v18  ;;  %v14261_v18 = vpack.c.bf16 %v5752_v7, %v5750_v3  ;;  %v16042_v7 = vld [vmem:[%s16864_s20] sm:$0xff] }
 0xc68   : > { %4721 = vadd.xlane.f32.xlu1 %v4720_v55  ;;  %v5754_v55 = vld [vmem:[#allocation11 + $0x20] sm:$0xff] }
 0xc6b   : > { %4727 = vadd.xlane.f32.xlu0 %v4726_v46  ;;  %v5759_v46 = vld [vmem:[#allocation11 + $0x48] sm:$0xff] }
 0xc6c   : > { %4730 = vadd.xlane.f32.xlu1 %v4729_v1  ;;  %v5761_v1 = vld [vmem:[#allocation11 + $0x58] sm:$0xff] }
 0xc70   : > { %4733 = vadd.xlane.f32.xlu1 %v4732_v33  ;;  %v14267_v33 = vpack.c.bf16 %v5761_v1, %v5759_v46 }
 0xc74   : > { %4736 = vadd.xlane.f32.xlu1 %v4735_v2  ;;  %v5760_v2 = vld [vmem:[#allocation11 + $0x50] sm:$0xff] }
 0xcbf   : > { %v4719_v28 = vpop.xlane.xlu0 %4718 }
 0xcc0   : > { %v4716_v35 = vpop.xlane.xlu1 %4715 }
 0xcc1   : > { %15673 = vrcp.f32 %v4716_v35  ;;  %v5765_v35 = vld [vmem:[#allocation11 + $0x78] sm:$0xff] }
 0xcc2   : > { %15675 = vrcp.f32 %v4719_v28  ;;  %v5763_v28 = vld [vmem:[#allocation11 + $0x68] sm:$0xff] }
 0xcc3   : > { %v15190_v38 = vpop.permute.xlu0 %15189 }
 0xcc4   : > { %v15185_v11 = vpop.permute.xlu1 %15184  ;;  %v15192_v42 = vunpack.i.h.bf16 %v15190_v38  ;;  %v15191_v0 = vunpack.i.l.bf16 %v15190_v38 }
 0xcc5   : > { %v15187_v34 = vunpack.i.h.bf16 %v15185_v11  ;;  %v15186_v43 = vunpack.i.l.bf16 %v15185_v11  ;;  %v14271_v11 = vpack.c.bf16 %v5765_v35, %v5763_v28  ;;  %v16044_v28 = vld [vmem:[%s16864_s20 + $0x20] sm:$0xff] }
 0xcc6   : > { %v14215_v52 = vpack.c.bf16 %v15192_v42, %v15191_v0  ;;  %v5762_v42 = vld [vmem:[#allocation11 + $0x60] sm:$0xff]  ;;  %v5764_v0 = vld [vmem:[#allocation11 + $0x70] sm:$0xff] }
 0xcc7   : > { %v14211_v41 = vpack.c.bf16 %v15187_v34, %v15186_v43  ;;  %v5767_v34 = vld [vmem:[#allocation11 + $0x88] sm:$0xff]  ;;  %v5769_v43 = vld [vmem:[#allocation11 + $0x98] sm:$0xff] }
 0xcc8   : > { %v14275_v4 = vpack.c.bf16 %v5769_v43, %v5767_v34  ;;  %v864_v34 = vld [vmem:[%s16872_s18] sm:$0xff] }
 0xcc9   : > { %14212 = vmatprep.subr.bf16.mxu0 %v14211_v41  ;;  %v5582_v43 = vld [vmem:[#allocation10] sm:$0xff] }
 0xcca   : > { %14214 = vmatpush3.bf16.msra.mxu0 %v14211_v41  ;;  %v14273_v41 = vpack.c.bf16 %v5764_v0, %v5762_v42 }
 0xccb   : > { %v15674_v36 = vpop.eup %15673  ;;  %14216 = vmatprep.subr.bf16.mxu0 %v14215_v52 }
 0xccc   : > { %v15676_v13 = vpop.eup %15675  ;;  %v4762_v62 = vmul.f32 %v15674_v36, %v18382_v63  ;;  %v5771_v36 = vld [vmem:[#allocation11 + $0xa8] sm:$0xff] }
 0xccd   : > { %v4763_v21 = vmul.f32 %v15676_v13, %v18380_v60 }
 0xcce   : > { %14218 = vmatpush3.bf16.msra.mxu0 %v14215_v52  ;;  %13135 = vmatprep.mubr.msk.f32.mxu0 %vm1558_vm2, %v4762_v62  ;;  %v5768_v52 = vld [vmem:[#allocation11 + $0x90] sm:$0xff] }
 0xccf   : > { %14220 = vmatprep.subr.bf16.mxu0 %v14219_v32  ;;  %v14277_v13 = vpack.c.bf16 %v5768_v52, %v5766_v47 }
 0xcd1   : > { %13136 = vmatmul.mubr.msk.f32.vlgmr.msra.gmra.mrb[88].mxu0 %vm1558_vm2, %v4763_v21  ;;  %v5775_v21 = vld [vmem:[#allocation11 + $0xc8] sm:$0xff] }
 0xcd2   : > { %14222 = vmatpush3.bf16.msra.mxu0 %v14219_v32  ;;  %v5773_v32 = vld [vmem:[#allocation11 + $0xb8] sm:$0xff] }
 0xcd3   : > { %14224 = vmatprep.subr.bf16.mxu0 %v14223_v40  ;;  %v14279_v62 = vpack.c.bf16 %v5773_v32, %v5771_v36  ;;  %v16046_v36 = vld [vmem:[%s16864_s20 + $0x30] sm:$0xff] }
 0xcd6   : > { %14226 = vmatpush3.bf16.msra.mxu0 %v14223_v40  ;;  %v5777_v40 = vld [vmem:[#allocation11 + $0xd8] sm:$0xff] }
 0xcd7   : > { %14260 = vmatprep.subr.bf16.mxu0 %v14259_v59 }
 0xcf4   : > { %v4725_v57 = vpop.xlane.xlu0 %4724 }
 0xcf5   : > { %15677 = vrcp.f32 %v4725_v57  ;;  %v4722_v26 = vpop.xlane.xlu1 %4721 }
 0xcf6   : > { %15679 = vrcp.f32 %v4722_v26  ;;  %v14281_v26 = vpack.c.bf16 %v5772_v49, %v5770_v8  ;;  %v5585_v8 = vld [vmem:[#allocation10 + $0x18] sm:$0xff]  ;;  %v16047_v49 = vld [vmem:[%s16864_s20 + $0x28] sm:$0xff] }
 0xcf8   : > { %v4728_v30 = vpop.xlane.xlu0 %4727 }
 0xcf9   : > { %15681 = vrcp.f32 %v4728_v30  ;;  %v4731_v63 = vpop.xlane.xlu1 %4730 }
 0xcfa   : > { %15683 = vrcp.f32 %v4731_v63  ;;  %v14283_v63 = vpack.c.bf16 %v5777_v40, %v5775_v21 }
 0xcfd   : > { %v4734_v27 = vpop.xlane.xlu1 %4733 }
 0xcfe   : > { %15685 = vrcp.f32 %v4734_v27  ;;  %v5774_v27 = vld [vmem:[#allocation11 + $0xc0] sm:$0xff] }
 0xcff   : > { %v15678_v45 = vpop.eup %15677 }
 0xd00   : > { %v15680_v31 = vpop.eup %15679  ;;  %v4765_v37 = vmul.f32 %v15678_v45, %v18418_v19  ;;  %v5755_v19 = vld [vmem:[#allocation11 + $0x28] sm:$0xff]  ;;  %v5776_v45 = vld [vmem:[#allocation11 + $0xd0] sm:$0xff] }
 0xd01   : > { %v4737_v60 = vpop.xlane.xlu1 %4736  ;;  %v4764_v12 = vmul.f32 %v15680_v31, %v18420_v16  ;;  %v5757_v16 = vld [vmem:[#allocation11 + $0x38] sm:$0xff]  ;;  %v5779_v31 = vld [vmem:[#allocation11 + $0xe8] sm:$0xff] }
 0xd02   : > { %15687 = vrcp.f32 %v4737_v60  ;;  %v5781_v60 = vld [vmem:[#allocation11 + $0xf8] sm:$0xff] }
 0xd03   : > { %v15682_v44 = vpop.eup %15681  ;;  %13138 = vmatprep.mubr.msk.f32.mxu0 %vm1558_vm2, %v4764_v12  ;;  %v14285_v12 = vpack.c.bf16 %v5776_v45, %v5774_v27 }
 0xd04   : > { %v15684_v15 = vpop.eup %15683  ;;  %13139 = vmatmul.mubr.msk.f32.gmra.mrb[90].mxu0 %vm1558_vm2, %v4765_v37  ;;  %v4766_v51 = vmul.f32 %v15682_v44, %v18424_v50  ;;  %v14263_v50 = vpack.c.bf16 %v5757_v16, %v5755_v19  ;;  %v14287_v37 = vpack.c.bf16 %v5781_v60, %v5779_v31  ;;  %v5778_v44 = vld [vmem:[#allocation11 + $0xe0] sm:$0xff]  ;;  %v16043_v16 = vld [vmem:[%s16864_s20 + $0x10] sm:$0xff]  ;;  %v867_v60 = vld [vmem:[%s16872_s18 + $0x18] sm:$0xff] }
 0xd05   : > { %v4767_v20 = vmul.f32 %v15684_v15, %v18428_v17  ;;  %v5756_v17 = vld [vmem:[#allocation11 + $0x30] sm:$0xff] }
 0xd06   : > { %13141 = vmatprep.mubr.msk.f32.mxu0 %vm1558_vm2, %v4766_v51  ;;  %v5780_v15 = vld [vmem:[#allocation11 + $0xf0] sm:$0xff] }
 0xd07   : > { %v14289_v51 = vpack.c.bf16 %v5780_v15, %v5778_v44  ;;  %v16048_v44 = vld [vmem:[%s16864_s20 + $0x38] sm:$0xff] }
 0xd08   : > { %v15686_v22 = vpop.eup %15685  ;;  %13142 = vmatmul.mubr.msk.f32.gmra.mrb[92].mxu0 %vm1558_vm2, %v4767_v20 }
 0xd09   : > { %v4768_v9 = vmul.f32 %v15686_v22, %v18434_v6  ;;  %v14265_v6 = vpack.c.bf16 %v5756_v17, %v5754_v55 }
 0xd0b   : > { %13144 = vmatprep.mubr.msk.f32.mxu0 %vm1558_vm2, %v4768_v9 }
 0xd0c   : > { %v15688_v5 = vpop.eup %15687 }
 0xd0d   : > { %v4769_v23 = vmul.f32 %v15688_v5, %v18438_v56  ;;  %v5758_v56 = vld [vmem:[#allocation11 + $0x40] sm:$0xff] }
 0xd0e   : > { %v13109_v61 = vpop.f32.mrb[88].mxu1  ;;  %v14269_v38 = vpack.c.bf16 %v5760_v2, %v5758_v56 }
 0xd0f   : > { %v4884_v53 = vpop.f32.mrb[89].mxu1  ;;  %13145 = vmatmul.mubr.msk.f32.gmra.mrb[94].mxu0 %vm1558_vm2, %v4769_v23 }
 0xd10   : > { %13155 = vmatprep.mubr.msk.f32.mxu0 %vm1251_vm0, %v4884_v53  ;;  %v18476_v53 = vld [vmem:[%s21125_s29] ss:$0 sm:$0xff]  ;;  %s21216_s29 = sld [smem:[#allocation90_spill]] }
 0xd12   : > { %v13112_v54 = vpop.f32.mrb[90].mxu1 }
 0xd13   : > { %v4894_v14 = vpop.f32.mrb[91].mxu1  ;;  %13156 = vmatmul.mubr.msk.f32.vlgmr.msra.gmra.mrb[56].mxu0 %vm1251_vm0, %v13109_v61 }
 0xd14   : > { %13158 = vmatprep.mubr.msk.f32.mxu0 %vm1251_vm0, %v4894_v14  ;;  %14262 = vmatpush1.bf16.msra.mxu0 %v14261_v18  ;;  %v21126_v14 = vmov 0.0  }
 0xd15   : > { %14264 = vmatprep.subr.bf16.mxu0 %v14263_v50 }
 0xd16   : > { %v13115_v48 = vpop.f32.mrb[92].mxu1 }
 0xd17   : > { %v4904_v24 = vpop.f32.mrb[93].mxu1  ;;  %13159 = vmatmul.mubr.msk.f32.gmra.mrb[58].mxu0 %vm1251_vm0, %v13112_v54 }
 0xd18   : > { %13161 = vmatprep.mubr.msk.f32.mxu0 %vm1251_vm0, %v4904_v24  ;;  %14266 = vmatpush1.bf16.msra.mxu0 %v14265_v6 }
 0xd19   : > { %14268 = vmatprep.subr.bf16.mxu0 %v14267_v33 }
 0xd1b   : > { %13162 = vmatmul.mubr.msk.f32.gmra.mrb[60].mxu0 %vm1251_vm0, %v13115_v48 }
 0xd1c   : > { %14270 = vmatpush1.bf16.msra.mxu0 %v14269_v38  ;;  %v16045_v38 = vld [vmem:[%s16864_s20 + $0x18] sm:$0xff] }
 0xd1d   : > { %14272 = vmatprep.subr.bf16.mxu0 %v14271_v11 }
 0xd1e   : > { %v13118_v25 = vpop.f32.mrb[94].mxu1 }
 0xd1f   : > { %v4914_v58 = vpop.f32.mrb[95].mxu1 }
 0xd20   : > { %13164 = vmatprep.mubr.msk.f32.mxu0 %vm1251_vm0, %v4914_v58  ;;  %14274 = vmatpush1.bf16.msra.mxu0 %v14273_v41  ;;  %v5583_v41 = vld [vmem:[#allocation10 + $0x8] sm:$0xff] }
 0xd21   : > { %13165 = vmatmul.mubr.msk.f32.gmra.mrb[62].mxu0 %vm1251_vm0, %v13118_v25  ;;  %14276 = vmatprep.subr.bf16.mxu0 %v14275_v4  ;;  %v16041_v25 = vld [vmem:[%s16864_s20 + $0x8] sm:$0xff]  ;;  %v14227_v52 = vpack.c.bf16 %v5583_v41, %v5582_v43  ;;  %v16050_v43 = vld [vmem:[%s16864_s20 + $0x40] sm:$0xff] }
 0xd23   : > { %14228 = vmatprep.subr.bf16.mxu1 %v14227_v52 }
 0xd24   : > { %14278 = vmatpush1.bf16.msra.mxu0 %v14277_v13  ;;  %v865_v13 = vld [vmem:[%s16872_s18 + $0x8] sm:$0xff]  ;;  %14230 = vmatpush3.bf16.msra.mxu1 %v14227_v52 }
 0xd25   : > { %14280 = vmatprep.subr.bf16.mxu0 %v14279_v62  ;;  %v5584_v62 = vld [vmem:[#allocation10 + $0x10] sm:$0xff] }
 0xd26   : > { %v14231_v40 = vpack.c.bf16 %v5585_v8, %v5584_v62 }
 0xd28   : > { %14282 = vmatpush1.bf16.msra.mxu0 %v14281_v26  ;;  %v866_v26 = vld [vmem:[%s16872_s18 + $0x10] sm:$0xff]  ;;  %14232 = vmatprep.subr.bf16.mxu1 %v14231_v40 }
 0xd29   : > { %14284 = vmatprep.subr.bf16.mxu0 %v14283_v63  ;;  %v5587_v63 = vld [vmem:[#allocation10 + $0x28] sm:$0xff]  ;;  %14234 = vmatpush3.bf16.msra.mxu1 %v14231_v40 }
 0xd2c   : > { %14286 = vmatpush1.bf16.msra.mxu0 %v14285_v12  ;;  %v5588_v12 = vld [vmem:[#allocation10 + $0x30] sm:$0xff] }
 0xd2d   : > { %14288 = vmatprep.subr.bf16.mxu0 %v14287_v37  ;;  %v5589_v37 = vld [vmem:[#allocation10 + $0x38] sm:$0xff] }
 0xd30   : > { %14290 = vmatpush1.bf16.msra.mxu0 %v14289_v51  ;;  %v14239_v51 = vpack.c.bf16 %v5589_v37, %v5588_v12  ;;  %v876_v37 = vld [vmem:[%s16872_s18 + $0x60] sm:$0xff] }
 0xda4   : > { %v13137_v57 = vpop.f32.mrb[88].mxu0 }
 0xda5   : > { %v5037_v30 = vpop.f32.mrb[89].mxu0 }
 0xda6   : > { %13167 = vmatprep.mubr.msk.f32.mxu0 %vm1251_vm0, %v5037_v30  ;;  %v5586_v30 = vld [vmem:[#allocation10 + $0x20] sm:$0xff] }
 0xda7   : > { %13168 = vmatmul.mubr.msk.f32.gmra.mrb[64].mxu0 %vm1251_vm0, %v13137_v57  ;;  %v14235_v31 = vpack.c.bf16 %v5587_v63, %v5586_v30 }
 0xda9   : > { %14236 = vmatprep.subr.bf16.mxu1 %v14235_v31 }
 0xdaa   : > { %14238 = vmatpush3.bf16.msra.mxu1 %v14235_v31 }
 0xdab   : > { %14240 = vmatprep.subr.bf16.mxu1 %v14239_v51 }
 0xdae   : > { %14242 = vmatpush3.bf16.msra.mxu1 %v14239_v51 }
 0xdd7   : > { %v13140_v20 = vpop.f32.mrb[90].mxu0 }
 0xdd8   : > { %v5047_v22 = vpop.f32.mrb[91].mxu0 }
 0xdd9   : > { %13170 = vmatprep.mubr.msk.f32.mxu0 %vm1251_vm0, %v5047_v22  ;;  %v5590_v22 = vld [vmem:[#allocation10 + $0x40] sm:$0xff] }
 0xdda   : > { %13171 = vmatmul.mubr.msk.f32.gmra.mrb[66].mxu0 %vm1251_vm0, %v13140_v20  ;;  %v868_v20 = vld [vmem:[%s16872_s18 + $0x20] sm:$0xff] }
 0xddb   : > { %v13143_v9 = vpop.f32.mrb[92].mxu0 }
 0xddc   : > { %v5057_v5 = vpop.f32.mrb[93].mxu0 }
 0xddd   : > { %13173 = vmatprep.mubr.msk.f32.mxu0 %vm1251_vm0, %v5057_v5 }
 0xdde   : > { %13174 = vmatmul.mubr.msk.f32.gmra.mrb[68].mxu0 %vm1251_vm0, %v13143_v9  ;;  %v5591_v9 = vld [vmem:[#allocation10 + $0x48] sm:$0xff] }
 0xde2   : > { %v13146_v23 = vpop.f32.mrb[94].mxu0 }
 0xde3   : > { %v5067_v61 = vpop.f32.mrb[95].mxu0 }
 0xde4   : > { %13176 = vmatprep.mubr.msk.f32.mxu0 %vm1251_vm0, %v5067_v61  ;;  %v869_v61 = vld [vmem:[%s16872_s18 + $0x28] sm:$0xff] }
 0xde5   : > { %13177 = vmatmul.mubr.msk.f32.gmra.mrb[70].mxu0 %vm1251_vm0, %v13146_v23  ;;  %v14243_v23 = vpack.c.bf16 %v5591_v9, %v5590_v22 }
 0xde6   : > { %v13157_v54 = vpop.f32.mrb[56].mxu0  ;;  %5858 = vmatprep.mubr.f32.mxu0 %v21126_v14 }
 0xde7   : > { %v5297_v48 = vadd.f32 %v13157_v54, %v18476_v53  ;;  %v5194_v24 = vpop.f32.mrb[57].mxu0  ;;  %14244 = vmatprep.subr.bf16.mxu1 %v14243_v23  ;;  %v5592_v54 = vld [vmem:[#allocation10 + $0x50] sm:$0xff] }
 0xde8   : > { %v5296_v29 = vadd.f32 %v18476_v53, %v5194_v24  ;;  %14246 = vmatpush3.bf16.msra.mxu1 %v14243_v23 }
 0xde9   : > { %v18482_v58 = vadd.f32 %v16041_v25, %v5297_v48  ;;  %5859 = vmatmul.mubr.f32.vlgmr.msra.gmra.mrb[96].mxu0 %v864_v34  ;;  %v5593_v48 = vld [vmem:[#allocation10 + $0x58] sm:$0xff]  ;;  %v870_v25 = vld [vmem:[%s16872_s18 + $0x30] sm:$0xff] }
 0xdea   : > { %v13160_v10 = vpop.f32.mrb[58].mxu0  ;;  %v18488_v19 = vadd.f32 %v16042_v7, %v5296_v29  ;;  %5864 = vmatprep.mubr.f32.mxu0 %v21126_v14  ;;  %v14247_v24 = vpack.c.bf16 %v5593_v48, %v5592_v54  ;;  %v5594_v29 = vld [vmem:[#allocation10 + $0x60] sm:$0xff]  ;;  %v5596_v7 = vld [vmem:[#allocation10 + $0x70] sm:$0xff] }
 0xdeb   : > { %5332 = vadd.xlane.f32.xlu1 %v18482_v58  ;;  %v5204_v3 = vpop.f32.mrb[59].mxu0  ;;  %v5363_v17 = vmul.f32 %v18482_v58, %v18482_v58  ;;  %v5299_v33 = vadd.f32 %v13160_v10, %v18476_v53  ;;  %v5595_v10 = vld [vmem:[#allocation10 + $0x68] sm:$0xff]  ;;  %v874_v34 = vld [vmem:[%s16872_s18 + $0x50] sm:$0xff] }
 0xdec   : > { %v5298_v59 = vadd.f32 %v18476_v53, %v5204_v3  ;;  %v5362_v2 = vmul.f32 %v18488_v19, %v18488_v19  ;;  %14248 = vmatprep.subr.bf16.mxu1 %v14247_v24  ;;  %v14251_v3 = vpack.c.bf16 %v5595_v10, %v5594_v29 }
 0xded   : > { %v18508_v11 = vadd.f32 %v16045_v38, %v5299_v33  ;;  %5865 = vmatmul.mubr.f32.gmra.mrb[98].mxu0 %v865_v13  ;;  %14250 = vmatpush3.bf16.msra.mxu1 %v14247_v24  ;;  %v16049_v38 = vld [vmem:[%s16864_s20 + $0x48] sm:$0xff] }
 0xdee   : > { %v18491_v18 = vadd.f32 %v16043_v16, %v5298_v59  ;;  %v13163_v50 = vpop.f32.mrb[60].mxu0  ;;  %5870 = vmatprep.mubr.f32.mxu0 %v21126_v14  ;;  %v871_v59 = vld [vmem:[%s16872_s18 + $0x38] sm:$0xff]  ;;  %14252 = vmatprep.subr.bf16.mxu1 %v14251_v3 }
 0xdef   : > { %5330 = vadd.xlane.f32.xlu1 %v18488_v19  ;;  %v5214_v55 = vpop.f32.mrb[61].mxu0  ;;  %v5301_v4 = vadd.f32 %v13163_v50, %v18476_v53  ;;  %v5365_v47 = vmul.f32 %v18508_v11, %v18508_v11  ;;  %v5597_v16 = vld [vmem:[#allocation10 + $0x78] sm:$0xff] }
 0xdf0   : > { %5334 = vadd.xlane.f32.xlu0 %v18491_v18  ;;  %v5300_v46 = vadd.f32 %v18476_v53, %v5214_v55  ;;  %v5364_v1 = vmul.f32 %v18491_v18, %v18491_v18  ;;  %v14255_v50 = vpack.c.bf16 %v5597_v16, %v5596_v7  ;;  %v872_v55 = vld [vmem:[%s16872_s18 + $0x40] sm:$0xff] }
 0xdf1   : > { %v18525_v21 = vadd.f32 %v16047_v49, %v5301_v4  ;;  %5871 = vmatmul.mubr.f32.gmra.mrb[100].mxu0 %v866_v26  ;;  %14254 = vmatpush3.bf16.msra.mxu1 %v14251_v3  ;;  %v875_v49 = vld [vmem:[%s16872_s18 + $0x58] sm:$0xff] }
 0xdf2   : > { %v18504_v35 = vadd.f32 %v16044_v28, %v5300_v46  ;;  %5876 = vmatprep.mubr.f32.mxu0 %v21126_v14  ;;  %14256 = vmatprep.subr.bf16.mxu1 %v14255_v50 }
 0xdf3   : > { %5380 = vadd.xlane.f32.xlu1 %v5363_v17  ;;  %v5367_v45 = vmul.f32 %v18525_v21, %v18525_v21  ;;  %v873_v17 = vld [vmem:[%s16872_s18 + $0x48] sm:$0xff] }
 0xdf4   : > { %5382 = vadd.xlane.f32.xlu0 %v5364_v1  ;;  %v13166_v6 = vpop.f32.mrb[62].mxu0  ;;  %v5366_v0 = vmul.f32 %v18504_v35, %v18504_v35 }
 0xdf5   : > { %v5224_v56 = vpop.f32.mrb[63].mxu0  ;;  %v5303_v27 = vadd.f32 %v13166_v6, %v18476_v53  ;;  %5877 = vmatmul.mubr.f32.gmra.mrb[102].mxu0 %v867_v60  ;;  %14258 = vmatpush3.bf16.msra.mxu1 %v14255_v50 }
 0xdf6   : > { %v5302_v42 = vadd.f32 %v18476_v53, %v5224_v56  ;;  %5882 = vmatprep.mubr.f32.mxu0 %v21126_v14 }
 0xdf7   : > { %5378 = vadd.xlane.f32.xlu1 %v5362_v2  ;;  %v18538_v15 = vadd.f32 %v16048_v44, %v5303_v27 }
 0xdf8   : > { %5338 = vadd.xlane.f32.xlu0 %v18504_v35  ;;  %v18520_v32 = vadd.f32 %v16046_v36, %v5302_v42 }
 0xdf9   : > { %5883 = vmatmul.mubr.f32.gmra.mrb[104].mxu0 %v868_v20  ;;  %v5369_v5 = vmul.f32 %v18538_v15, %v18538_v15 }
 0xdfa   : > { %v5368_v57 = vmul.f32 %v18520_v32, %v18520_v32  ;;  %5888 = vmatprep.mubr.f32.mxu0 %v21126_v14 }
 0xdfb   : > { %5336 = vadd.xlane.f32.xlu1 %v18508_v11 }
 0xdfc   : > { %5386 = vadd.xlane.f32.xlu0 %v5366_v0 }
 0xdfd   : > { %5889 = vmatmul.mubr.f32.gmra.mrb[106].mxu0 %v869_v61  ;;  %v877_v61 = vld [vmem:[%s16872_s18 + $0x68] sm:$0xff] }
 0xdfe   : > { %5894 = vmatprep.mubr.f32.mxu0 %v21126_v14 }
 0xdff   : > { %5384 = vadd.xlane.f32.xlu1 %v5365_v47 }
 0xe00   : > { %5342 = vadd.xlane.f32.xlu0 %v18520_v32 }
 0xe01   : > { %5895 = vmatmul.mubr.f32.gmra.mrb[108].mxu0 %v870_v25 }
 0xe02   : > { %5900 = vmatprep.mubr.f32.mxu0 %v21126_v14 }
 0xe03   : > { %5340 = vadd.xlane.f32.xlu1 %v18525_v21 }
 0xe04   : > { %5390 = vadd.xlane.f32.xlu0 %v5368_v57 }
 0xe05   : > { %5901 = vmatmul.mubr.f32.gmra.mrb[110].mxu0 %v871_v59  ;;  %v878_v59 = vld [vmem:[%s16872_s18 + $0x70] sm:$0xff] }
 0xe06   : > { %5906 = vmatprep.mubr.f32.mxu0 %v21126_v14 }
 0xe07   : > { %5388 = vadd.xlane.f32.xlu1 %v5367_v45 }
 0xe09   : > { %5907 = vmatmul.mubr.f32.gmra.mrb[112].mxu0 %v872_v55 }
 0xe0a   : > { %5912 = vmatprep.mubr.f32.mxu0 %v21126_v14 }
 0xe0b   : > { %5344 = vadd.xlane.f32.xlu1 %v18538_v15 }
 0xe0d   : > { %5913 = vmatmul.mubr.f32.gmra.mrb[114].mxu0 %v873_v17 }
 0xe0e   : > { %5918 = vmatprep.mubr.f32.mxu0 %v21126_v14 }
 0xe0f   : > { %5392 = vadd.xlane.f32.xlu1 %v5369_v5 }
 0xe11   : > { %5919 = vmatmul.mubr.f32.gmra.mrb[116].mxu0 %v874_v34 }
 0xe12   : > { %5924 = vmatprep.mubr.f32.mxu0 %v21126_v14 }
 0xe15   : > { %5925 = vmatmul.mubr.f32.gmra.mrb[118].mxu0 %v875_v49 }
 0xe16   : > { %5930 = vmatprep.mubr.f32.mxu0 %v21126_v14 }
 0xe19   : > { %5931 = vmatmul.mubr.f32.gmra.mrb[120].mxu0 %v876_v37 }
 0xe1a   : > { %5936 = vmatprep.mubr.f32.mxu0 %v21126_v14 }
 0xe1d   : > { %5937 = vmatmul.mubr.f32.gmra.mrb[122].mxu0 %v877_v61 }
 0xe1e   : > { %5942 = vmatprep.mubr.f32.mxu0 %v21126_v14 }
 0xe21   : > { %5943 = vmatmul.mubr.f32.gmra.mrb[124].mxu0 %v878_v59 }
 0xe22   : > { %5948 = vmatprep.mubr.f32.mxu0 %v21126_v14 }
 0xe78   : > { %v5333_v46 = vpop.xlane.xlu1 %5332 }
 0xe79   : > { %v18558_v28 = vmul.f32 0.0078125, %v5333_v46 }
 0xe7a   : > { %v13169_v1 = vpop.f32.mrb[64].mxu0 }
 0xe7b   : > { %v5305_v6 = vadd.f32 %v13169_v1, %v18476_v53  ;;  %v5234_v33 = vpop.f32.mrb[65].mxu0  ;;  %v5443_v52 = vmul.f32 %v18558_v28, %v18558_v28  ;;  %v5475_v46 = vsub.f32 %v18482_v58, %v18558_v28  ;;  %v18614_v28 = vld [vmem:[%s20914_s16] ss:$0 sm:$0xff] }
 0xe7c   : > { %v5304_v56 = vadd.f32 %v18476_v53, %v5234_v33  ;;  %v5331_v2 = vpop.xlane.xlu1 %5330 }
 0xe7d   : > { %v18561_v42 = vadd.f32 %v16049_v38, %v5305_v6  ;;  %v5335_v0 = vpop.xlane.xlu0 %5334  ;;  %v18574_v36 = vmul.f32 0.0078125, %v5331_v2 }
 0xe7e   : > { %v18565_v41 = vadd.f32 %v16050_v43, %v5304_v56  ;;  %v18567_v4 = vmul.f32 0.0078125, %v5335_v0  ;;  %v879_v56 = vld [vmem:[%s16872_s18 + $0x78] sm:$0xff]  ;;  %s21146_s18 = sld [smem:[#allocation81_spill]] }
 0xe7f   : > { %5348 = vadd.xlane.f32.xlu1 %v18561_v42  ;;  %v5371_v8 = vmul.f32 %v18561_v42, %v18561_v42  ;;  %v5442_v45 = vmul.f32 %v18574_v36, %v18574_v36  ;;  %5949 = vmatmul.mubr.f32.gmra.mrb[126].mxu0 %v879_v56 }
 0xe80   : > { %v5381_v47 = vpop.xlane.xlu1 %5380  ;;  %5346 = vadd.xlane.f32.xlu0 %v18565_v41  ;;  %v5444_v40 = vmul.f32 %v18567_v4, %v18567_v4  ;;  %v5370_v26 = vmul.f32 %v18565_v41, %v18565_v41  ;;  %v5476_v38 = vsub.f32 %v18491_v18, %v18567_v4 }
 0xe81   : > { %v5427_v13 = vmul.f32 0.0078125, %v5381_v47  ;;  %v5383_v62 = vpop.xlane.xlu0 %5382  ;;  %v5474_v47 = vsub.f32 %v18488_v19, %v18574_v36  ;;  %v18620_v19 = vld [vmem:[%s20915_s17] ss:$0 sm:$0xff] }
 0xe82   : > { %v5428_v57 = vmul.f32 0.0078125, %v5383_v62 }
 0xe83   : > { %v5459_v30 = vsub.f32 %v5427_v13, %v5443_v52  ;;  %5396 = vadd.xlane.f32.xlu1 %v5371_v8 }
 0xe84   : > { %v5460_v63 = vsub.f32 %v5428_v57, %v5444_v40  ;;  %v5379_v27 = vpop.xlane.xlu1 %5378  ;;  %5394 = vadd.xlane.f32.xlu0 %v5370_v26 }
 0xe85   : > { %v5491_v31 = vadd.f32 1e-05, %v5459_v30  ;;  %v5426_v60 = vmul.f32 0.0078125, %v5379_v27  ;;  %v5339_v12 = vpop.xlane.xlu0 %5338 }
 0xe86   : > { %v5492_v44 = vadd.f32 1e-05, %v5460_v63  ;;  %v18587_v51 = vmul.f32 0.0078125, %v5339_v12 }
 0xe87   : > { %15689 = vrsqrt.f32 %v5491_v31  ;;  %v5458_v20 = vsub.f32 %v5426_v60, %v5442_v45 }
 0xe88   : > { %15691 = vrsqrt.f32 %v5492_v44  ;;  %v5337_v22 = vpop.xlane.xlu1 %5336  ;;  %v5446_v54 = vmul.f32 %v18587_v51, %v18587_v51  ;;  %v5478_v63 = vsub.f32 %v18504_v35, %v18587_v51 }
 0xe89   : > { %v5490_v9 = vadd.f32 1e-05, %v5458_v20  ;;  %v18590_v5 = vmul.f32 0.0078125, %v5337_v22  ;;  %v5387_v23 = vpop.xlane.xlu0 %5386 }
 0xe8a   : > { %v5430_v48 = vmul.f32 0.0078125, %v5387_v23 }
 0xe8b   : > { %15693 = vrsqrt.f32 %v5490_v9  ;;  %v5445_v29 = vmul.f32 %v18590_v5, %v18590_v5  ;;  %v5477_v44 = vsub.f32 %v18508_v11, %v18590_v5 }
 0xe8c   : > { %v5462_v24 = vsub.f32 %v5430_v48, %v5446_v54  ;;  %v5385_v25 = vpop.xlane.xlu1 %5384 }
 0xe8d   : > { %v5429_v10 = vmul.f32 0.0078125, %v5385_v25  ;;  %v5343_v3 = vpop.xlane.xlu0 %5342 }
 0xe8e   : > { %v5494_v7 = vadd.f32 1e-05, %v5462_v24  ;;  %v18599_v16 = vmul.f32 0.0078125, %v5343_v3 }
 0xe8f   : > { %v5461_v50 = vsub.f32 %v5429_v10, %v5445_v29 }
 0xe90   : > { %15695 = vrsqrt.f32 %v5494_v7  ;;  %v5341_v55 = vpop.xlane.xlu1 %5340  ;;  %v5448_v0 = vmul.f32 %v18599_v16, %v18599_v16  ;;  %v5480_v11 = vsub.f32 %v18520_v32, %v18599_v16 }
 0xe91   : > { %v15690_v17 = vpop.eup %15689  ;;  %v5493_v1 = vadd.f32 1e-05, %v5461_v50  ;;  %v5415_v6 = vmul.f32 0.0078125, %v5341_v55  ;;  %v5391_v33 = vpop.xlane.xlu0 %5390 }
 0xe92   : > { %v15692_v2 = vpop.eup %15691  ;;  %v5432_v34 = vmul.f32 0.0078125, %v5391_v33  ;;  %v5523_v43 = vmul.f32 %v15690_v17, %v5475_v46 }
 0xe93   : > { %15697 = vrsqrt.f32 %v5493_v1  ;;  %v5524_v13 = vmul.f32 %v15692_v2, %v5476_v38  ;;  %v5447_v18 = vmul.f32 %v5415_v6, %v5415_v6  ;;  %v5479_v3 = vsub.f32 %v18525_v21, %v5415_v6  ;;  %v16051_v2 = vld [vmem:[%s16864_s20 + $0x58] sm:$0xff] }
 0xe94   : > { %v5464_v52 = vsub.f32 %v5432_v34, %v5448_v0  ;;  %v5389_v58 = vpop.xlane.xlu1 %5388  ;;  %v5545_v57 = vmul.f32 %v18614_v28, %v5523_v43  ;;  %v16052_v34 = vld [vmem:[%s16864_s20 + $0x50] sm:$0xff] }
 0xe95   : > { %v15694_v62 = vpop.eup %15693  ;;  %v5431_v4 = vmul.f32 0.0078125, %v5389_v58  ;;  %v5546_v30 = vmul.f32 %v18614_v28, %v5524_v13 }
 0xe96   : > { %v5496_v8 = vadd.f32 1e-05, %v5464_v52  ;;  %v5522_v49 = vmul.f32 %v15694_v62, %v5474_v47  ;;  %v18630_v12 = vadd.f32 %v18620_v19, %v5545_v57 }
 0xe97   : > { %v5463_v40 = vsub.f32 %v5431_v4, %v5447_v18  ;;  %v18636_v22 = vadd.f32 %v18620_v19, %v5546_v30  ;;  %v16053_v4 = vld [vmem:[%s16864_s20 + $0x68] sm:$0xff] }
 0xe98   : > { %15699 = vrsqrt.f32 %v5496_v8  ;;  %v5345_v26 = vpop.xlane.xlu1 %5344  ;;  %v5544_v36 = vmul.f32 %v18614_v28, %v5522_v49  ;;  %21128 = vst [vmem:[#allocation40_spill] sm:$0xff] %v18630_v12 }
 0xe99   : > { %v5495_v27 = vadd.f32 1e-05, %v5463_v40  ;;  %v5417_v45 = vmul.f32 0.0078125, %v5345_v26  ;;  %21129 = vst [vmem:[#allocation32_spill] sm:$0xff] %v18636_v22  ;;  %v16054_v40 = vld [vmem:[%s16864_s20 + $0x60] sm:$0xff] }
 0xe9a   : > { %v15696_v31 = vpop.eup %15695  ;;  %v18627_v60 = vadd.f32 %v18620_v19, %v5544_v36 }
 0xe9b   : > { %15701 = vrsqrt.f32 %v5495_v27  ;;  %v5526_v37 = vmul.f32 %v15696_v31, %v5478_v63  ;;  %v5449_v51 = vmul.f32 %v5417_v45, %v5417_v45  ;;  %v5481_v21 = vsub.f32 %v18538_v15, %v5417_v45  ;;  %v16055_v45 = vld [vmem:[%s16864_s20 + $0x78] sm:$0xff] }
 0xe9c   : > { %21127 = vst [vmem:[#allocation39_spill] sm:$0xff] %v18627_v60  ;;  %13211 = vmatprep.mubr.f32.mxu1 %v18627_v60  ;;  %v5393_v20 = vpop.xlane.xlu1 %5392 }
 0xe9d   : > { %v15698_v35 = vpop.eup %15697  ;;  %v5433_v9 = vmul.f32 0.0078125, %v5393_v20  ;;  %13212 = vmatmul.mubr.f32.vlgmr.msra.gmra.mrb[96].mxu1 %v18630_v12  ;;  %v5548_v54 = vmul.f32 %v18614_v28, %v5526_v37  ;;  %v16056_v37 = vld [vmem:[%s16864_s20 + $0x70] sm:$0xff] }
 0xe9e   : > { %13214 = vmatprep.mubr.f32.mxu1 %v18636_v22  ;;  %v5525_v23 = vmul.f32 %v15698_v35, %v5477_v44  ;;  %v18714_v35 = vld [vmem:[%s20907_s9] sm:$0x3] }
 0xe9f   : > { %v5465_v61 = vsub.f32 %v5433_v9, %v5449_v51  ;;  %v18648_v29 = vadd.f32 %v18620_v19, %v5548_v54  ;;  %v21135_v9 = vld [vmem:[#allocation28_spill] sm:$0xff] }
 0xea0   : > { %v5547_v48 = vmul.f32 %v18614_v28, %v5525_v23  ;;  %v18718_v23 = vrot.slane %v18714_v35, %v21135_v9 }
 0xea1   : > { %v5497_v5 = vadd.f32 1e-05, %v5465_v61  ;;  %21131 = vst [vmem:[#allocation48_spill] sm:$0xff] %v18648_v29 }
 0xea2   : > { %v15700_v24 = vpop.eup %15699  ;;  %v18645_v25 = vadd.f32 %v18620_v19, %v5547_v48 }
 0xea3   : > { %15703 = vrsqrt.f32 %v5497_v5  ;;  %v5528_v10 = vmul.f32 %v15700_v24, %v5480_v11 }
 0xea4   : > { %21130 = vst [vmem:[#allocation46_spill] sm:$0xff] %v18645_v25  ;;  %13215 = vmatmul.mubr.f32.gmra.mrb[98].mxu1 %v18645_v25 }
 0xea5   : > { %v15702_v59 = vpop.eup %15701  ;;  %13217 = vmatprep.mubr.f32.mxu1 %v18648_v29  ;;  %v5550_v32 = vmul.f32 %v18614_v28, %v5528_v10 }
 0xea6   : > { %v5527_v7 = vmul.f32 %v15702_v59, %v5479_v3 }
 0xea7   : > { %v18659_v55 = vadd.f32 %v18620_v19, %v5550_v32 }
 0xea8   : > { %v5549_v16 = vmul.f32 %v18614_v28, %v5527_v7 }
 0xea9   : > { %21133 = vst [vmem:[#allocation47_spill] sm:$0xff] %v18659_v55 }
 0xeaa   : > { %v18656_v50 = vadd.f32 %v18620_v19, %v5549_v16 }
 0xeac   : > { %21132 = vst [vmem:[#allocation35_spill] sm:$0xff] %v18656_v50  ;;  %13218 = vmatmul.mubr.f32.gmra.mrb[100].mxu1 %v18656_v50 }
 0xead   : > { %v15704_v17 = vpop.eup %15703  ;;  %v13172_v46 = vpop.f32.mrb[66].mxu0  ;;  %13220 = vmatprep.mubr.f32.mxu1 %v18659_v55 }
 0xeae   : > { %v5307_v1 = vadd.f32 %v13172_v46, %v18476_v53  ;;  %v5244_v6 = vpop.f32.mrb[67].mxu0  ;;  %v5529_v33 = vmul.f32 %v15704_v17, %v5481_v21 }
 0xeaf   : > { %v5306_v56 = vadd.f32 %v18476_v53, %v5244_v6 }
 0xeb0   : > { %v18667_v38 = vadd.f32 %v16051_v2, %v5307_v1  ;;  %v5551_v0 = vmul.f32 %v18614_v28, %v5529_v33 }
 0xeb1   : > { %v18671_v15 = vadd.f32 %v16052_v34, %v5306_v56  ;;  %v13175_v43 = vpop.f32.mrb[68].mxu0 }
 0xeb2   : > { %5352 = vadd.xlane.f32.xlu1 %v18667_v38  ;;  %v5254_v47 = vpop.f32.mrb[69].mxu0  ;;  %v18675_v52 = vadd.f32 %v18620_v19, %v5551_v0  ;;  %v5309_v58 = vadd.f32 %v13175_v43, %v18476_v53  ;;  %v5373_v13 = vmul.f32 %v18667_v38, %v18667_v38 }
 0xeb3   : > { %5350 = vadd.xlane.f32.xlu0 %v18671_v15  ;;  %v5308_v62 = vadd.f32 %v18476_v53, %v5254_v47  ;;  %v5372_v18 = vmul.f32 %v18671_v15, %v18671_v15 }
 0xeb4   : > { %21134 = vst [vmem:[#allocation50_spill] sm:$0xff] %v18675_v52  ;;  %13221 = vmatmul.mubr.f32.gmra.mrb[102].mxu1 %v18675_v52  ;;  %v18686_v8 = vadd.f32 %v16053_v4, %v5309_v58 }
 0xeb5   : > { %v18689_v57 = vadd.f32 %v16054_v40, %v5308_v62 }
 0xeb6   : > { %5400 = vadd.xlane.f32.xlu1 %v5373_v13  ;;  %v5375_v30 = vmul.f32 %v18686_v8, %v18686_v8 }
 0xeb7   : > { %5398 = vadd.xlane.f32.xlu0 %v5372_v18  ;;  %v5374_v27 = vmul.f32 %v18689_v57, %v18689_v57 }
 0xeb8   : > { %v13178_v49 = vpop.f32.mrb[70].mxu0 }
 0xeb9   : > { %v5264_v26 = vpop.f32.mrb[71].mxu0  ;;  %v5311_v36 = vadd.f32 %v13178_v49, %v18476_v53 }
 0xeba   : > { %5356 = vadd.xlane.f32.xlu1 %v18686_v8  ;;  %v5310_v63 = vadd.f32 %v18476_v53, %v5264_v26 }
 0xebb   : > { %5354 = vadd.xlane.f32.xlu0 %v18689_v57  ;;  %v18700_v31 = vadd.f32 %v16055_v45, %v5311_v36 }
 0xebc   : > { %v18703_v44 = vadd.f32 %v16056_v37, %v5310_v63  ;;  %v5860_v51 = vpop.f32.mrb[96].mxu0 }
 0xebd   : > { %v5377_v20 = vmul.f32 %v18700_v31, %v18700_v31  ;;  %v18720_v61 = vpop.f32.mrb[97].mxu0  ;;  %v18723_v54 = vadd.f32 %v5860_v51, %v18718_v23 }
 0xebe   : > { %5404 = vadd.xlane.f32.xlu1 %v5375_v30  ;;  %v5376_v53 = vmul.f32 %v18703_v44, %v18703_v44 }
 0xebf   : > { %5402 = vadd.xlane.f32.xlu0 %v5374_v27 }
 0xec0   : > { %v5866_v48 = vpop.f32.mrb[98].mxu0 }
 0xec1   : > { %v18726_v11 = vadd.f32 %v5866_v48, %v18718_v23  ;;  %v18730_v24 = vpop.f32.mrb[99].mxu0 }
 0xec2   : > { %5360 = vadd.xlane.f32.xlu1 %v18700_v31 }
 0xec3   : > { %5358 = vadd.xlane.f32.xlu0 %v18703_v44  ;;  %v14291_v5 = vpack.c.bf16 %v18726_v11, %v18723_v54 }
 0xec4   : > { %v5872_v10 = vpop.f32.mrb[100].mxu0 }
 0xec5   : > { %14293 = vmatprep.subr.msk.bf16.mxu1 %vm16962_vm1, %v14291_v5  ;;  %v18736_v3 = vpop.f32.mrb[101].mxu0  ;;  %v18739_v59 = vadd.f32 %v5872_v10, %v18718_v23 }
 0xec6   : > { %5408 = vadd.xlane.f32.xlu1 %v5377_v20  ;;  %14296 = vmatpush3.bf16.xpose.msk.msra.mxu1 %vm16962_vm1, %v14291_v5 }
 0xec7   : > { %5406 = vadd.xlane.f32.xlu0 %v5376_v53 }
 0xec8   : > { %v5878_v7 = vpop.f32.mrb[102].mxu0 }
 0xec9   : > { %v18742_v32 = vadd.f32 %v5878_v7, %v18718_v23  ;;  %v18744_v16 = vpop.f32.mrb[103].mxu0 }
 0xecb   : > { %v14297_v21 = vpack.c.bf16 %v18742_v32, %v18739_v59 }
 0xecc   : > { %v5884_v17 = vpop.f32.mrb[104].mxu0 }
 0xecd   : > { %14299 = vmatprep.subr.msk.bf16.mxu1 %vm16962_vm1, %v14297_v21  ;;  %v18750_v46 = vpop.f32.mrb[105].mxu0  ;;  %v18755_v1 = vadd.f32 %v5884_v17, %v18718_v23 }
 0xece   : > { %14302 = vmatpush3.bf16.xpose.msk.msra.mxu1 %vm16962_vm1, %v14297_v21 }
 0xed0   : > { %v5890_v6 = vpop.f32.mrb[106].mxu0 }
 0xed1   : > { %v18758_v33 = vadd.f32 %v5890_v6, %v18718_v23  ;;  %v18760_v56 = vpop.f32.mrb[107].mxu0 }
 0xed3   : > { %v14303_v2 = vpack.c.bf16 %v18758_v33, %v18755_v1 }
 0xed4   : > { %v5896_v0 = vpop.f32.mrb[108].mxu0 }
 0xed5   : > { %14305 = vmatprep.subr.msk.bf16.mxu1 %vm16962_vm1, %v14303_v2  ;;  %v18766_v34 = vpop.f32.mrb[109].mxu0  ;;  %v18771_v43 = vadd.f32 %v5896_v0, %v18718_v23 }
 0xed6   : > { %14308 = vmatpush3.bf16.xpose.msk.msra.mxu1 %vm16962_vm1, %v14303_v2 }
 0xed8   : > { %v5902_v47 = vpop.f32.mrb[110].mxu0 }
 0xed9   : > { %v18774_v58 = vadd.f32 %v5902_v47, %v18718_v23  ;;  %v18782_v18 = vpop.f32.mrb[111].mxu0 }
 0xedb   : > { %v14309_v13 = vpack.c.bf16 %v18774_v58, %v18771_v43 }
 0xedc   : > { %v5908_v48 = vpop.f32.mrb[112].mxu0 }
 0xedd   : > { %14311 = vmatprep.subr.msk.bf16.mxu1 %vm16962_vm1, %v14309_v13  ;;  %v18784_v5 = vpop.f32.mrb[113].mxu0  ;;  %v18787_v10 = vadd.f32 %v5908_v48, %v18718_v23 }
 0xede   : > { %14314 = vmatpush3.bf16.xpose.msk.msra.mxu1 %vm16962_vm1, %v14309_v13 }
 0xee0   : > { %v5914_v7 = vpop.f32.mrb[114].mxu0 }
 0xee1   : > { %v18791_v17 = vadd.f32 %v5914_v7, %v18718_v23  ;;  %v18793_v6 = vpop.f32.mrb[115].mxu0 }
 0xf0c   : > { %v5349_v62 = vpop.xlane.xlu1 %5348 }
 0xf0d   : > { %v5419_v4 = vmul.f32 0.0078125, %v5349_v62  ;;  %v5347_v49 = vpop.xlane.xlu0 %5346  ;;  %v18798_v62 = vpack.c.bf16 %v18791_v17, %v18787_v10 }
 0xf0e   : > { %v5418_v40 = vmul.f32 0.0078125, %v5347_v49 }
 0xf0f   : > { %v5451_v36 = vmul.f32 %v5419_v4, %v5419_v4  ;;  %v5483_v21 = vsub.f32 %v18561_v42, %v5419_v4  ;;  %14317 = vmatprep.subr.msk.bf16.mxu1 %vm16962_vm1, %v18798_v62 }
 0xf10   : > { %v5397_v26 = vpop.xlane.xlu1 %5396  ;;  %v5450_v27 = vmul.f32 %v5418_v40, %v5418_v40  ;;  %v5482_v0 = vsub.f32 %v18565_v41, %v5418_v40 }
 0xf11   : > { %v5435_v30 = vmul.f32 0.0078125, %v5397_v26  ;;  %v5395_v63 = vpop.xlane.xlu0 %5394 }
 0xf12   : > { %v5434_v45 = vmul.f32 0.0078125, %v5395_v63 }
 0xf13   : > { %v5467_v37 = vsub.f32 %v5435_v30, %v5451_v36 }
 0xf14   : > { %v5466_v20 = vsub.f32 %v5434_v45, %v5450_v27 }
 0xf15   : > { %v5499_v53 = vadd.f32 1e-05, %v5467_v37 }
 0xf16   : > { %v5498_v51 = vadd.f32 1e-05, %v5466_v20 }
 0xf17   : > { %15705 = vrsqrt.f32 %v5499_v53 }
 0xf18   : > { %15707 = vrsqrt.f32 %v5498_v51 }
 0xf21   : > { %v15706_v2 = vpop.eup %15705 }
 0xf22   : > { %v15708_v47 = vpop.eup %15707  ;;  %v5531_v13 = vmul.f32 %v15706_v2, %v5483_v21 }
 0xf23   : > { %v5530_v49 = vmul.f32 %v15708_v47, %v5482_v0 }
 0xf24   : > { %v5553_v26 = vmul.f32 %v18614_v28, %v5531_v13 }
 0xf25   : > { %v5552_v42 = vmul.f32 %v18614_v28, %v5530_v49 }
 0xf26   : > { %v18809_v41 = vadd.f32 %v18620_v19, %v5553_v26 }
 0xf27   : > { %v18806_v4 = vadd.f32 %v18620_v19, %v5552_v42 }
 0xf28   : > { %21137 = vst [vmem:[#allocation49_spill] sm:$0xff] %v18809_v41 }
 0xf29   : > { %21136 = vst [vmem:[#allocation34_spill] sm:$0xff] %v18806_v4  ;;  %13223 = vmatprep.mubr.f32.mxu1 %v18806_v4 }
 0xf2a   : > { %13224 = vmatmul.mubr.f32.gmra.mrb[104].mxu1 %v18809_v41 }
 0xf3f   : > { %v5353_v40 = vpop.xlane.xlu1 %5352 }
 0xf40   : > { %v5421_v36 = vmul.f32 0.0078125, %v5353_v40  ;;  %v5351_v30 = vpop.xlane.xlu0 %5350 }
 0xf41   : > { %v5420_v63 = vmul.f32 0.0078125, %v5351_v30 }
 0xf42   : > { %v5453_v45 = vmul.f32 %v5421_v36, %v5421_v36 }
 0xf43   : > { %v5401_v27 = vpop.xlane.xlu1 %5400  ;;  %v5452_v53 = vmul.f32 %v5420_v63, %v5420_v63 }
 0xf44   : > { %v5437_v37 = vmul.f32 0.0078125, %v5401_v27  ;;  %v5399_v20 = vpop.xlane.xlu0 %5398 }
 0xf45   : > { %v5436_v51 = vmul.f32 0.0078125, %v5399_v20 }
 0xf46   : > { %v5469_v48 = vsub.f32 %v5437_v37, %v5453_v45 }
 0xf47   : > { %v5468_v7 = vsub.f32 %v5436_v51, %v5452_v53  ;;  %v5357_v21 = vpop.xlane.xlu1 %5356 }
 0xf48   : > { %v5501_v2 = vadd.f32 1e-05, %v5469_v48  ;;  %v5423_v0 = vmul.f32 0.0078125, %v5357_v21  ;;  %v5355_v47 = vpop.xlane.xlu0 %5354  ;;  %v5920_v48 = vpop.f32.mrb[116].mxu0  ;;  %v5485_v21 = vsub.f32 %v18667_v38, %v5421_v36 }
 0xf49   : > { %v5500_v13 = vadd.f32 1e-05, %v5468_v7  ;;  %v5422_v49 = vmul.f32 0.0078125, %v5355_v47  ;;  %v18817_v7 = vpop.f32.mrb[117].mxu0 }
 0xf4a   : > { %15709 = vrsqrt.f32 %v5501_v2  ;;  %v5455_v42 = vmul.f32 %v5423_v0, %v5423_v0  ;;  %v5926_v38 = vpop.f32.mrb[118].mxu0 }
 0xf4b   : > { %15711 = vrsqrt.f32 %v5500_v13  ;;  %v5405_v26 = vpop.xlane.xlu1 %5404  ;;  %v5454_v9 = vmul.f32 %v5422_v49, %v5422_v49  ;;  %v5484_v13 = vsub.f32 %v18671_v15, %v5420_v63  ;;  %v18831_v15 = vpop.f32.mrb[119].mxu0 }
 0xf4c   : > { %v5439_v40 = vmul.f32 0.0078125, %v5405_v26  ;;  %v5403_v30 = vpop.xlane.xlu0 %5402 }
 0xf4d   : > { %v5438_v41 = vmul.f32 0.0078125, %v5403_v30 }
 0xf4e   : > { %v5471_v27 = vsub.f32 %v5439_v40, %v5455_v42 }
 0xf4f   : > { %v5470_v4 = vsub.f32 %v5438_v41, %v5454_v9  ;;  %v5361_v52 = vpop.xlane.xlu1 %5360 }
 0xf50   : > { %v5503_v20 = vadd.f32 1e-05, %v5471_v27  ;;  %v18813_v45 = vmul.f32 0.0078125, %v5361_v52  ;;  %v5359_v37 = vpop.xlane.xlu0 %5358 }
 0xf51   : > { %v5502_v53 = vadd.f32 1e-05, %v5470_v4  ;;  %v18815_v51 = vmul.f32 0.0078125, %v5359_v37  ;;  %v18824_v4 = vadd.f32 %v5920_v48, %v18718_v23 }
 0xf52   : > { %15713 = vrsqrt.f32 %v5503_v20  ;;  %v5457_v9 = vmul.f32 %v18813_v45, %v18813_v45  ;;  %v18829_v20 = vadd.f32 %v5926_v38, %v18718_v23 }
 0xf53   : > { %15715 = vrsqrt.f32 %v5502_v53  ;;  %v5409_v2 = vpop.xlane.xlu1 %5408  ;;  %v5456_v42 = vmul.f32 %v18815_v51, %v18815_v51 }
 0xf54   : > { %v15710_v47 = vpop.eup %15709  ;;  %v5441_v52 = vmul.f32 0.0078125, %v5409_v2  ;;  %v5407_v41 = vpop.xlane.xlu0 %5406  ;;  %v18837_v2 = vpack.c.bf16 %v18829_v20, %v18824_v4 }
 0xf55   : > { %v15712_v26 = vpop.eup %15711  ;;  %v5440_v40 = vmul.f32 0.0078125, %v5407_v41  ;;  %v5533_v30 = vmul.f32 %v15710_v47, %v5485_v21  ;;  %v5932_v21 = vpop.f32.mrb[120].mxu0 }
 0xf56   : > { %v5473_v36 = vsub.f32 %v5441_v52, %v5457_v9  ;;  %v5532_v27 = vmul.f32 %v15712_v26, %v5484_v13  ;;  %v18842_v13 = vpop.f32.mrb[121].mxu0  ;;  %v5487_v9 = vsub.f32 %v18686_v8, %v5423_v0 }
 0xf57   : > { %v5472_v63 = vsub.f32 %v5440_v40, %v5456_v42  ;;  %v5555_v37 = vmul.f32 %v18614_v28, %v5533_v30  ;;  %v5486_v42 = vsub.f32 %v18689_v57, %v5422_v49  ;;  %v18851_v40 = vadd.f32 %v5932_v21, %v18718_v23 }
 0xf58   : > { %v5505_v53 = vadd.f32 1e-05, %v5473_v36  ;;  %v5554_v48 = vmul.f32 %v18614_v28, %v5532_v27  ;;  %v5938_v36 = vpop.f32.mrb[122].mxu0 }
 0xf59   : > { %v5504_v41 = vadd.f32 1e-05, %v5472_v63  ;;  %v18846_v52 = vadd.f32 %v18620_v19, %v5555_v37  ;;  %v18855_v8 = vadd.f32 %v5938_v36, %v18718_v23  ;;  %v18857_v0 = vpop.f32.mrb[123].mxu0 }
 0xf5a   : > { %15717 = vrsqrt.f32 %v5505_v53  ;;  %v18840_v47 = vadd.f32 %v18620_v19, %v5554_v48  ;;  %v5944_v37 = vpop.f32.mrb[124].mxu0  ;;  %v21140_v53 = vld [vmem:[#allocation29_spill] sm:$0xff] }
 0xf5b   : > { %15719 = vrsqrt.f32 %v5504_v41  ;;  %21139 = vst [vmem:[#allocation38_spill] sm:$0xff] %v18846_v52  ;;  %v18863_v49 = vpack.c.bf16 %v18855_v8, %v18851_v40  ;;  %v18867_v48 = vrot.slane %v18714_v35, %v21140_v53  ;;  %v18872_v21 = vpop.f32.mrb[125].mxu0  ;;  %v18883_v35 = vadd.f32 %v5944_v37, %v18718_v23 }
 0xf5c   : > { %21138 = vst [vmem:[#allocation52_spill] sm:$0xff] %v18840_v47  ;;  %v15714_v26 = vpop.eup %15713  ;;  %13226 = vmatprep.mubr.f32.mxu1 %v18840_v47 }
 0xf5d   : > { %v15716_v30 = vpop.eup %15715  ;;  %13227 = vmatmul.mubr.f32.gmra.mrb[106].mxu1 %v18846_v52  ;;  %v5535_v38 = vmul.f32 %v15714_v26, %v5487_v9  ;;  %v5489_v9 = vsub.f32 %v18700_v31, %v18813_v45  ;;  %v5863_v31 = vadd.f32 %v18720_v61, %v18867_v48  ;;  %v5869_v45 = vadd.f32 %v18730_v24, %v18867_v48 }
 0xf5e   : > { %v5534_v27 = vmul.f32 %v15716_v30, %v5486_v42  ;;  %v5488_v30 = vsub.f32 %v18703_v44, %v18815_v51 }
 0xf5f   : > { %v5557_v63 = vmul.f32 %v18614_v28, %v5535_v38  ;;  %v18905_v24 = vpack.i.bf16 %v5869_v45, %v5863_v31 }
 0xf60   : > { %v5556_v57 = vmul.f32 %v18614_v28, %v5534_v27  ;;  %v5950_v27 = vpop.f32.mrb[126].mxu0 }
 0xf61   : > { %v18877_v26 = vadd.f32 %v18620_v19, %v5557_v63  ;;  %21145 = vst [vmem:[#allocation55_spill] sm:$0xff] %v18905_v24 }
 0xf62   : > { %v18870_v41 = vadd.f32 %v18620_v19, %v5556_v57  ;;  %v18891_v57 = vadd.f32 %v5950_v27, %v18718_v23  ;;  %v5881_v23 = vadd.f32 %v18744_v16, %v18867_v48  ;;  %v5893_v16 = vadd.f32 %v18760_v56, %v18867_v48 }
 0xf63   : > { %21142 = vst [vmem:[#allocation54_spill] sm:$0xff] %v18877_v26  ;;  %v5899_v56 = vadd.f32 %v18766_v34, %v18867_v48 }
 0xf64   : > { %21141 = vst [vmem:[#allocation51_spill] sm:$0xff] %v18870_v41  ;;  %v15718_v42 = vpop.eup %15717  ;;  %13229 = vmatprep.mubr.f32.mxu1 %v18870_v41  ;;  %v14333_v37 = vpack.c.bf16 %v18891_v57, %v18883_v35 }
 0xf65   : > { %v15720_v38 = vpop.eup %15719  ;;  %13230 = vmatmul.mubr.f32.gmra.mrb[108].mxu1 %v18877_v26  ;;  %v5537_v36 = vmul.f32 %v15718_v42, %v5489_v9  ;;  %v18900_v42 = vpack.c.bf16 %v5869_v45, %v5863_v31 }
 0xf66   : > { %v5536_v63 = vmul.f32 %v15720_v38, %v5488_v30  ;;  %v18916_v30 = vld [vmem:[%s21146_s18] ss:$0 sm:$0xff]  ;;  %s21227_s18 = sld [smem:[#allocation91_spill]] }
 0xf67   : > { %v5559_v44 = vmul.f32 %v18614_v28, %v5537_v36 }
 0xf68   : > { %v5558_v51 = vmul.f32 %v18614_v28, %v5536_v63  ;;  %v5875_v28 = vadd.f32 %v18736_v3, %v18867_v48  ;;  %v5887_v3 = vadd.f32 %v18750_v46, %v18867_v48 }
 0xf69   : > { %v18903_v61 = vadd.f32 %v18620_v19, %v5559_v44 }
 0xf6a   : > { %v18898_v9 = vadd.f32 %v18620_v19, %v5558_v51  ;;  %v18921_v27 = vpack.c.bf16 %v5881_v23, %v5875_v28  ;;  %v18926_v45 = vpack.i.bf16 %v5881_v23, %v5875_v28  ;;  %v18948_v46 = vpack.c.bf16 %v5893_v16, %v5887_v3 }
 0xf6b   : > { %21144 = vst [vmem:[#allocation56_spill] sm:$0xff] %v18903_v61  ;;  %v18950_v23 = vpack.i.bf16 %v5893_v16, %v5887_v3 }
 0xf6c   : > { %21143 = vst [vmem:[#allocation53_spill] sm:$0xff] %v18898_v9  ;;  %13232 = vmatprep.mubr.f32.mxu1 %v18898_v9  ;;  %21149 = vst [vmem:[#allocation45_spill] sm:$0xff] %v18926_v45 }
 0xf6d   : > { %13233 = vmatmul.mubr.f32.gmra.mrb[110].mxu1 %v18903_v61  ;;  %21151 = vst [vmem:[#allocation30_spill] sm:$0xff] %v18950_v23 }
 0xf70   : > { %v13213_v38 = vpop.f32.mrb[96].mxu1 }
 0xf71   : > { %v5671_v19 = vpop.f32.mrb[97].mxu1  ;;  %v18924_v31 = vadd.f32 %v13213_v38, %v18916_v30 }
 0xf72   : > { %v18919_v36 = vadd.f32 %v18916_v30, %v5671_v19 }
 0xf73   : > { %21148 = vst [vmem:[#allocation57_spill] sm:$0xff] %v18924_v31 }
 0xf74   : > { %21147 = vst [vmem:[#allocation58_spill] sm:$0xff] %v18919_v36  ;;  %13251 = vmatprep.mubr.msk.f32.mxu1 %vm1251_vm0, %v18919_v36 }
 0xf75   : > { %13252 = vmatmul.mubr.msk.f32.vlgmr.msra.gmra.mrb[112].mxu1 %vm1251_vm0, %v18924_v31 }
 0xf76   : > { %14320 = vmatpush3.bf16.xpose.msk.msra.mxu1 %vm16962_vm1, %v18798_v62  ;;  %v5905_v62 = vadd.f32 %v18782_v18, %v18867_v48  ;;  %v5911_v18 = vadd.f32 %v18784_v5, %v18867_v48  ;;  %v18995_v5 = vpack.i.bf16 %v18791_v17, %v18787_v10  ;;  %v19014_v17 = vpack.i.bf16 %v18829_v20, %v18824_v4  ;;  %v5952_v20 = vpop.f32.mrb[127].mxu0 }
 0xf77   : > { %v13216_v63 = vpop.f32.mrb[98].mxu1  ;;  %14323 = vmatprep.subr.msk.bf16.mxu1 %vm16962_vm1, %v18837_v2  ;;  %v5947_v4 = vadd.f32 %v18872_v21, %v18867_v48 }
 0xf78   : > { %v5681_v44 = vpop.f32.mrb[99].mxu1  ;;  %v18946_v28 = vadd.f32 %v13216_v63, %v18916_v30  ;;  %v14351_v34 = vpack.c.bf16 %v5905_v62, %v5899_v56  ;;  %v18972_v63 = vpack.i.bf16 %v5905_v62, %v5899_v56  ;;  %21153 = vst [vmem:[#allocation36_spill] sm:$0xff] %v18995_v5  ;;  %15194 = vrot.lane.b32.xlu0 %v18995_v5, %s16417_s15  ;;  %21154 = vst [vmem:[#allocation41_spill] sm:$0xff] %v19014_v17 }
 0xf79   : > { %v18943_v51 = vadd.f32 %v18916_v30, %v5681_v44 }
 0xf7a   : > { %21152 = vst [vmem:[#allocation37_spill] sm:$0xff] %v18972_v63 }
 0xf7b   : > { %21150 = vst [vmem:[#allocation33_spill] sm:$0xff] %v18943_v51  ;;  %13254 = vmatprep.mubr.msk.f32.mxu1 %vm1251_vm0, %v18943_v51 }
 0xf7c   : > { %13255 = vmatmul.mubr.msk.f32.gmra.mrb[114].mxu1 %vm1251_vm0, %v18946_v28 }
 0xf7e   : > { %14326 = vmatpush3.bf16.xpose.msk.msra.mxu1 %vm16962_vm1, %v18837_v2  ;;  %v5917_v2 = vadd.f32 %v18793_v6, %v18867_v48 }
 0xf7f   : > { %v13219_v38 = vpop.f32.mrb[100].mxu1  ;;  %14329 = vmatprep.subr.msk.bf16.mxu1 %vm16962_vm1, %v18863_v49 }
 0xf80   : > { %v5691_v19 = vpop.f32.mrb[101].mxu1  ;;  %v18970_v16 = vadd.f32 %v13219_v38, %v18916_v30  ;;  %v14355_v38 = vpack.c.bf16 %v5917_v2, %v5911_v18  ;;  %v18997_v6 = vpack.i.bf16 %v5917_v2, %v5911_v18 }
 0xf81   : > { %v18967_v3 = vadd.f32 %v18916_v30, %v5691_v19 }
 0xf82   : > { %14356 = vmatprep.subr.bf16.mxu0 %v14355_v38 }
 0xf83   : > { %13257 = vmatprep.mubr.msk.f32.mxu1 %vm1251_vm0, %v18967_v3  ;;  %14358 = vmatpush3.bf16.msra.mxu0 %v14355_v38  ;;  %v5953_v38 = vadd.f32 %v5952_v20, %v18867_v48 }
 0xf84   : > { %13258 = vmatmul.mubr.msk.f32.gmra.mrb[116].mxu1 %vm1251_vm0, %v18970_v16 }
 0xf86   : > { %14332 = vmatpush3.bf16.xpose.msk.msra.mxu1 %vm16962_vm1, %v18863_v49  ;;  %v5923_v49 = vadd.f32 %v18817_v7, %v18867_v48  ;;  %v5935_v7 = vadd.f32 %v18842_v13, %v18867_v48  ;;  %v19033_v13 = vpack.i.bf16 %v18891_v57, %v18883_v35 }
 0xf87   : > { %v13222_v44 = vpop.f32.mrb[102].mxu1  ;;  %14335 = vmatprep.subr.msk.bf16.mxu1 %vm16962_vm1, %v14333_v37 }
 0xf88   : > { %v5701_v56 = vpop.f32.mrb[103].mxu1  ;;  %v18991_v19 = vadd.f32 %v13222_v44, %v18916_v30  ;;  %v5929_v44 = vadd.f32 %v18831_v15, %v18867_v48  ;;  %v5941_v15 = vadd.f32 %v18857_v0, %v18867_v48  ;;  %v19035_v0 = vpack.i.bf16 %v5953_v38, %v5947_v4 }
 0xf89   : > { %v18988_v62 = vadd.f32 %v18916_v30, %v5701_v56 }
 0xf8a   : > { %v14359_v10 = vpack.c.bf16 %v5929_v44, %v5923_v49  ;;  %v19016_v18 = vpack.i.bf16 %v5929_v44, %v5923_v49  ;;  %v14363_v2 = vpack.c.bf16 %v5941_v15, %v5935_v7  ;;  %v19026_v56 = vpack.i.bf16 %v5941_v15, %v5935_v7  ;;  %21156 = vst [vmem:[#allocation43_spill] sm:$0xff] %v19035_v0 }
 0xf8b   : > { %13260 = vmatprep.mubr.msk.f32.mxu1 %vm1251_vm0, %v18988_v62  ;;  %v14367_v49 = vpack.c.bf16 %v5953_v38, %v5947_v4 }
 0xf8c   : > { %13261 = vmatmul.mubr.msk.f32.gmra.mrb[118].mxu1 %vm1251_vm0, %v18991_v19  ;;  %14360 = vmatprep.subr.bf16.mxu0 %v14359_v10 }
 0xf8d   : > { %14362 = vmatpush3.bf16.msra.mxu0 %v14359_v10 }
 0xf8e   : > { %14338 = vmatpush3.bf16.xpose.msk.msra.mxu1 %vm16962_vm1, %v14333_v37  ;;  %v19024_v37 = vpack.i.bf16 %v18855_v8, %v18851_v40  ;;  %14364 = vmatprep.subr.bf16.mxu0 %v14363_v2 }
 0xf8f   : > { %14340 = vmatprep.subr.bf16.mxu1 %v18900_v42 }
 0xf90   : > { %21155 = vst [vmem:[#allocation42_spill] sm:$0xff] %v19024_v37 }
 0xf91   : > { %14366 = vmatpush3.bf16.msra.mxu0 %v14363_v2 }
 0xf92   : > { %14368 = vmatprep.subr.bf16.mxu0 %v14367_v49 }
 0xf95   : > { %14370 = vmatpush3.bf16.msra.mxu0 %v14367_v49 }
 0xfea   : > { %v15195_v10 = vpop.permute.xlu0 %15194 }
 0xfeb   : > { %v15197_v7 = vunpack.i.h.bf16 %v15195_v10  ;;  %v15196_v48 = vunpack.i.l.bf16 %v15195_v10 }
 0xfed   : > { %v19047_v35 = vpack.c.bf16 %v15197_v7, %v15196_v48 }
 0xfef   : > { %14397 = vmatprep.subr.msk.bf16.mxu0 %vm16962_vm1, %v19047_v35 }
 0xffd   : > { %v13225_v40 = vpop.f32.mrb[104].mxu1 }
 0xffe   : > { %v5711_v8 = vpop.f32.mrb[105].mxu1  ;;  %v19041_v21 = vadd.f32 %v13225_v40, %v18916_v30 }
 0xfff   : > { %v19038_v44 = vadd.f32 %v18916_v30, %v5711_v8 }
0x1000   : > { %21157 = vst [vmem:[#allocation44_spill] sm:$0xff] %v19041_v21 }
0x1001   : > { %13279 = vmatprep.mubr.msk.f32.mxu1 %vm1251_vm0, %v19038_v44 }
0x1002   : > { %13280 = vmatmul.mubr.msk.f32.vlgmr.msra.gmra.mrb[120].mxu1 %vm1251_vm0, %v19041_v21 }
0x1003   : > { %14342 = vmatpush3.bf16.msra.mxu1 %v18900_v42 }
0x1004   : > { %14344 = vmatprep.subr.bf16.mxu1 %v18921_v27 }
0x1007   : > { %14346 = vmatpush3.bf16.msra.mxu1 %v18921_v27 }
0x1008   : > { %14348 = vmatprep.subr.bf16.mxu1 %v18948_v46 }
0x100b   : > { %14350 = vmatpush3.bf16.msra.mxu1 %v18948_v46 }
0x100c   : > { %14352 = vmatprep.subr.bf16.mxu1 %v14351_v34 }
0x100f   : > { %14354 = vmatpush3.bf16.msra.mxu1 %v14351_v34 }
0x1030   : > { %v13228_v57 = vpop.f32.mrb[106].mxu1 }
0x1031   : > { %v5721_v15 = vpop.f32.mrb[107].mxu1  ;;  %v19061_v42 = vadd.f32 %v13228_v57, %v18916_v30 }
0x1032   : > { %v19058_v2 = vadd.f32 %v18916_v30, %v5721_v15 }
0x1034   : > { %13282 = vmatprep.mubr.msk.f32.mxu1 %vm1251_vm0, %v19058_v2 }
0x1035   : > { %13283 = vmatmul.mubr.msk.f32.gmra.mrb[122].mxu1 %vm1251_vm0, %v19061_v42 }
0x1038   : > { %v13231_v27 = vpop.f32.mrb[108].mxu1 }
0x1039   : > { %v5731_v4 = vpop.f32.mrb[109].mxu1  ;;  %v19071_v34 = vadd.f32 %v13231_v27, %v18916_v30 }
0x103a   : > { %v19068_v46 = vadd.f32 %v18916_v30, %v5731_v4 }
0x103b   : > { %21158 = vst [vmem:[#allocation59_spill] sm:$0xff] %v19071_v34 }
0x103c   : > { %13285 = vmatprep.mubr.msk.f32.mxu1 %vm1251_vm0, %v19068_v46 }
0x103d   : > { %13286 = vmatmul.mubr.msk.f32.gmra.mrb[124].mxu1 %vm1251_vm0, %v19071_v34 }
0x1040   : > { %v13234_v20 = vpop.f32.mrb[110].mxu1 }
0x1041   : > { %v5741_v38 = vpop.f32.mrb[111].mxu1  ;;  %v19081_v40 = vadd.f32 %v13234_v20, %v18916_v30 }
0x1042   : > { %v19078_v49 = vadd.f32 %v18916_v30, %v5741_v38 }
0x1043   : > { %21159 = vst [vmem:[#allocation60_spill] sm:$0xff] %v19081_v40 }
0x1044   : > { %13288 = vmatprep.mubr.msk.f32.mxu1 %vm1251_vm0, %v19078_v49 }
0x1045   : > { %13289 = vmatmul.mubr.msk.f32.gmra.mrb[126].mxu1 %vm1251_vm0, %v19081_v40 }
0x1048   : > { %v19087_v8 = vpop.f32.mrb[112].mxu1 }
0x1049   : > { %v19089_v10 = vpop.f32.mrb[113].mxu1 }
0x104f   : > { %v19091_v7 = vpop.f32.mrb[114].mxu1 }
0x1050   : > { %v19093_v48 = vpop.f32.mrb[115].mxu1 }
0x1057   : > { %v19095_v57 = vpop.f32.mrb[116].mxu1 }
0x1058   : > { %v19097_v15 = vpop.f32.mrb[117].mxu1 }
0x105f   : > { %v19099_v30 = vpop.f32.mrb[118].mxu1 }
0x1060   : > { %v19101_v27 = vpop.f32.mrb[119].mxu1 }
0x10d5   : > { %v13281_v4 = vpop.f32.mrb[120].mxu1 }
0x10d6   : > { %v6222_v20 = vpop.f32.mrb[121].mxu1  ;;  %v6288_v38 = vsel %vm1558_vm2, %v13281_v4, -inf }
0x10d7   : > { %6289 = vmax.xlane.f32.xlu1 %v6288_v38  ;;  %v6285_v53 = vsel %vm1558_vm2, %v6222_v20, -inf }
0x10d8   : > { %6286 = vmax.xlane.f32.xlu0 %v6285_v53 }
0x1108   : > { %v13284_v61 = vpop.f32.mrb[122].mxu1 }
0x1109   : > { %v6232_v9 = vpop.f32.mrb[123].mxu1  ;;  %v6294_v26 = vsel %vm1558_vm2, %v13284_v61, -inf }
0x110a   : > { %6295 = vmax.xlane.f32.xlu1 %v6294_v26  ;;  %v6291_v41 = vsel %vm1558_vm2, %v6232_v9, -inf }
0x110b   : > { %6292 = vmax.xlane.f32.xlu0 %v6291_v41 }
0x1110   : > { %v13287_v52 = vpop.f32.mrb[124].mxu1 }
0x1111   : > { %v6242_v47 = vpop.f32.mrb[125].mxu1  ;;  %v6300_v55 = vsel %vm1558_vm2, %v13287_v52, -inf }
0x1112   : > { %6301 = vmax.xlane.f32.xlu1 %v6300_v55  ;;  %v6297_v50 = vsel %vm1558_vm2, %v6242_v47, -inf }
0x1113   : > { %6298 = vmax.xlane.f32.xlu0 %v6297_v50 }
0x1118   : > { %v13290_v38 = vpop.f32.mrb[126].mxu1 }
0x1119   : > { %v19109_v29 = vpop.f32.mrb[127].mxu1  ;;  %v6306_v53 = vsel %vm1558_vm2, %v13290_v38, -inf }
0x111a   : > { %6307 = vmax.xlane.f32.xlu1 %v6306_v53  ;;  %v6303_v41 = vsel %vm1558_vm2, %v19109_v29, -inf }
0x1129   : > { %15204 = vrot.lane.b32.xlu0 %v19024_v37, %s16417_s15 }
0x112b   : > { %15199 = vrot.lane.b32.xlu1 %v19014_v17, %s16417_s15 }
0x1148   : > { %6304 = vmax.xlane.f32.xlu0 %v6303_v41 }
0x115e   : > { %15209 = vrot.lane.b32.xlu0 %v19033_v13, %s16417_s15 }
0x1164   : > { %v6290_v50 = vpop.xlane.xlu1 %6289 }
0x1165   : > { %v6318_v55 = vsub.f32 %v13281_v4, %v6290_v50  ;;  %v6287_v26 = vpop.xlane.xlu0 %6286 }
0x1166   : > { %v6317_v22 = vsub.f32 %v6222_v20, %v6287_v26 }
0x1167   : > { %v6343_v25 = vmul.f32 1.442695, %v6318_v55 }
0x1168   : > { %v6341_v53 = vmul.f32 1.442695, %v6317_v22 }
0x1169   : > { %15721 = vpow2.f32 %v6343_v25 }
0x116a   : > { %15723 = vpow2.f32 %v6341_v53 }
0x1173   : > { %v19120_v12 = vpop.eup %15721 }
0x1174   : > { %v6384_v60 = vsel %vm1558_vm2, %v19120_v12, 0.0  ;;  %v19124_v14 = vpop.eup %15723 }
0x1175   : > { %6385 = vadd.xlane.f32.xlu1 %v6384_v60  ;;  %v6381_v41 = vsel %vm1558_vm2, %v19124_v14, 0.0 }
0x117d   : > { %6382 = vadd.xlane.f32.xlu0 %v6381_v41 }
0x1186   : > { %6868 = vrot.lane.b32.xlu1 %v19038_v44, %s16417_s15 }
0x1193   : > { %6870 = vrot.lane.b32.xlu0 %v19041_v21, %s16417_s15  ;;  %v6261_v21 = vsel %vm1558_vm2, %v19089_v10, -inf }
0x1197   : > { %v6296_v22 = vpop.xlane.xlu1 %6295 }
0x1198   : > { %v6320_v25 = vsub.f32 %v13284_v61, %v6296_v22  ;;  %v6293_v4 = vpop.xlane.xlu0 %6292 }
0x1199   : > { %v6319_v20 = vsub.f32 %v6232_v9, %v6293_v4 }
0x119a   : > { %v6347_v50 = vmul.f32 1.442695, %v6320_v25  ;;  %v6264_v25 = vsel %vm1558_vm2, %v19087_v8, -inf }
0x119b   : > { %v6345_v55 = vmul.f32 1.442695, %v6319_v20 }
0x119c   : > { %15725 = vpow2.f32 %v6347_v50 }
0x119d   : > { %15727 = vpow2.f32 %v6345_v55 }
0x119f   : > { %v6302_v26 = vpop.xlane.xlu1 %6301 }
0x11a0   : > { %v6322_v60 = vsub.f32 %v13287_v52, %v6302_v26  ;;  %v6299_v53 = vpop.xlane.xlu0 %6298 }
0x11a1   : > { %v6321_v45 = vsub.f32 %v6242_v47, %v6299_v53  ;;  %v6270_v53 = vsel %vm1558_vm2, %v19091_v7, -inf }
0x11a2   : > { %v6351_v63 = vmul.f32 1.442695, %v6322_v60 }
0x11a3   : > { %v6349_v41 = vmul.f32 1.442695, %v6321_v45 }
0x11a4   : > { %15729 = vpow2.f32 %v6351_v63  ;;  %v15205_v4 = vpop.permute.xlu0 %15204 }
0x11a5   : > { %15731 = vpow2.f32 %v6349_v41  ;;  %v6279_v41 = vsel %vm1558_vm2, %v19101_v27, -inf }
0x11a6   : > { %v19134_v61 = vpop.eup %15725 }
0x11a7   : > { %v6308_v23 = vpop.xlane.xlu1 %6307  ;;  %v19136_v22 = vpop.eup %15727  ;;  %v6390_v47 = vsel %vm1558_vm2, %v19134_v61, 0.0 }
0x11a8   : > { %v6324_v24 = vsub.f32 %v13290_v38, %v6308_v23  ;;  %v6387_v23 = vsel %vm1558_vm2, %v19136_v22, 0.0 }
0x11aa   : > { %v6355_v9 = vmul.f32 1.442695, %v6324_v24  ;;  %6262 = vmax.xlane.f32.xlu1 %v6261_v21 }
0x11ac   : > { %15733 = vpow2.f32 %v6355_v9  ;;  %v15200_v9 = vpop.permute.xlu1 %15199 }
0x11ae   : > { %v19140_v52 = vpop.eup %15729  ;;  %6391 = vadd.xlane.f32.xlu1 %v6390_v47 }
0x11af   : > { %v6396_v45 = vsel %vm1558_vm2, %v19140_v52, 0.0  ;;  %v19146_v63 = vpop.eup %15731 }
0x11b0   : > { %v6393_v24 = vsel %vm1558_vm2, %v19146_v63, 0.0 }
0x11b2   : > { %6397 = vadd.xlane.f32.xlu1 %v6396_v45  ;;  %6388 = vadd.xlane.f32.xlu0 %v6387_v23 }
0x11b6   : > { %v19150_v21 = vpop.eup %15733  ;;  %6394 = vadd.xlane.f32.xlu0 %v6393_v24 }
0x11b7   : > { %v6402_v38 = vsel %vm1558_vm2, %v19150_v21, 0.0 }
0x11b8   : > { %6403 = vadd.xlane.f32.xlu1 %v6402_v38 }
0x11ba   : > { %6265 = vmax.xlane.f32.xlu0 %v6264_v25  ;;  %v15202_v25 = vunpack.i.h.bf16 %v15200_v9 }
0x11d0   : > { %6872 = vrot.lane.b32.xlu0 %v19058_v2, %s16417_s15 }
0x11d4   : > { %6878 = vrot.lane.b32.xlu0 %v19071_v34, %s16417_s15 }
0x11d5   : > { %v6305_v20 = vpop.xlane.xlu0 %6304 }
0x11d6   : > { %v6323_v50 = vsub.f32 %v19109_v29, %v6305_v20  ;;  %v6273_v29 = vsel %vm1558_vm2, %v19097_v15, -inf  ;;  %v15201_v20 = vunpack.i.l.bf16 %v15200_v9 }
0x11d8   : > { %v6353_v55 = vmul.f32 1.442695, %v6323_v50  ;;  %6882 = vrot.lane.b32.xlu0 %v19081_v40, %s16417_s15 }
0x11d9   : > { %v15210_v47 = vpop.permute.xlu0 %15209 }
0x11da   : > { %15735 = vpow2.f32 %v6353_v55  ;;  %v15211_v9 = vunpack.i.l.bf16 %v15210_v47 }
0x11e4   : > { %v19163_v26 = vpop.eup %15735 }
0x11e5   : > { %v6399_v60 = vsel %vm1558_vm2, %v19163_v26, 0.0 }
0x11e6   : > { %6400 = vadd.xlane.f32.xlu1 %v6399_v60  ;;  %v14401_v60 = vpack.c.bf16 %v15202_v25, %v15201_v20 }
0x11f7   : > { %6271 = vmax.xlane.f32.xlu0 %v6270_v53  ;;  %6874 = vrot.lane.b32.xlu1 %v19061_v42, %s16417_s15  ;;  %v15207_v53 = vunpack.i.h.bf16 %v15205_v4 }
0x11fb   : > { %6274 = vmax.xlane.f32.xlu0 %v6273_v29  ;;  %6876 = vrot.lane.b32.xlu1 %v19068_v46, %s16417_s15  ;;  %v15206_v29 = vunpack.i.l.bf16 %v15205_v4  ;;  %v6282_v4 = vsel %vm1558_vm2, %v19099_v30, -inf }
0x11ff   : > { %6280 = vmax.xlane.f32.xlu0 %v6279_v41  ;;  %6880 = vrot.lane.b32.xlu1 %v19078_v49, %s16417_s15  ;;  %v14407_v41 = vpack.c.bf16 %v15207_v53, %v15206_v29 }
0x1202   : > { %v6386_v45 = vpop.xlane.xlu1 %6385 }
0x1203   : > { %15737 = vrcp.f32 %v6386_v45 }
0x120a   : > { %v6383_v23 = vpop.xlane.xlu0 %6382 }
0x120b   : > { %15739 = vrcp.f32 %v6383_v23  ;;  %v6869_v23 = vpop.permute.xlu1 %6868 }
0x120d   : > { %v15738_v24 = vpop.eup %15737 }
0x120e   : > { %v6430_v55 = vmul.f32 %v15738_v24, %v19120_v12  ;;  %v15212_v12 = vunpack.i.h.bf16 %v15210_v47  ;;  %v6871_v25 = vpop.permute.xlu0 %6870 }
0x1210   : > { %v14413_v45 = vpack.c.bf16 %v15212_v12, %v15211_v9 }
0x1215   : > { %v15740_v38 = vpop.eup %15739 }
0x1216   : > { %v6429_v50 = vmul.f32 %v15740_v38, %v19124_v14  ;;  %v6267_v14 = vsel %vm1558_vm2, %v19093_v48, -inf }
0x1218   : > { %13335 = vmatprep.mubr.msk.f32.mxu0 %vm1558_vm2, %v6429_v50 }
0x1219   : > { %13336 = vmatmul.mubr.msk.f32.vlgmr.msra.gmra.mrb[128].mxu0 %vm1558_vm2, %v6430_v55 }
0x121a   : > { %14400 = vmatpush3.bf16.xpose.msk.msra.mxu0 %vm16962_vm1, %v19047_v35  ;;  %v6276_v35 = vsel %vm1558_vm2, %v19095_v57, -inf }
0x121b   : > { %14403 = vmatprep.subr.msk.bf16.mxu0 %vm16962_vm1, %v14401_v60 }
0x1222   : > { %14406 = vmatpush3.bf16.xpose.msk.msra.mxu0 %vm16962_vm1, %v14401_v60 }
0x1223   : > { %14409 = vmatprep.subr.msk.bf16.mxu0 %vm16962_vm1, %v14407_v41  ;;  %6268 = vmax.xlane.f32.xlu1 %v6267_v14 }
0x1227   : > { %6277 = vmax.xlane.f32.xlu1 %v6276_v35 }
0x122a   : > { %14412 = vmatpush3.bf16.xpose.msk.msra.mxu0 %vm16962_vm1, %v14407_v41 }
0x122b   : > { %14415 = vmatprep.subr.msk.bf16.mxu0 %vm16962_vm1, %v14413_v45  ;;  %6283 = vmax.xlane.f32.xlu1 %v6282_v4 }
0x1232   : > { %14418 = vmatpush3.bf16.xpose.msk.msra.mxu0 %vm16962_vm1, %v14413_v45 }
0x1237   : > { %v6263_v47 = vpop.xlane.xlu1 %6262 }
0x1238   : > { %v6309_v24 = vsub.f32 %v19089_v10, %v6263_v47 }
0x123a   : > { %v6325_v38 = vmul.f32 1.442695, %v6309_v24 }
0x123b   : > { %v6392_v20 = vpop.xlane.xlu1 %6391 }
0x123c   : > { %15741 = vpow2.f32 %v6325_v38 }
0x123d   : > { %15743 = vrcp.f32 %v6392_v20 }
0x123f   : > { %v6389_v50 = vpop.xlane.xlu0 %6388  ;;  %v6398_v55 = vpop.xlane.xlu1 %6397 }
0x1240   : > { %15745 = vrcp.f32 %v6389_v50 }
0x1241   : > { %15747 = vrcp.f32 %v6398_v55 }
0x1243   : > { %v6395_v60 = vpop.xlane.xlu0 %6394 }
0x1244   : > { %15749 = vrcp.f32 %v6395_v60 }
0x1246   : > { %v19205_v53 = vpop.eup %15741 }
0x1247   : > { %v6266_v29 = vpop.xlane.xlu0 %6265  ;;  %v6357_v41 = vsel %vm1558_vm2, %v19205_v53, 0.0  ;;  %v15744_v10 = vpop.eup %15743 }
0x1248   : > { %v6310_v14 = vsub.f32 %v19087_v8, %v6266_v29  ;;  %6358 = vadd.xlane.f32.xlu0 %v6357_v41  ;;  %v6432_v4 = vmul.f32 %v15744_v10, %v19134_v61  ;;  %v6404_v61 = vpop.xlane.xlu1 %6403 }
0x124a   : > { %v6327_v12 = vmul.f32 1.442695, %v6310_v14  ;;  %v15746_v9 = vpop.eup %15745 }
0x124b   : > { %v6431_v35 = vmul.f32 %v15746_v9, %v19136_v22  ;;  %v15748_v45 = vpop.eup %15747  ;;  %v6873_v50 = vpop.permute.xlu0 %6872 }
0x124c   : > { %15751 = vpow2.f32 %v6327_v12  ;;  %v6434_v8 = vmul.f32 %v15748_v45, %v19140_v52 }
0x124d   : > { %13338 = vmatprep.mubr.msk.f32.mxu0 %vm1558_vm2, %v6431_v35  ;;  %15753 = vrcp.f32 %v6404_v61 }
0x124e   : > { %v15750_v47 = vpop.eup %15749  ;;  %13339 = vmatmul.mubr.msk.f32.gmra.mrb[130].mxu0 %vm1558_vm2, %v6432_v4 }
0x124f   : > { %v6433_v24 = vmul.f32 %v15750_v47, %v19146_v63  ;;  %v6879_v55 = vpop.permute.xlu0 %6878 }
0x1251   : > { %13341 = vmatprep.mubr.msk.f32.mxu0 %vm1558_vm2, %v6433_v24 }
0x1252   : > { %13342 = vmatmul.mubr.msk.f32.gmra.mrb[132].mxu0 %vm1558_vm2, %v6434_v8 }
0x1253   : > { %v6883_v41 = vpop.permute.xlu0 %6882 }
0x1256   : > { %v19218_v38 = vpop.eup %15751 }
0x1257   : > { %v6360_v22 = vsel %vm1558_vm2, %v19218_v38, 0.0  ;;  %v15754_v60 = vpop.eup %15753 }
0x1258   : > { %6361 = vadd.xlane.f32.xlu1 %v6360_v22  ;;  %v6436_v52 = vmul.f32 %v15754_v60, %v19150_v21 }
0x1273   : > { %v6401_v20 = vpop.xlane.xlu1 %6400 }
0x1274   : > { %15755 = vrcp.f32 %v6401_v20 }
0x1277   : > { %v6875_v14 = vpop.permute.xlu1 %6874 }
0x127b   : > { %v6877_v35 = vpop.permute.xlu1 %6876 }
0x127e   : > { %v15756_v63 = vpop.eup %15755 }
0x127f   : > { %v6435_v29 = vmul.f32 %v15756_v63, %v19163_v26  ;;  %v6881_v21 = vpop.permute.xlu1 %6880 }
0x1281   : > { %13344 = vmatprep.mubr.msk.f32.mxu0 %vm1558_vm2, %v6435_v29 }
0x1282   : > { %13345 = vmatmul.mubr.msk.f32.gmra.mrb[134].mxu0 %vm1558_vm2, %v6436_v52 }
0x1283   : > { %13391 = vmatprep.mubr.msk.f32.mxu0 %vm1251_vm0, %v6869_v23 }
0x1284   : > { %v6272_v10 = vpop.xlane.xlu0 %6271 }
0x1285   : > { %v6312_v12 = vsub.f32 %v19091_v7, %v6272_v10 }
0x1286   : > { %13392 = vmatmul.mubr.msk.f32.vlgmr.msra.gmra.mrb[136].mxu0 %vm1251_vm0, %v6871_v25 }
0x1287   : > { %v6331_v9 = vmul.f32 1.442695, %v6312_v12  ;;  %13394 = vmatprep.mubr.msk.f32.mxu0 %vm1251_vm0, %v6873_v50 }
0x1288   : > { %v6275_v23 = vpop.xlane.xlu0 %6274 }
0x1289   : > { %15757 = vpow2.f32 %v6331_v9  ;;  %v6313_v25 = vsub.f32 %v19097_v15, %v6275_v23 }
0x128a   : > { %13395 = vmatmul.mubr.msk.f32.gmra.mrb[138].mxu0 %vm1251_vm0, %v6875_v14 }
0x128b   : > { %13397 = vmatprep.mubr.msk.f32.mxu0 %vm1251_vm0, %v6877_v35  ;;  %v6333_v24 = vmul.f32 1.442695, %v6313_v25  ;;  %v19266_v35 = vpack.i.bf16 %v18726_v11, %v18723_v54  ;;  %v19284_v54 = vpack.i.bf16 %v18774_v58, %v18771_v43 }
0x128c   : > { %v6281_v45 = vpop.xlane.xlu0 %6280 }
0x128d   : > { %v6315_v8 = vsub.f32 %v19101_v27, %v6281_v45  ;;  %21160 = vst [vmem:[#allocation61_spill] sm:$0xff] %v19266_v35  ;;  %21163 = vst [vmem:[#allocation64_spill] sm:$0xff] %v19284_v54 }
0x128e   : > { %13398 = vmatmul.mubr.msk.f32.gmra.mrb[140].mxu0 %vm1251_vm0, %v6879_v55 }
0x128f   : > { %13400 = vmatprep.mubr.msk.f32.mxu0 %vm1251_vm0, %v6881_v21  ;;  %v6337_v50 = vmul.f32 1.442695, %v6315_v8  ;;  %v19272_v21 = vpack.i.bf16 %v18742_v32, %v18739_v59 }
0x1291   : > { %21161 = vst [vmem:[#allocation62_spill] sm:$0xff] %v19272_v21 }
0x1292   : > { %13401 = vmatmul.mubr.msk.f32.gmra.mrb[142].mxu0 %vm1251_vm0, %v6883_v41 }
0x1293   : > { %v19235_v26 = vpop.eup %15757 }
0x1294   : > { %v6366_v7 = vsel %vm1558_vm2, %v19235_v26, 0.0 }
0x1295   : > { %6367 = vadd.xlane.f32.xlu1 %v6366_v7  ;;  %v19276_v7 = vpack.i.bf16 %v18758_v33, %v18755_v1 }
0x1297   : > { %21162 = vst [vmem:[#allocation63_spill] sm:$0xff] %v19276_v7 }
0x12b0   : > { %v6269_v4 = vpop.xlane.xlu1 %6268 }
0x12b1   : > { %v6311_v47 = vsub.f32 %v19093_v48, %v6269_v4 }
0x12b3   : > { %v6329_v22 = vmul.f32 1.442695, %v6311_v47 }
0x12b4   : > { %v6278_v61 = vpop.xlane.xlu1 %6277 }
0x12b5   : > { %15759 = vpow2.f32 %v6329_v22  ;;  %v6314_v20 = vsub.f32 %v19095_v57, %v6278_v61 }
0x12b6   : > { %15761 = vpow2.f32 %v6333_v24 }
0x12b7   : > { %v6335_v55 = vmul.f32 1.442695, %v6314_v20 }
0x12b8   : > { %v6284_v60 = vpop.xlane.xlu1 %6283 }
0x12b9   : > { %15763 = vpow2.f32 %v6335_v55  ;;  %v6316_v63 = vsub.f32 %v19099_v30, %v6284_v60 }
0x12ba   : > { %15765 = vpow2.f32 %v6337_v50 }
0x12bb   : > { %v6339_v15 = vmul.f32 1.442695, %v6316_v63 }
0x12bd   : > { %15767 = vpow2.f32 %v6339_v15 }
0x12bf   : > { %v19244_v29 = vpop.eup %15759 }
0x12c0   : > { %v6363_v48 = vsel %vm1558_vm2, %v19244_v29, 0.0  ;;  %v19248_v27 = vpop.eup %15761 }
0x12c1   : > { %6364 = vadd.xlane.f32.xlu0 %v6363_v48  ;;  %v6369_v52 = vsel %vm1558_vm2, %v19248_v27, 0.0 }
0x12c3   : > { %v19250_v41 = vpop.eup %15763 }
0x12c4   : > { %v6372_v57 = vsel %vm1558_vm2, %v19250_v41, 0.0  ;;  %v19256_v30 = vpop.eup %15765 }
0x12c5   : > { %6373 = vadd.xlane.f32.xlu1 %v6372_v57  ;;  %6370 = vadd.xlane.f32.xlu0 %v6369_v52  ;;  %v6375_v14 = vsel %vm1558_vm2, %v19256_v30, 0.0 }
0x12c7   : > { %v19260_v10 = vpop.eup %15767 }
0x12c8   : > { %v6378_v12 = vsel %vm1558_vm2, %v19260_v10, 0.0 }
0x12c9   : > { %6376 = vadd.xlane.f32.xlu1 %v6375_v14 }
0x12cd   : > { %6379 = vadd.xlane.f32.xlu1 %v6378_v12 }
0x12d5   : > { %v6359_v9 = vpop.xlane.xlu0 %6358 }
0x12d6   : > { %15769 = vrcp.f32 %v6359_v9 }
0x12db   : > { %15214 = vrot.lane.b32.xlu0 %v19266_v35, %s16417_s15 }
0x12de   : > { %15219 = vrot.lane.b32.xlu1 %v19272_v21, %s16417_s15 }
0x12df   : > { %15224 = vrot.lane.b32.xlu0 %v19276_v7, %s16417_s15 }
0x12e0   : > { %v15770_v23 = vpop.eup %15769 }
0x12e1   : > { %v6421_v11 = vmul.f32 %v15770_v23, %v19205_v53 }
0x12e2   : > { %6699 = vrot.lane.b32.xlu1 %v18919_v36, %s16417_s15 }
0x12e3   : > { %15229 = vrot.lane.b32.xlu0 %v19284_v54, %s16417_s15  ;;  %13307 = vmatprep.mubr.msk.f32.mxu1 %vm1558_vm2, %v6421_v11 }
0x12e5   : > { %v6362_v59 = vpop.xlane.xlu1 %6361 }
0x12e6   : > { %15771 = vrcp.f32 %v6362_v59  ;;  %6703 = vrot.lane.b32.xlu1 %v18943_v51, %s16417_s15 }
0x12e7   : > { %6701 = vrot.lane.b32.xlu0 %v18924_v31, %s16417_s15 }
0x12ea   : > { %6707 = vrot.lane.b32.xlu1 %v18967_v3, %s16417_s15 }
0x12eb   : > { %6705 = vrot.lane.b32.xlu0 %v18946_v28, %s16417_s15 }
0x12ec   : > { %v19300_v32 = vpop.f32.mrb[128].mxu0 }
0x12ed   : > { %21164 = vst [vmem:[#allocation65_spill] sm:$0xff] %v19300_v32  ;;  %v19302_v1 = vpop.f32.mrb[129].mxu0 }
0x12ee   : > { %21165 = vst [vmem:[#allocation66_spill] sm:$0xff] %v19302_v1  ;;  %6711 = vrot.lane.b32.xlu1 %v18988_v62, %s16417_s15 }
0x12ef   : > { %6709 = vrot.lane.b32.xlu0 %v18970_v16, %s16417_s15 }
0x12f0   : > { %v15772_v33 = vpop.eup %15771 }
0x12f1   : > { %v6422_v43 = vmul.f32 %v15772_v33, %v19218_v38 }
0x12f2   : > { %15239 = vrot.lane.b32.xlu1 %v19016_v18, %s16417_s15 }
0x12f3   : > { %6713 = vrot.lane.b32.xlu0 %v18991_v19, %s16417_s15  ;;  %13308 = vmatmul.mubr.msk.f32.vlgmr.msra.gmra.mrb[128].mxu1 %vm1558_vm2, %v6422_v43 }
0x12f6   : > { %15244 = vrot.lane.b32.xlu1 %v19026_v56, %s16417_s15 }
0x12f7   : > { %15234 = vrot.lane.b32.xlu0 %v18997_v6, %s16417_s15 }
0x12fa   : > { %15259 = vrot.lane.b32.xlu1 %v19272_v21, %s16418_s6 }
0x12fb   : > { %15249 = vrot.lane.b32.xlu0 %v19035_v0, %s16417_s15 }
0x12fe   : > { %15274 = vrot.lane.b32.xlu1 %v18995_v5, %s16418_s6 }
0x12ff   : > { %15254 = vrot.lane.b32.xlu0 %v19266_v35, %s16418_s6 }
0x1302   : > { %7927 = vrot.lane.b32.xlu1 %v18924_v31, %s16418_s6 }
0x1303   : > { %15264 = vrot.lane.b32.xlu0 %v19276_v7, %s16418_s6 }
0x1307   : > { %15269 = vrot.lane.b32.xlu0 %v19284_v54, %s16418_s6 }
0x130b   : > { %7925 = vrot.lane.b32.xlu0 %v18919_v36, %s16418_s6 }
0x130f   : > { %15279 = vrot.lane.b32.xlu0 %v19014_v17, %s16418_s6 }
0x1321   : > { %v19336_v58 = vpop.f32.mrb[130].mxu0 }
0x1322   : > { %21166 = vst [vmem:[#allocation67_spill] sm:$0xff] %v19336_v58  ;;  %v19338_v53 = vpop.f32.mrb[131].mxu0  ;;  %v6368_v45 = vpop.xlane.xlu1 %6367 }
0x1323   : > { %21167 = vst [vmem:[#allocation68_spill] sm:$0xff] %v19338_v53  ;;  %15773 = vrcp.f32 %v6368_v45 }
0x1325   : > { %v19340_v38 = vpop.f32.mrb[132].mxu0 }
0x1326   : > { %21168 = vst [vmem:[#allocation69_spill] sm:$0xff] %v19340_v38  ;;  %v19342_v25 = vpop.f32.mrb[133].mxu0 }
0x1327   : > { %21169 = vst [vmem:[#allocation70_spill] sm:$0xff] %v19342_v25 }
0x132d   : > { %v15774_v50 = vpop.eup %15773 }
0x132e   : > { %v6424_v9 = vmul.f32 %v15774_v50, %v19235_v26 }
0x134e   : > { %v6365_v4 = vpop.xlane.xlu0 %6364 }
0x134f   : > { %15775 = vrcp.f32 %v6365_v4 }
0x1352   : > { %v6374_v47 = vpop.xlane.xlu1 %6373  ;;  %v6371_v24 = vpop.xlane.xlu0 %6370 }
0x1353   : > { %15777 = vrcp.f32 %v6374_v47 }
0x1354   : > { %15779 = vrcp.f32 %v6371_v24 }
0x1355   : > { %v19344_v8 = vpop.f32.mrb[134].mxu0 }
0x1356   : > { %21170 = vst [vmem:[#allocation71_spill] sm:$0xff] %v19344_v8  ;;  %v19346_v22 = vpop.f32.mrb[135].mxu0  ;;  %v6377_v61 = vpop.xlane.xlu1 %6376 }
0x1357   : > { %21171 = vst [vmem:[#allocation72_spill] sm:$0xff] %v19346_v22  ;;  %15781 = vrcp.f32 %v6377_v61  ;;  %v15215_v20 = vpop.permute.xlu0 %15214 }
0x1358   : > { %v15217_v55 = vunpack.i.h.bf16 %v15215_v20  ;;  %v15216_v60 = vunpack.i.l.bf16 %v15215_v20 }
0x1359   : > { %v15776_v63 = vpop.eup %15775  ;;  %v19348_v15 = vpop.f32.mrb[136].mxu0 }
0x135a   : > { %v14371_v48 = vpack.c.bf16 %v15217_v55, %v15216_v60  ;;  %v6380_v57 = vpop.xlane.xlu1 %6379  ;;  %v19350_v52 = vpop.f32.mrb[137].mxu0  ;;  %v6423_v14 = vmul.f32 %v15776_v63, %v19244_v29 }
0x135b   : > { %15783 = vrcp.f32 %v6380_v57  ;;  %v15225_v12 = vpop.permute.xlu0 %15224 }
0x135c   : > { %14373 = vmatprep.subr.msk.bf16.mxu1 %vm16962_vm1, %v14371_v48  ;;  %13310 = vmatprep.mubr.msk.f32.mxu1 %vm1558_vm2, %v6423_v14  ;;  %v15227_v26 = vunpack.i.h.bf16 %v15225_v12  ;;  %v15226_v61 = vunpack.i.l.bf16 %v15225_v12 }
0x135d   : > { %v15778_v23 = vpop.eup %15777  ;;  %14376 = vmatpush3.bf16.xpose.msk.msra.mxu1 %vm16962_vm1, %v14371_v48  ;;  %v19359_v11 = vpop.f32.mrb[138].mxu0 }
0x135e   : > { %v15780_v59 = vpop.eup %15779  ;;  %13311 = vmatmul.mubr.msk.f32.gmra.mrb[130].mxu1 %vm1558_vm2, %v6424_v9  ;;  %v15220_v33 = vpop.permute.xlu1 %15219  ;;  %v6426_v43 = vmul.f32 %v15778_v23, %v19250_v41 }
0x135f   : > { %v19362_v29 = vpop.f32.mrb[139].mxu0  ;;  %v15222_v45 = vunpack.i.h.bf16 %v15220_v33  ;;  %v15221_v4 = vunpack.i.l.bf16 %v15220_v33  ;;  %v15230_v47 = vpop.permute.xlu0 %15229  ;;  %v6425_v24 = vmul.f32 %v15780_v59, %v19248_v27  ;;  %v14383_v27 = vpack.c.bf16 %v15227_v26, %v15226_v61 }
0x1360   : > { %v15232_v59 = vunpack.i.h.bf16 %v15230_v47  ;;  %v15231_v33 = vunpack.i.l.bf16 %v15230_v47 }
0x1361   : > { %v15782_v20 = vpop.eup %15781  ;;  %v14377_v50 = vpack.c.bf16 %v15222_v45, %v15221_v4  ;;  %13313 = vmatprep.mubr.msk.f32.mxu1 %vm1558_vm2, %v6425_v24  ;;  %v19367_v55 = vpop.f32.mrb[140].mxu0 }
0x1362   : > { %13314 = vmatmul.mubr.msk.f32.gmra.mrb[132].mxu1 %vm1558_vm2, %v6426_v43  ;;  %v6700_v60 = vpop.permute.xlu1 %6699  ;;  %v19370_v63 = vpop.f32.mrb[141].mxu0  ;;  %v6427_v41 = vmul.f32 %v15782_v20, %v19256_v30  ;;  %v14389_v4 = vpack.c.bf16 %v15232_v59, %v15231_v33 }
0x1363   : > { %v6702_v48 = vpop.permute.xlu0 %6701  ;;  %14379 = vmatprep.subr.msk.bf16.mxu1 %vm16962_vm1, %v14377_v50 }
0x1364   : > { %13316 = vmatprep.mubr.msk.f32.mxu1 %vm1558_vm2, %v6427_v41 }
0x1365   : > { %v15784_v57 = vpop.eup %15783  ;;  %14382 = vmatpush3.bf16.xpose.msk.msra.mxu1 %vm16962_vm1, %v14377_v50  ;;  %v19378_v14 = vpop.f32.mrb[142].mxu0 }
0x1366   : > { %14385 = vmatprep.subr.msk.bf16.mxu1 %vm16962_vm1, %v14383_v27  ;;  %v6704_v12 = vpop.permute.xlu1 %6703  ;;  %v19382_v9 = vpop.f32.mrb[143].mxu0  ;;  %v6428_v30 = vmul.f32 %v15784_v57, %v19260_v10 }
0x1367   : > { %v6706_v23 = vpop.permute.xlu0 %6705 }
0x1368   : > { %13317 = vmatmul.mubr.msk.f32.gmra.mrb[134].mxu1 %vm1558_vm2, %v6428_v30 }
0x1369   : > { %13363 = vmatprep.mubr.msk.f32.mxu1 %vm1251_vm0, %v6700_v60 }
0x136a   : > { %v6708_v43 = vpop.permute.xlu1 %6707 }
0x136b   : > { %v6710_v45 = vpop.permute.xlu0 %6709 }
0x136d   : > { %14388 = vmatpush3.bf16.xpose.msk.msra.mxu1 %vm16962_vm1, %v14383_v27 }
0x136e   : > { %14391 = vmatprep.subr.msk.bf16.mxu1 %vm16962_vm1, %v14389_v4  ;;  %v6712_v24 = vpop.permute.xlu1 %6711 }
0x136f   : > { %v6714_v26 = vpop.permute.xlu0 %6713 }
0x1372   : > { %v15240_v61 = vpop.permute.xlu1 %15239 }
0x1373   : > { %v15235_v10 = vpop.permute.xlu0 %15234  ;;  %v15242_v20 = vunpack.i.h.bf16 %v15240_v61  ;;  %v15241_v50 = vunpack.i.l.bf16 %v15240_v61 }
0x1374   : > { %v15237_v47 = vunpack.i.h.bf16 %v15235_v10  ;;  %v15236_v41 = vunpack.i.l.bf16 %v15235_v10 }
0x1375   : > { %14394 = vmatpush3.bf16.xpose.msk.msra.mxu1 %vm16962_vm1, %v14389_v4  ;;  %v14439_v27 = vpack.c.bf16 %v15242_v20, %v15241_v50 }
0x1376   : > { %v15245_v60 = vpop.permute.xlu1 %15244  ;;  %v14435_v57 = vpack.c.bf16 %v15237_v47, %v15236_v41 }
0x1377   : > { %v15250_v30 = vpop.permute.xlu0 %15249  ;;  %v15247_v59 = vunpack.i.h.bf16 %v15245_v60  ;;  %v15246_v33 = vunpack.i.l.bf16 %v15245_v60 }
0x1378   : > { %14436 = vmatprep.subr.bf16.mxu0 %v14435_v57  ;;  %v15252_v17 = vunpack.i.h.bf16 %v15250_v30  ;;  %v15251_v31 = vunpack.i.l.bf16 %v15250_v30  ;;  %v7064_v30 = vsel %vm1558_vm2, %v19348_v15, -inf }
0x1379   : > { %14438 = vmatpush3.bf16.msra.mxu0 %v14435_v57  ;;  %v14443_v36 = vpack.c.bf16 %v15247_v59, %v15246_v33  ;;  %v7061_v59 = vsel %vm1558_vm2, %v19350_v52, -inf }
0x137a   : > { %14440 = vmatprep.subr.bf16.mxu0 %v14439_v27  ;;  %v14447_v47 = vpack.c.bf16 %v15252_v17, %v15251_v31 }
0x137b   : > { %v15255_v61 = vpop.permute.xlu0 %15254 }
0x137c   : > { %13364 = vmatmul.mubr.msk.f32.vlgmr.msra.gmra.mrb[136].mxu1 %vm1251_vm0, %v6702_v48  ;;  %v15257_v4 = vunpack.i.h.bf16 %v15255_v61  ;;  %v15256_v10 = vunpack.i.l.bf16 %v15255_v61 }
0x137d   : > { %13366 = vmatprep.mubr.msk.f32.mxu1 %vm1251_vm0, %v6704_v12  ;;  %14442 = vmatpush3.bf16.msra.mxu0 %v14439_v27 }
0x137e   : > { %14444 = vmatprep.subr.bf16.mxu0 %v14443_v36  ;;  %v19397_v20 = vpack.c.bf16 %v15257_v4, %v15256_v10  ;;  %v7070_v4 = vsel %vm1558_vm2, %v19359_v11, -inf }
0x1380   : > { %13367 = vmatmul.mubr.msk.f32.gmra.mrb[138].mxu1 %vm1251_vm0, %v6706_v23 }
0x1381   : > { %13369 = vmatprep.mubr.msk.f32.mxu1 %vm1251_vm0, %v6708_v43  ;;  %14446 = vmatpush3.bf16.msra.mxu0 %v14443_v36 }
0x1382   : > { %14448 = vmatprep.subr.bf16.mxu0 %v14447_v47 }
0x1384   : > { %13370 = vmatmul.mubr.msk.f32.gmra.mrb[140].mxu1 %vm1251_vm0, %v6710_v45 }
0x1385   : > { %13372 = vmatprep.mubr.msk.f32.mxu1 %vm1251_vm0, %v6712_v24  ;;  %14450 = vmatpush3.bf16.msra.mxu0 %v14447_v47 }
0x1386   : > { %14469 = vmatprep.subr.msk.bf16.mxu0 %vm16962_vm1, %v19397_v20 }
0x1388   : > { %13373 = vmatmul.mubr.msk.f32.gmra.mrb[142].mxu1 %vm1251_vm0, %v6714_v26 }
0x13c6   : > { %v19405_v48 = vpop.f32.mrb[128].mxu1 }
0x13c7   : > { %v19407_v31 = vpop.f32.mrb[129].mxu1 }
0x1431   : > { %v19409_v17 = vpop.f32.mrb[130].mxu1 }
0x1432   : > { %v19411_v36 = vpop.f32.mrb[131].mxu1 }
0x1435   : > { %v19413_v12 = vpop.f32.mrb[132].mxu1 }
0x1436   : > { %v19415_v23 = vpop.f32.mrb[133].mxu1 }
0x143b   : > { %v19417_v43 = vpop.f32.mrb[134].mxu1 }
0x143c   : > { %21172 = vst [vmem:[#allocation73_spill] sm:$0xff] %v19417_v43  ;;  %v19419_v45 = vpop.f32.mrb[135].mxu1 }
0x144f   : > { %v19421_v24 = vpop.f32.mrb[136].mxu1 }
0x1450   : > { %v19423_v50 = vpop.f32.mrb[137].mxu1  ;;  %v7040_v26 = vsel %vm1558_vm2, %v19421_v24, -inf }
0x1451   : > { %7041 = vmax.xlane.f32.xlu0 %v7040_v26  ;;  %v7037_v41 = vsel %vm1558_vm2, %v19423_v50, -inf  ;;  %v7067_v26 = vsel %vm1558_vm2, %v19362_v29, -inf }
0x1452   : > { %7038 = vmax.xlane.f32.xlu1 %v7037_v41  ;;  %v7076_v41 = vsel %vm1558_vm2, %v19367_v55, -inf }
0x1453   : > { %v19429_v60 = vpop.f32.mrb[138].mxu1 }
0x1454   : > { %v19431_v57 = vpop.f32.mrb[139].mxu1 }
0x1455   : > { %7065 = vmax.xlane.f32.xlu0 %v7064_v30  ;;  %v7043_v61 = vsel %vm1558_vm2, %v19431_v57, -inf  ;;  %v7073_v30 = vsel %vm1558_vm2, %v19370_v63, -inf }
0x1456   : > { %7062 = vmax.xlane.f32.xlu1 %v7061_v59  ;;  %v7082_v59 = vsel %vm1558_vm2, %v19378_v14, -inf }
0x1457   : > { %v19437_v33 = vpop.f32.mrb[140].mxu1 }
0x1458   : > { %v19439_v27 = vpop.f32.mrb[141].mxu1 }
0x1459   : > { %7044 = vmax.xlane.f32.xlu0 %v7043_v61  ;;  %v7046_v61 = vsel %vm1558_vm2, %v19429_v60, -inf }
0x145a   : > { %7071 = vmax.xlane.f32.xlu1 %v7070_v4  ;;  %v7049_v4 = vsel %vm1558_vm2, %v19439_v27, -inf }
0x145b   : > { %v19445_v10 = vpop.f32.mrb[142].mxu1 }
0x145c   : > { %v19447_v47 = vpop.f32.mrb[143].mxu1 }
0x145d   : > { %7068 = vmax.xlane.f32.xlu0 %v7067_v26  ;;  %v7052_v26 = vsel %vm1558_vm2, %v19437_v33, -inf }
0x145e   : > { %7077 = vmax.xlane.f32.xlu1 %v7076_v41  ;;  %v7079_v41 = vsel %vm1558_vm2, %v19382_v9, -inf }
0x1461   : > { %7074 = vmax.xlane.f32.xlu0 %v7073_v30  ;;  %v19469_v30 = vpop.permute.xlu0 %15264 }
0x1462   : > { %7083 = vmax.xlane.f32.xlu1 %v7082_v59 }
0x1465   : > { %7047 = vmax.xlane.f32.xlu0 %v7046_v61  ;;  %v19471_v59 = vpop.permute.xlu0 %15269  ;;  %v19473_v61 = vpop.permute.xlu1 %15259 }
0x1469   : > { %7050 = vmax.xlane.f32.xlu0 %v7049_v4  ;;  %v19475_v4 = vpop.permute.xlu0 %7925  ;;  %v19477_v5 = vpop.permute.xlu1 %15274 }
0x146d   : > { %7053 = vmax.xlane.f32.xlu0 %v7052_v26  ;;  %v19479_v26 = vpop.permute.xlu0 %15279  ;;  %v19481_v54 = vpop.permute.xlu1 %7927 }
0x1471   : > { %7080 = vmax.xlane.f32.xlu0 %v7079_v41 }
0x1473   : > { %15284 = vrot.lane.b32.xlu1 %v19024_v37, %s16418_s6 }
0x1487   : > { %7929 = vrot.lane.b32.xlu0 %v18943_v51, %s16418_s6 }
0x14de   : > { %v19483_v41 = vpop.xlane.xlu0 %7041 }
0x14df   : > { %v19485_v21 = vpop.xlane.xlu1 %7038 }
0x14e2   : > { %v7066_v37 = vpop.xlane.xlu0 %7065 }
0x14e3   : > { %v7094_v35 = vsub.f32 %v19348_v15, %v7066_v37  ;;  %v7063_v51 = vpop.xlane.xlu1 %7062 }
0x14e4   : > { %v7093_v0 = vsub.f32 %v19350_v52, %v7063_v51 }
0x14e5   : > { %v7119_v7 = vmul.f32 1.442695, %v7094_v35 }
0x14e6   : > { %v7117_v8 = vmul.f32 1.442695, %v7093_v0  ;;  %v19489_v22 = vpop.xlane.xlu0 %7044 }
0x14e7   : > { %15785 = vpow2.f32 %v7119_v7  ;;  %v7072_v38 = vpop.xlane.xlu1 %7071 }
0x14e8   : > { %15787 = vpow2.f32 %v7117_v8  ;;  %v7096_v25 = vsub.f32 %v19359_v11, %v7072_v38 }
0x14ea   : > { %v7123_v58 = vmul.f32 1.442695, %v7096_v25  ;;  %v7069_v53 = vpop.xlane.xlu0 %7068 }
0x14eb   : > { %v7095_v32 = vsub.f32 %v19362_v29, %v7069_v53  ;;  %v7078_v1 = vpop.xlane.xlu1 %7077 }
0x14ec   : > { %15789 = vpow2.f32 %v7123_v58  ;;  %v7098_v37 = vsub.f32 %v19367_v55, %v7078_v1 }
0x14ed   : > { %v7121_v15 = vmul.f32 1.442695, %v7095_v32 }
0x14ee   : > { %v7127_v43 = vmul.f32 1.442695, %v7098_v37  ;;  %v7075_v51 = vpop.xlane.xlu0 %7074 }
0x14ef   : > { %15791 = vpow2.f32 %v7121_v15  ;;  %v7097_v0 = vsub.f32 %v19370_v63, %v7075_v51  ;;  %v7084_v35 = vpop.xlane.xlu1 %7083 }
0x14f0   : > { %v7100_v7 = vsub.f32 %v19378_v14, %v7084_v35  ;;  %15793 = vpow2.f32 %v7127_v43 }
0x14f1   : > { %v19496_v8 = vpop.eup %15785  ;;  %v7125_v38 = vmul.f32 1.442695, %v7097_v0 }
0x14f2   : > { %v19498_v25 = vpop.eup %15787  ;;  %v7131_v53 = vmul.f32 1.442695, %v7100_v7  ;;  %v19500_v52 = vpop.xlane.xlu0 %7047  ;;  %v7160_v32 = vsel %vm1558_vm2, %v19496_v8, 0.0 }
0x14f3   : > { %15795 = vpow2.f32 %v7125_v38  ;;  %7161 = vadd.xlane.f32.xlu1 %v7160_v32  ;;  %v7157_v1 = vsel %vm1558_vm2, %v19498_v25, 0.0 }
0x14f4   : > { %7158 = vadd.xlane.f32.xlu0 %v7157_v1  ;;  %15797 = vpow2.f32 %v7131_v53 }
0x14f6   : > { %v19506_v58 = vpop.eup %15789  ;;  %v7051_v11 = vpop.xlane.xlu0 %7050 }
0x14f7   : > { %v7166_v29 = vsel %vm1558_vm2, %v19506_v58, 0.0 }
0x14f8   : > { %7167 = vadd.xlane.f32.xlu0 %v7166_v29  ;;  %v7055_v29 = vsel %vm1558_vm2, %v19447_v47, -inf }
0x14f9   : > { %v19510_v55 = vpop.eup %15791 }
0x14fa   : > { %v19512_v63 = vpop.xlane.xlu0 %7053  ;;  %v7163_v14 = vsel %vm1558_vm2, %v19510_v55, 0.0  ;;  %v19516_v43 = vpop.eup %15793 }
0x14fb   : > { %7164 = vadd.xlane.f32.xlu1 %v7163_v14  ;;  %v7172_v51 = vsel %vm1558_vm2, %v19516_v43, 0.0  ;;  %v7086_v14 = vsub.f32 %v19421_v24, %v19483_v41 }
0x14fd   : > { %v19518_v37 = vpop.eup %15795 }
0x14fe   : > { %v7081_v15 = vpop.xlane.xlu0 %7080  ;;  %v7169_v0 = vsel %vm1558_vm2, %v19518_v37, 0.0  ;;  %v19524_v35 = vpop.eup %15797 }
0x14ff   : > { %v7099_v7 = vsub.f32 %v19382_v9, %v7081_v15  ;;  %7173 = vadd.xlane.f32.xlu1 %v7172_v51  ;;  %7170 = vadd.xlane.f32.xlu0 %v7169_v0  ;;  %v7178_v53 = vsel %vm1558_vm2, %v19524_v35, 0.0  ;;  %v7058_v9 = vsel %vm1558_vm2, %v19445_v10, -inf  ;;  %v7103_v15 = vmul.f32 1.442695, %v7086_v14  ;;  %v21173_v0 = vld [vmem:[#allocation44_spill] sm:$0xff] }
0x1500   : > { %v7087_v51 = vsub.f32 %v19431_v57, %v19489_v22 }
0x1501   : > { %v7129_v38 = vmul.f32 1.442695, %v7099_v7 }
0x1502   : > { %v7105_v7 = vmul.f32 1.442695, %v7087_v51 }
0x1503   : > { %15799 = vpow2.f32 %v7129_v38  ;;  %7179 = vadd.xlane.f32.xlu1 %v7178_v53  ;;  %v7089_v38 = vsub.f32 %v19439_v27, %v7051_v11  ;;  %v19580_v11 = vpop.permute.xlu1 %15284 }
0x1504   : > { %15801 = vpow2.f32 %v7103_v15 }
0x1505   : > { %15803 = vpow2.f32 %v7105_v7  ;;  %v7109_v53 = vmul.f32 1.442695, %v7089_v38  ;;  %v7088_v7 = vsub.f32 %v19429_v60, %v19500_v52 }
0x1507   : > { %15805 = vpow2.f32 %v7109_v53  ;;  %v7107_v53 = vmul.f32 1.442695, %v7088_v7 }
0x150d   : > { %v19529_v32 = vpop.eup %15799 }
0x150e   : > { %v7175_v1 = vsel %vm1558_vm2, %v19529_v32, 0.0  ;;  %v19568_v24 = vpop.eup %15801 }
0x150f   : > { %7176 = vadd.xlane.f32.xlu1 %v7175_v1  ;;  %v7136_v22 = vsel %vm1558_vm2, %v19568_v24, 0.0  ;;  %v19574_v57 = vpop.eup %15803 }
0x1510   : > { %v7139_v27 = vsel %vm1558_vm2, %v19574_v57, 0.0 }
0x1511   : > { %v19578_v41 = vpop.eup %15805 }
0x1512   : > { %v7145_v1 = vsel %vm1558_vm2, %v19578_v41, 0.0 }
0x1515   : > { %15289 = vrot.lane.b32.xlu0 %v19033_v13, %s16418_s6 }
0x1520   : > { %7931 = vrot.lane.b32.xlu1 %v18946_v28, %s16418_s6 }
0x1534   : > { %7059 = vmax.xlane.f32.xlu0 %v7058_v9  ;;  %v19584_v9 = vpop.permute.xlu0 %7929 }
0x1544   : > { %7056 = vmax.xlane.f32.xlu1 %v7055_v29  ;;  %v7085_v29 = vsub.f32 %v19423_v50, %v19485_v21 }
0x1546   : > { %v7101_v51 = vmul.f32 1.442695, %v7085_v29  ;;  %v15261_v29 = vunpack.i.l.bf16 %v19473_v61 }
0x154a   : > { %7935 = vrot.lane.b32.xlu0 %v18970_v16, %s16418_s6 }
0x154e   : > { %8100 = vrot.lane.b32.xlu0 %v19061_v42, %s16418_s6 }
0x1552   : > { %8104 = vrot.lane.b32.xlu0 %v19071_v34, %s16418_s6 }
0x1555   : > { %7933 = vrot.lane.b32.xlu1 %v18967_v3, %s16418_s6 }
0x1556   : > { %8108 = vrot.lane.b32.xlu0 %v19081_v40, %s16418_s6 }
0x1559   : > { %7937 = vrot.lane.b32.xlu1 %v18988_v62, %s16418_s6 }
0x155d   : > { %7939 = vrot.lane.b32.xlu1 %v18991_v19, %s16418_s6 }
0x1561   : > { %8094 = vrot.lane.b32.xlu1 %v19038_v44, %s16418_s6 }
0x1565   : > { %8096 = vrot.lane.b32.xlu1 %v21173_v0, %s16418_s6 }
0x1569   : > { %8098 = vrot.lane.b32.xlu1 %v19058_v2, %s16418_s6 }
0x156d   : > { %8102 = vrot.lane.b32.xlu1 %v19068_v46, %s16418_s6 }
0x1571   : > { %8106 = vrot.lane.b32.xlu1 %v19078_v49, %s16418_s6 }
0x1575   : > { %7137 = vadd.xlane.f32.xlu0 %v7136_v22  ;;  %v7090_v22 = vsub.f32 %v19437_v33, %v19512_v63 }
0x1577   : > { %v7111_v21 = vmul.f32 1.442695, %v7090_v22 }
0x1579   : > { %7140 = vadd.xlane.f32.xlu0 %v7139_v27 }
0x157d   : > { %7146 = vadd.xlane.f32.xlu0 %v7145_v1 }
0x1580   : > { %v7162_v14 = vpop.xlane.xlu1 %7161 }
0x1581   : > { %15807 = vrcp.f32 %v7162_v14  ;;  %v7159_v15 = vpop.xlane.xlu0 %7158  ;;  %v15262_v14 = vunpack.i.h.bf16 %v19473_v61 }
0x1582   : > { %15809 = vrcp.f32 %v7159_v15 }
0x1583   : > { %15811 = vpow2.f32 %v7101_v51  ;;  %v14473_v33 = vpack.c.bf16 %v15262_v14, %v15261_v29  ;;  %v15266_v51 = vunpack.i.l.bf16 %v19469_v30  ;;  %v21176_v29 = vld [vmem:[#allocation37_spill] sm:$0xff] }
0x1585   : > { %v7168_v38 = vpop.xlane.xlu0 %7167 }
0x1586   : > { %15813 = vrcp.f32 %v7168_v38 }
0x1588   : > { %v7165_v27 = vpop.xlane.xlu1 %7164 }
0x1589   : > { %15815 = vrcp.f32 %v7165_v27  ;;  %v21175_v27 = vld [vmem:[#allocation30_spill] sm:$0xff] }
0x158a   : > { %15817 = vpow2.f32 %v7107_v53 }
0x158b   : > { %v15808_v1 = vpop.eup %15807 }
0x158c   : > { %v15810_v50 = vpop.eup %15809  ;;  %v7174_v15 = vpop.xlane.xlu1 %7173  ;;  %v7206_v52 = vmul.f32 %v15808_v1, %v19496_v8  ;;  %v21174_v8 = vld [vmem:[#allocation55_spill] sm:$0xff] }
0x158d   : > { %v7171_v40 = vpop.xlane.xlu0 %7170  ;;  %15819 = vrcp.f32 %v7174_v15  ;;  %v7205_v60 = vmul.f32 %v15810_v50, %v19498_v25  ;;  %v19598_v63 = vpop.eup %15811  ;;  %v15272_v15 = vunpack.i.h.bf16 %v19471_v59 }
0x158e   : > { %15821 = vrcp.f32 %v7171_v40  ;;  %v15267_v40 = vunpack.i.h.bf16 %v19469_v30  ;;  %v7133_v7 = vsel %vm1558_vm2, %v19598_v63, 0.0 }
0x158f   : > { %15823 = vpow2.f32 %v7111_v21  ;;  %13447 = vmatprep.mubr.msk.f32.mxu0 %vm1558_vm2, %v7205_v60 }
0x1590   : > { %13448 = vmatmul.mubr.msk.f32.vlgmr.msra.gmra.mrb[144].mxu0 %vm1558_vm2, %v7206_v52  ;;  %v15814_v61 = vpop.eup %15813  ;;  %v14479_v30 = vpack.c.bf16 %v15267_v40, %v15266_v51  ;;  %v7180_v21 = vpop.xlane.xlu1 %7179 }
0x1591   : > { %14472 = vmatpush3.bf16.xpose.msk.msra.mxu0 %vm16962_vm1, %v19397_v20  ;;  %v7208_v20 = vmul.f32 %v15814_v61, %v19506_v58  ;;  %15825 = vrcp.f32 %v7180_v21 }
0x1592   : > { %14475 = vmatprep.subr.msk.bf16.mxu0 %vm16962_vm1, %v14473_v33 }
0x1593   : > { %v15816_v25 = vpop.eup %15815  ;;  %15294 = vrot.lane.b32.xlu0 %v21174_v8, %s16417_s15 }
0x1594   : > { %v7207_v38 = vmul.f32 %v15816_v25, %v19510_v55  ;;  %v19612_v53 = vpop.eup %15817 }
0x1595   : > { %7134 = vadd.xlane.f32.xlu1 %v7133_v7  ;;  %v7142_v50 = vsel %vm1558_vm2, %v19612_v53, 0.0 }
0x1596   : > { %13450 = vmatprep.mubr.msk.f32.mxu0 %vm1558_vm2, %v7207_v38  ;;  %v15282_v38 = vunpack.i.h.bf16 %v19479_v26 }
0x1597   : > { %v15820_v22 = vpop.eup %15819  ;;  %15304 = vrot.lane.b32.xlu0 %v21175_v27, %s16417_s15  ;;  %13451 = vmatmul.mubr.msk.f32.gmra.mrb[146].mxu0 %vm1558_vm2, %v7208_v20  ;;  %v15287_v20 = vunpack.i.h.bf16 %v19580_v11 }
0x1598   : > { %v15822_v1 = vpop.eup %15821  ;;  %v7210_v55 = vmul.f32 %v15820_v22, %v19516_v43  ;;  %v15271_v43 = vunpack.i.l.bf16 %v19471_v59  ;;  %v15277_v59 = vunpack.i.h.bf16 %v19477_v5  ;;  %v15290_v22 = vpop.permute.xlu0 %15289 }
0x1599   : > { %v19622_v14 = vpop.eup %15823  ;;  %14478 = vmatpush3.bf16.xpose.msk.msra.mxu0 %vm16962_vm1, %v14473_v33  ;;  %7143 = vadd.xlane.f32.xlu1 %v7142_v50  ;;  %v7209_v58 = vmul.f32 %v15822_v1, %v19518_v37  ;;  %v15276_v33 = vunpack.i.l.bf16 %v19477_v5  ;;  %v15281_v5 = vunpack.i.l.bf16 %v19479_v26  ;;  %v15286_v26 = vunpack.i.l.bf16 %v19580_v11 }
0x159a   : > { %14481 = vmatprep.subr.msk.bf16.mxu0 %vm16962_vm1, %v14479_v30  ;;  %v7148_v52 = vsel %vm1558_vm2, %v19622_v14, 0.0  ;;  %v14485_v37 = vpack.c.bf16 %v15272_v15, %v15271_v43 }
0x159b   : > { %13453 = vmatprep.mubr.msk.f32.mxu0 %vm1558_vm2, %v7209_v58  ;;  %15309 = vrot.lane.b32.xlu0 %v21176_v29, %s16417_s15  ;;  %v15826_v61 = vpop.eup %15825  ;;  %v14491_v40 = vpack.c.bf16 %v15277_v59, %v15276_v33 }
0x159c   : > { %13454 = vmatmul.mubr.msk.f32.gmra.mrb[148].mxu0 %vm1558_vm2, %v7210_v55  ;;  %v7177_v60 = vpop.xlane.xlu1 %7176  ;;  %v7212_v7 = vmul.f32 %v15826_v61, %v19524_v35 }
0x159d   : > { %15827 = vrcp.f32 %v7177_v60  ;;  %7149 = vadd.xlane.f32.xlu1 %v7148_v52 }
0x159f   : > { %15314 = vrot.lane.b32.xlu0 %v21174_v8, %s16418_s6 }
0x15a0   : > { %v7932_v35 = vpop.permute.xlu1 %7931 }
0x15a1   : > { %14484 = vmatpush3.bf16.xpose.msk.msra.mxu0 %vm16962_vm1, %v14479_v30 }
0x15a2   : > { %14487 = vmatprep.subr.msk.bf16.mxu0 %vm16962_vm1, %v14485_v37 }
0x15a7   : > { %v15828_v25 = vpop.eup %15827 }
0x15a8   : > { %v7211_v51 = vmul.f32 %v15828_v25, %v19529_v32  ;;  %v14497_v32 = vpack.c.bf16 %v15282_v38, %v15281_v5 }
0x15a9   : > { %14490 = vmatpush3.bf16.xpose.msk.msra.mxu0 %vm16962_vm1, %v14485_v37 }
0x15aa   : > { %14493 = vmatprep.subr.msk.bf16.mxu0 %vm16962_vm1, %v14491_v40  ;;  %13456 = vmatprep.mubr.msk.f32.mxu0 %vm1558_vm2, %v7211_v51 }
0x15ab   : > { %13457 = vmatmul.mubr.msk.f32.gmra.mrb[150].mxu0 %vm1558_vm2, %v7212_v7 }
0x15ac   : > { %13539 = vmatprep.mubr.msk.f32.mxu0 %vm1251_vm0, %v19475_v4  ;;  %v14503_v4 = vpack.c.bf16 %v15287_v20, %v15286_v26 }
0x15b0   : > { %13540 = vmatmul.mubr.msk.f32.vlgmr.msra.gmra.mrb[152].mxu0 %vm1251_vm0, %v19481_v54  ;;  %v15292_v54 = vunpack.i.h.bf16 %v15290_v22 }
0x15b1   : > { %13542 = vmatprep.mubr.msk.f32.mxu0 %vm1251_vm0, %v19584_v9  ;;  %14496 = vmatpush3.bf16.xpose.msk.msra.mxu0 %vm16962_vm1, %v14491_v40  ;;  %v15291_v9 = vunpack.i.l.bf16 %v15290_v22 }
0x15b2   : > { %14499 = vmatprep.subr.msk.bf16.mxu0 %vm16962_vm1, %v14497_v32 }
0x15b3   : > { %v14509_v1 = vpack.c.bf16 %v15292_v54, %v15291_v9 }
0x15b4   : > { %13543 = vmatmul.mubr.msk.f32.gmra.mrb[154].mxu0 %vm1251_vm0, %v7932_v35 }
0x15b9   : > { %14502 = vmatpush3.bf16.xpose.msk.msra.mxu0 %vm16962_vm1, %v14497_v32  ;;  %v21177_v32 = vld [vmem:[#allocation45_spill] sm:$0xff] }
0x15ba   : > { %14505 = vmatprep.subr.msk.bf16.mxu0 %vm16962_vm1, %v14503_v4 }
0x15c1   : > { %14508 = vmatpush3.bf16.xpose.msk.msra.mxu0 %vm16962_vm1, %v14503_v4  ;;  %v7060_v11 = vpop.xlane.xlu0 %7059 }
0x15c2   : > { %14511 = vmatprep.subr.msk.bf16.mxu0 %vm16962_vm1, %v14509_v1  ;;  %v7092_v30 = vsub.f32 %v19445_v10, %v7060_v11 }
0x15c4   : > { %v7115_v55 = vmul.f32 1.442695, %v7092_v30 }
0x15c5   : > { %v7936_v43 = vpop.permute.xlu0 %7935 }
0x15c9   : > { %14514 = vmatpush3.bf16.xpose.msk.msra.mxu0 %vm16962_vm1, %v14509_v1  ;;  %v8101_v25 = vpop.permute.xlu0 %8100 }
0x15cd   : > { %v8105_v51 = vpop.permute.xlu0 %8104 }
0x15d1   : > { %v7057_v21 = vpop.xlane.xlu1 %7056  ;;  %v8109_v5 = vpop.permute.xlu0 %8108 }
0x15d2   : > { %v7091_v50 = vsub.f32 %v19447_v47, %v7057_v21 }
0x15d4   : > { %v7113_v58 = vmul.f32 1.442695, %v7091_v50 }
0x15d5   : > { %v7934_v15 = vpop.permute.xlu1 %7933 }
0x15d6   : > { %15829 = vpow2.f32 %v7113_v58  ;;  %13545 = vmatprep.mubr.msk.f32.mxu0 %vm1251_vm0, %v7934_v15 }
0x15d7   : > { %13546 = vmatmul.mubr.msk.f32.gmra.mrb[156].mxu0 %vm1251_vm0, %v7936_v43  ;;  %15831 = vpow2.f32 %v7115_v55 }
0x15d9   : > { %v7938_v60 = vpop.permute.xlu1 %7937 }
0x15da   : > { %13548 = vmatprep.mubr.msk.f32.mxu0 %vm1251_vm0, %v7938_v60 }
0x15dd   : > { %v7940_v52 = vpop.permute.xlu1 %7939 }
0x15de   : > { %13549 = vmatmul.mubr.msk.f32.gmra.mrb[158].mxu0 %vm1251_vm0, %v7940_v52 }
0x15e0   : > { %v19684_v10 = vpop.eup %15829 }
0x15e1   : > { %v8095_v37 = vpop.permute.xlu1 %8094  ;;  %v7151_v47 = vsel %vm1558_vm2, %v19684_v10, 0.0  ;;  %v19688_v59 = vpop.eup %15831 }
0x15e2   : > { %7152 = vadd.xlane.f32.xlu1 %v7151_v47  ;;  %13567 = vmatprep.mubr.msk.f32.mxu0 %vm1251_vm0, %v8095_v37  ;;  %v7154_v61 = vsel %vm1558_vm2, %v19688_v59, 0.0 }
0x15e5   : > { %v8097_v33 = vpop.permute.xlu1 %8096 }
0x15e6   : > { %7155 = vadd.xlane.f32.xlu1 %v7154_v61  ;;  %13568 = vmatmul.mubr.msk.f32.vlgmr.msra.gmra.mrb[160].mxu0 %vm1251_vm0, %v8097_v33 }
0x15e9   : > { %v8099_v40 = vpop.permute.xlu1 %8098 }
0x15ea   : > { %13570 = vmatprep.mubr.msk.f32.mxu0 %vm1251_vm0, %v8099_v40 }
0x15eb   : > { %13571 = vmatmul.mubr.msk.f32.gmra.mrb[162].mxu0 %vm1251_vm0, %v8101_v25 }
0x15ed   : > { %v8103_v7 = vpop.permute.xlu1 %8102 }
0x15ee   : > { %13573 = vmatprep.mubr.msk.f32.mxu0 %vm1251_vm0, %v8103_v7 }
0x15ef   : > { %13574 = vmatmul.mubr.msk.f32.gmra.mrb[164].mxu0 %vm1251_vm0, %v8105_v51 }
0x15f1   : > { %v8107_v38 = vpop.permute.xlu1 %8106 }
0x15f2   : > { %13576 = vmatprep.mubr.msk.f32.mxu0 %vm1251_vm0, %v8107_v38 }
0x15f3   : > { %13577 = vmatmul.mubr.msk.f32.gmra.mrb[166].mxu0 %vm1251_vm0, %v8109_v5 }
0x15f7   : > { %15299 = vrot.lane.b32.xlu1 %v21177_v32, %s16417_s15  ;;  %s20756_s15 = scalar_lea.vmem [#allocation17], %s16860_s13  ;;  %s11730_s13 = sshll.u32 %s16559_s23, 11 }
0x15f8   : > { %s16420_s23 = smov [#allocation17]  }
0x15fb   : > { %15319 = vrot.lane.b32.xlu1 %v21177_v32, %s16418_s6 }
0x1602   : > { %v7138_v35 = vpop.xlane.xlu0 %7137 }
0x1606   : > { %v7141_v20 = vpop.xlane.xlu0 %7140 }
0x160a   : > { %v7147_v26 = vpop.xlane.xlu0 %7146 }
0x160e   : > { %v15295_v4 = vpop.permute.xlu0 %15294 }
0x160f   : > { %v15297_v22 = vunpack.i.h.bf16 %v15295_v4  ;;  %v15296_v54 = vunpack.i.l.bf16 %v15295_v4 }
0x1611   : > { %v14419_v9 = vpack.c.bf16 %v15297_v22, %v15296_v54 }
0x1612   : > { %v15305_v47 = vpop.permute.xlu0 %15304 }
0x1613   : > { %14420 = vmatprep.subr.bf16.mxu1 %v14419_v9  ;;  %v15307_v61 = vunpack.i.h.bf16 %v15305_v47  ;;  %v15306_v25 = vunpack.i.l.bf16 %v15305_v47 }
0x1614   : > { %14422 = vmatpush3.bf16.msra.mxu1 %v14419_v9 }
0x1615   : > { %v14427_v22 = vpack.c.bf16 %v15307_v61, %v15306_v25 }
0x1616   : > { %v15310_v7 = vpop.permute.xlu0 %15309 }
0x1617   : > { %v15312_v5 = vunpack.i.h.bf16 %v15310_v7  ;;  %v15311_v4 = vunpack.i.l.bf16 %v15310_v7 }
0x1622   : > { %v7135_v1 = vpop.xlane.xlu1 %7134 }
0x1623   : > { %15833 = vrcp.f32 %v7135_v1  ;;  %v14431_v1 = vpack.c.bf16 %v15312_v5, %v15311_v4 }
0x1624   : > { %15835 = vrcp.f32 %v7138_v35 }
0x1625   : > { %15837 = vrcp.f32 %v7141_v20 }
0x1626   : > { %v7144_v55 = vpop.xlane.xlu1 %7143 }
0x1627   : > { %15839 = vrcp.f32 %v7144_v55 }
0x1628   : > { %15841 = vrcp.f32 %v7147_v26 }
0x162a   : > { %v7150_v15 = vpop.xlane.xlu1 %7149 }
0x162b   : > { %15843 = vrcp.f32 %v7150_v15 }
0x162d   : > { %v15834_v11 = vpop.eup %15833 }
0x162e   : > { %v7197_v30 = vmul.f32 %v15834_v11, %v19598_v63  ;;  %v15836_v35 = vpop.eup %15835 }
0x162f   : > { %v15838_v11 = vpop.eup %15837  ;;  %v7198_v15 = vmul.f32 %v15836_v35, %v19568_v24 }
0x1630   : > { %13419 = vmatprep.mubr.msk.f32.mxu1 %vm1558_vm2, %v7197_v30 }
0x1663   : > { %v19706_v21 = vpop.f32.mrb[144].mxu0 }
0x1664   : > { %v19708_v50 = vpop.f32.mrb[145].mxu0 }
0x166a   : > { %v19710_v58 = vpop.f32.mrb[146].mxu0 }
0x166b   : > { %v19712_v43 = vpop.f32.mrb[147].mxu0 }
0x166f   : > { %v19714_v60 = vpop.f32.mrb[148].mxu0  ;;  %v7153_v52 = vpop.xlane.xlu1 %7152 }
0x1670   : > { %v19716_v37 = vpop.f32.mrb[149].mxu0  ;;  %15845 = vrcp.f32 %v7153_v52  ;;  %v15840_v52 = vpop.eup %15839 }
0x1671   : > { %v15842_v61 = vpop.eup %15841  ;;  %v7200_v24 = vmul.f32 %v15840_v52, %v19612_v53 }
0x1673   : > { %v7156_v33 = vpop.xlane.xlu1 %7155 }
0x1674   : > { %15847 = vrcp.f32 %v7156_v33 }
0x1677   : > { %v15300_v63 = vpop.permute.xlu1 %15299 }
0x1678   : > { %v15302_v40 = vunpack.i.h.bf16 %v15300_v63  ;;  %v15301_v51 = vunpack.i.l.bf16 %v15300_v63  ;;  %v7199_v63 = vmul.f32 %v15838_v11, %v19574_v57  ;;  %v7201_v57 = vmul.f32 %v15842_v61, %v19578_v41 }
0x167a   : > { %v14423_v38 = vpack.c.bf16 %v15302_v40, %v15301_v51  ;;  %v15844_v51 = vpop.eup %15843 }
0x167b   : > { %v15846_v7 = vpop.eup %15845 }
0x167c   : > { %14424 = vmatprep.subr.bf16.mxu1 %v14423_v38  ;;  %v7203_v4 = vmul.f32 %v15846_v7, %v19684_v10 }
0x167d   : > { %14426 = vmatpush3.bf16.msra.mxu1 %v14423_v38  ;;  %v7202_v38 = vmul.f32 %v15844_v51, %v19622_v14 }
0x167e   : > { %14428 = vmatprep.subr.bf16.mxu1 %v14427_v22  ;;  %v19718_v54 = vpop.f32.mrb[150].mxu0  ;;  %v15848_v5 = vpop.eup %15847 }
0x167f   : > { %v19720_v9 = vpop.f32.mrb[151].mxu0 }
0x1681   : > { %14430 = vmatpush3.bf16.msra.mxu1 %v14427_v22  ;;  %v7204_v22 = vmul.f32 %v15848_v5, %v19688_v59 }
0x1682   : > { %14432 = vmatprep.subr.bf16.mxu1 %v14431_v1 }
0x1683   : > { %v19722_v20 = vpop.f32.mrb[152].mxu0 }
0x1684   : > { %v19724_v30 = vpop.f32.mrb[153].mxu0  ;;  %v8266_v55 = vsel %vm1558_vm2, %v19722_v20, -inf }
0x1685   : > { %8267 = vmax.xlane.f32.xlu0 %v8266_v55  ;;  %v8263_v26 = vsel %vm1558_vm2, %v19724_v30, -inf  ;;  %14434 = vmatpush3.bf16.msra.mxu1 %v14431_v1 }
0x1686   : > { %8264 = vmax.xlane.f32.xlu1 %v8263_v26 }
0x1687   : > { %v19731_v47 = vpop.f32.mrb[154].mxu0 }
0x1688   : > { %v19734_v25 = vpop.f32.mrb[155].mxu0  ;;  %13420 = vmatmul.mubr.msk.f32.vlgmr.msra.gmra.mrb[144].mxu1 %vm1558_vm2, %v7198_v15  ;;  %v8272_v33 = vsel %vm1558_vm2, %v19731_v47, -inf }
0x1689   : > { %v8269_v40 = vsel %vm1558_vm2, %v19734_v25, -inf  ;;  %13422 = vmatprep.mubr.msk.f32.mxu1 %vm1558_vm2, %v7199_v63 }
0x168a   : > { %8270 = vmax.xlane.f32.xlu0 %v8269_v40  ;;  %8273 = vmax.xlane.f32.xlu1 %v8272_v33 }
0x168c   : > { %13423 = vmatmul.mubr.msk.f32.gmra.mrb[146].mxu1 %vm1558_vm2, %v7200_v24 }
0x168d   : > { %13425 = vmatprep.mubr.msk.f32.mxu1 %vm1558_vm2, %v7201_v57 }
0x1690   : > { %13426 = vmatmul.mubr.msk.f32.gmra.mrb[148].mxu1 %vm1558_vm2, %v7202_v38 }
0x1691   : > { %13428 = vmatprep.mubr.msk.f32.mxu1 %vm1558_vm2, %v7203_v4 }
0x1694   : > { %13429 = vmatmul.mubr.msk.f32.gmra.mrb[150].mxu1 %vm1558_vm2, %v7204_v22 }
0x16aa   : > { %v19752_v53 = vpop.f32.mrb[156].mxu0 }
0x16ab   : > { %v19754_v41 = vpop.f32.mrb[157].mxu0  ;;  %v8278_v1 = vsel %vm1558_vm2, %v19752_v53, -inf }
0x16ac   : > { %8279 = vmax.xlane.f32.xlu1 %v8278_v1  ;;  %v8275_v14 = vsel %vm1558_vm2, %v19754_v41, -inf  ;;  %v7535_v1 = vld [vmem:[#allocation13 + $0x20] sm:$0xff] }
0x16ad   : > { %8276 = vmax.xlane.f32.xlu0 %v8275_v14  ;;  %v7536_v14 = vld [vmem:[#allocation13 + $0x28] sm:$0xff] }
0x16b1   : > { %v19760_v10 = vpop.f32.mrb[158].mxu0 }
0x16b2   : > { %v19762_v35 = vpop.f32.mrb[159].mxu0  ;;  %v8284_v59 = vsel %vm1558_vm2, %v19760_v10, -inf }
0x16b3   : > { %8285 = vmax.xlane.f32.xlu1 %v8284_v59  ;;  %v8281_v11 = vsel %vm1558_vm2, %v19762_v35, -inf  ;;  %v14451_v59 = vpack.c.bf16 %v7536_v14, %v7535_v1 }
0x16b4   : > { %8282 = vmax.xlane.f32.xlu0 %v8281_v11  ;;  %v7537_v11 = vld [vmem:[#allocation13 + $0x30] sm:$0xff] }
0x16b5   : > { %14452 = vmatprep.subr.bf16.mxu1 %v14451_v59 }
0x16b6   : > { %14454 = vmatpush3.bf16.msra.mxu1 %v14451_v59 }
0x16b9   : > { %v19768_v55 = vpop.f32.mrb[160].mxu0 }
0x16ba   : > { %v19770_v26 = vpop.f32.mrb[161].mxu0  ;;  %v8290_v15 = vsel %vm1558_vm2, %v19768_v55, -inf }
0x16bb   : > { %8291 = vmax.xlane.f32.xlu1 %v8290_v15  ;;  %v8287_v52 = vsel %vm1558_vm2, %v19770_v26, -inf  ;;  %v7538_v15 = vld [vmem:[#allocation13 + $0x38] sm:$0xff] }
0x16bc   : > { %8288 = vmax.xlane.f32.xlu0 %v8287_v52  ;;  %v14455_v52 = vpack.c.bf16 %v7538_v15, %v7537_v11 }
0x16be   : > { %v19776_v63 = vpop.f32.mrb[162].mxu0  ;;  %14456 = vmatprep.subr.bf16.mxu1 %v14455_v52 }
0x16bf   : > { %v19778_v61 = vpop.f32.mrb[163].mxu0  ;;  %v8296_v33 = vsel %vm1558_vm2, %v19776_v63, -inf  ;;  %14458 = vmatpush3.bf16.msra.mxu1 %v14455_v52 }
0x16c0   : > { %8297 = vmax.xlane.f32.xlu1 %v8296_v33  ;;  %v8293_v40 = vsel %vm1558_vm2, %v19778_v61, -inf  ;;  %v6695_v33 = vld [vmem:[#allocation13] sm:$0xff] }
0x16c1   : > { %8294 = vmax.xlane.f32.xlu0 %v8293_v40  ;;  %v6696_v40 = vld [vmem:[#allocation13 + $0x8] sm:$0xff] }
0x16c2   : > { %v19784_v24 = vpop.f32.mrb[164].mxu0 }
0x16c3   : > { %v19786_v51 = vpop.f32.mrb[165].mxu0  ;;  %v8302_v57 = vsel %vm1558_vm2, %v19784_v24, -inf }
0x16c4   : > { %8303 = vmax.xlane.f32.xlu1 %v8302_v57  ;;  %v8299_v7 = vsel %vm1558_vm2, %v19786_v51, -inf  ;;  %v19802_v57 = vpack.c.bf16 %v6696_v40, %v6695_v33 }
0x16c5   : > { %8300 = vmax.xlane.f32.xlu0 %v8299_v7  ;;  %v19807_v7 = vpop.permute.xlu0 %15314 }
0x16c6   : > { %v19792_v38 = vpop.f32.mrb[166].mxu0  ;;  %14460 = vmatprep.subr.bf16.mxu1 %v19802_v57 }
0x16c7   : > { %v19794_v5 = vpop.f32.mrb[167].mxu0  ;;  %v8308_v4 = vsel %vm1558_vm2, %v19792_v38, -inf }
0x16c8   : > { %8309 = vmax.xlane.f32.xlu1 %v8308_v4  ;;  %v8305_v22 = vsel %vm1558_vm2, %v19794_v5, -inf  ;;  %v19809_v4 = vpop.permute.xlu1 %15319 }
0x16c9   : > { %8306 = vmax.xlane.f32.xlu0 %v8305_v22 }
0x16d9   : > { %15329 = vrot.lane.b32.xlu1 %v21176_v29, %s16418_s6 }
0x16df   : > { %15324 = vrot.lane.b32.xlu0 %v21175_v27, %s16418_s6 }
0x1712   : > { %v8268_v22 = vpop.xlane.xlu0 %8267 }
0x1713   : > { %v8312_v1 = vsub.f32 %v19722_v20, %v8268_v22  ;;  %v8265_v14 = vpop.xlane.xlu1 %8264 }
0x1714   : > { %v8311_v59 = vsub.f32 %v19724_v30, %v8265_v14 }
0x1715   : > { %v8329_v11 = vmul.f32 1.442695, %v8312_v1 }
0x1716   : > { %v8327_v15 = vmul.f32 1.442695, %v8311_v59 }
0x1717   : > { %15849 = vpow2.f32 %v8329_v11  ;;  %v8274_v52 = vpop.xlane.xlu1 %8273  ;;  %v8271_v33 = vpop.xlane.xlu0 %8270 }
0x1718   : > { %15851 = vpow2.f32 %v8327_v15  ;;  %v8314_v40 = vsub.f32 %v19731_v47, %v8274_v52  ;;  %v8313_v39 = vsub.f32 %v19734_v25, %v8271_v33 }
0x171a   : > { %v8333_v27 = vmul.f32 1.442695, %v8314_v40  ;;  %v8331_v8 = vmul.f32 1.442695, %v8313_v39 }
0x171c   : > { %15853 = vpow2.f32 %v8333_v27 }
0x171d   : > { %15855 = vpow2.f32 %v8331_v8 }
0x1721   : > { %v19815_v34 = vpop.eup %15849 }
0x1722   : > { %v19817_v20 = vpop.eup %15851  ;;  %v8362_v30 = vsel %vm1558_vm2, %v19815_v34, 0.0 }
0x1723   : > { %8363 = vadd.xlane.f32.xlu1 %v8362_v30  ;;  %v8359_v22 = vsel %vm1558_vm2, %v19817_v20, 0.0 }
0x1724   : > { %8360 = vadd.xlane.f32.xlu0 %v8359_v22 }
0x1726   : > { %v19823_v1 = vpop.eup %15853 }
0x1727   : > { %v19825_v47 = vpop.eup %15855  ;;  %v8368_v39 = vsel %vm1558_vm2, %v19823_v1, 0.0 }
0x1728   : > { %8369 = vadd.xlane.f32.xlu1 %v8368_v39  ;;  %v8365_v8 = vsel %vm1558_vm2, %v19825_v47, 0.0 }
0x1729   : > { %8366 = vadd.xlane.f32.xlu0 %v8365_v8 }
0x1739   : > { %v8280_v27 = vpop.xlane.xlu1 %8279 }
0x173a   : > { %v8316_v25 = vsub.f32 %v19752_v53, %v8280_v27  ;;  %v8277_v14 = vpop.xlane.xlu0 %8276 }
0x173b   : > { %v8315_v59 = vsub.f32 %v19754_v41, %v8277_v14 }
0x173c   : > { %v8337_v11 = vmul.f32 1.442695, %v8316_v25 }
0x173d   : > { %v8335_v15 = vmul.f32 1.442695, %v8315_v59 }
0x173e   : > { %15857 = vpow2.f32 %v8337_v11 }
0x173f   : > { %15859 = vpow2.f32 %v8335_v15 }
0x1740   : > { %v8286_v52 = vpop.xlane.xlu1 %8285 }
0x1741   : > { %v8318_v33 = vsub.f32 %v19760_v10, %v8286_v52  ;;  %v8283_v40 = vpop.xlane.xlu0 %8282 }
0x1742   : > { %v8317_v30 = vsub.f32 %v19762_v35, %v8283_v40 }
0x1743   : > { %v8341_v22 = vmul.f32 1.442695, %v8318_v33 }
0x1744   : > { %v8339_v39 = vmul.f32 1.442695, %v8317_v30 }
0x1745   : > { %15861 = vpow2.f32 %v8341_v22 }
0x1746   : > { %15863 = vpow2.f32 %v8339_v39 }
0x1748   : > { %v19835_v8 = vpop.eup %15857  ;;  %v8292_v53 = vpop.xlane.xlu1 %8291 }
0x1749   : > { %v19837_v27 = vpop.eup %15859  ;;  %v8320_v41 = vsub.f32 %v19768_v55, %v8292_v53  ;;  %v8289_v25 = vpop.xlane.xlu0 %8288  ;;  %v8374_v14 = vsel %vm1558_vm2, %v19835_v8, 0.0 }
0x174a   : > { %v8319_v10 = vsub.f32 %v19770_v26, %v8289_v25  ;;  %8375 = vadd.xlane.f32.xlu1 %v8374_v14  ;;  %v8371_v35 = vsel %vm1558_vm2, %v19837_v27, 0.0 }
0x174b   : > { %v8345_v59 = vmul.f32 1.442695, %v8320_v41  ;;  %8372 = vadd.xlane.f32.xlu0 %v8371_v35 }
0x174c   : > { %v8343_v11 = vmul.f32 1.442695, %v8319_v10 }
0x174d   : > { %15865 = vpow2.f32 %v8345_v59  ;;  %v8298_v15 = vpop.xlane.xlu1 %8297 }
0x174e   : > { %15867 = vpow2.f32 %v8343_v11  ;;  %v8322_v52 = vsub.f32 %v19776_v63, %v8298_v15  ;;  %v8295_v33 = vpop.xlane.xlu0 %8294  ;;  %v6698_v15 = vld [vmem:[#allocation13 + $0x18] sm:$0xff] }
0x174f   : > { %v19846_v55 = vpop.eup %15861  ;;  %v8321_v40 = vsub.f32 %v19778_v61, %v8295_v33 }
0x1750   : > { %v8349_v30 = vmul.f32 1.442695, %v8322_v52  ;;  %v8380_v26 = vsel %vm1558_vm2, %v19846_v55, 0.0  ;;  %v19851_v22 = vpop.eup %15863 }
0x1751   : > { %v8347_v39 = vmul.f32 1.442695, %v8321_v40  ;;  %v8304_v53 = vpop.xlane.xlu1 %8303  ;;  %8381 = vadd.xlane.f32.xlu1 %v8380_v26  ;;  %v8377_v61 = vsel %vm1558_vm2, %v19851_v22, 0.0 }
0x1752   : > { %15869 = vpow2.f32 %v8349_v30  ;;  %v8324_v41 = vsub.f32 %v19784_v24, %v8304_v53  ;;  %v8301_v25 = vpop.xlane.xlu0 %8300  ;;  %v15317_v53 = vunpack.i.h.bf16 %v19807_v7 }
0x1753   : > { %v8323_v63 = vsub.f32 %v19786_v51, %v8301_v25  ;;  %15871 = vpow2.f32 %v8347_v39  ;;  %v6697_v51 = vld [vmem:[#allocation13 + $0x10] sm:$0xff] }
0x1754   : > { %v8353_v14 = vmul.f32 1.442695, %v8324_v41  ;;  %v14463_v30 = vpack.c.bf16 %v6698_v15, %v6697_v51  ;;  %v15316_v41 = vunpack.i.l.bf16 %v19807_v7 }
0x1755   : > { %v8351_v10 = vmul.f32 1.442695, %v8323_v63  ;;  %8378 = vadd.xlane.f32.xlu1 %v8377_v61 }
0x1756   : > { %v14515_v7 = vpack.c.bf16 %v15317_v53, %v15316_v41  ;;  %v21180_v41 = vld [vmem:[#allocation65_spill] sm:$0xff] }
0x1757   : > { %v19857_v35 = vpop.eup %15865  ;;  %15873 = vpow2.f32 %v8351_v10 }
0x1758   : > { %v19859_v59 = vpop.eup %15867  ;;  %15875 = vpow2.f32 %v8353_v14  ;;  %v8386_v11 = vsel %vm1558_vm2, %v19857_v35, 0.0 }
0x1759   : > { %8387 = vadd.xlane.f32.xlu1 %v8386_v11  ;;  %v8383_v24 = vsel %vm1558_vm2, %v19859_v59, 0.0 }
0x175a   : > { %8384 = vadd.xlane.f32.xlu0 %v8383_v24 }
0x175b   : > { %v13421_v52 = vpop.f32.mrb[144].mxu1 }
0x175c   : > { %v19865_v33 = vpop.eup %15869  ;;  %v7335_v40 = vpop.f32.mrb[145].mxu1 }
0x175d   : > { %13467 = vmatprep.mubr.msk.f32.mxu1 %vm1251_vm0, %v7335_v40  ;;  %v8392_v26 = vsel %vm1558_vm2, %v19865_v33, 0.0  ;;  %v19870_v39 = vpop.eup %15871  ;;  %v8307_v40 = vpop.xlane.xlu0 %8306 }
0x175e   : > { %13468 = vmatmul.mubr.msk.f32.vlgmr.msra.gmra.mrb[152].mxu1 %vm1251_vm0, %v13421_v52  ;;  %8393 = vadd.xlane.f32.xlu1 %v8392_v26  ;;  %v8389_v61 = vsel %vm1558_vm2, %v19870_v39, 0.0 }
0x175f   : > { %14462 = vmatpush3.bf16.msra.mxu1 %v19802_v57  ;;  %v13424_v25 = vpop.f32.mrb[146].mxu1 }
0x1760   : > { %v7345_v63 = vpop.f32.mrb[147].mxu1  ;;  %14464 = vmatprep.subr.bf16.mxu1 %v14463_v30 }
0x1761   : > { %v19876_v14 = vpop.eup %15873  ;;  %13470 = vmatprep.mubr.msk.f32.mxu1 %vm1251_vm0, %v7345_v63  ;;  %v21184_v63 = vld [vmem:[#allocation69_spill] sm:$0xff] }
0x1762   : > { %v19881_v10 = vpop.eup %15875  ;;  %13471 = vmatmul.mubr.msk.f32.gmra.mrb[154].mxu1 %vm1251_vm0, %v13424_v25  ;;  %8390 = vadd.xlane.f32.xlu1 %v8389_v61  ;;  %v8395_v11 = vsel %vm1558_vm2, %v19876_v14, 0.0  ;;  %v21185_v61 = vld [vmem:[#allocation72_spill] sm:$0xff] }
0x1763   : > { %14466 = vmatpush3.bf16.msra.mxu1 %v14463_v30  ;;  %v13427_v57 = vpop.f32.mrb[148].mxu1  ;;  %8396 = vadd.xlane.f32.xlu0 %v8395_v11  ;;  %v8398_v51 = vsel %vm1558_vm2, %v19881_v10, 0.0  ;;  %v21186_v11 = vld [vmem:[#allocation71_spill] sm:$0xff] }
0x1764   : > { %14516 = vmatprep.subr.bf16.mxu1 %v14515_v7  ;;  %v7355_v24 = vpop.f32.mrb[149].mxu1 }
0x1765   : > { %13473 = vmatprep.mubr.msk.f32.mxu1 %vm1251_vm0, %v7355_v24 }
0x1766   : > { %13474 = vmatmul.mubr.msk.f32.gmra.mrb[156].mxu1 %vm1251_vm0, %v13427_v57  ;;  %8399 = vadd.xlane.f32.xlu1 %v8398_v51  ;;  %v21187_v51 = vld [vmem:[#allocation63_spill] sm:$0xff] }
0x1767   : > { %v13430_v15 = vpop.f32.mrb[150].mxu1 }
0x1768   : > { %v7365_v52 = vpop.f32.mrb[151].mxu1 }
0x1769   : > { %13476 = vmatprep.mubr.msk.f32.mxu1 %vm1251_vm0, %v7365_v52  ;;  %v21188_v52 = vld [vmem:[#allocation43_spill] sm:$0xff] }
0x176a   : > { %13477 = vmatmul.mubr.msk.f32.gmra.mrb[158].mxu1 %vm1251_vm0, %v13430_v15 }
0x176b   : > { %13479 = vmatprep.mubr.msk.f32.mxu1 %vm1251_vm0, %v19708_v50  ;;  %v15322_v50 = vunpack.i.h.bf16 %v19809_v4 }
0x176e   : > { %13480 = vmatmul.mubr.msk.f32.gmra.mrb[160].mxu1 %vm1251_vm0, %v19706_v21  ;;  %v8310_v21 = vpop.xlane.xlu1 %8309 }
0x176f   : > { %13482 = vmatprep.mubr.msk.f32.mxu1 %vm1251_vm0, %v19712_v43  ;;  %v15325_v43 = vpop.permute.xlu0 %15324 }
0x1772   : > { %13483 = vmatmul.mubr.msk.f32.gmra.mrb[162].mxu1 %vm1251_vm0, %v19710_v58  ;;  %v15321_v58 = vunpack.i.l.bf16 %v19809_v4  ;;  %v15330_v30 = vpop.permute.xlu1 %15329 }
0x1773   : > { %13485 = vmatprep.mubr.msk.f32.mxu1 %vm1251_vm0, %v19716_v37  ;;  %v15326_v37 = vunpack.i.l.bf16 %v15325_v43  ;;  %v15332_v4 = vunpack.i.h.bf16 %v15330_v30  ;;  %v15331_v26 = vunpack.i.l.bf16 %v15330_v30 }
0x1775   : > { %v14527_v53 = vpack.c.bf16 %v15332_v4, %v15331_v26 }
0x1776   : > { %13486 = vmatmul.mubr.msk.f32.gmra.mrb[164].mxu1 %vm1251_vm0, %v19714_v60  ;;  %v15327_v60 = vunpack.i.h.bf16 %v15325_v43 }
0x1777   : > { %13488 = vmatprep.mubr.msk.f32.mxu1 %vm1251_vm0, %v19720_v9  ;;  %15339 = vrot.lane.b32.xlu1 %v19016_v18, %s16418_s6  ;;  %v14519_v9 = vpack.c.bf16 %v15322_v50, %v15321_v58  ;;  %v21190_v50 = vld [vmem:[#allocation61_spill] sm:$0xff] }
0x1779   : > { %15334 = vrot.lane.b32.xlu0 %v18997_v6, %s16418_s6 }
0x177a   : > { %13489 = vmatmul.mubr.msk.f32.gmra.mrb[166].mxu1 %vm1251_vm0, %v19718_v54  ;;  %v8326_v54 = vsub.f32 %v19792_v38, %v8310_v21  ;;  %v21179_v38 = vld [vmem:[#allocation66_spill] sm:$0xff]  ;;  %v21189_v21 = vld [vmem:[#allocation33_spill] sm:$0xff] }
0x177b   : > { %13499 = vmatprep.mubr.msk.f32.mxu1 %vm1251_vm0, %v19407_v31  ;;  %15344 = vrot.lane.b32.xlu1 %v19026_v56, %s16418_s6  ;;  %v14523_v31 = vpack.c.bf16 %v15327_v60, %v15326_v37  ;;  %v21191_v60 = vld [vmem:[#allocation42_spill] sm:$0xff] }
0x177c   : > { %v21192_v37 = vld [vmem:[#allocation62_spill] sm:$0xff] }
0x177e   : > { %13500 = vmatmul.mubr.msk.f32.vlgmr.msra.gmra.mrb[152].mxu1 %vm1251_vm0, %v19405_v48  ;;  %v8357_v48 = vmul.f32 1.442695, %v8326_v54  ;;  %v21193_v54 = vld [vmem:[#allocation64_spill] sm:$0xff] }
0x177f   : > { %14518 = vmatpush3.bf16.msra.mxu1 %v14515_v7  ;;  %13502 = vmatprep.mubr.msk.f32.mxu1 %vm1251_vm0, %v19411_v36  ;;  %v8325_v36 = vsub.f32 %v19794_v5, %v8307_v40  ;;  %v21183_v5 = vld [vmem:[#allocation70_spill] sm:$0xff] }
0x1780   : > { %14520 = vmatprep.subr.bf16.mxu1 %v14519_v9  ;;  %15877 = vpow2.f32 %v8357_v48  ;;  %v8746_v48 = vld [vmem:[#allocation13 + $0x48] sm:$0xff] }
0x1782   : > { %13503 = vmatmul.mubr.msk.f32.gmra.mrb[154].mxu1 %vm1251_vm0, %v19409_v17  ;;  %v21178_v17 = vld [vmem:[#allocation73_spill] sm:$0xff] }
0x1783   : > { %14522 = vmatpush3.bf16.msra.mxu1 %v14519_v9  ;;  %13505 = vmatprep.mubr.msk.f32.mxu1 %vm1251_vm0, %v19415_v23  ;;  %v8355_v23 = vmul.f32 1.442695, %v8325_v36 }
0x1784   : > { %14524 = vmatprep.subr.bf16.mxu1 %v14523_v31 }
0x1785   : > { %15879 = vpow2.f32 %v8355_v23 }
0x1786   : > { %13506 = vmatmul.mubr.msk.f32.gmra.mrb[156].mxu1 %vm1251_vm0, %v19413_v12  ;;  %v21181_v12 = vld [vmem:[#allocation68_spill] sm:$0xff] }
0x1787   : > { %14526 = vmatpush3.bf16.msra.mxu1 %v14523_v31  ;;  %13508 = vmatprep.mubr.msk.f32.mxu1 %vm1251_vm0, %v19419_v45  ;;  %v21182_v45 = vld [vmem:[#allocation67_spill] sm:$0xff]  ;;  %v8745_v31 = vld [vmem:[#allocation13 + $0x40] sm:$0xff] }
0x1788   : > { %14528 = vmatprep.subr.bf16.mxu1 %v14527_v53 }
0x178a   : > { %13509 = vmatmul.mubr.msk.f32.gmra.mrb[158].mxu1 %vm1251_vm0, %v21178_v17  ;;  %v19944_v25 = vpop.eup %15877 }
0x178b   : > { %14530 = vmatpush3.bf16.msra.mxu1 %v14527_v53  ;;  %13511 = vmatprep.mubr.msk.f32.mxu1 %vm1251_vm0, %v21179_v38  ;;  %v8404_v7 = vsel %vm1558_vm2, %v19944_v25, 0.0  ;;  %v14547_v53 = vpack.c.bf16 %v8746_v48, %v8745_v31 }
0x178d   : > { %14548 = vmatprep.subr.bf16.mxu1 %v14547_v53 }
0x178e   : > { %13512 = vmatmul.mubr.msk.f32.gmra.mrb[160].mxu1 %vm1251_vm0, %v21180_v41  ;;  %v21195_v41 = vld [vmem:[#allocation58_spill] sm:$0xff] }
0x178f   : > { %13514 = vmatprep.mubr.msk.f32.mxu1 %vm1251_vm0, %v21181_v12  ;;  %v19954_v57 = vpop.eup %15879 }
0x1790   : > { %v8401_v24 = vsel %vm1558_vm2, %v19954_v57, 0.0 }
0x1792   : > { %13515 = vmatmul.mubr.msk.f32.gmra.mrb[162].mxu1 %vm1251_vm0, %v21182_v45 }
0x1793   : > { %13517 = vmatprep.mubr.msk.f32.mxu1 %vm1251_vm0, %v21183_v5  ;;  %v21199_v5 = vld [vmem:[#allocation60_spill] sm:$0xff] }
0x1796   : > { %13518 = vmatmul.mubr.msk.f32.gmra.mrb[164].mxu1 %vm1251_vm0, %v21184_v63 }
0x1797   : > { %13520 = vmatprep.mubr.msk.f32.mxu1 %vm1251_vm0, %v21185_v61  ;;  %v21200_v61 = vld [vmem:[#allocation55_spill] sm:$0xff] }
0x1798   : > { %8405 = vadd.xlane.f32.xlu0 %v8404_v7 }
0x179a   : > { %13521 = vmatmul.mubr.msk.f32.gmra.mrb[166].mxu1 %vm1251_vm0, %v21186_v11 }
0x179f   : > { %8402 = vadd.xlane.f32.xlu1 %v8401_v24 }
0x17ae   : > { %15364 = vrot.lane.b32.xlu0 %v21187_v51, %s16419_s8 }
0x17b0   : > { %v8364_v15 = vpop.xlane.xlu1 %8363  ;;  %15349 = vrot.lane.b32.xlu1 %v21188_v52, %s16418_s6  ;;  %s11006_s6 = sshll.u32 %s20756_s15, 4  ;;  %s20852_s6 = int_to_ptr.vmem [resolvable:$true] %s11006_s6 }
0x17b1   : > { %15881 = vrcp.f32 %v8364_v15  ;;  %v8361_v40 = vpop.xlane.xlu0 %8360  ;;  %v21201_v15 = vld [vmem:[#allocation30_spill] sm:$0xff]  ;;  %s16313_s27 = scalar_lea.vmem %s20852_s6, 2048 }
0x17b2   : > { %15883 = vrcp.f32 %v8361_v40  ;;  %8962 = vrot.lane.b32.xlu0 %v21189_v21, %s16419_s8  ;;  %p16314_p6 = scmp.ne.s32.totalorder %s20852_s6, %s16313_s27 }
0x17b4   : > { %15354 = vrot.lane.b32.xlu1 %v21190_v50, %s16419_s8  ;;  %p16315_p0 = pnand %p16314_p6, %p21230_p9 }
0x17b5   : > { %v8370_v58 = vpop.xlane.xlu1 %8369 }
0x17b6   : > { %15885 = vrcp.f32 %v8370_v58  ;;  %v8367_v43 = vpop.xlane.xlu0 %8366  ;;  %15384 = vrot.lane.b32.xlu0 %v21191_v60, %s16419_s8  ;;  %p16316_p5 = pneg %p16315_p0 }
0x17b7   : > { %15887 = vrcp.f32 %v8367_v43 }
0x17b8   : > { %15359 = vrot.lane.b32.xlu1 %v21192_v37, %s16419_s8 }
0x17ba   : > { %8968 = vrot.lane.b32.xlu0 %v18970_v16, %s16419_s8  ;;  %v21194_v16 = vld [vmem:[#allocation36_spill] sm:$0xff] }
0x17bb   : > { %v15882_v9 = vpop.eup %15881 }
0x17bc   : > { %v15884_v30 = vpop.eup %15883  ;;  %15369 = vrot.lane.b32.xlu1 %v21193_v54, %s16419_s8  ;;  %v8424_v26 = vmul.f32 %v15882_v9, %v19815_v34  ;;  %v8747_v34 = vld [vmem:[#allocation13 + $0x50] sm:$0xff] }
0x17bd   : > { %v8423_v4 = vmul.f32 %v15884_v30, %v19817_v20  ;;  %v8748_v20 = vld [vmem:[#allocation13 + $0x58] sm:$0xff] }
0x17be   : > { %8970 = vrot.lane.b32.xlu0 %v18988_v62, %s16419_s8  ;;  %v14551_v23 = vpack.c.bf16 %v8748_v20, %v8747_v34 }
0x17bf   : > { %13595 = vmatprep.mubr.msk.f32.mxu1 %vm1558_vm2, %v8423_v4 }
0x17c0   : > { %v15886_v36 = vpop.eup %15885  ;;  %13596 = vmatmul.mubr.msk.f32.vlgmr.msra.gmra.mrb[168].mxu1 %vm1558_vm2, %v8424_v26  ;;  %15374 = vrot.lane.b32.xlu1 %v21194_v16, %s16419_s8 }
0x17c1   : > { %v15888_v17 = vpop.eup %15887  ;;  %v8426_v38 = vmul.f32 %v15886_v36, %v19823_v1  ;;  %14550 = vmatpush3.bf16.msra.mxu1 %v14547_v53  ;;  %v21197_v1 = vld [vmem:[#allocation41_spill] sm:$0xff] }
0x17c2   : > { %9127 = vrot.lane.b32.xlu0 %v19038_v44, %s16419_s8  ;;  %v8425_v62 = vmul.f32 %v15888_v17, %v19825_v47  ;;  %14552 = vmatprep.subr.bf16.mxu1 %v14551_v23  ;;  %v21196_v44 = vld [vmem:[#allocation57_spill] sm:$0xff] }
0x17c4   : > { %13598 = vmatprep.mubr.msk.f32.mxu1 %vm1558_vm2, %v8425_v62  ;;  %8958 = vrot.lane.b32.xlu1 %v21195_v41, %s16419_s8 }
0x17c5   : > { %13599 = vmatmul.mubr.msk.f32.gmra.mrb[170].mxu1 %vm1558_vm2, %v8426_v38 }
0x17c6   : > { %9131 = vrot.lane.b32.xlu0 %v19058_v2, %s16419_s8  ;;  %14554 = vmatpush3.bf16.msra.mxu1 %v14551_v23 }
0x17c8   : > { %8960 = vrot.lane.b32.xlu1 %v21196_v44, %s16419_s8 }
0x17ca   : > { %9135 = vrot.lane.b32.xlu0 %v19068_v46, %s16419_s8 }
0x17cc   : > { %15379 = vrot.lane.b32.xlu1 %v21197_v1, %s16419_s8 }
0x17ce   : > { %9139 = vrot.lane.b32.xlu0 %v19078_v49, %s16419_s8 }
0x17d0   : > { %8964 = vrot.lane.b32.xlu1 %v18946_v28, %s16419_s8 }
0x17d2   : > { %15399 = vrot.lane.b32.xlu0 %v21177_v32, %s16419_s8 }
0x17d4   : > { %8966 = vrot.lane.b32.xlu1 %v18967_v3, %s16419_s8 }
0x17d6   : > { %15409 = vrot.lane.b32.xlu0 %v21176_v29, %s16419_s8 }
0x17d7   : > { %v8376_v2 = vpop.xlane.xlu1 %8375 }
0x17d8   : > { %15889 = vrcp.f32 %v8376_v2  ;;  %15389 = vrot.lane.b32.xlu1 %v19033_v13, %s16419_s8  ;;  %v8373_v46 = vpop.xlane.xlu0 %8372 }
0x17d9   : > { %15891 = vrcp.f32 %v8373_v46 }
0x17dc   : > { %8972 = vrot.lane.b32.xlu1 %v18991_v19, %s16419_s8 }
0x17de   : > { %v8382_v28 = vpop.xlane.xlu1 %8381 }
0x17df   : > { %15893 = vrcp.f32 %v8382_v28 }
0x17e0   : > { %9129 = vrot.lane.b32.xlu1 %v21173_v0, %s16419_s8  ;;  %v21198_v0 = vld [vmem:[#allocation59_spill] sm:$0xff] }
0x17e2   : > { %v15890_v49 = vpop.eup %15889  ;;  %v8379_v3 = vpop.xlane.xlu1 %8378 }
0x17e3   : > { %v15892_v32 = vpop.eup %15891  ;;  %15895 = vrcp.f32 %v8379_v3  ;;  %v8428_v13 = vmul.f32 %v15890_v49, %v19835_v8 }
0x17e4   : > { %9133 = vrot.lane.b32.xlu1 %v19061_v42, %s16419_s8  ;;  %v8427_v29 = vmul.f32 %v15892_v32, %v19837_v27 }
0x17e6   : > { %v8388_v47 = vpop.xlane.xlu1 %8387  ;;  %13601 = vmatprep.mubr.msk.f32.mxu1 %vm1558_vm2, %v8427_v29 }
0x17e7   : > { %v8385_v19 = vpop.xlane.xlu0 %8384  ;;  %13602 = vmatmul.mubr.msk.f32.gmra.mrb[172].mxu1 %vm1558_vm2, %v8428_v13 }
0x17e8   : > { %15897 = vrcp.f32 %v8385_v19  ;;  %9137 = vrot.lane.b32.xlu1 %v21198_v0, %s16419_s8 }
0x17e9   : > { %v15894_v45 = vpop.eup %15893  ;;  %15899 = vrcp.f32 %v8388_v47 }
0x17ea   : > { %v8430_v8 = vmul.f32 %v15894_v45, %v19846_v55 }
0x17eb   : > { %v8394_v12 = vpop.xlane.xlu1 %8393 }
0x17ec   : > { %9141 = vrot.lane.b32.xlu1 %v21199_v5, %s16419_s8 }
0x17ed   : > { %v15896_v42 = vpop.eup %15895 }
0x17ee   : > { %v8429_v27 = vmul.f32 %v15896_v42, %v19851_v22 }
0x17ef   : > { %v8391_v63 = vpop.xlane.xlu1 %8390 }
0x17f0   : > { %15394 = vrot.lane.b32.xlu1 %v21200_v61, %s16419_s8  ;;  %v8397_v7 = vpop.xlane.xlu0 %8396  ;;  %13604 = vmatprep.mubr.msk.f32.mxu1 %vm1558_vm2, %v8429_v27  ;;  %15901 = vrcp.f32 %v8391_v63 }
0x17f1   : > { %13605 = vmatmul.mubr.msk.f32.gmra.mrb[174].mxu1 %vm1558_vm2, %v8430_v8  ;;  %15903 = vrcp.f32 %v8394_v12 }
0x17f2   : > { %v15898_v11 = vpop.eup %15897  ;;  %15905 = vrcp.f32 %v8397_v7 }
0x17f3   : > { %v8400_v24 = vpop.xlane.xlu1 %8399  ;;  %v8431_v51 = vmul.f32 %v15898_v11, %v19859_v59  ;;  %v15900_v36 = vpop.eup %15899 }
0x17f4   : > { %15404 = vrot.lane.b32.xlu1 %v21201_v15, %s16419_s8  ;;  %v15335_v40 = vpop.permute.xlu0 %15334  ;;  %15907 = vrcp.f32 %v8400_v24  ;;  %v8432_v34 = vmul.f32 %v15900_v36, %v19857_v35 }
0x17f5   : > { %v15337_v22 = vunpack.i.h.bf16 %v15335_v40  ;;  %v15336_v21 = vunpack.i.l.bf16 %v15335_v40  ;;  %13623 = vmatprep.mubr.msk.f32.mxu0 %vm1558_vm2, %v8431_v51 }
0x17f7   : > { %v15340_v55 = vpop.permute.xlu1 %15339  ;;  %v14531_v50 = vpack.c.bf16 %v15337_v22, %v15336_v21 }
0x17f8   : > { %v15342_v58 = vunpack.i.h.bf16 %v15340_v55  ;;  %v15341_v43 = vunpack.i.l.bf16 %v15340_v55 }
0x17f9   : > { %14532 = vmatprep.subr.bf16.mxu0 %v14531_v50 }
0x17fa   : > { %14534 = vmatpush3.bf16.msra.mxu0 %v14531_v50  ;;  %v14535_v60 = vpack.c.bf16 %v15342_v58, %v15341_v43  ;;  %v15902_v17 = vpop.eup %15901 }
0x17fb   : > { %v15345_v37 = vpop.permute.xlu1 %15344  ;;  %v15904_v23 = vpop.eup %15903  ;;  %v8433_v1 = vmul.f32 %v15902_v17, %v19870_v39 }
0x17fc   : > { %v15347_v9 = vunpack.i.h.bf16 %v15345_v37  ;;  %v15346_v30 = vunpack.i.l.bf16 %v15345_v37  ;;  %14536 = vmatprep.subr.bf16.mxu0 %v14535_v60  ;;  %v15906_v2 = vpop.eup %15905  ;;  %v8434_v3 = vmul.f32 %v15904_v23, %v19865_v33 }
0x17fd   : > { %v8435_v29 = vmul.f32 %v15906_v2, %v19876_v14 }
0x17fe   : > { %14538 = vmatpush3.bf16.msra.mxu0 %v14535_v60  ;;  %v14539_v59 = vpack.c.bf16 %v15347_v9, %v15346_v30  ;;  %v15908_v32 = vpop.eup %15907 }
0x17ff   : > { %v8436_v19 = vmul.f32 %v15908_v32, %v19881_v10 }
0x1800   : > { %14540 = vmatprep.subr.bf16.mxu0 %v14539_v59 }
0x1802   : > { %14542 = vmatpush3.bf16.msra.mxu0 %v14539_v59 }
0x1825   : > { %v8406_v48 = vpop.xlane.xlu0 %8405 }
0x1829   : > { %v15365_v41 = vpop.permute.xlu0 %15364 }
0x182a   : > { %v15367_v5 = vunpack.i.h.bf16 %v15365_v41  ;;  %v15366_v42 = vunpack.i.l.bf16 %v15365_v41 }
0x182c   : > { %v8403_v54 = vpop.xlane.xlu1 %8402 }
0x182d   : > { %15909 = vrcp.f32 %v8403_v54  ;;  %v8963_v39 = vpop.permute.xlu0 %8962 }
0x182e   : > { %15911 = vrcp.f32 %v8406_v48 }
0x1830   : > { %v15350_v4 = vpop.permute.xlu1 %15349 }
0x1831   : > { %v15352_v26 = vunpack.i.h.bf16 %v15350_v4  ;;  %v15351_v31 = vunpack.i.l.bf16 %v15350_v4  ;;  %v20055_v10 = vpop.permute.xlu0 %15384 }
0x1833   : > { %v14543_v53 = vpack.c.bf16 %v15352_v26, %v15351_v31 }
0x1834   : > { %v15355_v16 = vpop.permute.xlu1 %15354 }
0x1835   : > { %v15357_v38 = vunpack.i.h.bf16 %v15355_v16  ;;  %v15356_v62 = vunpack.i.l.bf16 %v15355_v16  ;;  %14544 = vmatprep.subr.bf16.mxu0 %v14543_v53 }
0x1836   : > { %14546 = vmatpush3.bf16.msra.mxu0 %v14543_v53 }
0x1837   : > { %v14555_v20 = vpack.c.bf16 %v15357_v38, %v15356_v62  ;;  %v15910_v13 = vpop.eup %15909 }
0x1838   : > { %v15360_v44 = vpop.permute.xlu1 %15359  ;;  %v15912_v0 = vpop.eup %15911  ;;  %v8437_v33 = vmul.f32 %v15910_v13, %v19954_v57  ;;  %v14567_v57 = vpack.c.bf16 %v15367_v5, %v15366_v42  ;;  %v15386_v13 = vunpack.i.l.bf16 %v20055_v10 }
0x1839   : > { %13624 = vmatmul.mubr.msk.f32.vlgmr.msra.gmra.mrb[168].mxu0 %vm1558_vm2, %v8432_v34  ;;  %14557 = vmatprep.subr.msk.bf16.mxu0 %vm16962_vm1, %v14555_v20  ;;  %v15362_v28 = vunpack.i.h.bf16 %v15360_v44  ;;  %v15361_v49 = vunpack.i.l.bf16 %v15360_v44  ;;  %v8438_v63 = vmul.f32 %v15912_v0, %v19944_v25  ;;  %v8969_v25 = vpop.permute.xlu0 %8968 }
0x183a   : > { %13626 = vmatprep.mubr.msk.f32.mxu0 %vm1558_vm2, %v8433_v1 }
0x183b   : > { %v14561_v47 = vpack.c.bf16 %v15362_v28, %v15361_v49 }
0x183c   : > { %v15370_v35 = vpop.permute.xlu1 %15369 }
0x183d   : > { %13627 = vmatmul.mubr.msk.f32.gmra.mrb[170].mxu0 %vm1558_vm2, %v8434_v3  ;;  %v15372_v7 = vunpack.i.h.bf16 %v15370_v35  ;;  %v15371_v11 = vunpack.i.l.bf16 %v15370_v35  ;;  %v8971_v15 = vpop.permute.xlu0 %8970 }
0x183e   : > { %13629 = vmatprep.mubr.msk.f32.mxu0 %vm1558_vm2, %v8435_v29  ;;  %v15387_v29 = vunpack.i.h.bf16 %v20055_v10 }
0x183f   : > { %14560 = vmatpush3.bf16.xpose.msk.msra.mxu0 %vm16962_vm1, %v14555_v20  ;;  %v14573_v51 = vpack.c.bf16 %v15372_v7, %v15371_v11 }
0x1840   : > { %v15375_v12 = vpop.permute.xlu1 %15374  ;;  %14563 = vmatprep.subr.msk.bf16.mxu0 %vm16962_vm1, %v14561_v47 }
0x1841   : > { %v15377_v14 = vunpack.i.h.bf16 %v15375_v12  ;;  %v15376_v45 = vunpack.i.l.bf16 %v15375_v12  ;;  %13630 = vmatmul.mubr.msk.f32.gmra.mrb[172].mxu0 %vm1558_vm2, %v8436_v19  ;;  %v20070_v21 = vpop.permute.xlu0 %9127 }
0x1842   : > { %13632 = vmatprep.mubr.msk.f32.mxu0 %vm1558_vm2, %v8437_v33 }
0x1843   : > { %v20052_v27 = vpack.c.bf16 %v15377_v14, %v15376_v45 }
0x1844   : > { %v8959_v8 = vpop.permute.xlu1 %8958 }
0x1845   : > { %13633 = vmatmul.mubr.msk.f32.gmra.mrb[174].mxu0 %vm1558_vm2, %v8438_v63  ;;  %14581 = vmatprep.subr.msk.bf16.mxu1 %vm16962_vm1, %v20052_v27  ;;  %v20074_v50 = vpop.permute.xlu0 %9131 }
0x1846   : > { %13683 = vmatprep.mubr.msk.f32.mxu0 %vm1251_vm0, %v8959_v8 }
0x1847   : > { %14566 = vmatpush3.bf16.xpose.msk.msra.mxu0 %vm16962_vm1, %v14561_v47 }
0x1848   : > { %v8961_v61 = vpop.permute.xlu1 %8960  ;;  %14569 = vmatprep.subr.msk.bf16.mxu0 %vm16962_vm1, %v14567_v57 }
0x1849   : > { %v20080_v60 = vpop.permute.xlu0 %9135 }
0x184c   : > { %v15380_v24 = vpop.permute.xlu1 %15379 }
0x184d   : > { %v20088_v9 = vpop.permute.xlu0 %9139  ;;  %v15382_v1 = vunpack.i.h.bf16 %v15380_v24  ;;  %v15381_v2 = vunpack.i.l.bf16 %v15380_v24 }
0x184f   : > { %14572 = vmatpush3.bf16.xpose.msk.msra.mxu0 %vm16962_vm1, %v14567_v57  ;;  %v14585_v3 = vpack.c.bf16 %v15382_v1, %v15381_v2 }
0x1850   : > { %v8965_v40 = vpop.permute.xlu1 %8964  ;;  %14575 = vmatprep.subr.msk.bf16.mxu0 %vm16962_vm1, %v14573_v51 }
0x1851   : > { %v15400_v54 = vpop.permute.xlu0 %15399 }
0x1852   : > { %v15402_v26 = vunpack.i.h.bf16 %v15400_v54  ;;  %v15401_v31 = vunpack.i.l.bf16 %v15400_v54 }
0x1854   : > { %v8967_v22 = vpop.permute.xlu1 %8966  ;;  %v14607_v62 = vpack.c.bf16 %v15402_v26, %v15401_v31 }
0x1855   : > { %v15410_v34 = vpop.permute.xlu0 %15409 }
0x1856   : > { %v15412_v20 = vunpack.i.h.bf16 %v15410_v34  ;;  %v15411_v23 = vunpack.i.l.bf16 %v15410_v34 }
0x1857   : > { %14578 = vmatpush3.bf16.xpose.msk.msra.mxu0 %vm16962_vm1, %v14573_v51 }
0x1858   : > { %v15390_v55 = vpop.permute.xlu1 %15389  ;;  %v14615_v44 = vpack.c.bf16 %v15412_v20, %v15411_v23 }
0x1859   : > { %v15392_v47 = vunpack.i.h.bf16 %v15390_v55  ;;  %v15391_v19 = vunpack.i.l.bf16 %v15390_v55 }
0x185b   : > { %v14597_v0 = vpack.c.bf16 %v15392_v47, %v15391_v19 }
0x185c   : > { %v8973_v58 = vpop.permute.xlu1 %8972 }
0x185e   : > { %13684 = vmatmul.mubr.msk.f32.vlgmr.msra.gmra.mrb[176].mxu0 %vm1251_vm0, %v8961_v61 }
0x185f   : > { %13686 = vmatprep.mubr.msk.f32.mxu0 %vm1251_vm0, %v8963_v39  ;;  %v14591_v39 = vpack.c.bf16 %v15387_v29, %v15386_v13 }
0x1860   : > { %v20078_v43 = vpop.permute.xlu1 %9129 }
0x1862   : > { %13687 = vmatmul.mubr.msk.f32.gmra.mrb[178].mxu0 %vm1251_vm0, %v8965_v40 }
0x1863   : > { %13689 = vmatprep.mubr.msk.f32.mxu0 %vm1251_vm0, %v8967_v22 }
0x1864   : > { %v20084_v37 = vpop.permute.xlu1 %9133 }
0x1866   : > { %13690 = vmatmul.mubr.msk.f32.gmra.mrb[180].mxu0 %vm1251_vm0, %v8969_v25 }
0x1867   : > { %13692 = vmatprep.mubr.msk.f32.mxu0 %vm1251_vm0, %v8971_v15 }
0x1868   : > { %v20090_v30 = vpop.permute.xlu1 %9137 }
0x186a   : > { %13693 = vmatmul.mubr.msk.f32.gmra.mrb[182].mxu0 %vm1251_vm0, %v8973_v58 }
0x186c   : > { %v20093_v59 = vpop.permute.xlu1 %9141 }
0x1870   : > { %v15395_v4 = vpop.permute.xlu1 %15394 }
0x1871   : > { %v15397_v48 = vunpack.i.h.bf16 %v15395_v4  ;;  %v15396_v53 = vunpack.i.l.bf16 %v15395_v4 }
0x1873   : > { %v14603_v36 = vpack.c.bf16 %v15397_v48, %v15396_v53 }
0x1874   : > { %v15405_v16 = vpop.permute.xlu1 %15404 }
0x1875   : > { %v15407_v17 = vunpack.i.h.bf16 %v15405_v16  ;;  %v15406_v38 = vunpack.i.l.bf16 %v15405_v16  ;;  %14604 = vmatprep.subr.bf16.mxu0 %v14603_v36 }
0x1876   : > { %14606 = vmatpush3.bf16.msra.mxu0 %v14603_v36 }
0x1877   : > { %14608 = vmatprep.subr.bf16.mxu0 %v14607_v62  ;;  %v14611_v41 = vpack.c.bf16 %v15407_v17, %v15406_v38 }
0x187a   : > { %14610 = vmatpush3.bf16.msra.mxu0 %v14607_v62 }
0x187b   : > { %14612 = vmatprep.subr.bf16.mxu0 %v14611_v41 }
0x187e   : > { %14614 = vmatpush3.bf16.msra.mxu0 %v14611_v41 }
0x187f   : > { %14616 = vmatprep.subr.bf16.mxu0 %v14615_v44 }
0x1882   : > { %14618 = vmatpush3.bf16.msra.mxu0 %v14615_v44 }
0x1893   : > { %v13597_v28 = vpop.f32.mrb[168].mxu1 }
0x1894   : > { %v8553_v49 = vpop.f32.mrb[169].mxu1 }
0x1895   : > { %13643 = vmatprep.mubr.msk.f32.mxu1 %vm1251_vm0, %v8553_v49 }
0x1896   : > { %13644 = vmatmul.mubr.msk.f32.vlgmr.msra.gmra.mrb[152].mxu1 %vm1251_vm0, %v13597_v28 }
0x1897   : > { %14584 = vmatpush3.bf16.xpose.msk.msra.mxu1 %vm16962_vm1, %v20052_v27 }
0x1898   : > { %v13600_v32 = vpop.f32.mrb[170].mxu1  ;;  %14587 = vmatprep.subr.msk.bf16.mxu1 %vm16962_vm1, %v14585_v3 }
0x1899   : > { %v8563_v35 = vpop.f32.mrb[171].mxu1 }
0x189a   : > { %13646 = vmatprep.mubr.msk.f32.mxu1 %vm1251_vm0, %v8563_v35 }
0x189b   : > { %13647 = vmatmul.mubr.msk.f32.gmra.mrb[154].mxu1 %vm1251_vm0, %v13600_v32 }
0x189f   : > { %14590 = vmatpush3.bf16.xpose.msk.msra.mxu1 %vm16962_vm1, %v14585_v3 }
0x18a0   : > { %14593 = vmatprep.subr.msk.bf16.mxu1 %vm16962_vm1, %v14591_v39 }
0x18a7   : > { %14596 = vmatpush3.bf16.xpose.msk.msra.mxu1 %vm16962_vm1, %v14591_v39 }
0x18a8   : > { %14599 = vmatprep.subr.msk.bf16.mxu1 %vm16962_vm1, %v14597_v0 }
0x18af   : > { %14602 = vmatpush3.bf16.xpose.msk.msra.mxu1 %vm16962_vm1, %v14597_v0 }
0x18ba   : > { %v13603_v12 = vpop.f32.mrb[172].mxu1 }
0x18bb   : > { %v8573_v33 = vpop.f32.mrb[173].mxu1 }
0x18bc   : > { %13649 = vmatprep.mubr.msk.f32.mxu1 %vm1251_vm0, %v8573_v33 }
0x18bd   : > { %13650 = vmatmul.mubr.msk.f32.gmra.mrb[156].mxu1 %vm1251_vm0, %v13603_v12 }
0x18c4   : > { %v13606_v14 = vpop.f32.mrb[174].mxu1 }
0x18c5   : > { %v8583_v45 = vpop.f32.mrb[175].mxu1 }
0x18c6   : > { %13652 = vmatprep.mubr.msk.f32.mxu1 %vm1251_vm0, %v8583_v45 }
0x18c7   : > { %13653 = vmatmul.mubr.msk.f32.gmra.mrb[158].mxu1 %vm1251_vm0, %v13606_v14 }
0x190c   : > { %v13625_v5 = vpop.f32.mrb[168].mxu0 }
0x190d   : > { %v8706_v42 = vpop.f32.mrb[169].mxu0 }
0x190e   : > { %13655 = vmatprep.mubr.msk.f32.mxu1 %vm1251_vm0, %v8706_v42 }
0x190f   : > { %13656 = vmatmul.mubr.msk.f32.gmra.mrb[160].mxu1 %vm1251_vm0, %v13625_v5 }
0x1910   : > { %v13628_v46 = vpop.f32.mrb[170].mxu0 }
0x1911   : > { %v8716_v27 = vpop.f32.mrb[171].mxu0 }
0x1912   : > { %13658 = vmatprep.mubr.msk.f32.mxu1 %vm1251_vm0, %v8716_v27 }
0x1913   : > { %13659 = vmatmul.mubr.msk.f32.gmra.mrb[162].mxu1 %vm1251_vm0, %v13628_v46 }
0x1914   : > { %v13631_v63 = vpop.f32.mrb[172].mxu0 }
0x1915   : > { %v8726_v10 = vpop.f32.mrb[173].mxu0 }
0x1916   : > { %13661 = vmatprep.mubr.msk.f32.mxu1 %vm1251_vm0, %v8726_v10 }
0x1917   : > { %13662 = vmatmul.mubr.msk.f32.gmra.mrb[164].mxu1 %vm1251_vm0, %v13631_v63 }
0x1918   : > { %v13634_v8 = vpop.f32.mrb[174].mxu0 }
0x1919   : > { %v8736_v57 = vpop.f32.mrb[175].mxu0 }
0x191a   : > { %13664 = vmatprep.mubr.msk.f32.mxu1 %vm1251_vm0, %v8736_v57 }
0x191b   : > { %13665 = vmatmul.mubr.msk.f32.gmra.mrb[166].mxu1 %vm1251_vm0, %v13634_v8 }
0x191c   : > { %13711 = vmatprep.mubr.msk.f32.mxu1 %vm1251_vm0, %v20070_v21 }
0x191f   : > { %13712 = vmatmul.mubr.msk.f32.vlgmr.msra.gmra.mrb[176].mxu1 %vm1251_vm0, %v20078_v43 }
0x1920   : > { %13714 = vmatprep.mubr.msk.f32.mxu1 %vm1251_vm0, %v20074_v50 }
0x1923   : > { %13715 = vmatmul.mubr.msk.f32.gmra.mrb[178].mxu1 %vm1251_vm0, %v20084_v37 }
0x1924   : > { %13717 = vmatprep.mubr.msk.f32.mxu1 %vm1251_vm0, %v20080_v60 }
0x1927   : > { %13718 = vmatmul.mubr.msk.f32.gmra.mrb[180].mxu1 %vm1251_vm0, %v20090_v30 }
0x1928   : > { %13720 = vmatprep.mubr.msk.f32.mxu1 %vm1251_vm0, %v20088_v9 }
0x192b   : > { %13721 = vmatmul.mubr.msk.f32.gmra.mrb[182].mxu1 %vm1251_vm0, %v20093_v59 }
0x1931   : > { %v13685_v61 = vpop.f32.mrb[176].mxu0 }
0x1932   : > { %v9088_v25 = vpop.f32.mrb[177].mxu0  ;;  %v9299_v7 = vsel %vm1558_vm2, %v13685_v61, -inf }
0x1933   : > { %9300 = vmax.xlane.f32.xlu1 %v9299_v7  ;;  %v9296_v11 = vsel %vm1558_vm2, %v9088_v25, -inf }
0x1934   : > { %9297 = vmax.xlane.f32.xlu0 %v9296_v11 }
0x1935   : > { %v13688_v24 = vpop.f32.mrb[178].mxu0 }
0x1936   : > { %v9098_v51 = vpop.f32.mrb[179].mxu0  ;;  %v9305_v15 = vsel %vm1558_vm2, %v13688_v24, -inf }
0x1937   : > { %v9302_v21 = vsel %vm1558_vm2, %v9098_v51, -inf }
0x1938   : > { %9306 = vmax.xlane.f32.xlu0 %v9305_v15 }
0x1939   : > { %v13691_v40 = vpop.f32.mrb[180].mxu0 }
0x193a   : > { %v9108_v22 = vpop.f32.mrb[181].mxu0  ;;  %v9311_v43 = vsel %vm1558_vm2, %v13691_v40, -inf }
0x193b   : > { %v9308_v55 = vsel %vm1558_vm2, %v9108_v22, -inf }
0x193c   : > { %9303 = vmax.xlane.f32.xlu0 %v9302_v21  ;;  %9309 = vmax.xlane.f32.xlu1 %v9308_v55 }
0x193d   : > { %v13694_v50 = vpop.f32.mrb[182].mxu0 }
0x193e   : > { %v9118_v58 = vpop.f32.mrb[183].mxu0  ;;  %v9317_v37 = vsel %vm1558_vm2, %v13694_v50, -inf }
0x193f   : > { %v9314_v60 = vsel %vm1558_vm2, %v9118_v58, -inf }
0x1940   : > { %9312 = vmax.xlane.f32.xlu0 %v9311_v43  ;;  %9315 = vmax.xlane.f32.xlu1 %v9314_v60 }
0x1944   : > { %9318 = vmax.xlane.f32.xlu0 %v9317_v37 }
0x19c0   : > { %v9301_v9 = vpop.xlane.xlu1 %9300 }
0x19c1   : > { %v9345_v30 = vsub.f32 %v13685_v61, %v9301_v9  ;;  %v9298_v59 = vpop.xlane.xlu0 %9297 }
0x19c2   : > { %v9344_v54 = vsub.f32 %v9088_v25, %v9298_v59 }
0x19c3   : > { %v9362_v4 = vmul.f32 1.442695, %v9345_v30 }
0x19c4   : > { %v9360_v26 = vmul.f32 1.442695, %v9344_v54 }
0x19c5   : > { %15913 = vpow2.f32 %v9362_v4  ;;  %v9307_v31 = vpop.xlane.xlu0 %9306 }
0x19c6   : > { %15915 = vpow2.f32 %v9360_v26  ;;  %v9347_v48 = vsub.f32 %v13688_v24, %v9307_v31 }
0x19c8   : > { %v9366_v53 = vmul.f32 1.442695, %v9347_v48 }
0x19c9   : > { %v9304_v36 = vpop.xlane.xlu0 %9303  ;;  %v9310_v16 = vpop.xlane.xlu1 %9309 }
0x19ca   : > { %15917 = vpow2.f32 %v9366_v53  ;;  %v9346_v17 = vsub.f32 %v9098_v51, %v9304_v36  ;;  %v9348_v38 = vsub.f32 %v9108_v22, %v9310_v16 }
0x19cc   : > { %v9364_v62 = vmul.f32 1.442695, %v9346_v17  ;;  %v9368_v34 = vmul.f32 1.442695, %v9348_v38 }
0x19cd   : > { %v9313_v20 = vpop.xlane.xlu0 %9312  ;;  %v9316_v23 = vpop.xlane.xlu1 %9315 }
0x19ce   : > { %15919 = vpow2.f32 %v9364_v62  ;;  %v9349_v41 = vsub.f32 %v13691_v40, %v9313_v20  ;;  %v9350_v44 = vsub.f32 %v9118_v58, %v9316_v23 }
0x19cf   : > { %v20152_v1 = vpop.eup %15913  ;;  %15921 = vpow2.f32 %v9368_v34 }
0x19d0   : > { %v20154_v2 = vpop.eup %15915  ;;  %v9370_v28 = vmul.f32 1.442695, %v9349_v41  ;;  %v9372_v49 = vmul.f32 1.442695, %v9350_v44  ;;  %v9395_v3 = vsel %vm1558_vm2, %v20152_v1, 0.0  ;;  %v21203_v44 = vmov 0.0  }
0x19d1   : > { %9396 = vadd.xlane.f32.xlu0 %v9395_v3  ;;  %v9319_v32 = vpop.xlane.xlu0 %9318  ;;  %v9392_v35 = vsel %vm1558_vm2, %v20154_v2, 0.0 }
0x19d2   : > { %15923 = vpow2.f32 %v9370_v28  ;;  %v9351_v29 = vsub.f32 %v13694_v50, %v9319_v32  ;;  %9393 = vadd.xlane.f32.xlu1 %v9392_v35 }
0x19d3   : > { %15925 = vpow2.f32 %v9372_v49 }
0x19d4   : > { %v20160_v13 = vpop.eup %15917  ;;  %v9374_v39 = vmul.f32 1.442695, %v9351_v29 }
0x19d5   : > { %v9401_v47 = vsel %vm1558_vm2, %v20160_v13, 0.0 }
0x19d6   : > { %15927 = vpow2.f32 %v9374_v39  ;;  %9402 = vadd.xlane.f32.xlu0 %v9401_v47 }
0x19d8   : > { %v20164_v19 = vpop.eup %15919 }
0x19d9   : > { %v9398_v0 = vsel %vm1558_vm2, %v20164_v19, 0.0  ;;  %v20168_v12 = vpop.eup %15921 }
0x19da   : > { %9399 = vadd.xlane.f32.xlu1 %v9398_v0  ;;  %v9404_v45 = vsel %vm1558_vm2, %v20168_v12, 0.0 }
0x19dc   : > { %v20170_v33 = vpop.eup %15923 }
0x19dd   : > { %v9407_v14 = vsel %vm1558_vm2, %v20170_v33, 0.0  ;;  %v20176_v5 = vpop.eup %15925 }
0x19de   : > { %9408 = vadd.xlane.f32.xlu0 %v9407_v14  ;;  %9405 = vadd.xlane.f32.xlu1 %v9404_v45  ;;  %v9410_v27 = vsel %vm1558_vm2, %v20176_v5, 0.0 }
0x19e0   : > { %v20178_v42 = vpop.eup %15927 }
0x19e1   : > { %v9413_v46 = vsel %vm1558_vm2, %v20178_v42, 0.0 }
0x19e2   : > { %9414 = vadd.xlane.f32.xlu0 %v9413_v46  ;;  %9411 = vadd.xlane.f32.xlu1 %v9410_v27 }
0x19f2   : > { %v20184_v63 = vpop.f32.mrb[176].mxu1 }
0x19f3   : > { %v20186_v10 = vpop.f32.mrb[177].mxu1  ;;  %v9323_v8 = vsel %vm1558_vm2, %v20184_v63, -inf }
0x19f4   : > { %9324 = vmax.xlane.f32.xlu0 %v9323_v8  ;;  %v9320_v57 = vsel %vm1558_vm2, %v20186_v10, -inf }
0x19f5   : > { %9321 = vmax.xlane.f32.xlu1 %v9320_v57 }
0x19f6   : > { %v20192_v61 = vpop.f32.mrb[178].mxu1 }
0x19f7   : > { %v20194_v25 = vpop.f32.mrb[179].mxu1  ;;  %v9329_v7 = vsel %vm1558_vm2, %v20192_v61, -inf }
0x19f8   : > { %9330 = vmax.xlane.f32.xlu0 %v9329_v7  ;;  %v9326_v11 = vsel %vm1558_vm2, %v20194_v25, -inf }
0x19f9   : > { %9327 = vmax.xlane.f32.xlu1 %v9326_v11 }
0x19fa   : > { %v20200_v24 = vpop.f32.mrb[180].mxu1 }
0x19fb   : > { %v20202_v51 = vpop.f32.mrb[181].mxu1  ;;  %v9335_v15 = vsel %vm1558_vm2, %v20200_v24, -inf }
0x19fc   : > { %9336 = vmax.xlane.f32.xlu0 %v9335_v15  ;;  %v9332_v40 = vsel %vm1558_vm2, %v20202_v51, -inf }
0x19fd   : > { %9333 = vmax.xlane.f32.xlu1 %v9332_v40 }
0x19fe   : > { %v20208_v22 = vpop.f32.mrb[182].mxu1 }
0x19ff   : > { %v20210_v21 = vpop.f32.mrb[183].mxu1  ;;  %v9341_v55 = vsel %vm1558_vm2, %v20208_v22, -inf }
0x1a00   : > { %9342 = vmax.xlane.f32.xlu0 %v9341_v55  ;;  %v9338_v50 = vsel %vm1558_vm2, %v20210_v21, -inf }
0x1a01   : > { %9339 = vmax.xlane.f32.xlu1 %v9338_v50 }
0x1a12   : > { %15414 = vrot.lane.b32.xlu1 %v18997_v6, %s16419_s8 }
0x1a16   : > { %15419 = vrot.lane.b32.xlu0 %v19016_v18, %s16419_s8 }
0x1a5e   : > { %v9397_v58 = vpop.xlane.xlu0 %9396 }
0x1a5f   : > { %15929 = vrcp.f32 %v9397_v58  ;;  %v9394_v43 = vpop.xlane.xlu1 %9393 }
0x1a60   : > { %15931 = vrcp.f32 %v9394_v43 }
0x1a63   : > { %v9403_v60 = vpop.xlane.xlu0 %9402 }
0x1a64   : > { %15933 = vrcp.f32 %v9403_v60 }
0x1a67   : > { %v9400_v37 = vpop.xlane.xlu1 %9399 }
0x1a68   : > { %15935 = vrcp.f32 %v9400_v37 }
0x1a69   : > { %v15930_v9 = vpop.eup %15929 }
0x1a6a   : > { %v15932_v30 = vpop.eup %15931  ;;  %v9457_v26 = vmul.f32 %v15930_v9, %v20152_v1 }
0x1a6b   : > { %v9409_v59 = vpop.xlane.xlu0 %9408  ;;  %v9406_v54 = vpop.xlane.xlu1 %9405  ;;  %v9456_v4 = vmul.f32 %v15932_v30, %v20154_v2 }
0x1a6c   : > { %15937 = vrcp.f32 %v9409_v59 }
0x1a6d   : > { %15939 = vrcp.f32 %v9406_v54  ;;  %13739 = vmatprep.mubr.msk.f32.mxu0 %vm1558_vm2, %v9456_v4 }
0x1a6e   : > { %13740 = vmatmul.mubr.msk.f32.vlgmr.msra.gmra.mrb[184].mxu0 %vm1558_vm2, %v9457_v26  ;;  %v15934_v31 = vpop.eup %15933 }
0x1a6f   : > { %v9415_v6 = vpop.xlane.xlu0 %9414  ;;  %v9412_v18 = vpop.xlane.xlu1 %9411  ;;  %v9459_v36 = vmul.f32 %v15934_v31, %v20160_v13 }
0x1a70   : > { %15941 = vrcp.f32 %v9415_v6 }
0x1a71   : > { %15943 = vrcp.f32 %v9412_v18 }
0x1a72   : > { %v15936_v48 = vpop.eup %15935 }
0x1a73   : > { %v9458_v53 = vmul.f32 %v15936_v48, %v20164_v19 }
0x1a75   : > { %13742 = vmatprep.mubr.msk.f32.mxu0 %vm1558_vm2, %v9458_v53 }
0x1a76   : > { %v15938_v16 = vpop.eup %15937  ;;  %13743 = vmatmul.mubr.msk.f32.gmra.mrb[186].mxu0 %vm1558_vm2, %v9459_v36 }
0x1a77   : > { %v15940_v17 = vpop.eup %15939  ;;  %v9461_v38 = vmul.f32 %v15938_v16, %v20170_v33 }
0x1a78   : > { %v9460_v62 = vmul.f32 %v15940_v17, %v20168_v12 }
0x1a7a   : > { %v15942_v34 = vpop.eup %15941  ;;  %13745 = vmatprep.mubr.msk.f32.mxu0 %vm1558_vm2, %v9460_v62 }
0x1a7b   : > { %v15944_v20 = vpop.eup %15943  ;;  %13746 = vmatmul.mubr.msk.f32.gmra.mrb[188].mxu0 %vm1558_vm2, %v9461_v38  ;;  %v9463_v23 = vmul.f32 %v15942_v34, %v20178_v42 }
0x1a7c   : > { %v9462_v41 = vmul.f32 %v15944_v20, %v20176_v5 }
0x1a7e   : > { %13748 = vmatprep.mubr.msk.f32.mxu0 %vm1558_vm2, %v9462_v41 }
0x1a7f   : > { %13749 = vmatmul.mubr.msk.f32.gmra.mrb[190].mxu0 %vm1558_vm2, %v9463_v23 }
0x1a80   : > { %10392 = vmatprep.mubr.f32.mxu0 %v21203_v44 }
0x1a81   : > { %v9325_v1 = vpop.xlane.xlu0 %9324 }
0x1a82   : > { %v9353_v2 = vsub.f32 %v20184_v63, %v9325_v1  ;;  %v9322_v28 = vpop.xlane.xlu1 %9321  ;;  %v9778_v1 = vld [vmem:[#allocation13 + $0x60] sm:$0xff] }
0x1a83   : > { %v9352_v49 = vsub.f32 %v20186_v10, %v9322_v28 }
0x1a84   : > { %v9378_v3 = vmul.f32 1.442695, %v9353_v2  ;;  %v9779_v2 = vld [vmem:[#allocation13 + $0x68] sm:$0xff] }
0x1a85   : > { %v9376_v32 = vmul.f32 1.442695, %v9352_v49  ;;  %v9331_v35 = vpop.xlane.xlu0 %9330  ;;  %v14635_v49 = vpack.c.bf16 %v9779_v2, %v9778_v1 }
0x1a86   : > { %15945 = vpow2.f32 %v9378_v3  ;;  %v9355_v29 = vsub.f32 %v20192_v61, %v9331_v35  ;;  %v9328_v13 = vpop.xlane.xlu1 %9327  ;;  %v9781_v35 = vld [vmem:[#allocation13 + $0x78] sm:$0xff] }
0x1a87   : > { %15947 = vpow2.f32 %v9376_v32  ;;  %v9354_v39 = vsub.f32 %v20194_v25, %v9328_v13  ;;  %v9780_v32 = vld [vmem:[#allocation13 + $0x70] sm:$0xff] }
0x1a88   : > { %v9382_v47 = vmul.f32 1.442695, %v9355_v29 }
0x1a89   : > { %v9380_v19 = vmul.f32 1.442695, %v9354_v39  ;;  %v9337_v0 = vpop.xlane.xlu0 %9336  ;;  %v14639_v39 = vpack.c.bf16 %v9781_v35, %v9780_v32 }
0x1a8a   : > { %15949 = vpow2.f32 %v9382_v47  ;;  %v9357_v12 = vsub.f32 %v20200_v24, %v9337_v0  ;;  %v9334_v33 = vpop.xlane.xlu1 %9333 }
0x1a8b   : > { %15951 = vpow2.f32 %v9380_v19  ;;  %v9356_v14 = vsub.f32 %v20202_v51, %v9334_v33 }
0x1a8c   : > { %v9386_v45 = vmul.f32 1.442695, %v9357_v12 }
0x1a8d   : > { %v9384_v5 = vmul.f32 1.442695, %v9356_v14  ;;  %v9343_v42 = vpop.xlane.xlu0 %9342 }
0x1a8e   : > { %15953 = vpow2.f32 %v9386_v45  ;;  %v9340_v46 = vpop.xlane.xlu1 %9339  ;;  %v9359_v30 = vsub.f32 %v20208_v22, %v9343_v42 }
0x1a8f   : > { %15955 = vpow2.f32 %v9384_v5  ;;  %v9358_v59 = vsub.f32 %v20210_v21, %v9340_v46 }
0x1a90   : > { %v20243_v27 = vpop.eup %15945  ;;  %v9390_v54 = vmul.f32 1.442695, %v9359_v30  ;;  %v10288_v30 = vld [vmem:[#allocation14 + $0x20] sm:$0xff] }
0x1a91   : > { %v15948_v63 = vpop.eup %15947  ;;  %v15420_v10 = vpop.permute.xlu0 %15419  ;;  %v9419_v8 = vsel %vm1558_vm2, %v20243_v27, 0.0  ;;  %v9388_v4 = vmul.f32 1.442695, %v9358_v59  ;;  %v10290_v59 = vld [vmem:[#allocation14 + $0x30] sm:$0xff] }
0x1a92   : > { %9420 = vadd.xlane.f32.xlu0 %v9419_v8  ;;  %v15415_v57 = vpop.permute.xlu1 %15414  ;;  %v9416_v61 = vsel %vm1558_vm2, %v15948_v63, 0.0  ;;  %v15422_v25 = vunpack.i.h.bf16 %v15420_v10  ;;  %v15421_v7 = vunpack.i.l.bf16 %v15420_v10  ;;  %15957 = vpow2.f32 %v9390_v54 }
0x1a93   : > { %v15417_v11 = vunpack.i.h.bf16 %v15415_v57  ;;  %v15416_v24 = vunpack.i.l.bf16 %v15415_v57  ;;  %9417 = vadd.xlane.f32.xlu1 %v9416_v61  ;;  %15959 = vpow2.f32 %v9388_v4  ;;  %v14649_v54 = vpack.c.bf16 %v10290_v59, %v10288_v30  ;;  %v10300_v30 = vld [vmem:[#allocation14 + $0x80] sm:$0xff]  ;;  %v10302_v59 = vld [vmem:[#allocation14 + $0x90] sm:$0xff] }
0x1a94   : > { %v20248_v51 = vpop.eup %15949  ;;  %v14623_v58 = vpack.c.bf16 %v15422_v25, %v15421_v7 }
0x1a95   : > { %v20250_v15 = vpop.eup %15951  ;;  %v14619_v40 = vpack.c.bf16 %v15417_v11, %v15416_v24  ;;  %v9425_v55 = vsel %vm1558_vm2, %v20248_v51, 0.0 }
0x1a96   : > { %9426 = vadd.xlane.f32.xlu0 %v9425_v55  ;;  %v9422_v50 = vsel %vm1558_vm2, %v20250_v15, 0.0  ;;  %v10284_v55 = vld [vmem:[#allocation14] sm:$0xff] }
0x1a97   : > { %9423 = vadd.xlane.f32.xlu1 %v9422_v50  ;;  %14620 = vmatprep.subr.bf16.mxu1 %v14619_v40 }
0x1a98   : > { %v20256_v43 = vpop.eup %15953  ;;  %14622 = vmatpush3.bf16.msra.mxu1 %v14619_v40  ;;  %v10287_v40 = vld [vmem:[#allocation14 + $0x18] sm:$0xff] }
0x1a99   : > { %v20258_v60 = vpop.eup %15955  ;;  %14624 = vmatprep.subr.bf16.mxu1 %v14623_v58  ;;  %v9431_v37 = vsel %vm1558_vm2, %v20256_v43, 0.0 }
0x1a9a   : > { %9432 = vadd.xlane.f32.xlu0 %v9431_v37  ;;  %v9428_v9 = vsel %vm1558_vm2, %v20258_v60, 0.0 }
0x1a9b   : > { %9429 = vadd.xlane.f32.xlu1 %v9428_v9 }
0x1a9c   : > { %14626 = vmatpush3.bf16.msra.mxu1 %v14623_v58  ;;  %v20270_v26 = vpop.eup %15957  ;;  %v10286_v58 = vld [vmem:[#allocation14 + $0x10] sm:$0xff] }
0x1a9d   : > { %v20272_v6 = vpop.eup %15959  ;;  %v9437_v18 = vsel %vm1558_vm2, %v20270_v26, 0.0  ;;  %v14645_v37 = vpack.c.bf16 %v10286_v58, %v10284_v55  ;;  %v21211_v55 = vld [vmem:[#allocation47_spill] sm:$0xff] }
0x1aac   : > { %15424 = vrot.lane.b32.xlu1 %v19026_v56, %s16419_s8  ;;  %v9434_v56 = vsel %vm1558_vm2, %v20272_v6, 0.0 }
0x1ab0   : > { %15429 = vrot.lane.b32.xlu0 %v21188_v52, %s16419_s8  ;;  %s21215_s8 = sld [smem:[#allocation89_spill]] }
0x1acf   : > { %9438 = vadd.xlane.f32.xlu0 %v9437_v18 }
0x1ad0   : > { %9435 = vadd.xlane.f32.xlu1 %v9434_v56 }
0x1b1f   : > { %v9421_v52 = vpop.xlane.xlu0 %9420 }
0x1b20   : > { %v9418_v22 = vpop.xlane.xlu1 %9417 }
0x1b21   : > { %15961 = vrcp.f32 %v9418_v22 }
0x1b22   : > { %15963 = vrcp.f32 %v9421_v52 }
0x1b23   : > { %v9427_v21 = vpop.xlane.xlu0 %9426 }
0x1b24   : > { %v9424_v31 = vpop.xlane.xlu1 %9423 }
0x1b25   : > { %15965 = vrcp.f32 %v9424_v31  ;;  %v20312_v31 = vld [vmem:[%s21204_s5] ss:$0 sm:$0xff]  ;;  %s21228_s5 = sld [smem:[#allocation92_spill]] }
0x1b26   : > { %15967 = vrcp.f32 %v9427_v21 }
0x1b27   : > { %v9433_v48 = vpop.xlane.xlu0 %9432 }
0x1b28   : > { %v9430_v53 = vpop.xlane.xlu1 %9429 }
0x1b29   : > { %15969 = vrcp.f32 %v9430_v53 }
0x1b2a   : > { %15971 = vrcp.f32 %v9433_v48 }
0x1b2b   : > { %v15962_v36 = vpop.eup %15961  ;;  %v15430_v16 = vpop.permute.xlu0 %15429 }
0x1b2c   : > { %v15425_v17 = vpop.permute.xlu1 %15424  ;;  %v9464_v38 = vmul.f32 %v15962_v36, %v15948_v63  ;;  %v15432_v62 = vunpack.i.h.bf16 %v15430_v16  ;;  %v15431_v34 = vunpack.i.l.bf16 %v15430_v16  ;;  %v15964_v3 = vpop.eup %15963 }
0x1b2d   : > { %v15427_v20 = vunpack.i.h.bf16 %v15425_v17  ;;  %v15426_v23 = vunpack.i.l.bf16 %v15425_v17  ;;  %v9465_v13 = vmul.f32 %v15964_v3, %v20243_v27  ;;  %v21205_v17 = vld [vmem:[#allocation39_spill] sm:$0xff]  ;;  %v21207_v3 = vld [vmem:[#allocation32_spill] sm:$0xff] }
0x1b2e   : > { %13767 = vmatprep.mubr.msk.f32.mxu1 %vm1558_vm2, %v9464_v38  ;;  %v14631_v28 = vpack.c.bf16 %v15432_v62, %v15431_v34 }
0x1b2f   : > { %v14627_v41 = vpack.c.bf16 %v15427_v20, %v15426_v23  ;;  %v15966_v29 = vpop.eup %15965  ;;  %v21206_v20 = vld [vmem:[#allocation40_spill] sm:$0xff] }
0x1b30   : > { %v15968_v47 = vpop.eup %15967  ;;  %v9466_v19 = vmul.f32 %v15966_v29, %v20250_v15  ;;  %v10285_v15 = vld [vmem:[#allocation14 + $0x8] sm:$0xff] }
0x1b31   : > { %14628 = vmatprep.subr.bf16.mxu1 %v14627_v41  ;;  %v9467_v12 = vmul.f32 %v15968_v47, %v20248_v51  ;;  %v14643_v50 = vpack.c.bf16 %v10287_v40, %v10285_v15  ;;  %v10298_v15 = vld [vmem:[#allocation14 + $0x70] sm:$0xff] }
0x1b32   : > { %14630 = vmatpush3.bf16.msra.mxu1 %v14627_v41 }
0x1b33   : > { %14632 = vmatprep.subr.bf16.mxu1 %v14631_v28  ;;  %v15970_v0 = vpop.eup %15969  ;;  %14644 = vmatprep.subr.bf16.mxu0 %v14643_v50 }
0x1b34   : > { %v15972_v33 = vpop.eup %15971  ;;  %v9468_v14 = vmul.f32 %v15970_v0, %v20258_v60  ;;  %v10291_v60 = vld [vmem:[#allocation14 + $0x38] sm:$0xff]  ;;  %14646 = vmatpush1.bf16.msra.mxu0 %v14645_v37 }
0x1b35   : > { %v9469_v45 = vmul.f32 %v15972_v33, %v20256_v43  ;;  %v10289_v43 = vld [vmem:[#allocation14 + $0x28] sm:$0xff]  ;;  %v21209_v33 = vld [vmem:[#allocation48_spill] sm:$0xff]  ;;  %v10303_v37 = vld [vmem:[#allocation14 + $0x98] sm:$0xff] }
0x1b36   : > { %14634 = vmatpush3.bf16.msra.mxu1 %v14631_v28  ;;  %v14647_v9 = vpack.c.bf16 %v10291_v60, %v10289_v43  ;;  %v10301_v60 = vld [vmem:[#allocation14 + $0x88] sm:$0xff] }
0x1b37   : > { %14636 = vmatprep.subr.bf16.mxu1 %v14635_v49 }
0x1b38   : > { %14648 = vmatprep.subr.bf16.mxu0 %v14647_v9  ;;  %v14659_v9 = vpack.c.bf16 %v10303_v37, %v10301_v60 }
0x1b39   : > { %13768 = vmatmul.mubr.msk.f32.vlgmr.msra.gmra.mrb[184].mxu1 %vm1558_vm2, %v9465_v13  ;;  %14650 = vmatpush1.bf16.msra.mxu0 %v14649_v54  ;;  %v21212_v54 = vld [vmem:[#allocation50_spill] sm:$0xff] }
0x1b3a   : > { %13770 = vmatprep.mubr.msk.f32.mxu1 %vm1558_vm2, %v9466_v19  ;;  %14638 = vmatpush3.bf16.msra.mxu1 %v14635_v49 }
0x1b3b   : > { %14640 = vmatprep.subr.bf16.mxu1 %v14639_v39 }
0x1b3d   : > { %13771 = vmatmul.mubr.msk.f32.gmra.mrb[186].mxu1 %vm1558_vm2, %v9467_v12 }
0x1b3e   : > { %13773 = vmatprep.mubr.msk.f32.mxu1 %vm1558_vm2, %v9468_v14  ;;  %14642 = vmatpush3.bf16.msra.mxu1 %v14639_v39  ;;  %v21208_v39 = vld [vmem:[#allocation46_spill] sm:$0xff] }
0x1b41   : > { %v13741_v5 = vpop.f32.mrb[184].mxu0  ;;  %13774 = vmatmul.mubr.msk.f32.gmra.mrb[188].mxu1 %vm1558_vm2, %v9469_v45 }
0x1b42   : > { %v9586_v42 = vpop.f32.mrb[185].mxu0 }
0x1b49   : > { %v13744_v46 = vpop.f32.mrb[186].mxu0 }
0x1b4a   : > { %v9596_v27 = vpop.f32.mrb[187].mxu0 }
0x1b4e   : > { %v13747_v63 = vpop.f32.mrb[188].mxu0 }
0x1b4f   : > { %v9606_v10 = vpop.f32.mrb[189].mxu0 }
0x1b52   : > { %v13750_v8 = vpop.f32.mrb[190].mxu0 }
0x1b53   : > { %v9616_v57 = vpop.f32.mrb[191].mxu0 }
0x1b5c   : > { %v9439_v61 = vpop.xlane.xlu0 %9438 }
0x1b5d   : > { %15973 = vrcp.f32 %v9439_v61  ;;  %v9436_v25 = vpop.xlane.xlu1 %9435 }
0x1b5e   : > { %15975 = vrcp.f32 %v9436_v25 }
0x1b67   : > { %v15974_v7 = vpop.eup %15973 }
0x1b68   : > { %v15976_v11 = vpop.eup %15975  ;;  %v9471_v51 = vmul.f32 %v15974_v7, %v20270_v26  ;;  %v10297_v7 = vld [vmem:[#allocation14 + $0x68] sm:$0xff] }
0x1b69   : > { %v9470_v24 = vmul.f32 %v15976_v11, %v20272_v6  ;;  %v10299_v11 = vld [vmem:[#allocation14 + $0x78] sm:$0xff] }
0x1b6b   : > { %13776 = vmatprep.mubr.msk.f32.mxu1 %vm1558_vm2, %v9470_v24  ;;  %v14655_v24 = vpack.c.bf16 %v10299_v11, %v10297_v7 }
0x1b6c   : > { %13777 = vmatmul.mubr.msk.f32.gmra.mrb[190].mxu1 %vm1558_vm2, %v9471_v51  ;;  %v10296_v51 = vld [vmem:[#allocation14 + $0x60] sm:$0xff] }
0x1b6d   : > { %13787 = vmatprep.mubr.msk.f32.mxu1 %vm1251_vm0, %v9586_v42  ;;  %v10295_v42 = vld [vmem:[#allocation14 + $0x58] sm:$0xff]  ;;  %v14657_v43 = vpack.c.bf16 %v10298_v15, %v10296_v51 }
0x1b70   : > { %13788 = vmatmul.mubr.msk.f32.vlgmr.msra.gmra.mrb[152].mxu1 %vm1251_vm0, %v13741_v5  ;;  %v10293_v5 = vld [vmem:[#allocation14 + $0x48] sm:$0xff] }
0x1b71   : > { %13790 = vmatprep.mubr.msk.f32.mxu1 %vm1251_vm0, %v9596_v27  ;;  %v10292_v27 = vld [vmem:[#allocation14 + $0x40] sm:$0xff] }
0x1b74   : > { %13791 = vmatmul.mubr.msk.f32.gmra.mrb[154].mxu1 %vm1251_vm0, %v13744_v46  ;;  %v14651_v46 = vpack.c.bf16 %v10295_v42, %v10293_v5 }
0x1b75   : > { %13793 = vmatprep.mubr.msk.f32.mxu1 %vm1251_vm0, %v9606_v10  ;;  %v21210_v10 = vld [vmem:[#allocation35_spill] sm:$0xff] }
0x1b76   : > { %14652 = vmatprep.subr.bf16.mxu0 %v14651_v46 }
0x1b78   : > { %13794 = vmatmul.mubr.msk.f32.gmra.mrb[156].mxu1 %vm1251_vm0, %v13747_v63  ;;  %v10294_v63 = vld [vmem:[#allocation14 + $0x50] sm:$0xff] }
0x1b79   : > { %13796 = vmatprep.mubr.msk.f32.mxu1 %vm1251_vm0, %v9616_v57  ;;  %v14653_v25 = vpack.c.bf16 %v10294_v63, %v10292_v27 }
0x1b7b   : > { %14654 = vmatpush1.bf16.msra.mxu0 %v14653_v25 }
0x1b7c   : > { %13797 = vmatmul.mubr.msk.f32.gmra.mrb[158].mxu1 %vm1251_vm0, %v13750_v8  ;;  %14656 = vmatprep.subr.bf16.mxu0 %v14655_v24 }
0x1b7f   : > { %14658 = vmatpush1.bf16.msra.mxu0 %v14657_v43 }
0x1b80   : > { %14660 = vmatprep.subr.bf16.mxu0 %v14659_v9  ;;  %v21213_v9 = vld [vmem:[#allocation34_spill] sm:$0xff] }
0x1c0c   : > { %v13769_v4 = vpop.f32.mrb[184].mxu1 }
0x1c0d   : > { %v9739_v26 = vpop.f32.mrb[185].mxu1 }
0x1c0e   : > { %13799 = vmatprep.mubr.msk.f32.mxu1 %vm1251_vm0, %v9739_v26 }
0x1c0f   : > { %13800 = vmatmul.mubr.msk.f32.gmra.mrb[160].mxu1 %vm1251_vm0, %v13769_v4 }
0x1c10   : > { %v13772_v6 = vpop.f32.mrb[186].mxu1 }
0x1c11   : > { %v9749_v18 = vpop.f32.mrb[187].mxu1 }
0x1c12   : > { %13802 = vmatprep.mubr.msk.f32.mxu1 %vm1251_vm0, %v9749_v18  ;;  %v10305_v18 = vld [vmem:[#allocation14 + $0xa8] sm:$0xff] }
0x1c13   : > { %13803 = vmatmul.mubr.msk.f32.gmra.mrb[162].mxu1 %vm1251_vm0, %v13772_v6  ;;  %v14661_v6 = vpack.c.bf16 %v10302_v59, %v10300_v30 }
0x1c14   : > { %v13775_v56 = vpop.f32.mrb[188].mxu1 }
0x1c15   : > { %v9759_v52 = vpop.f32.mrb[189].mxu1  ;;  %14662 = vmatpush1.bf16.msra.mxu0 %v14661_v6 }
0x1c16   : > { %13805 = vmatprep.mubr.msk.f32.mxu1 %vm1251_vm0, %v9759_v52 }
0x1c17   : > { %13806 = vmatmul.mubr.msk.f32.gmra.mrb[164].mxu1 %vm1251_vm0, %v13775_v56  ;;  %v10307_v56 = vld [vmem:[#allocation14 + $0xb8] sm:$0xff] }
0x1c18   : > { %v14663_v52 = vpack.c.bf16 %v10307_v56, %v10305_v18 }
0x1c1a   : > { %14664 = vmatprep.subr.bf16.mxu0 %v14663_v52  ;;  %v21214_v52 = vld [vmem:[#allocation49_spill] sm:$0xff] }
0x1c3f   : > { %v13778_v22 = vpop.f32.mrb[190].mxu1 }
0x1c40   : > { %v9769_v21 = vpop.f32.mrb[191].mxu1 }
0x1c41   : > { %13808 = vmatprep.mubr.msk.f32.mxu1 %vm1251_vm0, %v9769_v21  ;;  %v10306_v21 = vld [vmem:[#allocation14 + $0xb0] sm:$0xff] }
0x1c42   : > { %13809 = vmatmul.mubr.msk.f32.gmra.mrb[166].mxu1 %vm1251_vm0, %v13778_v22  ;;  %v10304_v22 = vld [vmem:[#allocation14 + $0xa0] sm:$0xff] }
0x1c43   : > { %v13789_v48 = vpop.f32.mrb[152].mxu1 }
0x1c44   : > { %v9896_v53 = vpop.f32.mrb[153].mxu1  ;;  %v9999_v36 = vadd.f32 %v13789_v48, %v20312_v31 }
0x1c45   : > { %v9998_v16 = vadd.f32 %v20312_v31, %v9896_v53  ;;  %v14665_v53 = vpack.c.bf16 %v10306_v21, %v10304_v22 }
0x1c46   : > { %v20320_v23 = vadd.f32 %v9999_v36, %v21206_v20  ;;  %v10309_v36 = vld [vmem:[#allocation14 + $0xc8] sm:$0xff] }
0x1c47   : > { %v20317_v38 = vadd.f32 %v9998_v16, %v21205_v17  ;;  %v13792_v62 = vpop.f32.mrb[154].mxu1  ;;  %14666 = vmatpush1.bf16.msra.mxu0 %v14665_v53  ;;  %v10311_v16 = vld [vmem:[#allocation14 + $0xd8] sm:$0xff] }
0x1c48   : > { %v9906_v34 = vpop.f32.mrb[155].mxu1  ;;  %v10001_v49 = vadd.f32 %v13792_v62, %v20312_v31  ;;  %v10065_v35 = vmul.f32 %v20320_v23, %v20320_v23  ;;  %v14667_v17 = vpack.c.bf16 %v10311_v16, %v10309_v36  ;;  %v10308_v62 = vld [vmem:[#allocation14 + $0xc0] sm:$0xff] }
0x1c49   : > { %v10000_v41 = vadd.f32 %v20312_v31, %v9906_v34  ;;  %10032 = vadd.xlane.f32.xlu1 %v20317_v38  ;;  %v10064_v1 = vmul.f32 %v20317_v38, %v20317_v38  ;;  %v10310_v34 = vld [vmem:[#allocation14 + $0xd0] sm:$0xff] }
0x1c4a   : > { %v20334_v47 = vadd.f32 %v10001_v49, %v21208_v39  ;;  %v14669_v20 = vpack.c.bf16 %v10310_v34, %v10308_v62  ;;  %14668 = vmatprep.subr.bf16.mxu0 %v14667_v17  ;;  %v10314_v49 = vld [vmem:[#allocation14 + $0xf0] sm:$0xff]  ;;  %v20402_v62 = vld [vmem:[%s21215_s8] ss:$0 sm:$0xff] }
0x1c4b   : > { %10080 = vadd.xlane.f32.xlu0 %v10064_v1  ;;  %v13795_v2 = vpop.f32.mrb[156].mxu1  ;;  %v20328_v32 = vadd.f32 %v10000_v41, %v21207_v3  ;;  %v10313_v41 = vld [vmem:[#allocation14 + $0xe8] sm:$0xff]  ;;  %v10315_v1 = vld [vmem:[#allocation14 + $0xf8] sm:$0xff] }
0x1c4c   : > { %v9916_v28 = vpop.f32.mrb[157].mxu1  ;;  %v10003_v12 = vadd.f32 %v13795_v2, %v20312_v31  ;;  %v10067_v45 = vmul.f32 %v20334_v47, %v20334_v47  ;;  %14670 = vmatpush1.bf16.msra.mxu0 %v14669_v20  ;;  %v14671_v2 = vpack.c.bf16 %v10315_v1, %v10313_v41 }
0x1c4d   : > { %10034 = vadd.xlane.f32.xlu1 %v20320_v23  ;;  %v10002_v19 = vadd.f32 %v20312_v31, %v9916_v28  ;;  %v10066_v0 = vmul.f32 %v20328_v32, %v20328_v32  ;;  %v10312_v28 = vld [vmem:[#allocation14 + $0xe0] sm:$0xff] }
0x1c4e   : > { %v20348_v8 = vadd.f32 %v10003_v12, %v21210_v10  ;;  %v14673_v3 = vpack.c.bf16 %v10314_v49, %v10312_v28  ;;  %14672 = vmatprep.subr.bf16.mxu0 %v14671_v2 }
0x1c4f   : > { %10082 = vadd.xlane.f32.xlu0 %v10065_v35  ;;  %v13798_v29 = vpop.f32.mrb[158].mxu1  ;;  %v20342_v14 = vadd.f32 %v10002_v19, %v21209_v33 }
0x1c50   : > { %v9926_v13 = vpop.f32.mrb[159].mxu1  ;;  %v10005_v40 = vadd.f32 %v13798_v29, %v20312_v31  ;;  %v10069_v58 = vmul.f32 %v20348_v8, %v20348_v8  ;;  %14674 = vmatpush1.bf16.msra.mxu0 %v14673_v3 }
0x1c51   : > { %10036 = vadd.xlane.f32.xlu1 %v20328_v32  ;;  %v10004_v57 = vadd.f32 %v20312_v31, %v9926_v13  ;;  %v10068_v61 = vmul.f32 %v20342_v14, %v20342_v14 }
0x1c52   : > { %v20362_v4 = vadd.f32 %v10005_v40, %v21212_v54 }
0x1c53   : > { %10084 = vadd.xlane.f32.xlu0 %v10066_v0  ;;  %v20356_v50 = vadd.f32 %v10004_v57, %v21211_v55 }
0x1c54   : > { %v10071_v48 = vmul.f32 %v20362_v4, %v20362_v4 }
0x1c55   : > { %10038 = vadd.xlane.f32.xlu1 %v20334_v47  ;;  %v10070_v26 = vmul.f32 %v20356_v50, %v20356_v50 }
0x1c57   : > { %10086 = vadd.xlane.f32.xlu0 %v10067_v45 }
0x1c59   : > { %10040 = vadd.xlane.f32.xlu1 %v20342_v14 }
0x1c5b   : > { %10088 = vadd.xlane.f32.xlu0 %v10068_v61 }
0x1c5d   : > { %10042 = vadd.xlane.f32.xlu1 %v20348_v8 }
0x1c5f   : > { %10090 = vadd.xlane.f32.xlu0 %v10069_v58 }
0x1c61   : > { %10044 = vadd.xlane.f32.xlu1 %v20356_v50 }
0x1c63   : > { %10092 = vadd.xlane.f32.xlu0 %v10070_v26 }
0x1c65   : > { %10046 = vadd.xlane.f32.xlu1 %v20362_v4 }
0x1c67   : > { %10094 = vadd.xlane.f32.xlu0 %v10071_v48 }
0x1cd6   : > { %v10033_v35 = vpop.xlane.xlu1 %10032 }
0x1cd7   : > { %v10112_v29 = vmul.f32 0.0078125, %v10033_v35 }
0x1cd8   : > { %v10081_v13 = vpop.xlane.xlu0 %10080 }
0x1cd9   : > { %v10144_v39 = vmul.f32 %v10112_v29, %v10112_v29  ;;  %v10128_v19 = vmul.f32 0.0078125, %v10081_v13  ;;  %v10176_v6 = vsub.f32 %v20317_v38, %v10112_v29  ;;  %v20412_v29 = vld [vmem:[%s21216_s29] ss:$0 sm:$0xff]  ;;  %s20850_s29 = scalar_lea.hbm %s21229_s19, %s11730_s13 }
0x1cda   : > { %v10035_v0 = vpop.xlane.xlu1 %10034  ;;  %v21217_v13 = vld [vmem:[#allocation52_spill] sm:$0xff] }
0x1cdb   : > { %v10160_v12 = vsub.f32 %v10128_v19, %v10144_v39  ;;  %v20370_v33 = vmul.f32 0.0078125, %v10035_v0 }
0x1cdc   : > { %v10083_v45 = vpop.xlane.xlu0 %10082 }
0x1cdd   : > { %v10192_v5 = vadd.f32 1e-05, %v10160_v12  ;;  %v10145_v42 = vmul.f32 %v20370_v33, %v20370_v33  ;;  %v10129_v46 = vmul.f32 0.0078125, %v10083_v45  ;;  %v10177_v2 = vsub.f32 %v20320_v23, %v20370_v33 }
0x1cde   : > { %v10037_v27 = vpop.xlane.xlu1 %10036 }
0x1cdf   : > { %15977 = vrsqrt.f32 %v10192_v5  ;;  %v10161_v63 = vsub.f32 %v10129_v46, %v10145_v42  ;;  %v20374_v10 = vmul.f32 0.0078125, %v10037_v27 }
0x1ce0   : > { %v10085_v57 = vpop.xlane.xlu0 %10084 }
0x1ce1   : > { %v10193_v61 = vadd.f32 1e-05, %v10161_v63  ;;  %v10146_v25 = vmul.f32 %v20374_v10, %v20374_v10  ;;  %v10130_v7 = vmul.f32 0.0078125, %v10085_v57  ;;  %v10178_v5 = vsub.f32 %v20328_v32, %v20374_v10  ;;  %v21218_v57 = vld [vmem:[#allocation38_spill] sm:$0xff] }
0x1ce2   : > { %v10039_v11 = vpop.xlane.xlu1 %10038  ;;  %v13801_v24 = vpop.f32.mrb[160].mxu1 }
0x1ce3   : > { %15979 = vrsqrt.f32 %v10193_v61  ;;  %v10162_v51 = vsub.f32 %v10130_v7, %v10146_v25  ;;  %v20378_v15 = vmul.f32 0.0078125, %v10039_v11  ;;  %v9936_v40 = vpop.f32.mrb[161].mxu1  ;;  %v10007_v55 = vadd.f32 %v13801_v24, %v20312_v31 }
0x1ce4   : > { %v10006_v58 = vadd.f32 %v20312_v31, %v9936_v40  ;;  %v10087_v43 = vpop.xlane.xlu0 %10086 }
0x1ce5   : > { %v10194_v60 = vadd.f32 1e-05, %v10162_v51  ;;  %v10147_v37 = vmul.f32 %v20378_v15, %v20378_v15  ;;  %v10131_v59 = vmul.f32 0.0078125, %v10087_v43  ;;  %v20391_v22 = vadd.f32 %v10007_v55, %v21214_v52 }
0x1ce6   : > { %v20385_v30 = vadd.f32 %v10006_v58, %v21213_v9  ;;  %v10041_v54 = vpop.xlane.xlu1 %10040  ;;  %v13804_v26 = vpop.f32.mrb[162].mxu1 }
0x1ce7   : > { %15981 = vrsqrt.f32 %v10194_v60  ;;  %v20388_v18 = vmul.f32 0.0078125, %v10041_v54  ;;  %v9946_v56 = vpop.f32.mrb[163].mxu1  ;;  %v10163_v21 = vsub.f32 %v10131_v59, %v10147_v37  ;;  %v10009_v28 = vadd.f32 %v13804_v26, %v20312_v31  ;;  %v21219_v26 = vld [vmem:[#allocation51_spill] sm:$0xff] }
0x1ce8   : > { %v10008_v48 = vadd.f32 %v20312_v31, %v9946_v56  ;;  %v10089_v53 = vpop.xlane.xlu0 %10088  ;;  %10048 = vadd.xlane.f32.xlu1 %v20385_v30  ;;  %v10072_v36 = vmul.f32 %v20385_v30, %v20385_v30  ;;  %v10073_v23 = vmul.f32 %v20391_v22, %v20391_v22 }
0x1ce9   : > { %v15978_v16 = vpop.eup %15977  ;;  %v10148_v38 = vmul.f32 %v20388_v18, %v20388_v18  ;;  %v10132_v17 = vmul.f32 0.0078125, %v10089_v53  ;;  %v10195_v20 = vadd.f32 1e-05, %v10163_v21  ;;  %v20429_v61 = vadd.f32 %v10009_v28, %v21218_v57 }
0x1cea   : > { %v10224_v34 = vmul.f32 %v15978_v16, %v10176_v6  ;;  %v10043_v41 = vpop.xlane.xlu1 %10042  ;;  %10096 = vadd.xlane.f32.xlu0 %v10072_v36  ;;  %v13807_v1 = vpop.f32.mrb[164].mxu1  ;;  %v20415_v39 = vadd.f32 %v10008_v48, %v21217_v13  ;;  %v10179_v48 = vsub.f32 %v20334_v47, %v20378_v15 }
0x1ceb   : > { %v10164_v49 = vsub.f32 %v10132_v17, %v10148_v38  ;;  %v20407_v3 = vmul.f32 0.0078125, %v10043_v41  ;;  %v9956_v35 = vpop.f32.mrb[165].mxu1  ;;  %15983 = vrsqrt.f32 %v10195_v20  ;;  %v10011_v9 = vadd.f32 %v13807_v1, %v20312_v31  ;;  %v21220_v1 = vld [vmem:[#allocation54_spill] sm:$0xff] }
0x1cec   : > { %v10091_v19 = vpop.xlane.xlu0 %10090  ;;  %10050 = vadd.xlane.f32.xlu1 %v20391_v22  ;;  %v10246_v0 = vmul.f32 %v20402_v62, %v10224_v34  ;;  %v10010_v25 = vadd.f32 %v20312_v31, %v9956_v35  ;;  %v10074_v32 = vmul.f32 %v20415_v39, %v20415_v39  ;;  %v10075_v52 = vmul.f32 %v20429_v61, %v20429_v61 }
0x1ced   : > { %v15980_v12 = vpop.eup %15979  ;;  %v10196_v33 = vadd.f32 1e-05, %v10164_v49  ;;  %v10149_v45 = vmul.f32 %v20407_v3, %v20407_v3  ;;  %v10133_v42 = vmul.f32 0.0078125, %v10091_v19  ;;  %v10180_v41 = vsub.f32 %v20342_v14, %v20388_v18 }
0x1cee   : > { %v10045_v46 = vpop.xlane.xlu1 %10044  ;;  %10098 = vadd.xlane.f32.xlu0 %v10073_v23  ;;  %v20426_v27 = vadd.f32 %v20412_v29, %v10246_v0  ;;  %v10225_v63 = vmul.f32 %v15980_v12, %v10177_v2  ;;  %v20447_v6 = vadd.f32 %v10010_v25, %v21219_v26  ;;  %v20463_v2 = vadd.f32 %v10011_v9, %v21220_v1 }
0x1cef   : > { %15985 = vrsqrt.f32 %v10196_v33  ;;  %v20432_v7 = vmul.f32 0.0078125, %v10045_v46  ;;  %v10165_v11 = vsub.f32 %v10133_v42, %v10149_v45  ;;  %v10181_v19 = vsub.f32 %v20348_v8, %v20407_v3 }
0x1cf0   : > { %10393 = vmatmul.mubr.f32.vlgmr.msra.gmra.mrb[192].mxu0 %v20426_v27  ;;  %v10093_v24 = vpop.xlane.xlu0 %10092  ;;  %10052 = vadd.xlane.f32.xlu1 %v20415_v39  ;;  %v10247_v10 = vmul.f32 %v20402_v62, %v10225_v63  ;;  %v10076_v47 = vmul.f32 %v20447_v6, %v20447_v6  ;;  %v10077_v18 = vmul.f32 %v20463_v2, %v20463_v2 }
0x1cf1   : > { %v15982_v51 = vpop.eup %15981  ;;  %v10150_v40 = vmul.f32 %v20432_v7, %v20432_v7  ;;  %v10134_v55 = vmul.f32 0.0078125, %v10093_v24  ;;  %10398 = vmatprep.mubr.f32.mxu0 %v21203_v44  ;;  %v10197_v58 = vadd.f32 1e-05, %v10165_v11  ;;  %v10182_v33 = vsub.f32 %v20356_v50, %v20432_v7 }
0x1cf2   : > { %v10047_v43 = vpop.xlane.xlu1 %10046  ;;  %10100 = vadd.xlane.f32.xlu0 %v10074_v32  ;;  %v20443_v60 = vadd.f32 %v20412_v29, %v10247_v10  ;;  %v10226_v37 = vmul.f32 %v15982_v51, %v10178_v5  ;;  %v21221_v10 = vld [vmem:[#allocation53_spill] sm:$0xff] }
0x1cf3   : > { %v10166_v59 = vsub.f32 %v10134_v55, %v10150_v40  ;;  %v10119_v54 = vmul.f32 0.0078125, %v10047_v43  ;;  %15987 = vrsqrt.f32 %v10197_v58  ;;  %v21222_v40 = vld [vmem:[#allocation56_spill] sm:$0xff] }
0x1cf4   : > { %10399 = vmatmul.mubr.f32.gmra.mrb[194].mxu0 %v20443_v60  ;;  %v10095_v56 = vpop.xlane.xlu0 %10094  ;;  %10054 = vadd.xlane.f32.xlu1 %v20429_v61  ;;  %v10248_v21 = vmul.f32 %v20402_v62, %v10226_v37  ;;  %v10537_v37 = vld [vmem:[#allocation16 + $0x80] sm:$0xff] }
0x1cf5   : > { %v10198_v53 = vadd.f32 1e-05, %v10166_v59  ;;  %v10151_v36 = vmul.f32 %v10119_v54, %v10119_v54  ;;  %v10135_v16 = vmul.f32 0.0078125, %v10095_v56  ;;  %10404 = vmatprep.mubr.f32.mxu0 %v21203_v44  ;;  %v15984_v38 = vpop.eup %15983  ;;  %v10183_v42 = vsub.f32 %v20362_v4, %v10119_v54  ;;  %v10521_v59 = vld [vmem:[#allocation16] sm:$0xff]  ;;  %v10522_v54 = vld [vmem:[#allocation16 + $0x8] sm:$0xff]  ;;  %v10539_v56 = vld [vmem:[#allocation16 + $0x90] sm:$0xff] }
0x1cf6   : > { %10102 = vadd.xlane.f32.xlu0 %v10075_v52  ;;  %v20458_v17 = vadd.f32 %v20412_v29, %v10248_v21  ;;  %v10227_v20 = vmul.f32 %v15984_v38, %v10179_v48  ;;  %v14677_v26 = vpack.c.bf16 %v10522_v54, %v10521_v59  ;;  %v10540_v52 = vld [vmem:[#allocation16 + $0x98] sm:$0xff]  ;;  %v10523_v48 = vld [vmem:[#allocation16 + $0x10] sm:$0xff]  ;;  %v10542_v38 = vld [vmem:[#allocation16 + $0xa8] sm:$0xff] }
0x1cf7   : > { %15989 = vrsqrt.f32 %v10198_v53  ;;  %v10167_v34 = vsub.f32 %v10135_v16, %v10151_v36  ;;  %v14679_v21 = vpack.c.bf16 %v10540_v52, %v10539_v56  ;;  %v10524_v53 = vld [vmem:[#allocation16 + $0x18] sm:$0xff]  ;;  %v10541_v16 = vld [vmem:[#allocation16 + $0xa0] sm:$0xff] }
0x1cf8   : > { %10405 = vmatmul.mubr.f32.gmra.mrb[196].mxu0 %v20458_v17  ;;  %10056 = vadd.xlane.f32.xlu1 %v20447_v6  ;;  %v10249_v49 = vmul.f32 %v20402_v62, %v10227_v20  ;;  %v14681_v36 = vpack.c.bf16 %v10524_v53, %v10523_v48  ;;  %v10525_v20 = vld [vmem:[#allocation16 + $0x20] sm:$0xff] }
0x1cf9   : > { %v15986_v15 = vpop.eup %15985  ;;  %v10199_v28 = vadd.f32 1e-05, %v10167_v34  ;;  %10410 = vmatprep.mubr.f32.mxu0 %v21203_v44  ;;  %v14683_v34 = vpack.c.bf16 %v10542_v38, %v10541_v16 }
0x1cfa   : > { %10104 = vadd.xlane.f32.xlu0 %v10076_v47  ;;  %v10228_v35 = vmul.f32 %v15986_v15, %v10180_v41  ;;  %v20472_v14 = vadd.f32 %v20412_v29, %v10249_v49  ;;  %v10526_v41 = vld [vmem:[#allocation16 + $0x28] sm:$0xff]  ;;  %v10543_v47 = vld [vmem:[#allocation16 + $0xb0] sm:$0xff]  ;;  %v10544_v15 = vld [vmem:[#allocation16 + $0xb8] sm:$0xff] }
0x1cfb   : > { %15991 = vrsqrt.f32 %v10199_v28  ;;  %v14685_v1 = vpack.c.bf16 %v10526_v41, %v10525_v20  ;;  %v10527_v28 = vld [vmem:[#allocation16 + $0x30] sm:$0xff]  ;;  %v14687_v49 = vpack.c.bf16 %v10544_v15, %v10543_v47 }
0x1cfc   : > { %10058 = vadd.xlane.f32.xlu1 %v20463_v2  ;;  %v10250_v13 = vmul.f32 %v20402_v62, %v10228_v35  ;;  %10411 = vmatmul.mubr.f32.gmra.mrb[198].mxu0 %v20472_v14  ;;  %v10528_v35 = vld [vmem:[#allocation16 + $0x38] sm:$0xff] }
0x1cfd   : > { %v15988_v23 = vpop.eup %15987  ;;  %10416 = vmatprep.mubr.f32.mxu0 %v21203_v44 }
0x1cfe   : > { %10106 = vadd.xlane.f32.xlu0 %v10077_v18  ;;  %v20483_v0 = vadd.f32 %v20412_v29, %v10250_v13  ;;  %v10229_v12 = vmul.f32 %v15988_v23, %v10181_v19  ;;  %v10545_v18 = vld [vmem:[#allocation16 + $0xc0] sm:$0xff]  ;;  %v10546_v13 = vld [vmem:[#allocation16 + $0xc8] sm:$0xff]  ;;  %v14689_v19 = vpack.c.bf16 %v10528_v35, %v10527_v28 }
0x1cff   : > { %v14691_v23 = vpack.c.bf16 %v10546_v13, %v10545_v18 }
0x1d00   : > { %10417 = vmatmul.mubr.f32.gmra.mrb[200].mxu0 %v20483_v0  ;;  %v10251_v5 = vmul.f32 %v20402_v62, %v10229_v12  ;;  %v10529_v12 = vld [vmem:[#allocation16 + $0x40] sm:$0xff] }
0x1d01   : > { %v15990_v45 = vpop.eup %15989  ;;  %10422 = vmatprep.mubr.f32.mxu0 %v21203_v44 }
0x1d02   : > { %v10230_v8 = vmul.f32 %v15990_v45, %v10182_v33  ;;  %v20491_v3 = vadd.f32 %v20412_v29, %v10251_v5  ;;  %v10530_v33 = vld [vmem:[#allocation16 + $0x48] sm:$0xff]  ;;  %v10547_v45 = vld [vmem:[#allocation16 + $0xd0] sm:$0xff]  ;;  %v10548_v5 = vld [vmem:[#allocation16 + $0xd8] sm:$0xff] }
0x1d04   : > { %v10252_v46 = vmul.f32 %v20402_v62, %v10230_v8  ;;  %10423 = vmatmul.mubr.f32.gmra.mrb[202].mxu0 %v20491_v3  ;;  %v14693_v8 = vpack.c.bf16 %v10530_v33, %v10529_v12 }
0x1d05   : > { %v15992_v63 = vpop.eup %15991  ;;  %10428 = vmatprep.mubr.f32.mxu0 %v21203_v44 }
0x1d06   : > { %v20498_v50 = vadd.f32 %v20412_v29, %v10252_v46  ;;  %v10231_v57 = vmul.f32 %v15992_v63, %v10183_v42  ;;  %v14695_v42 = vpack.c.bf16 %v10548_v5, %v10547_v45  ;;  %v10531_v46 = vld [vmem:[#allocation16 + $0x50] sm:$0xff]  ;;  %v10532_v63 = vld [vmem:[#allocation16 + $0x58] sm:$0xff] }
0x1d08   : > { %v10253_v25 = vmul.f32 %v20402_v62, %v10231_v57  ;;  %10429 = vmatmul.mubr.f32.gmra.mrb[204].mxu0 %v20498_v50  ;;  %v14697_v57 = vpack.c.bf16 %v10532_v63, %v10531_v46 }
0x1d09   : > { %10434 = vmatprep.mubr.f32.mxu0 %v21203_v44 }
0x1d0a   : > { %v20504_v7 = vadd.f32 %v20412_v29, %v10253_v25  ;;  %v10549_v25 = vld [vmem:[#allocation16 + $0xe0] sm:$0xff] }
0x1d0c   : > { %10435 = vmatmul.mubr.f32.gmra.mrb[206].mxu0 %v20504_v7 }
0x1d0d   : > { %10440 = vmatprep.mubr.f32.mxu0 %v21203_v44 }
0x1d15   : > { %v13810_v4 = vpop.f32.mrb[166].mxu1 }
0x1d16   : > { %v9966_v11 = vpop.f32.mrb[167].mxu1  ;;  %v10013_v24 = vadd.f32 %v13810_v4, %v20312_v31  ;;  %v10550_v4 = vld [vmem:[#allocation16 + $0xe8] sm:$0xff] }
0x1d17   : > { %v10012_v32 = vadd.f32 %v20312_v31, %v9966_v11  ;;  %v10538_v31 = vld [vmem:[#allocation16 + $0x88] sm:$0xff]  ;;  %v14699_v11 = vpack.c.bf16 %v10550_v4, %v10549_v25 }
0x1d18   : > { %v20514_v55 = vadd.f32 %v10013_v24, %v21222_v40  ;;  %v14675_v9 = vpack.c.bf16 %v10538_v31, %v10537_v37  ;;  %v10533_v24 = vld [vmem:[#allocation16 + $0x60] sm:$0xff]  ;;  %v10551_v40 = vld [vmem:[#allocation16 + $0xf0] sm:$0xff]  ;;  %v10536_v31 = vld [vmem:[#allocation16 + $0x78] sm:$0xff] }
0x1d19   : > { %v20511_v51 = vadd.f32 %v10012_v32, %v21221_v10  ;;  %v10534_v32 = vld [vmem:[#allocation16 + $0x68] sm:$0xff]  ;;  %v10535_v37 = vld [vmem:[#allocation16 + $0x70] sm:$0xff] }
0x1d1a   : > { %v10079_v43 = vmul.f32 %v20514_v55, %v20514_v55  ;;  %14676 = vmatprep.subr.bf16.mxu0 %v14675_v9  ;;  %14707 = vmatprep.subr.bf16.mxu1 %v14675_v9  ;;  %v14701_v10 = vpack.c.bf16 %v10534_v32, %v10533_v24  ;;  %v14705_v9 = vpack.c.bf16 %v10536_v31, %v10535_v37 }
0x1d1b   : > { %10060 = vadd.xlane.f32.xlu1 %v20511_v51  ;;  %v10078_v58 = vmul.f32 %v20511_v51, %v20511_v51  ;;  %14678 = vmatpush3.bf16.msra.mxu0 %v14677_v26 }
0x1d1c   : > { %14715 = vmatpush3.bf16.msra.mxu1 %v14677_v26  ;;  %14680 = vmatprep.subr.bf16.mxu0 %v14679_v21 }
0x1d1d   : > { %10108 = vadd.xlane.f32.xlu0 %v10078_v58  ;;  %14708 = vmatprep.subr.bf16.mxu1 %v14679_v21  ;;  %v10552_v58 = vld [vmem:[#allocation16 + $0xf8] sm:$0xff] }
0x1d1f   : > { %10062 = vadd.xlane.f32.xlu1 %v20514_v55  ;;  %14682 = vmatpush3.bf16.msra.mxu0 %v14681_v36 }
0x1d20   : > { %14716 = vmatpush3.bf16.msra.mxu1 %v14681_v36  ;;  %14684 = vmatprep.subr.bf16.mxu0 %v14683_v34 }
0x1d21   : > { %10110 = vadd.xlane.f32.xlu0 %v10079_v43  ;;  %14709 = vmatprep.subr.bf16.mxu1 %v14683_v34  ;;  %v14703_v43 = vpack.c.bf16 %v10552_v58, %v10551_v40 }
0x1d23   : > { %14686 = vmatpush3.bf16.msra.mxu0 %v14685_v1 }
0x1d24   : > { %14717 = vmatpush3.bf16.msra.mxu1 %v14685_v1  ;;  %14688 = vmatprep.subr.bf16.mxu0 %v14687_v49 }
0x1d25   : > { %14710 = vmatprep.subr.bf16.mxu1 %v14687_v49 }
0x1d27   : > { %14690 = vmatpush3.bf16.msra.mxu0 %v14689_v19 }
0x1d28   : > { %14718 = vmatpush3.bf16.msra.mxu1 %v14689_v19  ;;  %14692 = vmatprep.subr.bf16.mxu0 %v14691_v23 }
0x1d29   : > { %14711 = vmatprep.subr.bf16.mxu1 %v14691_v23 }
0x1d2b   : > { %14694 = vmatpush3.bf16.msra.mxu0 %v14693_v8 }
0x1d2c   : > { %14719 = vmatpush3.bf16.msra.mxu1 %v14693_v8  ;;  %14696 = vmatprep.subr.bf16.mxu0 %v14695_v42 }
0x1d2d   : > { %14712 = vmatprep.subr.bf16.mxu1 %v14695_v42 }
0x1d2f   : > { %14698 = vmatpush3.bf16.msra.mxu0 %v14697_v57 }
0x1d30   : > { %14720 = vmatpush3.bf16.msra.mxu1 %v14697_v57  ;;  %14700 = vmatprep.subr.bf16.mxu0 %v14699_v11 }
0x1d31   : > { %14713 = vmatprep.subr.bf16.mxu1 %v14699_v11 }
0x1d33   : > { %14702 = vmatpush3.bf16.msra.mxu0 %v14701_v10 }
0x1d34   : > { %14721 = vmatpush3.bf16.msra.mxu1 %v14701_v10  ;;  %14704 = vmatprep.subr.bf16.mxu0 %v14703_v43 }
0x1d35   : > { %14714 = vmatprep.subr.bf16.mxu1 %v14703_v43 }
0x1d37   : > { %14706 = vmatpush3.bf16.msra.mxu0 %v14705_v9 }
0x1d38   : > { %14722 = vmatpush3.bf16.msra.mxu1 %v14705_v9 }
0x1d75   : > { %v10049_v59 = vpop.xlane.xlu1 %10048 }
0x1d76   : > { %v10120_v54 = vmul.f32 0.0078125, %v10049_v59 }
0x1d77   : > { %v10097_v26 = vpop.xlane.xlu0 %10096 }
0x1d78   : > { %v10152_v56 = vmul.f32 %v10120_v54, %v10120_v54  ;;  %v10136_v52 = vmul.f32 0.0078125, %v10097_v26  ;;  %v10184_v42 = vsub.f32 %v20385_v30, %v10120_v54 }
0x1d79   : > { %v10051_v21 = vpop.xlane.xlu1 %10050 }
0x1d7a   : > { %v10168_v48 = vsub.f32 %v10136_v52, %v10152_v56  ;;  %v10121_v53 = vmul.f32 0.0078125, %v10051_v21 }
0x1d7b   : > { %v10099_v36 = vpop.xlane.xlu0 %10098 }
0x1d7c   : > { %v10200_v16 = vadd.f32 1e-05, %v10168_v48  ;;  %v10153_v38 = vmul.f32 %v10121_v53, %v10121_v53  ;;  %v10137_v34 = vmul.f32 0.0078125, %v10099_v36  ;;  %v10185_v40 = vsub.f32 %v20391_v22, %v10121_v53 }
0x1d7d   : > { %v10053_v20 = vpop.xlane.xlu1 %10052 }
0x1d7e   : > { %15993 = vrsqrt.f32 %v10200_v16  ;;  %v10169_v41 = vsub.f32 %v10137_v34, %v10153_v38  ;;  %v10122_v1 = vmul.f32 0.0078125, %v10053_v20 }
0x1d7f   : > { %v10101_v47 = vpop.xlane.xlu0 %10100 }
0x1d80   : > { %v10201_v15 = vadd.f32 1e-05, %v10169_v41  ;;  %v10154_v28 = vmul.f32 %v10122_v1, %v10122_v1  ;;  %v10138_v49 = vmul.f32 0.0078125, %v10101_v47  ;;  %v10186_v56 = vsub.f32 %v20415_v39, %v10122_v1 }
0x1d81   : > { %v10055_v35 = vpop.xlane.xlu1 %10054 }
0x1d82   : > { %15995 = vrsqrt.f32 %v10201_v15  ;;  %v10170_v18 = vsub.f32 %v10138_v49, %v10154_v28  ;;  %v10123_v13 = vmul.f32 0.0078125, %v10055_v35 }
0x1d83   : > { %v10103_v19 = vpop.xlane.xlu0 %10102 }
0x1d84   : > { %v10202_v23 = vadd.f32 1e-05, %v10170_v18  ;;  %v10155_v12 = vmul.f32 %v10123_v13, %v10123_v13  ;;  %v10139_v33 = vmul.f32 0.0078125, %v10103_v19  ;;  %v10187_v36 = vsub.f32 %v20429_v61, %v10123_v13 }
0x1d85   : > { %v10057_v45 = vpop.xlane.xlu1 %10056 }
0x1d86   : > { %15997 = vrsqrt.f32 %v10202_v23  ;;  %v10171_v5 = vsub.f32 %v10139_v33, %v10155_v12  ;;  %v10124_v8 = vmul.f32 0.0078125, %v10057_v45 }
0x1d87   : > { %v10105_v46 = vpop.xlane.xlu0 %10104 }
0x1d88   : > { %v15994_v63 = vpop.eup %15993  ;;  %v10203_v57 = vadd.f32 1e-05, %v10171_v5  ;;  %v10156_v25 = vmul.f32 %v10124_v8, %v10124_v8  ;;  %v10140_v4 = vmul.f32 0.0078125, %v10105_v46  ;;  %v10188_v20 = vsub.f32 %v20447_v6, %v10124_v8 }
0x1d89   : > { %v10059_v11 = vpop.xlane.xlu1 %10058  ;;  %v10232_v24 = vmul.f32 %v15994_v63, %v10184_v42 }
0x1d8a   : > { %15999 = vrsqrt.f32 %v10203_v57  ;;  %v10172_v32 = vsub.f32 %v10140_v4, %v10156_v25  ;;  %v10125_v10 = vmul.f32 0.0078125, %v10059_v11 }
0x1d8b   : > { %v10107_v58 = vpop.xlane.xlu0 %10106  ;;  %v10254_v43 = vmul.f32 %v20402_v62, %v10232_v24 }
0x1d8c   : > { %v15996_v37 = vpop.eup %15995  ;;  %v10204_v31 = vadd.f32 1e-05, %v10172_v32  ;;  %v10157_v9 = vmul.f32 %v10125_v10, %v10125_v10  ;;  %v10141_v59 = vmul.f32 0.0078125, %v10107_v58  ;;  %v10189_v15 = vsub.f32 %v20463_v2, %v10125_v10  ;;  %v10316_v10 = vld [vmem:[%s21223_s26] sm:$0x3]  ;;  %s16317_s26 = sshll.u32 %s16420_s23, 4  ;;  %s16318_s26 = int_to_ptr.vmem [resolvable:$false] %s16317_s26 }
0x1d8d   : > { %v20526_v30 = vadd.f32 %v20412_v29, %v10254_v43  ;;  %v10233_v54 = vmul.f32 %v15996_v37, %v10185_v40  ;;  %s16319_s22 = scalar_lea.vmem %s16318_s26, 4096  ;;  %p16320_p7 = scmp.lt.s32.totalorder %s20852_s6, %s16318_s26 }
0x1d8e   : > { %16001 = vrsqrt.f32 %v10204_v31  ;;  %v10173_v26 = vsub.f32 %v10141_v59, %v10157_v9  ;;  %v21224_v31 = vld [vmem:[#allocation28_spill] sm:$0xff]  ;;  %p16321_p8 = scmp.lt.s32.totalorder %s16319_s22, %s16313_s27 }
0x1d8f   : > { %10441 = vmatmul.mubr.f32.gmra.mrb[208].mxu0 %v20526_v30  ;;  %v10255_v52 = vmul.f32 %v20402_v62, %v10233_v54  ;;  %v20574_v9 = vrot.slane %v10316_v10, %v21224_v31  ;;  %v21225_v54 = vld [vmem:[#allocation29_spill] sm:$0xff] }
0x1d90   : > { %v15998_v22 = vpop.eup %15997  ;;  %v10205_v21 = vadd.f32 1e-05, %v10173_v26  ;;  %10446 = vmatprep.mubr.f32.mxu0 %v21203_v44  ;;  %p16322_p4 = por %p16321_p8, %p16320_p7 }
0x1d91   : > { %v20533_v48 = vadd.f32 %v20412_v29, %v10255_v52  ;;  %v10234_v53 = vmul.f32 %v15998_v22, %v10186_v56 }
0x1d92   : > { %16003 = vrsqrt.f32 %v10205_v21  ;;  %p16323_p3 = pnand %p16322_p4, %p16316_p5 }
0x1d93   : > { %10447 = vmatmul.mubr.f32.gmra.mrb[210].mxu0 %v20533_v48  ;;  %v10256_v16 = vmul.f32 %v20402_v62, %v10234_v53 }
0x1d94   : > { %v16000_v39 = vpop.eup %15999  ;;  %10452 = vmatprep.mubr.f32.mxu0 %v21203_v44 }
0x1d95   : > { %v20540_v38 = vadd.f32 %v20412_v29, %v10256_v16  ;;  %v10235_v34 = vmul.f32 %v16000_v39, %v10187_v36 }
0x1d97   : > { %10453 = vmatmul.mubr.f32.gmra.mrb[212].mxu0 %v20540_v38  ;;  %v10257_v41 = vmul.f32 %v20402_v62, %v10235_v34 }
0x1d98   : > { %v16002_v1 = vpop.eup %16001  ;;  %10458 = vmatprep.mubr.f32.mxu0 %v21203_v44 }
0x1d99   : > { %v20547_v61 = vadd.f32 %v20412_v29, %v10257_v41  ;;  %v10236_v47 = vmul.f32 %v16002_v1, %v10188_v20 }
0x1d9b   : > { %10459 = vmatmul.mubr.f32.gmra.mrb[214].mxu0 %v20547_v61  ;;  %v10258_v28 = vmul.f32 %v20402_v62, %v10236_v47 }
0x1d9c   : > { %v16004_v49 = vpop.eup %16003  ;;  %10464 = vmatprep.mubr.f32.mxu0 %v21203_v44 }
0x1d9d   : > { %v20554_v6 = vadd.f32 %v20412_v29, %v10258_v28  ;;  %v10237_v35 = vmul.f32 %v16004_v49, %v10189_v15 }
0x1d9f   : > { %10465 = vmatmul.mubr.f32.gmra.mrb[216].mxu0 %v20554_v6  ;;  %v10259_v18 = vmul.f32 %v20402_v62, %v10237_v35 }
0x1da0   : > { %10470 = vmatprep.mubr.f32.mxu0 %v21203_v44 }
0x1da1   : > { %v20560_v13 = vadd.f32 %v20412_v29, %v10259_v18 }
0x1da3   : > { %10471 = vmatmul.mubr.f32.gmra.mrb[218].mxu0 %v20560_v13 }
0x1da4   : > { %10476 = vmatprep.mubr.f32.mxu0 %v21203_v44 }
0x1da8   : > { %v10061_v2 = vpop.xlane.xlu1 %10060 }
0x1da9   : > { %v10126_v19 = vmul.f32 0.0078125, %v10061_v2 }
0x1daa   : > { %v10109_v23 = vpop.xlane.xlu0 %10108 }
0x1dab   : > { %v10158_v12 = vmul.f32 %v10126_v19, %v10126_v19  ;;  %v10142_v33 = vmul.f32 0.0078125, %v10109_v23  ;;  %v10190_v11 = vsub.f32 %v20511_v51, %v10126_v19  ;;  %v20577_v51 = vrot.slane %v10316_v10, %v21225_v54 }
0x1dac   : > { %v10063_v45 = vpop.xlane.xlu1 %10062 }
0x1dad   : > { %v10174_v5 = vsub.f32 %v10142_v33, %v10158_v12  ;;  %v10127_v8 = vmul.f32 0.0078125, %v10063_v45 }
0x1dae   : > { %v10111_v42 = vpop.xlane.xlu0 %10110 }
0x1daf   : > { %v10206_v46 = vadd.f32 1e-05, %v10174_v5  ;;  %v10159_v63 = vmul.f32 %v10127_v8, %v10127_v8  ;;  %v10143_v57 = vmul.f32 0.0078125, %v10111_v42  ;;  %v10191_v40 = vsub.f32 %v20514_v55, %v10127_v8 }
0x1db1   : > { %16005 = vrsqrt.f32 %v10206_v46  ;;  %v10175_v25 = vsub.f32 %v10143_v57, %v10159_v63 }
0x1db3   : > { %v10207_v4 = vadd.f32 1e-05, %v10175_v25 }
0x1db5   : > { %16007 = vrsqrt.f32 %v10207_v4 }
0x1dbb   : > { %v16006_v24 = vpop.eup %16005 }
0x1dbc   : > { %v10238_v32 = vmul.f32 %v16006_v24, %v10190_v11 }
0x1dbe   : > { %v10260_v58 = vmul.f32 %v20402_v62, %v10238_v32 }
0x1dbf   : > { %v16008_v43 = vpop.eup %16007 }
0x1dc0   : > { %v20571_v37 = vadd.f32 %v20412_v29, %v10260_v58  ;;  %v10239_v59 = vmul.f32 %v16008_v43, %v10191_v40 }
0x1dc2   : > { %10477 = vmatmul.mubr.f32.gmra.mrb[220].mxu0 %v20571_v37  ;;  %v10261_v26 = vmul.f32 %v20402_v62, %v10239_v59 }
0x1dc3   : > { %v10394_v56 = vpop.f32.mrb[192].mxu0  ;;  %10482 = vmatprep.mubr.f32.mxu0 %v21203_v44 }
0x1dc4   : > { %v10395_v55 = vadd.f32 %v10394_v56, %v20574_v9  ;;  %v10396_v52 = vpop.f32.mrb[193].mxu0  ;;  %v20584_v22 = vadd.f32 %v20412_v29, %v10261_v26 }
0x1dc5   : > { %v10397_v21 = vadd.f32 %v10396_v52, %v20577_v51 }
0x1dc6   : > { %10483 = vmatmul.mubr.f32.gmra.mrb[222].mxu0 %v20584_v22  ;;  %v10489_v16 = vmax.f32 %v10395_v55, 0.0 }
0x1dc7   : > { %v10490_v53 = vmax.f32 %v10397_v21, 0.0  ;;  %v10400_v36 = vpop.f32.mrb[194].mxu0 }
0x1dc8   : > { %v10401_v39 = vadd.f32 %v10400_v36, %v20574_v9  ;;  %v10402_v34 = vpop.f32.mrb[195].mxu0 }
0x1dc9   : > { %v10403_v62 = vadd.f32 %v10402_v34, %v20577_v51  ;;  %10624 = vmatprep.mubr.f32.mxu0 %v10490_v53 }
0x1dca   : > { %10625 = vmatmul.mubr.f32.vlgmr.msra.gmra.mrb[224].mxu0 %v10489_v16  ;;  %v10491_v41 = vmax.f32 %v10401_v39, 0.0 }
0x1dcb   : > { %v10492_v44 = vmax.f32 %v10403_v62, 0.0  ;;  %v10406_v20 = vpop.f32.mrb[196].mxu0 }
0x1dcc   : > { %v10407_v29 = vadd.f32 %v10406_v20, %v20574_v9  ;;  %v10408_v1 = vpop.f32.mrb[197].mxu0 }
0x1dcd   : > { %v10409_v47 = vadd.f32 %v10408_v1, %v20577_v51  ;;  %10629 = vmatprep.mubr.f32.mxu0 %v10492_v44 }
0x1dce   : > { %10630 = vmatmul.mubr.f32.gmra.mrb[226].mxu0 %v10491_v41  ;;  %v10493_v28 = vmax.f32 %v10407_v29, 0.0 }
0x1dcf   : > { %v10494_v15 = vmax.f32 %v10409_v47, 0.0  ;;  %v10412_v49 = vpop.f32.mrb[198].mxu0 }
0x1dd0   : > { %v10413_v35 = vadd.f32 %v10412_v49, %v20574_v9  ;;  %v10414_v18 = vpop.f32.mrb[199].mxu0 }
0x1dd1   : > { %10634 = vmatprep.mubr.f32.mxu1 %v10494_v15  ;;  %v10415_v2 = vadd.f32 %v10414_v18, %v20577_v51 }
0x1dd2   : > { %10635 = vmatmul.mubr.f32.vlgmr.msra.gmra.mrb[192].mxu1 %v10493_v28  ;;  %v10495_v12 = vmax.f32 %v10413_v35, 0.0 }
0x1dd3   : > { %v10496_v19 = vmax.f32 %v10415_v2, 0.0  ;;  %v10418_v23 = vpop.f32.mrb[200].mxu0 }
0x1dd4   : > { %v10419_v33 = vadd.f32 %v10418_v23, %v20574_v9  ;;  %v10420_v45 = vpop.f32.mrb[201].mxu0 }
0x1dd5   : > { %v10421_v5 = vadd.f32 %v10420_v45, %v20577_v51  ;;  %10639 = vmatprep.mubr.f32.mxu1 %v10496_v19 }
0x1dd6   : > { %10640 = vmatmul.mubr.f32.gmra.mrb[194].mxu1 %v10495_v12  ;;  %v10497_v46 = vmax.f32 %v10419_v33, 0.0 }
0x1dd7   : > { %v10498_v8 = vmax.f32 %v10421_v5, 0.0  ;;  %v10424_v42 = vpop.f32.mrb[202].mxu0 }
0x1dd8   : > { %v10425_v63 = vadd.f32 %v10424_v42, %v20574_v9  ;;  %v10426_v57 = vpop.f32.mrb[203].mxu0 }
0x1dd9   : > { %v10427_v25 = vadd.f32 %v10426_v57, %v20577_v51  ;;  %10644 = vmatprep.mubr.f32.mxu1 %v10498_v8 }
0x1dda   : > { %10645 = vmatmul.mubr.f32.gmra.mrb[196].mxu1 %v10497_v46  ;;  %v10499_v24 = vmax.f32 %v10425_v63, 0.0 }
0x1ddb   : > { %v10500_v4 = vmax.f32 %v10427_v25, 0.0  ;;  %v10430_v11 = vpop.f32.mrb[204].mxu0 }
0x1ddc   : > { %v10431_v32 = vadd.f32 %v10430_v11, %v20574_v9  ;;  %v10432_v10 = vpop.f32.mrb[205].mxu0 }
0x1ddd   : > { %v10433_v40 = vadd.f32 %v10432_v10, %v20577_v51  ;;  %10649 = vmatprep.mubr.f32.mxu1 %v10500_v4 }
0x1dde   : > { %10650 = vmatmul.mubr.f32.gmra.mrb[198].mxu1 %v10499_v24  ;;  %v10501_v31 = vmax.f32 %v10431_v32, 0.0 }
0x1ddf   : > { %v10502_v58 = vmax.f32 %v10433_v40, 0.0  ;;  %v10436_v43 = vpop.f32.mrb[206].mxu0 }
0x1de0   : > { %v10437_v59 = vadd.f32 %v10436_v43, %v20574_v9  ;;  %v10438_v54 = vpop.f32.mrb[207].mxu0 }
0x1de1   : > { %v10439_v26 = vadd.f32 %v10438_v54, %v20577_v51  ;;  %10654 = vmatprep.mubr.f32.mxu1 %v10502_v58 }
0x1de2   : > { %10655 = vmatmul.mubr.f32.gmra.mrb[200].mxu1 %v10501_v31  ;;  %v10503_v55 = vmax.f32 %v10437_v59, 0.0 }
0x1de3   : > { %v10504_v56 = vmax.f32 %v10439_v26, 0.0 }
0x1de5   : > { %10659 = vmatprep.mubr.f32.mxu1 %v10504_v56 }
0x1de6   : > { %10660 = vmatmul.mubr.f32.gmra.mrb[202].mxu1 %v10503_v55 }
0x1e62   : > { %v10442_v52 = vpop.f32.mrb[208].mxu0 }
0x1e63   : > { %v10443_v21 = vadd.f32 %v10442_v52, %v20574_v9  ;;  %v10444_v53 = vpop.f32.mrb[209].mxu0 }
0x1e64   : > { %v10445_v36 = vadd.f32 %v10444_v53, %v20577_v51 }
0x1e65   : > { %v10505_v34 = vmax.f32 %v10443_v21, 0.0 }
0x1e66   : > { %v10506_v16 = vmax.f32 %v10445_v36, 0.0  ;;  %v10448_v39 = vpop.f32.mrb[210].mxu0 }
0x1e67   : > { %v10449_v62 = vadd.f32 %v10448_v39, %v20574_v9  ;;  %v10450_v44 = vpop.f32.mrb[211].mxu0 }
0x1e68   : > { %v10451_v20 = vadd.f32 %v10450_v44, %v20577_v51  ;;  %10664 = vmatprep.mubr.f32.mxu1 %v10506_v16 }
0x1e69   : > { %10665 = vmatmul.mubr.f32.gmra.mrb[204].mxu1 %v10505_v34  ;;  %v10507_v1 = vmax.f32 %v10449_v62, 0.0 }
0x1e6a   : > { %v10508_v41 = vmax.f32 %v10451_v20, 0.0  ;;  %v10454_v29 = vpop.f32.mrb[212].mxu0 }
0x1e6b   : > { %v10455_v47 = vadd.f32 %v10454_v29, %v20574_v9  ;;  %v10456_v15 = vpop.f32.mrb[213].mxu0 }
0x1e6c   : > { %v10457_v28 = vadd.f32 %v10456_v15, %v20577_v51  ;;  %10669 = vmatprep.mubr.f32.mxu1 %v10508_v41 }
0x1e6d   : > { %10670 = vmatmul.mubr.f32.gmra.mrb[206].mxu1 %v10507_v1  ;;  %v10509_v18 = vmax.f32 %v10455_v47, 0.0 }
0x1e6e   : > { %v10510_v49 = vmax.f32 %v10457_v28, 0.0  ;;  %v10460_v35 = vpop.f32.mrb[214].mxu0 }
0x1e6f   : > { %v10461_v2 = vadd.f32 %v10460_v35, %v20574_v9  ;;  %v10462_v19 = vpop.f32.mrb[215].mxu0 }
0x1e70   : > { %v10463_v23 = vadd.f32 %v10462_v19, %v20577_v51  ;;  %10674 = vmatprep.mubr.f32.mxu1 %v10510_v49 }
0x1e71   : > { %10675 = vmatmul.mubr.f32.gmra.mrb[208].mxu1 %v10509_v18  ;;  %v10511_v45 = vmax.f32 %v10461_v2, 0.0 }
0x1e72   : > { %v10512_v12 = vmax.f32 %v10463_v23, 0.0  ;;  %v10466_v33 = vpop.f32.mrb[216].mxu0 }
0x1e73   : > { %v10467_v5 = vadd.f32 %v10466_v33, %v20574_v9  ;;  %v10468_v8 = vpop.f32.mrb[217].mxu0 }
0x1e74   : > { %v10469_v42 = vadd.f32 %v10468_v8, %v20577_v51  ;;  %10679 = vmatprep.mubr.f32.mxu1 %v10512_v12 }
0x1e75   : > { %10680 = vmatmul.mubr.f32.gmra.mrb[210].mxu1 %v10511_v45  ;;  %v10513_v57 = vmax.f32 %v10467_v5, 0.0 }
0x1e76   : > { %v10514_v46 = vmax.f32 %v10469_v42, 0.0  ;;  %v10472_v63 = vpop.f32.mrb[218].mxu0 }
0x1e77   : > { %v10473_v25 = vadd.f32 %v10472_v63, %v20574_v9  ;;  %v10474_v4 = vpop.f32.mrb[219].mxu0 }
0x1e78   : > { %v10475_v11 = vadd.f32 %v10474_v4, %v20577_v51  ;;  %10684 = vmatprep.mubr.f32.mxu1 %v10514_v46 }
0x1e79   : > { %10685 = vmatmul.mubr.f32.gmra.mrb[212].mxu1 %v10513_v57  ;;  %v10515_v32 = vmax.f32 %v10473_v25, 0.0 }
0x1e7a   : > { %v10516_v24 = vmax.f32 %v10475_v11, 0.0 }
0x1e7c   : > { %10689 = vmatprep.mubr.f32.mxu1 %v10516_v24 }
0x1e7d   : > { %10690 = vmatmul.mubr.f32.gmra.mrb[214].mxu1 %v10515_v32 }
0x1e95   : > { %v10478_v10 = vpop.f32.mrb[220].mxu0 }
0x1e96   : > { %v10479_v40 = vadd.f32 %v10478_v10, %v20574_v9  ;;  %v10480_v58 = vpop.f32.mrb[221].mxu0 }
0x1e97   : > { %v10481_v43 = vadd.f32 %v10480_v58, %v20577_v51 }
0x1e98   : > { %v10517_v54 = vmax.f32 %v10479_v40, 0.0 }
0x1e99   : > { %v10518_v31 = vmax.f32 %v10481_v43, 0.0  ;;  %v10484_v59 = vpop.f32.mrb[222].mxu0 }
0x1e9a   : > { %v10485_v26 = vadd.f32 %v10484_v59, %v20574_v9  ;;  %v10486_v56 = vpop.f32.mrb[223].mxu0  ;;  %v20621_v9 = vld [vmem:[%s21226_s1] ss:$0 sm:$0xff] }
0x1e9b   : > { %v10487_v55 = vadd.f32 %v10486_v56, %v20577_v51  ;;  %10694 = vmatprep.mubr.f32.mxu1 %v10518_v31 }
0x1e9c   : > { %10695 = vmatmul.mubr.f32.gmra.mrb[216].mxu1 %v10517_v54  ;;  %v10519_v53 = vmax.f32 %v10485_v26, 0.0 }
0x1e9d   : > { %v10520_v52 = vmax.f32 %v10487_v55, 0.0  ;;  %v12499_v21 = vpop.f32.mrb[224].mxu0 }
0x1e9e   : > { %v12500_v36 = vpop.f32.mrb[225].mxu0 }
0x1e9f   : > { %v12501_v16 = vadd.f32 %v12500_v36, %v12499_v21  ;;  %10699 = vmatprep.mubr.f32.mxu1 %v10520_v52 }
0x1ea0   : > { %10700 = vmatmul.mubr.f32.gmra.mrb[218].mxu1 %v10519_v53 }
0x1ea1   : > { %v12502_v39 = vpop.f32.mrb[226].mxu0  ;;  %v10627_v35 = vadd.f32 %v12501_v16, %v20621_v9 }
0x1ea2   : > { %v12503_v34 = vpop.f32.mrb[227].mxu0 }
0x1ea3   : > { %v12504_v62 = vadd.f32 %v12503_v34, %v12502_v39  ;;  %v20637_v33 = vadd.f32 %v10627_v35, %v20426_v27 }
0x1ea5   : > { %v12505_v44 = vpop.f32.mrb[192].mxu1  ;;  %v10632_v45 = vadd.f32 %v12504_v62, %v20621_v9  ;;  %v10755_v63 = vmul.f32 %v20637_v33, %v20637_v33 }
0x1ea6   : > { %v12506_v20 = vpop.f32.mrb[193].mxu1 }
0x1ea7   : > { %v12507_v41 = vadd.f32 %v12506_v20, %v12505_v44  ;;  %v20647_v27 = vadd.f32 %v10632_v45, %v20443_v60 }
0x1ea9   : > { %v10637_v51 = vadd.f32 %v12507_v41, %v20621_v9  ;;  %v12508_v29 = vpop.f32.mrb[194].mxu1  ;;  %v10756_v10 = vmul.f32 %v20647_v27, %v20647_v27 }
0x1eaa   : > { %v12509_v1 = vpop.f32.mrb[195].mxu1 }
0x1eab   : > { %v20625_v47 = vadd.f32 %v10637_v51, %v20458_v17  ;;  %v12510_v15 = vadd.f32 %v12509_v1, %v12508_v29 }
0x1ead   : > { %10727 = vadd.xlane.f32.xlu1 %v20625_v47  ;;  %v10642_v28 = vadd.f32 %v12510_v15, %v20621_v9  ;;  %v12511_v49 = vpop.f32.mrb[196].mxu1  ;;  %v10757_v2 = vmul.f32 %v20625_v47, %v20625_v47 }
0x1eae   : > { %v12512_v18 = vpop.f32.mrb[197].mxu1 }
0x1eaf   : > { %v12513_v19 = vadd.f32 %v12512_v18, %v12511_v49  ;;  %v20633_v23 = vadd.f32 %v10642_v28, %v20472_v14 }
0x1eb1   : > { %10775 = vadd.xlane.f32.xlu1 %v10757_v2  ;;  %v12514_v12 = vpop.f32.mrb[198].mxu1  ;;  %10729 = vadd.xlane.f32.xlu0 %v20633_v23  ;;  %v10758_v8 = vmul.f32 %v20633_v23, %v20633_v23  ;;  %v10647_v14 = vadd.f32 %v12513_v19, %v20621_v9 }
0x1eb2   : > { %v12515_v17 = vpop.f32.mrb[199].mxu1 }
0x1eb3   : > { %v12516_v5 = vadd.f32 %v12515_v17, %v12514_v12  ;;  %v20651_v11 = vadd.f32 %v10647_v14, %v20483_v0 }
0x1eb5   : > { %10723 = vadd.xlane.f32.xlu1 %v20637_v33  ;;  %v12517_v42 = vpop.f32.mrb[200].mxu1  ;;  %10777 = vadd.xlane.f32.xlu0 %v10758_v8  ;;  %v10652_v24 = vadd.f32 %v12516_v5, %v20621_v9  ;;  %v10759_v40 = vmul.f32 %v20651_v11, %v20651_v11 }
0x1eb6   : > { %v12518_v46 = vpop.f32.mrb[201].mxu1 }
0x1eb7   : > { %v12519_v57 = vadd.f32 %v12518_v46, %v12517_v42  ;;  %v20661_v58 = vadd.f32 %v10652_v24, %v20491_v3 }
0x1eb9   : > { %10771 = vadd.xlane.f32.xlu1 %v10755_v63  ;;  %v12520_v25 = vpop.f32.mrb[202].mxu1  ;;  %10725 = vadd.xlane.f32.xlu0 %v20647_v27  ;;  %v10657_v60 = vadd.f32 %v12519_v57, %v20621_v9  ;;  %v10760_v31 = vmul.f32 %v20661_v58, %v20661_v58 }
0x1eba   : > { %v12521_v4 = vpop.f32.mrb[203].mxu1 }
0x1ebb   : > { %v12522_v32 = vadd.f32 %v12521_v4, %v12520_v25  ;;  %v20665_v0 = vadd.f32 %v10657_v60, %v20498_v50 }
0x1ebd   : > { %10731 = vadd.xlane.f32.xlu1 %v20651_v11  ;;  %10773 = vadd.xlane.f32.xlu0 %v10756_v10  ;;  %v10662_v43 = vadd.f32 %v12522_v32, %v20621_v9  ;;  %v10761_v59 = vmul.f32 %v20665_v0, %v20665_v0 }
0x1ebf   : > { %v20674_v3 = vadd.f32 %v10662_v43, %v20504_v7 }
0x1ec1   : > { %10779 = vadd.xlane.f32.xlu1 %v10759_v40  ;;  %10733 = vadd.xlane.f32.xlu0 %v20661_v58  ;;  %v10762_v50 = vmul.f32 %v20674_v3, %v20674_v3 }
0x1ec5   : > { %10735 = vadd.xlane.f32.xlu1 %v20665_v0  ;;  %10781 = vadd.xlane.f32.xlu0 %v10760_v31 }
0x1ec9   : > { %10783 = vadd.xlane.f32.xlu1 %v10761_v59  ;;  %10737 = vadd.xlane.f32.xlu0 %v20674_v3 }
0x1ecd   : > { %10785 = vadd.xlane.f32.xlu0 %v10762_v50 }
0x1f3a   : > { %v10728_v54 = vpop.xlane.xlu1 %10727 }
0x1f3b   : > { %v20679_v26 = vmul.f32 0.0078125, %v10728_v54 }
0x1f3c   : > { %v12523_v56 = vpop.f32.mrb[204].mxu1 }
0x1f3d   : > { %v12524_v55 = vpop.f32.mrb[205].mxu1  ;;  %v10837_v53 = vmul.f32 %v20679_v26, %v20679_v26 }
0x1f3e   : > { %v12525_v52 = vadd.f32 %v12524_v55, %v12523_v56  ;;  %v10776_v21 = vpop.xlane.xlu1 %10775  ;;  %v10730_v7 = vpop.xlane.xlu0 %10729  ;;  %v10869_v55 = vsub.f32 %v20625_v47, %v20679_v26 }
0x1f3f   : > { %v10821_v36 = vmul.f32 0.0078125, %v10776_v21  ;;  %v20684_v39 = vmul.f32 0.0078125, %v10730_v7  ;;  %v20725_v7 = vld [vmem:[%s21227_s18] ss:$0 sm:$0xff] }
0x1f40   : > { %v10667_v16 = vadd.f32 %v12525_v52, %v20621_v9  ;;  %v12526_v34 = vpop.f32.mrb[206].mxu1 }
0x1f41   : > { %v10853_v62 = vsub.f32 %v10821_v36, %v10837_v53  ;;  %v12527_v44 = vpop.f32.mrb[207].mxu1  ;;  %v10838_v28 = vmul.f32 %v20684_v39, %v20684_v39 }
0x1f42   : > { %v12528_v20 = vadd.f32 %v12527_v44, %v12526_v34  ;;  %v10724_v41 = vpop.xlane.xlu1 %10723  ;;  %v20687_v51 = vadd.f32 %v10667_v16, %v20526_v30  ;;  %v10778_v15 = vpop.xlane.xlu0 %10777 }
0x1f43   : > { %v10885_v29 = vadd.f32 1e-05, %v10853_v62  ;;  %v20689_v1 = vmul.f32 0.0078125, %v10724_v41  ;;  %v10822_v35 = vmul.f32 0.0078125, %v10778_v15 }
0x1f44   : > { %v10672_v49 = vadd.f32 %v12528_v20, %v20621_v9  ;;  %v12529_v18 = vpop.f32.mrb[208].mxu1  ;;  %10739 = vadd.xlane.f32.xlu1 %v20687_v51  ;;  %v10763_v45 = vmul.f32 %v20687_v51, %v20687_v51 }
0x1f45   : > { %16009 = vrsqrt.f32 %v10885_v29  ;;  %v12530_v2 = vpop.f32.mrb[209].mxu1  ;;  %v10854_v19 = vsub.f32 %v10822_v35, %v10838_v28  ;;  %v10835_v5 = vmul.f32 %v20689_v1, %v20689_v1  ;;  %v20738_v29 = vld [vmem:[%s21228_s5] ss:$0 sm:$0xff]  ;;  %v10870_v35 = vsub.f32 %v20633_v23, %v20684_v39 }
0x1f46   : > { %v12531_v12 = vadd.f32 %v12530_v2, %v12529_v18  ;;  %v10772_v17 = vpop.xlane.xlu1 %10771  ;;  %v20696_v30 = vadd.f32 %v10672_v49, %v20533_v48  ;;  %v10726_v42 = vpop.xlane.xlu0 %10725 }
0x1f47   : > { %v10819_v8 = vmul.f32 0.0078125, %v10772_v17  ;;  %v10886_v14 = vadd.f32 1e-05, %v10854_v19  ;;  %v20703_v63 = vmul.f32 0.0078125, %v10726_v42 }
0x1f48   : > { %v10677_v46 = vadd.f32 %v12531_v12, %v20621_v9  ;;  %v12532_v57 = vpop.f32.mrb[210].mxu1  ;;  %10741 = vadd.xlane.f32.xlu0 %v20696_v30  ;;  %10787 = vadd.xlane.f32.xlu1 %v10763_v45  ;;  %v10764_v32 = vmul.f32 %v20696_v30, %v20696_v30 }
0x1f49   : > { %v10851_v25 = vsub.f32 %v10819_v8, %v10835_v5  ;;  %v12533_v48 = vpop.f32.mrb[211].mxu1  ;;  %16011 = vrsqrt.f32 %v10886_v14  ;;  %v10836_v31 = vmul.f32 %v20703_v63, %v20703_v63 }
0x1f4a   : > { %v12534_v4 = vadd.f32 %v12533_v48, %v12532_v57  ;;  %v10732_v24 = vpop.xlane.xlu1 %10731  ;;  %v10774_v40 = vpop.xlane.xlu0 %10773  ;;  %v20711_v43 = vadd.f32 %v10677_v46, %v20540_v38 }
0x1f4b   : > { %v10883_v10 = vadd.f32 1e-05, %v10851_v25  ;;  %v20708_v60 = vmul.f32 0.0078125, %v10732_v24  ;;  %v10820_v50 = vmul.f32 0.0078125, %v10774_v40 }
0x1f4c   : > { %v10682_v59 = vadd.f32 %v12534_v4, %v20621_v9  ;;  %v12535_v54 = vpop.f32.mrb[212].mxu1  ;;  %10789 = vadd.xlane.f32.xlu0 %v10764_v32  ;;  %10743 = vadd.xlane.f32.xlu1 %v20711_v43  ;;  %v10765_v47 = vmul.f32 %v20711_v43, %v20711_v43 }
0x1f4d   : > { %16013 = vrsqrt.f32 %v10883_v10  ;;  %v12536_v56 = vpop.f32.mrb[213].mxu1  ;;  %v10852_v52 = vsub.f32 %v10820_v50, %v10836_v31  ;;  %v10839_v16 = vmul.f32 %v20708_v60, %v20708_v60 }
0x1f4e   : > { %v12537_v21 = vadd.f32 %v12536_v56, %v12535_v54  ;;  %v10780_v53 = vpop.xlane.xlu1 %10779  ;;  %v20720_v38 = vadd.f32 %v10682_v59, %v20547_v61  ;;  %v10734_v62 = vpop.xlane.xlu0 %10733 }
0x1f4f   : > { %v16010_v36 = vpop.eup %16009  ;;  %v10823_v34 = vmul.f32 0.0078125, %v10780_v53  ;;  %v10884_v44 = vadd.f32 1e-05, %v10852_v52  ;;  %v20732_v61 = vmul.f32 0.0078125, %v10734_v62 }
0x1f50   : > { %v10917_v26 = vmul.f32 %v16010_v36, %v10869_v55  ;;  %v10687_v20 = vadd.f32 %v12537_v21, %v20621_v9  ;;  %v12538_v41 = vpop.f32.mrb[214].mxu1  ;;  %10745 = vadd.xlane.f32.xlu0 %v20720_v38  ;;  %10791 = vadd.xlane.f32.xlu1 %v10765_v47  ;;  %v10766_v2 = vmul.f32 %v20720_v38, %v20720_v38 }
0x1f51   : > { %v10855_v15 = vsub.f32 %v10823_v34, %v10839_v16  ;;  %v12539_v28 = vpop.f32.mrb[215].mxu1  ;;  %16015 = vrsqrt.f32 %v10884_v44  ;;  %v10840_v23 = vmul.f32 %v20732_v61, %v20732_v61  ;;  %v10871_v47 = vsub.f32 %v20651_v11, %v20708_v60 }
0x1f52   : > { %v10939_v49 = vmul.f32 %v20725_v7, %v10917_v26  ;;  %v10736_v18 = vpop.xlane.xlu1 %10735  ;;  %v12540_v12 = vadd.f32 %v12539_v28, %v12538_v41  ;;  %v10782_v45 = vpop.xlane.xlu0 %10781  ;;  %v20748_v5 = vadd.f32 %v10687_v20, %v20554_v6  ;;  %v10867_v6 = vsub.f32 %v20637_v33, %v20689_v1 }
0x1f53   : > { %v10887_v19 = vadd.f32 1e-05, %v10855_v15  ;;  %v20745_v17 = vmul.f32 0.0078125, %v10736_v18  ;;  %v16012_v8 = vpop.eup %16011  ;;  %v10824_v39 = vmul.f32 0.0078125, %v10782_v45  ;;  %v10872_v28 = vsub.f32 %v20661_v58, %v20732_v61 }
0x1f54   : > { %v10961_v42 = vadd.f32 %v20738_v29, %v10939_v49  ;;  %10793 = vadd.xlane.f32.xlu0 %v10766_v2  ;;  %v10918_v14 = vmul.f32 %v16012_v8, %v10870_v35  ;;  %v10692_v46 = vadd.f32 %v12540_v12, %v20621_v9  ;;  %10747 = vadd.xlane.f32.xlu1 %v20748_v5 }
0x1f55   : > { %16017 = vrsqrt.f32 %v10887_v19  ;;  %v10841_v57 = vmul.f32 %v20745_v17, %v20745_v17  ;;  %v10856_v25 = vsub.f32 %v10824_v39, %v10840_v23  ;;  %v10767_v31 = vmul.f32 %v20748_v5, %v20748_v5 }
0x1f56   : > { %10977 = vst [vmem:[%s20756_s15 + $0x10] sm:$0xff] %v10961_v42  ;;  %v10784_v48 = vpop.xlane.xlu1 %10783  ;;  %v10940_v24 = vmul.f32 %v20725_v7, %v10918_v14  ;;  %v10738_v10 = vpop.xlane.xlu0 %10737  ;;  %v20765_v40 = vadd.f32 %v10692_v46, %v20560_v13  ;;  %v10868_v13 = vsub.f32 %v20647_v27, %v20703_v63  ;;  %v10873_v35 = vsub.f32 %v20665_v0, %v20745_v17 }
0x1f57   : > { %v16014_v4 = vpop.eup %16013  ;;  %v10825_v32 = vmul.f32 0.0078125, %v10784_v48  ;;  %v10888_v50 = vadd.f32 1e-05, %v10856_v25  ;;  %v10810_v33 = vmul.f32 0.0078125, %v10738_v10 }
0x1f58   : > { %v10915_v59 = vmul.f32 %v16014_v4, %v10867_v6  ;;  %v10962_v1 = vadd.f32 %v20738_v29, %v10940_v24  ;;  %10749 = vadd.xlane.f32.xlu0 %v20765_v40  ;;  %10795 = vadd.xlane.f32.xlu1 %v10767_v31  ;;  %v10768_v21 = vmul.f32 %v20765_v40, %v20765_v40 }
0x1f59   : > { %v10857_v54 = vsub.f32 %v10825_v32, %v10841_v57  ;;  %16019 = vrsqrt.f32 %v10888_v50  ;;  %v10842_v16 = vmul.f32 %v10810_v33, %v10810_v33  ;;  %v10874_v58 = vsub.f32 %v20674_v3, %v10810_v33 }
0x1f5a   : > { %v10937_v56 = vmul.f32 %v20725_v7, %v10915_v59  ;;  %10978 = vst [vmem:[%s20756_s15 + $0x18] sm:$0xff] %v10962_v1  ;;  %v10786_v52 = vpop.xlane.xlu0 %10785 }
0x1f5b   : > { %v10889_v55 = vadd.f32 1e-05, %v10857_v54  ;;  %v16016_v53 = vpop.eup %16015  ;;  %v10826_v34 = vmul.f32 0.0078125, %v10786_v52 }
0x1f5c   : > { %v10959_v36 = vadd.f32 %v20738_v29, %v10937_v56  ;;  %v10916_v62 = vmul.f32 %v16016_v53, %v10868_v13  ;;  %10797 = vadd.xlane.f32.xlu0 %v10768_v21 }
0x1f5d   : > { %16021 = vrsqrt.f32 %v10889_v55  ;;  %v10858_v27 = vsub.f32 %v10826_v34, %v10842_v16 }
0x1f5e   : > { %10975 = vst [vmem:[%s20756_s15] sm:$0xff] %v10959_v36  ;;  %v10938_v26 = vmul.f32 %v20725_v7, %v10916_v62 }
0x1f5f   : > { %v16018_v63 = vpop.eup %16017  ;;  %v10890_v20 = vadd.f32 1e-05, %v10858_v27 }
0x1f60   : > { %v10919_v44 = vmul.f32 %v16018_v63, %v10871_v47  ;;  %v10960_v41 = vadd.f32 %v20738_v29, %v10938_v26 }
0x1f61   : > { %16023 = vrsqrt.f32 %v10890_v20 }
0x1f62   : > { %v10941_v15 = vmul.f32 %v20725_v7, %v10919_v44  ;;  %10976 = vst [vmem:[%s20756_s15 + $0x8] sm:$0xff] %v10960_v41 }
0x1f63   : > { %v16020_v49 = vpop.eup %16019 }
0x1f64   : > { %v10963_v11 = vadd.f32 %v20738_v29, %v10941_v15  ;;  %v10920_v60 = vmul.f32 %v16020_v49, %v10872_v28 }
0x1f66   : > { %10979 = vst [vmem:[%s20756_s15 + $0x20] sm:$0xff] %v10963_v11  ;;  %v10942_v2 = vmul.f32 %v20725_v7, %v10920_v60 }
0x1f67   : > { %v16022_v18 = vpop.eup %16021 }
0x1f68   : > { %v10921_v19 = vmul.f32 %v16022_v18, %v10873_v35  ;;  %v10964_v12 = vadd.f32 %v20738_v29, %v10942_v2 }
0x1f6a   : > { %v10943_v45 = vmul.f32 %v20725_v7, %v10921_v19  ;;  %10980 = vst [vmem:[%s20756_s15 + $0x28] sm:$0xff] %v10964_v12 }
0x1f6b   : > { %v16024_v61 = vpop.eup %16023 }
0x1f6c   : > { %v10965_v8 = vadd.f32 %v20738_v29, %v10943_v45  ;;  %v10922_v42 = vmul.f32 %v16024_v61, %v10874_v58 }
0x1f6e   : > { %10981 = vst [vmem:[%s20756_s15 + $0x30] sm:$0xff] %v10965_v8  ;;  %v10944_v23 = vmul.f32 %v20725_v7, %v10922_v42 }
0x1f6f   : > { %v12541_v0 = vpop.f32.mrb[216].mxu1 }
0x1f70   : > { %v12542_v17 = vpop.f32.mrb[217].mxu1  ;;  %v10966_v39 = vadd.f32 %v20738_v29, %v10944_v23 }
0x1f71   : > { %v12543_v14 = vadd.f32 %v12542_v17, %v12541_v0 }
0x1f72   : > { %10982 = vst [vmem:[%s20756_s15 + $0x38] sm:$0xff] %v10966_v39 }
0x1f73   : > { %v10697_v46 = vadd.f32 %v12543_v14, %v20621_v9  ;;  %v12544_v6 = vpop.f32.mrb[218].mxu1 }
0x1f74   : > { %v12545_v57 = vpop.f32.mrb[219].mxu1 }
0x1f75   : > { %v12546_v25 = vadd.f32 %v12545_v57, %v12544_v6  ;;  %v20803_v3 = vadd.f32 %v10697_v46, %v20571_v37 }
0x1f77   : > { %v10702_v48 = vadd.f32 %v12546_v25, %v20621_v9  ;;  %10751 = vadd.xlane.f32.xlu1 %v20803_v3  ;;  %v10769_v4 = vmul.f32 %v20803_v3, %v20803_v3 }
0x1f79   : > { %v20810_v24 = vadd.f32 %v10702_v48, %v20584_v22 }
0x1f7b   : > { %10799 = vadd.xlane.f32.xlu1 %v10769_v4  ;;  %10753 = vadd.xlane.f32.xlu0 %v20810_v24  ;;  %v10770_v32 = vmul.f32 %v20810_v24, %v20810_v24 }
0x1f7f   : > { %10801 = vadd.xlane.f32.xlu0 %v10770_v32 }
0x1fd1   : > { %v10740_v10 = vpop.xlane.xlu1 %10739 }
0x1fd2   : > { %v10811_v37 = vmul.f32 0.0078125, %v10740_v10 }
0x1fd4   : > { %v10843_v9 = vmul.f32 %v10811_v37, %v10811_v37  ;;  %v10875_v49 = vsub.f32 %v20687_v51, %v10811_v37 }
0x1fd5   : > { %v10788_v31 = vpop.xlane.xlu1 %10787  ;;  %v10742_v59 = vpop.xlane.xlu0 %10741 }
0x1fd6   : > { %v10827_v50 = vmul.f32 0.0078125, %v10788_v31  ;;  %v10812_v33 = vmul.f32 0.0078125, %v10742_v59 }
0x1fd8   : > { %v10859_v1 = vsub.f32 %v10827_v50, %v10843_v9  ;;  %v10844_v13 = vmul.f32 %v10812_v33, %v10812_v33  ;;  %v10876_v61 = vsub.f32 %v20696_v30, %v10812_v33 }
0x1fd9   : > { %v10790_v54 = vpop.xlane.xlu0 %10789  ;;  %v10744_v22 = vpop.xlane.xlu1 %10743 }
0x1fda   : > { %v10891_v56 = vadd.f32 1e-05, %v10859_v1  ;;  %v10828_v55 = vmul.f32 0.0078125, %v10790_v54  ;;  %v10813_v52 = vmul.f32 0.0078125, %v10744_v22 }
0x1fdc   : > { %16025 = vrsqrt.f32 %v10891_v56  ;;  %v10860_v21 = vsub.f32 %v10828_v55, %v10844_v13  ;;  %v10845_v62 = vmul.f32 %v10813_v52, %v10813_v52  ;;  %v10877_v57 = vsub.f32 %v20711_v43, %v10813_v52 }
0x1fdd   : > { %v10746_v53 = vpop.xlane.xlu0 %10745  ;;  %v10792_v16 = vpop.xlane.xlu1 %10791 }
0x1fde   : > { %v10892_v36 = vadd.f32 1e-05, %v10860_v21  ;;  %v10814_v34 = vmul.f32 0.0078125, %v10746_v53  ;;  %v10829_v47 = vmul.f32 0.0078125, %v10792_v16 }
0x1fe0   : > { %16027 = vrsqrt.f32 %v10892_v36  ;;  %v10861_v27 = vsub.f32 %v10829_v47, %v10845_v62  ;;  %v10846_v26 = vmul.f32 %v10814_v34, %v10814_v34  ;;  %v10878_v32 = vsub.f32 %v20720_v38, %v10814_v34 }
0x1fe1   : > { %v10794_v63 = vpop.xlane.xlu0 %10793  ;;  %v10748_v44 = vpop.xlane.xlu1 %10747 }
0x1fe2   : > { %v10830_v20 = vmul.f32 0.0078125, %v10794_v63  ;;  %v10893_v41 = vadd.f32 1e-05, %v10861_v27  ;;  %v10815_v15 = vmul.f32 0.0078125, %v10748_v44 }
0x1fe4   : > { %v10862_v28 = vsub.f32 %v10830_v20, %v10846_v26  ;;  %16029 = vrsqrt.f32 %v10893_v41  ;;  %v10847_v19 = vmul.f32 %v10815_v15, %v10815_v15  ;;  %v10879_v9 = vsub.f32 %v20748_v5, %v10815_v15 }
0x1fe5   : > { %v10796_v35 = vpop.xlane.xlu1 %10795  ;;  %v10750_v18 = vpop.xlane.xlu0 %10749 }
0x1fe6   : > { %v16026_v11 = vpop.eup %16025  ;;  %v10894_v60 = vadd.f32 1e-05, %v10862_v28  ;;  %v10831_v12 = vmul.f32 0.0078125, %v10796_v35  ;;  %v10816_v45 = vmul.f32 0.0078125, %v10750_v18 }
0x1fe7   : > { %v10923_v2 = vmul.f32 %v16026_v11, %v10875_v49 }
0x1fe8   : > { %16031 = vrsqrt.f32 %v10894_v60  ;;  %v10863_v8 = vsub.f32 %v10831_v12, %v10847_v19  ;;  %v10848_v23 = vmul.f32 %v10816_v45, %v10816_v45  ;;  %v10880_v54 = vsub.f32 %v20765_v40, %v10816_v45 }
0x1fe9   : > { %v10945_v58 = vmul.f32 %v20725_v7, %v10923_v2  ;;  %v10798_v51 = vpop.xlane.xlu0 %10797 }
0x1fea   : > { %v16028_v42 = vpop.eup %16027  ;;  %v10895_v39 = vadd.f32 1e-05, %v10863_v8  ;;  %v10832_v14 = vmul.f32 0.0078125, %v10798_v51 }
0x1feb   : > { %v10967_v0 = vadd.f32 %v20738_v29, %v10945_v58  ;;  %v10924_v17 = vmul.f32 %v16028_v42, %v10876_v61 }
0x1fec   : > { %16033 = vrsqrt.f32 %v10895_v39  ;;  %v10864_v6 = vsub.f32 %v10832_v14, %v10848_v23 }
0x1fed   : > { %10983 = vst [vmem:[%s20756_s15 + $0x40] sm:$0xff] %v10967_v0  ;;  %v10946_v46 = vmul.f32 %v20725_v7, %v10924_v17 }
0x1fee   : > { %v16030_v25 = vpop.eup %16029  ;;  %v10896_v48 = vadd.f32 1e-05, %v10864_v6 }
0x1fef   : > { %v10968_v30 = vadd.f32 %v20738_v29, %v10946_v46  ;;  %v10925_v4 = vmul.f32 %v16030_v25, %v10877_v57 }
0x1ff0   : > { %16035 = vrsqrt.f32 %v10896_v48 }
0x1ff1   : > { %10984 = vst [vmem:[%s20756_s15 + $0x48] sm:$0xff] %v10968_v30  ;;  %v10947_v37 = vmul.f32 %v20725_v7, %v10925_v4 }
0x1ff2   : > { %v16032_v10 = vpop.eup %16031 }
0x1ff3   : > { %v10926_v31 = vmul.f32 %v16032_v10, %v10878_v32  ;;  %v10969_v59 = vadd.f32 %v20738_v29, %v10947_v37 }
0x1ff5   : > { %v10948_v43 = vmul.f32 %v20725_v7, %v10926_v31  ;;  %10985 = vst [vmem:[%s20756_s15 + $0x50] sm:$0xff] %v10969_v59 }
0x1ff6   : > { %v16034_v50 = vpop.eup %16033 }
0x1ff7   : > { %v10970_v33 = vadd.f32 %v20738_v29, %v10948_v43  ;;  %v10927_v1 = vmul.f32 %v16034_v50, %v10879_v9 }
0x1ff9   : > { %10986 = vst [vmem:[%s20756_s15 + $0x58] sm:$0xff] %v10970_v33  ;;  %v10949_v38 = vmul.f32 %v20725_v7, %v10927_v1 }
0x1ffa   : > { %v16036_v56 = vpop.eup %16035 }
0x1ffb   : > { %v10971_v13 = vadd.f32 %v20738_v29, %v10949_v38  ;;  %v10928_v22 = vmul.f32 %v16036_v56, %v10880_v54 }
0x1ffd   : > { %10987 = vst [vmem:[%s20756_s15 + $0x60] sm:$0xff] %v10971_v13  ;;  %v10950_v55 = vmul.f32 %v20725_v7, %v10928_v22 }
0x1fff   : > { %v10972_v52 = vadd.f32 %v20738_v29, %v10950_v55 }
0x2001   : > { %10988 = vst [vmem:[%s20756_s15 + $0x68] sm:$0xff] %v10972_v52 }
0x2004   : > { %v10752_v5 = vpop.xlane.xlu1 %10751 }
0x2005   : > { %v10817_v21 = vmul.f32 0.0078125, %v10752_v5 }
0x2007   : > { %v10849_v16 = vmul.f32 %v10817_v21, %v10817_v21  ;;  %v10881_v41 = vsub.f32 %v20803_v3, %v10817_v21 }
0x2008   : > { %v10800_v53 = vpop.xlane.xlu1 %10799  ;;  %v10754_v36 = vpop.xlane.xlu0 %10753 }
0x2009   : > { %v10833_v34 = vmul.f32 0.0078125, %v10800_v53  ;;  %v10818_v62 = vmul.f32 0.0078125, %v10754_v36 }
0x200b   : > { %v10865_v47 = vsub.f32 %v10833_v34, %v10849_v16  ;;  %v10850_v63 = vmul.f32 %v10818_v62, %v10818_v62  ;;  %v10882_v11 = vsub.f32 %v20810_v24, %v10818_v62 }
0x200c   : > { %v10802_v27 = vpop.xlane.xlu0 %10801 }
0x200d   : > { %v10897_v40 = vadd.f32 1e-05, %v10865_v47  ;;  %v10834_v26 = vmul.f32 0.0078125, %v10802_v27 }
0x200f   : > { %16037 = vrsqrt.f32 %v10897_v40  ;;  %v10866_v44 = vsub.f32 %v10834_v26, %v10850_v63 }
0x2011   : > { %v10898_v20 = vadd.f32 1e-05, %v10866_v44 }
0x2013   : > { %16039 = vrsqrt.f32 %v10898_v20 }
0x2019   : > { %v16038_v15 = vpop.eup %16037 }
0x201a   : > { %v10929_v28 = vmul.f32 %v16038_v15, %v10881_v41 }
0x201c   : > { %v10951_v49 = vmul.f32 %v20725_v7, %v10929_v28 }
0x201d   : > { %v16040_v60 = vpop.eup %16039 }
0x201e   : > { %v10973_v35 = vadd.f32 %v20738_v29, %v10951_v49  ;;  %v10930_v18 = vmul.f32 %v16040_v60, %v10882_v11 }
0x2020   : > { %10989 = vst [vmem:[%s20756_s15 + $0x70] sm:$0xff] %v10973_v35  ;;  %v10952_v2 = vmul.f32 %v20725_v7, %v10930_v18 }
0x2022   : > { %v10974_v3 = vadd.f32 %v20738_v29, %v10952_v2 }
0x2024   : > { %10990 = vst [vmem:[%s20756_s15 + $0x78] sm:$0xff] %v10974_v3 }
0x2025   : > { %16326 = shalt.err (!%p16323_p3)
}
0x2026   : > { %s16327_s11 = scalar_lea.hbm %s20850_s29, 2048  ;;  %s16331_s24 = scalar_lea.hbm %s21229_s19, 4096 }
0x2027   : > { %p16328_p10 = scmp.ne.s32.totalorder %s20850_s29, %s16327_s11  ;;  %p16332_p12 = scmp.lt.u32.totalorder %s20850_s29, %s21229_s19 }
0x2028   : > { %p16333_p2 = scmp.lt.u32.totalorder %s16331_s24, %s16327_s11  ;;  %p16335_p6 = scmp.lt.u32.totalorder %s16327_s11, %s20850_s29 }
0x2029   : > { %p16329_p1 = pnand %p16328_p10, %p21230_p9 }
0x202a   : > { %p16334_p13 = por %p16333_p2, %p16332_p12 }
0x202b   : > { %p16330_p11 = pneg %p16329_p1 }
0x202c   : > { %p16336_p0 = por %p16335_p6, %p16334_p13 }
0x202e   : > { %p16337_p5 = pnand %p16336_p0, %p16330_p11 }
0x2030   : > { %16340 = shalt.err (!%p16337_p5)
}
0x2031   : > { %s16421_s0 = smov 128   ;;  %s16422_s5 = smov 8  }
0x2032   : > { %14851 = dma.vmem_to_hbm [thread:$0]  (%p21230_p9), %s20852_s6, 2048, %s20850_s29, %s10992_s25, %s16421_s0, %s16421_s0, %s16422_s5  }
0x2033 PF: > { %s11021_s15 = sand.u32 1, %s16387_s3   ;;  %p21231_p7 = scmp.ne.s32.totalorder %s21044_s2, 0 }
0x2034   : > { %p21232_p8 = scmp.ge.s32.totalorder %s16399_s30, 2  ;;  %s11022_s13 = scalar_lea.sflag [#allocation4], %s11021_s15 }
0x2036   : > { %p14883_p4 = pnand %p21232_p8, %p21231_p7 }
0x2038   : > { %16382 = dma.done.wait (!%p14883_p4), %s11022_s13, 2048  }
0x2039   : > { %16384 = vsyncadd (!%p14883_p4), %s11022_s13, 4294965248  ;;  %s21233_s30 = sld [smem:[#allocation26_spill]]  ;;  %s21234_s8 = sld [smem:[#allocation25_spill]] }
0x203a   : > { %s21235_s29 = sld [smem:[#allocation27_spill]]  ;;  %s21236_s3 = smov %s16391_s28 }
0x203f   : > { %p41_p3 = scmp.ge.s32.totalorder %s21233_s30, 4   ;;  %s21237_s28 = smov %s21234_s8 }
0x2041   :  { %43 = sbr.rel (!%p41_p3) target bundleno = 31 (0x1f), region = 194 }
0x2048   :  { %11027 = vsyncpa [#allocation3], 1 }
0x2049   :  { %11029 = vsyncpa [#allocation3 + $0x1], 1 }
0x204a   :  { %11030 = vsyncpa [#allocation6], 1 }
0x204b   :  { %11032 = vsyncpa [#allocation6 + $0x1], 1 }
0x204c   :  { %11033 = vsyncpa [#allocation9], 1 }
0x204d   :  { %11034 = vsyncpa [#allocation12], 1 }
0x204e   :  { %11035 = vsyncpa [#allocation15], 1 }
0x204f   :  { %11036 = vsyncpa [#allocation4], 1 }
0x2050   :  { %11038 = vsyncpa [#allocation4 + $0x1], 1 }

</bundles_post_ra>
